<compile_context>
chip_gen: v7x
topology: tpu7x:2x2x1
jax: 0.10.0
libtpu: 0.0.40
codegen_flags: <defaults>
</compile_context>

<pallas_src>
import math

import numpy as np

import jax
import jax.numpy as jnp
from jax import lax
from jax.experimental import pallas as pl
from jax.experimental.pallas import tpu as pltpu

# ---------------- config (small, consistent with the module) ----------------
VOCAB = 64
N_EMBD = 32
N_HEAD = 4
N_LAYER = 2
N_INTRA = 3                      # intra_channel_encoder = 3 Blocks
B, C, T = 2, 3, 8
HEAD_DIM = N_EMBD // N_HEAD
REDUCED_DIM = 16
SCALED_STD = 0.02 * (2 * N_LAYER) ** -0.5   # NANOGPT_SCALE_INIT

ROWS = B * C * T                 # 48 rows, processed in one kernel invocation
LOGIT_PAD = 128                  # lane-dense logits store (VOCAB zero-padded)
LN_EPS = 1e-5
NEG_INF = -1e30
GELU_K = math.sqrt(2.0 / math.pi)
N_ATTN = N_INTRA + N_LAYER       # 5 attention / MLP layers in total
N_LN = 2 * N_INTRA + 4 * N_LAYER + 1   # 15 layernorms in total

# static offsets into the packed weight slabs
W32_V, W32_PROJ, W32_FUSE = 0, 5, 10               # (12, 32, 32)
W128_ROT, W128_FC, W128_LM = 0, 5, 10              # (11, 32, 128)
RV128_BROT, RV128_BFC = 0, 5                        # (10, 1, 128)
RV32_BV, RV32_BPROJ, RV32_BMP = 0, 5, 10            # (47, 1, 32)
RV32_BFUSE, RV32_LNG, RV32_LNB = 15, 17, 32


# ---------------- the fused Pallas kernel ----------------
def _gpt_kernel(idx_ref, w32_ref, w128_ref, wmp_ref, rv128_ref, rv32_ref,
                ccat_ref, bias_ref, mfuse_ref, hmask_ref, o_ref):
    f32 = jnp.float32
    rows = o_ref.shape[0]

    hmask = hmask_ref[...]                 # (H*rows, E) per-head 0/1 feature mask
    lm = w128_ref[W128_LM]                 # (E, 128) tied wte^T, lanes >= VOCAB are zero

    # ---- token embedding: one-hot(idx) contracted against the tied wte slab ----
    vocab_iota = lax.broadcasted_iota(jnp.int32, (rows, LOGIT_PAD), 1)
    onehot = jnp.where(vocab_iota == idx_ref[...], 1.0, 0.0).astype(f32)
    x = lax.dot_general(onehot, lm, (((1,), (1,)), ((), ())),
                        preferred_element_type=f32)          # (rows, E)

    def layer_norm(h, i):
        mu = jnp.mean(h, axis=-1, keepdims=True)
        hc = h - mu
        var = jnp.mean(hc * hc, axis=-1, keepdims=True)
        return (hc * lax.rsqrt(var + LN_EPS) * rv32_ref[RV32_LNG + i]
                + rv32_ref[RV32_LNB + i])

    def attention(h, l, stage):
        # rotary slab [qa|ka|qb|kb]; RoPE even/odd gather matrices and the
        # 1/sqrt(head_dim) q-scale are folded into the weights, cos/sin are the
        # per-row constants ccat = [c1|c1|c2|c2].
        rot = (jnp.dot(h, w128_ref[W128_ROT + l], preferred_element_type=f32)
               + rv128_ref[RV128_BROT + l]) * ccat_ref[stage]
        qk = rot[:, :2 * N_EMBD] + rot[:, 2 * N_EMBD:]        # (rows, 2E) = [q | k]
        q = qk[:, :N_EMBD]
        k = qk[:, N_EMBD:]
        v = (jnp.dot(h, w32_ref[W32_V + l], preferred_element_type=f32)
             + rv32_ref[RV32_BV + l])

        # all heads at once: block-diagonal K / V via sublane tiling + 0/1 mask
        k_big = jnp.concatenate([k] * N_HEAD, axis=0) * hmask   # (H*rows, E)
        v_big = jnp.concatenate([v] * N_HEAD, axis=0) * hmask
        s = lax.dot_general(q, k_big, (((1,), (1,)), ((), ())),
                            preferred_element_type=f32) + bias_ref[stage]
        # one shared row max is valid per head (softmax is shift invariant)
        p = jnp.exp(s - jnp.max(s, axis=-1, keepdims=True))     # (rows, H*rows)
        o = jnp.dot(p, v_big, preferred_element_type=f32)       # (rows, E)
        denom = jnp.dot(p, hmask, preferred_element_type=f32)   # per-head sums, broadcast
        # approx=False keeps the 2e-3 validation margin; normalization is applied
        # to the (rows, E) output instead of the (rows, H*rows) probability tile.
        o = o * pl.reciprocal(denom, approx=False)
        return (jnp.dot(o, w32_ref[W32_PROJ + l], preferred_element_type=f32)
                + rv32_ref[RV32_BPROJ + l])

    def mlp(h, l):
        f = (jnp.dot(h, w128_ref[W128_FC + l], preferred_element_type=f32)
             + rv128_ref[RV128_BFC + l])
        f = 0.5 * f * (1.0 + jnp.tanh(GELU_K * (f + 0.044715 * f * f * f)))
        return (jnp.dot(f, wmp_ref[l], preferred_element_type=f32)
                + rv32_ref[RV32_BMP + l])

    # ---- stage 1: intra-channel encoder (rows stay in (b, c, t) order) ----
    for i in range(N_INTRA):
        x = x + attention(layer_norm(x, 2 * i), i, 0)
        x = x + mlp(layer_norm(x, 2 * i + 1), i)

    # ---- stage 2: BlockWithFusion layers (torch .view permutation folded into
    #      the stage-2 bias / RoPE tables / fusion matrix constants) ----
    for j in range(N_LAYER):
        l = N_INTRA + j
        base = 2 * N_INTRA + 4 * j
        x = x + attention(layer_norm(x, base), l, 1)
        h = layer_norm(x, base + 1)
        fused = (jnp.dot(jnp.dot(mfuse_ref[...], h, preferred_element_type=f32),
                         w32_ref[W32_FUSE + j], preferred_element_type=f32)
                 + rv32_ref[RV32_BFUSE + j])
        x = x + layer_norm(h + fused, base + 2)
        x = x + mlp(layer_norm(x, base + 3), l)

    # ---- final LayerNorm + tied lm_head, lane-dense (VOCAB zero-padded to 128) ----
    x = layer_norm(x, N_LN - 1)
    o_ref[...] = jnp.dot(x, lm, preferred_element_type=f32).astype(o_ref.dtype)


def gpt_forward_fused(packed, idx):
    b, c, t = idx.shape
    rows = b * c * t
    idx2d = idx.reshape(rows, 1).astype(jnp.int32)
    const_names = ("w32", "w128", "wmp", "rv128", "rv32",
                   "ccat", "bias", "mfuse", "hmask")
    consts = [packed[n] for n in const_names]

    def vmem():
        return pl.BlockSpec(memory_space=pltpu.MemorySpace.VMEM)

    out = pl.pallas_call(
        _gpt_kernel,
        out_shape=jax.ShapeDtypeStruct((rows, LOGIT_PAD), jnp.float32),
        in_specs=[vmem() for _ in range(1 + len(consts))],
        out_specs=vmem(),
    )(idx2d, *consts)
    return out[:, :VOCAB].reshape(b, c, t, VOCAB)


# ---------------- parameter packing (done once, outside the jitted forward) ----------------
def pack_params(params):
    f32 = np.float32
    scale = 1.0 / math.sqrt(HEAD_DIM)
    half = HEAD_DIM // 2

    # RoPE even/odd gather matrices (block-diagonal across heads).
    ma = np.zeros((HEAD_DIM, HEAD_DIM), f32)
    mb = np.zeros((HEAD_DIM, HEAD_DIM), f32)
    for j in range(half):
        ma[2 * j, j] = 1.0
        ma[2 * j, j + half] = 1.0
        mb[2 * j + 1, j] = 1.0
        mb[2 * j + 1, j + half] = 1.0
    MA = jnp.asarray(np.kron(np.eye(N_HEAD, dtype=f32), ma))
    MB = jnp.asarray(np.kron(np.eye(N_HEAD, dtype=f32), mb))

    # RoPE cos/sin per sequence position.
    freqs = np.arange(0, HEAD_DIM, 2, dtype=f32) / HEAD_DIM
    theta = 1000.0 ** (-freqs)
    ang = np.arange(T, dtype=f32)[:, None] * theta[None, :]
    c1_tab = np.concatenate([np.cos(ang), np.sin(ang)], axis=1).astype(f32)    # (T, hd)
    c2_tab = np.concatenate([-np.sin(ang), np.cos(ang)], axis=1).astype(f32)

    # Row bookkeeping for the fixed (b, c, t) row order used throughout the kernel.
    r = np.arange(ROWS)
    b_of, c_of, t_of = r // (C * T), (r // T) % C, r % T
    seq1, pos1 = b_of * C + c_of, t_of                 # stage-1 sequences: (b, c), pos = t
    fi = t_of * C + c_of                               # torch .view(B*C, T, E) flat index
    seq2, pos2 = b_of * C + fi // T, fi % T            # stage-2 (scrambled-view) sequences

    def ccat_of(pos):
        c1 = np.tile(c1_tab[pos], (1, N_HEAD))         # (ROWS, E)
        c2 = np.tile(c2_tab[pos], (1, N_HEAD))
        return np.concatenate([c1, c1, c2, c2], axis=1).astype(f32)   # (ROWS, 4E)

    def bias_of(seq, pos):
        keep = (seq[:, None] == seq[None, :]) & (pos[None, :] <= pos[:, None])
        b48 = np.where(keep, 0.0, NEG_INF).astype(f32)
        return np.tile(b48, (1, N_HEAD))               # (ROWS, N_HEAD*ROWS)

    ccat = jnp.asarray(np.stack([ccat_of(pos1), ccat_of(pos2)]))
    bias = jnp.asarray(np.stack([bias_of(seq1, pos1), bias_of(seq2, pos2)]))

    # Fusion channel-mean broadcast, folded (mbcast @ mmean) and expressed in
    # (b, c, t) row order: rows sharing (b, t) average together.
    bt = b_of * T + t_of
    mfuse = jnp.asarray((bt[:, None] == bt[None, :]).astype(f32) / C)   # (ROWS, ROWS)

    # Per-head feature mask for the block-diagonal all-head attention.
    hmask_np = np.zeros((N_HEAD * ROWS, N_EMBD), f32)
    for h in range(N_HEAD):
        hmask_np[h * ROWS:(h + 1) * ROWS, h * HEAD_DIM:(h + 1) * HEAD_DIM] = 1.0
    hmask = jnp.asarray(hmask_np)

    blocks = list(params["intra"]) + list(params["h"])
    wrot, brot, wv, bv, wpr, bpr, wfc, bfc, wmp, bmp = ([] for _ in range(10))
    for bp in blocks:
        w, b_ = bp["attn"]["c_attn"]["w"], bp["attn"]["c_attn"]["b"]
        wq, wk, wvv = w[:, :N_EMBD], w[:, N_EMBD:2 * N_EMBD], w[:, 2 * N_EMBD:]
        bq, bk, bvv = b_[:N_EMBD], b_[N_EMBD:2 * N_EMBD], b_[2 * N_EMBD:]
        wrot.append(jnp.concatenate(
            [wq @ MA * scale, wk @ MA, wq @ MB * scale, wk @ MB], axis=1))
        brot.append(jnp.concatenate(
            [bq @ MA * scale, bk @ MA, bq @ MB * scale, bk @ MB]).reshape(1, -1))
        wv.append(wvv)
        bv.append(bvv.reshape(1, -1))
        wpr.append(bp["attn"]["c_proj"]["w"])
        bpr.append(bp["attn"]["c_proj"]["b"].reshape(1, -1))
        wfc.append(bp["mlp"]["c_fc"]["w"])
        bfc.append(bp["mlp"]["c_fc"]["b"].reshape(1, -1))
        wmp.append(bp["mlp"]["c_proj"]["w"])
        bmp.append(bp["mlp"]["c_proj"]["b"].reshape(1, -1))

    # SimpleCrossChannelFusion: reduce->expand has no nonlinearity, fold exactly.
    wfu, bfu = [], []
    for bp in params["h"]:
        wr, br_ = bp["fusion"]["reduce"]["w"], bp["fusion"]["reduce"]["b"]
        we, be = bp["fusion"]["expand"]["w"], bp["fusion"]["expand"]["b"]
        wfu.append(wr @ we)
        bfu.append((br_ @ we + be).reshape(1, -1))

    ln_list = []
    for bp in params["intra"]:
        ln_list += [bp["ln1"], bp["ln2"]]
    for bp in params["h"]:
        ln_list += [bp["ln1"], bp["ln2"], bp["fusion"]["ln"], bp["ln3"]]
    ln_list.append(params["lnf"])

    lm = jnp.zeros((N_EMBD, LOGIT_PAD), jnp.float32).at[:, :VOCAB].set(params["wte"].T)

    return dict(
        w32=jnp.stack(wv + wpr + wfu),                       # (12, 32, 32)
        w128=jnp.stack(wrot + wfc + [lm]),                   # (11, 32, 128)
        wmp=jnp.stack(wmp),                                  # (5, 128, 32)
        rv128=jnp.stack(brot + bfc),                         # (10, 1, 128)
        rv32=jnp.stack(bv + bpr + bmp + bfu
                       + [l["g"].reshape(1, -1) for l in ln_list]
                       + [l["b"].reshape(1, -1) for l in ln_list]),   # (47, 1, 32)
        ccat=ccat, bias=bias, mfuse=mfuse, hmask=hmask,
    )


# ---------------- pure-JAX reference (mirrors the torch module exactly) ----------------
def _ref_ln(x, p):
    mu = jnp.mean(x, axis=-1, keepdims=True)
    xc = x - mu
    var = jnp.mean(xc * xc, axis=-1, keepdims=True)
    return xc * lax.rsqrt(var + LN_EPS) * p["g"] + p["b"]


def _ref_rope(x, seq_len):
    hd = x.shape[-1]
    freqs = jnp.arange(0, hd, 2, dtype=jnp.float32) / hd
    theta = 1000.0 ** (-freqs)
    pos = jnp.arange(seq_len, dtype=jnp.float32)
    ang = pos[:, None] * theta[None, :]
    sin, cos = jnp.sin(ang), jnp.cos(ang)
    x1, x2 = (x[..., 0::2], x[..., 1::2])
    return jnp.concatenate([x1 * cos - x2 * sin, x1 * sin + x2 * cos], axis=-1)


def _ref_attn(p, x):
    n, t, e = x.shape
    qkv = x @ p["c_attn"]["w"] + p["c_attn"]["b"]
    q, k, v = jnp.split(qkv, 3, axis=-1)
    q = q.reshape(n, t, N_HEAD, HEAD_DIM).transpose(0, 2, 1, 3)
    k = k.reshape(n, t, N_HEAD, HEAD_DIM).transpose(0, 2, 1, 3)
    v = v.reshape(n, t, N_HEAD, HEAD_DIM).transpose(0, 2, 1, 3)
    q = _ref_rope(q, t)
    k = _ref_rope(k, t)
    s = jnp.einsum("nhqd,nhkd->nhqk", q, k) / math.sqrt(HEAD_DIM)
    mask = jnp.tril(jnp.ones((t, t), bool))
    s = jnp.where(mask, s, NEG_INF)
    att = jax.nn.softmax(s, axis=-1)
    y = jnp.einsum("nhqk,nhkd->nhqd", att, v)
    y = y.transpose(0, 2, 1, 3).reshape(n, t, e)
    return y @ p["c_proj"]["w"] + p["c_proj"]["b"]


def _ref_mlp(p, x):
    h = x @ p["c_fc"]["w"] + p["c_fc"]["b"]
    h = 0.5 * h * (1.0 + jnp.tanh(math.sqrt(2.0 / math.pi) * (h + 0.044715 * h ** 3)))
    return h @ p["c_proj"]["w"] + p["c_proj"]["b"]


def _ref_block(p, x):
    x = x + _ref_attn(p["attn"], _ref_ln(x, p["ln1"]))
    x = x + _ref_mlp(p["mlp"], _ref_ln(x, p["ln2"]))
    return x


def _ref_fusion(p, x):
    fused = jnp.mean(x, axis=2, keepdims=True)
    fused = fused @ p["reduce"]["w"] + p["reduce"]["b"]
    fused = fused @ p["expand"]["w"] + p["expand"]["b"]
    return _ref_ln(x + fused, p["ln"])


def _ref_block_fusion(p, x):
    b, t, c, e = x.shape
    xr = x.reshape(b * c, t, e)
    xr = xr + _ref_attn(p["attn"], _ref_ln(xr, p["ln1"]))
    x = xr.reshape(b, t, c, e)
    x = x + _ref_fusion(p["fusion"], _ref_ln(x, p["ln2"]))
    xr = x.reshape(b * c, t, e)
    xr = xr + _ref_mlp(p["mlp"], _ref_ln(xr, p["ln3"]))
    return xr.reshape(b, t, c, e)


def ref_forward(params, idx):
    b, c, t = idx.shape
    tok = params["wte"][idx]                 # (B, C, T, E)
    x = tok.transpose(0, 2, 1, 3)            # (B, T, C, E)
    outs = []
    for ch in range(c):
        xc = x[:, :, ch, :]
        for bp in params["intra"]:
            xc = _ref_block(bp, xc)
        outs.append(xc)
    x = jnp.stack(outs, axis=2)
    for bp in params["h"]:
        x = _ref_block_fusion(bp, x)
    x = x.transpose(0, 2, 1, 3).reshape(b * c, t, N_EMBD)
    x = _ref_ln(x, params["lnf"])
    logits = x @ params["wte"].T
    return logits.reshape(b, c, t, VOCAB)


# ---------------- deterministic parameter init ----------------
def init_linear_p(key, din, dout, std):
    return {"w": std * jax.random.normal(key, (din, dout), jnp.float32),
            "b": jnp.zeros((dout,), jnp.float32)}


def init_ln():
    return {"g": jnp.ones((N_EMBD,), jnp.float32), "b": jnp.zeros((N_EMBD,), jnp.float32)}


def init_attn(key):
    k1, k2 = jax.random.split(key)
    return {"c_attn": init_linear_p(k1, N_EMBD, 3 * N_EMBD, 0.02),
            "c_proj": init_linear_p(k2, N_EMBD, N_EMBD, SCALED_STD)}


def init_mlp(key):
    k1, k2 = jax.random.split(key)
    return {"c_fc": init_linear_p(k1, N_EMBD, 4 * N_EMBD, 0.02),
            "c_proj": init_linear_p(k2, 4 * N_EMBD, N_EMBD, SCALED_STD)}


def init_block(key):
    k1, k2 = jax.random.split(key)
    return {"ln1": init_ln(), "attn": init_attn(k1),
            "ln2": init_ln(), "mlp": init_mlp(k2)}


def init_fusion(key):
    k1, k2 = jax.random.split(key)
    return {"reduce": init_linear_p(k1, N_EMBD, REDUCED_DIM, 0.02),
            "expand": init_linear_p(k2, REDUCED_DIM, N_EMBD, 0.02),
            "ln": init_ln()}


def init_block_fusion(key):
    k1, k2, k3 = jax.random.split(key, 3)
    return {"ln1": init_ln(), "attn": init_attn(k1),
            "ln2": init_ln(), "fusion": init_fusion(k2),
            "ln3": init_ln(), "mlp": init_mlp(k3)}


def init_params(key):
    keys = jax.random.split(key, 1 + N_LAYER + N_INTRA)
    wte = 0.02 * jax.random.normal(keys[0], (VOCAB, N_EMBD), jnp.float32)
    h = [init_block_fusion(keys[1 + i]) for i in range(N_LAYER)]
    intra = [init_block(keys[1 + N_LAYER + i]) for i in range(N_INTRA)]
    return {"wte": wte, "h": h, "lnf": init_ln(), "intra": intra}


# ---------------- main ----------------
if __name__ == "__main__":
    key = jax.random.PRNGKey(0)
    kp, kd = jax.random.split(key)
    params = init_params(kp)
    idx = jax.random.randint(kd, (B, C, T), 0, VOCAB, dtype=jnp.int32)

    packed = pack_params(params)                       # folding done once, offline
    fused = jax.jit(gpt_forward_fused)
    logits = fused(packed, idx)
    jax.block_until_ready(logits)

    assert logits.shape == (B, C, T, VOCAB)
    assert bool(jnp.all(jnp.isfinite(logits)))

    # validate the fused kernel against a pure-JAX reference of the torch module
    ref = jax.jit(ref_forward)(params, idx)
    err = float(jnp.max(jnp.abs(logits - ref)))
    assert err < 2e-3, f"fused kernel mismatch vs reference: {err}"

    print("KERNEL_OK")
</pallas_src>

<mosaic_0001>
module attributes {stable_mosaic.version = 11 : i64} {
  func.func @_gpt_kernel(%arg0: memref<48x1xi32, #tpu.memory_space<vmem>>, %arg1: memref<12x32x32xf32, #tpu.memory_space<vmem>>, %arg2: memref<11x32x128xf32, #tpu.memory_space<vmem>>, %arg3: memref<5x128x32xf32, #tpu.memory_space<vmem>>, %arg4: memref<10x1x128xf32, #tpu.memory_space<vmem>>, %arg5: memref<47x1x32xf32, #tpu.memory_space<vmem>>, %arg6: memref<2x48x128xf32, #tpu.memory_space<vmem>>, %arg7: memref<2x48x192xf32, #tpu.memory_space<vmem>>, %arg8: memref<48x48xf32, #tpu.memory_space<vmem>>, %arg9: memref<192x32xf32, #tpu.memory_space<vmem>>, %arg10: memref<48x128xf32, #tpu.memory_space<vmem>>) attributes {dimension_semantics = [], scalar_prefetch = 0 : i64, scratch_operands = 0 : i64, tpu.core_type = #tpu.core_type<tc>} {
    %c0 = arith.constant 0 : index
    %c0_0 = arith.constant 0 : index
    %0 = vector.load %arg9[%c0, %c0_0] : memref<192x32xf32, #tpu.memory_space<vmem>>, vector<192x32xf32>
    %c10 = arith.constant 10 : index
    %c0_1 = arith.constant 0 : index
    %c0_2 = arith.constant 0 : index
    %1 = vector.load %arg2[%c10, %c0_1, %c0_2] : memref<11x32x128xf32, #tpu.memory_space<vmem>>, vector<1x32x128xf32>
    %2 = vector.shape_cast %1 : vector<1x32x128xf32> to vector<32x128xf32>
    %3 = tpu.iota {dimensions = array<i32: 1>} : vector<48x128xi32>
    %c0_3 = arith.constant 0 : index
    %c0_4 = arith.constant 0 : index
    %4 = vector.load %arg0[%c0_3, %c0_4] : memref<48x1xi32, #tpu.memory_space<vmem>>, vector<48x1xi32>
    %5 = vector.broadcast %4 : vector<48x1xi32> to vector<48x128xi32>
    %6 = arith.cmpi eq, %3, %5 : vector<48x128xi32>
    %cst = arith.constant 1.000000e+00 : f32
    %cst_5 = arith.constant 0.000000e+00 : f32
    %7 = vector.broadcast %cst : f32 to vector<48x128xf32>
    %8 = vector.broadcast %cst_5 : f32 to vector<48x128xf32>
    %9 = arith.select %6, %7, %8 : vector<48x128xi1>, vector<48x128xf32>
    %cst_6 = arith.constant dense<0.000000e+00> : vector<48x32xf32>
    %10 = tpu.matmul %9, %2, %cst_6 {dimension_numbers = #tpu.dot_dimension_numbers<[1], [1], [0], [0], [0, 0, 1, 0], [], []>} : vector<48x128xf32>, vector<32x128xf32>, vector<48x32xf32> -> vector<48x32xf32>
    %cst_7 = arith.constant dense<0.000000e+00> : vector<48xf32>
    %11 = vector.multi_reduction <add>, %10, %cst_7 [1] : vector<48x32xf32> to vector<48xf32>
    %12 = vector.shape_cast %11 : vector<48xf32> to vector<48x1xf32>
    %cst_8 = arith.constant 3.200000e+01 : f32
    %13 = vector.broadcast %cst_8 : f32 to vector<48x1xf32>
    %14 = arith.divf %12, %13 : vector<48x1xf32>
    %15 = vector.broadcast %14 : vector<48x1xf32> to vector<48x32xf32>
    %16 = arith.subf %10, %15 : vector<48x32xf32>
    %17 = arith.mulf %16, %16 : vector<48x32xf32>
    %cst_9 = arith.constant dense<0.000000e+00> : vector<48xf32>
    %18 = vector.multi_reduction <add>, %17, %cst_9 [1] : vector<48x32xf32> to vector<48xf32>
    %19 = vector.shape_cast %18 : vector<48xf32> to vector<48x1xf32>
    %cst_10 = arith.constant 3.200000e+01 : f32
    %20 = vector.broadcast %cst_10 : f32 to vector<48x1xf32>
    %21 = arith.divf %19, %20 : vector<48x1xf32>
    %cst_11 = arith.constant 9.99999974E-6 : f32
    %22 = vector.broadcast %cst_11 : f32 to vector<48x1xf32>
    %23 = arith.addf %21, %22 : vector<48x1xf32>
    %24 = math.rsqrt %23 : vector<48x1xf32>
    %25 = vector.broadcast %24 : vector<48x1xf32> to vector<48x32xf32>
    %26 = arith.mulf %16, %25 : vector<48x32xf32>
    %c17 = arith.constant 17 : index
    %c0_12 = arith.constant 0 : index
    %c0_13 = arith.constant 0 : index
    %27 = vector.load %arg5[%c17, %c0_12, %c0_13] : memref<47x1x32xf32, #tpu.memory_space<vmem>>, vector<1x1x32xf32>
    %28 = vector.shape_cast %27 : vector<1x1x32xf32> to vector<1x32xf32>
    %29 = vector.broadcast %28 : vector<1x32xf32> to vector<48x32xf32>
    %30 = arith.mulf %26, %29 : vector<48x32xf32>
    %c32 = arith.constant 32 : index
    %c0_14 = arith.constant 0 : index
    %c0_15 = arith.constant 0 : index
    %31 = vector.load %arg5[%c32, %c0_14, %c0_15] : memref<47x1x32xf32, #tpu.memory_space<vmem>>, vector<1x1x32xf32>
    %32 = vector.shape_cast %31 : vector<1x1x32xf32> to vector<1x32xf32>
    %33 = vector.broadcast %32 : vector<1x32xf32> to vector<48x32xf32>
    %34 = arith.addf %30, %33 : vector<48x32xf32>
    %c0_16 = arith.constant 0 : index
    %c0_17 = arith.constant 0 : index
    %c0_18 = arith.constant 0 : index
    %35 = vector.load %arg2[%c0_16, %c0_17, %c0_18] : memref<11x32x128xf32, #tpu.memory_space<vmem>>, vector<1x32x128xf32>
    %36 = vector.shape_cast %35 : vector<1x32x128xf32> to vector<32x128xf32>
    %cst_19 = arith.constant dense<0.000000e+00> : vector<48x128xf32>
    %37 = tpu.matmul %34, %36, %cst_19 {dimension_numbers = #tpu.dot_dimension_numbers<[1], [0], [0], [1], [0, 0, 1, 1], [], []>} : vector<48x32xf32>, vector<32x128xf32>, vector<48x128xf32> -> vector<48x128xf32>
    %c0_20 = arith.constant 0 : index
    %c0_21 = arith.constant 0 : index
    %c0_22 = arith.constant 0 : index
    %38 = vector.load %arg4[%c0_20, %c0_21, %c0_22] : memref<10x1x128xf32, #tpu.memory_space<vmem>>, vector<1x1x128xf32>
    %39 = vector.shape_cast %38 : vector<1x1x128xf32> to vector<1x128xf32>
    %40 = vector.broadcast %39 : vector<1x128xf32> to vector<48x128xf32>
    %41 = arith.addf %37, %40 : vector<48x128xf32>
    %c0_23 = arith.constant 0 : index
    %c0_24 = arith.constant 0 : index
    %c0_25 = arith.constant 0 : index
    %42 = vector.load %arg6[%c0_23, %c0_24, %c0_25] : memref<2x48x128xf32, #tpu.memory_space<vmem>>, vector<1x48x128xf32>
    %43 = vector.shape_cast %42 : vector<1x48x128xf32> to vector<48x128xf32>
    %44 = arith.mulf %41, %43 : vector<48x128xf32>
    %45 = vector.extract_strided_slice %44 {offsets = [0, 0], sizes = [48, 64], strides = [1, 1]} : vector<48x128xf32> to vector<48x64xf32>
    %46 = vector.extract_strided_slice %44 {offsets = [0, 64], sizes = [48, 64], strides = [1, 1]} : vector<48x128xf32> to vector<48x64xf32>
    %47 = arith.addf %45, %46 : vector<48x64xf32>
    %48 = vector.extract_strided_slice %47 {offsets = [0, 0], sizes = [48, 32], strides = [1, 1]} : vector<48x64xf32> to vector<48x32xf32>
    %49 = vector.extract_strided_slice %47 {offsets = [0, 32], sizes = [48, 32], strides = [1, 1]} : vector<48x64xf32> to vector<48x32xf32>
    %c0_26 = arith.constant 0 : index
    %c0_27 = arith.constant 0 : index
    %c0_28 = arith.constant 0 : index
    %50 = vector.load %arg1[%c0_26, %c0_27, %c0_28] : memref<12x32x32xf32, #tpu.memory_space<vmem>>, vector<1x32x32xf32>
    %51 = vector.shape_cast %50 : vector<1x32x32xf32> to vector<32x32xf32>
    %cst_29 = arith.constant dense<0.000000e+00> : vector<48x32xf32>
    %52 = tpu.matmul %34, %51, %cst_29 {dimension_numbers = #tpu.dot_dimension_numbers<[1], [0], [0], [1], [0, 0, 1, 1], [], []>} : vector<48x32xf32>, vector<32x32xf32>, vector<48x32xf32> -> vector<48x32xf32>
    %c0_30 = arith.constant 0 : index
    %c0_31 = arith.constant 0 : index
    %c0_32 = arith.constant 0 : index
    %53 = vector.load %arg5[%c0_30, %c0_31, %c0_32] : memref<47x1x32xf32, #tpu.memory_space<vmem>>, vector<1x1x32xf32>
    %54 = vector.shape_cast %53 : vector<1x1x32xf32> to vector<1x32xf32>
    %55 = vector.broadcast %54 : vector<1x32xf32> to vector<48x32xf32>
    %56 = arith.addf %52, %55 : vector<48x32xf32>
    %57 = tpu.concatenate %49, %49, %49, %49 in 0 : vector<48x32xf32>, vector<48x32xf32>, vector<48x32xf32>, vector<48x32xf32> -> vector<192x32xf32>
    %58 = arith.mulf %57, %0 : vector<192x32xf32>
    %59 = tpu.concatenate %56, %56, %56, %56 in 0 : vector<48x32xf32>, vector<48x32xf32>, vector<48x32xf32>, vector<48x32xf32> -> vector<192x32xf32>
    %60 = arith.mulf %59, %0 : vector<192x32xf32>
    %cst_33 = arith.constant dense<0.000000e+00> : vector<48x192xf32>
    %61 = tpu.matmul %48, %58, %cst_33 {dimension_numbers = #tpu.dot_dimension_numbers<[1], [1], [0], [0], [0, 0, 1, 0], [], []>} : vector<48x32xf32>, vector<192x32xf32>, vector<48x192xf32> -> vector<48x192xf32>
    %c0_34 = arith.constant 0 : index
    %c0_35 = arith.constant 0 : index
    %c0_36 = arith.constant 0 : index
    %62 = vector.load %arg7[%c0_34, %c0_35, %c0_36] : memref<2x48x192xf32, #tpu.memory_space<vmem>>, vector<1x48x192xf32>
    %63 = vector.shape_cast %62 : vector<1x48x192xf32> to vector<48x192xf32>
    %64 = arith.addf %61, %63 : vector<48x192xf32>
    %cst_37 = arith.constant dense<0xFF800000> : vector<48xf32>
    %65 = vector.multi_reduction <maximumf>, %64, %cst_37 [1] : vector<48x192xf32> to vector<48xf32>
    %66 = vector.shape_cast %65 : vector<48xf32> to vector<48x1xf32>
    %67 = vector.broadcast %66 : vector<48x1xf32> to vector<48x192xf32>
    %68 = arith.subf %64, %67 : vector<48x192xf32>
    %69 = math.exp %68 : vector<48x192xf32>
    %cst_38 = arith.constant dense<0.000000e+00> : vector<48x32xf32>
    %70 = tpu.matmul %69, %60, %cst_38 {dimension_numbers = #tpu.dot_dimension_numbers<[1], [0], [0], [1], [0, 0, 1, 1], [], []>} : vector<48x192xf32>, vector<192x32xf32>, vector<48x32xf32> -> vector<48x32xf32>
    %cst_39 = arith.constant dense<0.000000e+00> : vector<48x32xf32>
    %71 = tpu.matmul %69, %0, %cst_39 {dimension_numbers = #tpu.dot_dimension_numbers<[1], [0], [0], [1], [0, 0, 1, 1], [], []>} : vector<48x192xf32>, vector<192x32xf32>, vector<48x32xf32> -> vector<48x32xf32>
    %72 = tpu.reciprocal %71 : vector<48x32xf32> -> vector<48x32xf32>
    %73 = arith.mulf %70, %72 : vector<48x32xf32>
    %c5 = arith.constant 5 : index
    %c0_40 = arith.constant 0 : index
    %c0_41 = arith.constant 0 : index
    %74 = vector.load %arg1[%c5, %c0_40, %c0_41] : memref<12x32x32xf32, #tpu.memory_space<vmem>>, vector<1x32x32xf32>
    %75 = vector.shape_cast %74 : vector<1x32x32xf32> to vector<32x32xf32>
    %cst_42 = arith.constant dense<0.000000e+00> : vector<48x32xf32>
    %76 = tpu.matmul %73, %75, %cst_42 {dimension_numbers = #tpu.dot_dimension_numbers<[1], [0], [0], [1], [0, 0, 1, 1], [], []>} : vector<48x32xf32>, vector<32x32xf32>, vector<48x32xf32> -> vector<48x32xf32>
    %c5_43 = arith.constant 5 : index
    %c0_44 = arith.constant 0 : index
    %c0_45 = arith.constant 0 : index
    %77 = vector.load %arg5[%c5_43, %c0_44, %c0_45] : memref<47x1x32xf32, #tpu.memory_space<vmem>>, vector<1x1x32xf32>
    %78 = vector.shape_cast %77 : vector<1x1x32xf32> to vector<1x32xf32>
    %79 = vector.broadcast %78 : vector<1x32xf32> to vector<48x32xf32>
    %80 = arith.addf %76, %79 : vector<48x32xf32>
    %81 = arith.addf %10, %80 : vector<48x32xf32>
    %cst_46 = arith.constant dense<0.000000e+00> : vector<48xf32>
    %82 = vector.multi_reduction <add>, %81, %cst_46 [1] : vector<48x32xf32> to vector<48xf32>
    %83 = vector.shape_cast %82 : vector<48xf32> to vector<48x1xf32>
    %cst_47 = arith.constant 3.200000e+01 : f32
    %84 = vector.broadcast %cst_47 : f32 to vector<48x1xf32>
    %85 = arith.divf %83, %84 : vector<48x1xf32>
    %86 = vector.broadcast %85 : vector<48x1xf32> to vector<48x32xf32>
    %87 = arith.subf %81, %86 : vector<48x32xf32>
    %88 = arith.mulf %87, %87 : vector<48x32xf32>
    %cst_48 = arith.constant dense<0.000000e+00> : vector<48xf32>
    %89 = vector.multi_reduction <add>, %88, %cst_48 [1] : vector<48x32xf32> to vector<48xf32>
    %90 = vector.shape_cast %89 : vector<48xf32> to vector<48x1xf32>
    %cst_49 = arith.constant 3.200000e+01 : f32
    %91 = vector.broadcast %cst_49 : f32 to vector<48x1xf32>
    %92 = arith.divf %90, %91 : vector<48x1xf32>
    %cst_50 = arith.constant 9.99999974E-6 : f32
    %93 = vector.broadcast %cst_50 : f32 to vector<48x1xf32>
    %94 = arith.addf %92, %93 : vector<48x1xf32>
    %95 = math.rsqrt %94 : vector<48x1xf32>
    %96 = vector.broadcast %95 : vector<48x1xf32> to vector<48x32xf32>
    %97 = arith.mulf %87, %96 : vector<48x32xf32>
    %c18 = arith.constant 18 : index
    %c0_51 = arith.constant 0 : index
    %c0_52 = arith.constant 0 : index
    %98 = vector.load %arg5[%c18, %c0_51, %c0_52] : memref<47x1x32xf32, #tpu.memory_space<vmem>>, vector<1x1x32xf32>
    %99 = vector.shape_cast %98 : vector<1x1x32xf32> to vector<1x32xf32>
    %100 = vector.broadcast %99 : vector<1x32xf32> to vector<48x32xf32>
    %101 = arith.mulf %97, %100 : vector<48x32xf32>
    %c33 = arith.constant 33 : index
    %c0_53 = arith.constant 0 : index
    %c0_54 = arith.constant 0 : index
    %102 = vector.load %arg5[%c33, %c0_53, %c0_54] : memref<47x1x32xf32, #tpu.memory_space<vmem>>, vector<1x1x32xf32>
    %103 = vector.shape_cast %102 : vector<1x1x32xf32> to vector<1x32xf32>
    %104 = vector.broadcast %103 : vector<1x32xf32> to vector<48x32xf32>
    %105 = arith.addf %101, %104 : vector<48x32xf32>
    %c5_55 = arith.constant 5 : index
    %c0_56 = arith.constant 0 : index
    %c0_57 = arith.constant 0 : index
    %106 = vector.load %arg2[%c5_55, %c0_56, %c0_57] : memref<11x32x128xf32, #tpu.memory_space<vmem>>, vector<1x32x128xf32>
    %107 = vector.shape_cast %106 : vector<1x32x128xf32> to vector<32x128xf32>
    %cst_58 = arith.constant dense<0.000000e+00> : vector<48x128xf32>
    %108 = tpu.matmul %105, %107, %cst_58 {dimension_numbers = #tpu.dot_dimension_numbers<[1], [0], [0], [1], [0, 0, 1, 1], [], []>} : vector<48x32xf32>, vector<32x128xf32>, vector<48x128xf32> -> vector<48x128xf32>
    %c5_59 = arith.constant 5 : index
    %c0_60 = arith.constant 0 : index
    %c0_61 = arith.constant 0 : index
    %109 = vector.load %arg4[%c5_59, %c0_60, %c0_61] : memref<10x1x128xf32, #tpu.memory_space<vmem>>, vector<1x1x128xf32>
    %110 = vector.shape_cast %109 : vector<1x1x128xf32> to vector<1x128xf32>
    %111 = vector.broadcast %110 : vector<1x128xf32> to vector<48x128xf32>
    %112 = arith.addf %108, %111 : vector<48x128xf32>
    %cst_62 = arith.constant 5.000000e-01 : f32
    %113 = vector.broadcast %cst_62 : f32 to vector<48x128xf32>
    %114 = arith.mulf %113, %112 : vector<48x128xf32>
    %cst_63 = arith.constant 4.471500e-02 : f32
    %115 = vector.broadcast %cst_63 : f32 to vector<48x128xf32>
    %116 = arith.mulf %115, %112 : vector<48x128xf32>
    %117 = arith.mulf %116, %112 : vector<48x128xf32>
    %118 = arith.mulf %117, %112 : vector<48x128xf32>
    %119 = arith.addf %112, %118 : vector<48x128xf32>
    %cst_64 = arith.constant 0.797884583 : f32
    %120 = vector.broadcast %cst_64 : f32 to vector<48x128xf32>
    %121 = arith.mulf %120, %119 : vector<48x128xf32>
    %122 = math.tanh %121 : vector<48x128xf32>
    %cst_65 = arith.constant 1.000000e+00 : f32
    %123 = vector.broadcast %cst_65 : f32 to vector<48x128xf32>
    %124 = arith.addf %123, %122 : vector<48x128xf32>
    %125 = arith.mulf %114, %124 : vector<48x128xf32>
    %c0_66 = arith.constant 0 : index
    %c0_67 = arith.constant 0 : index
    %c0_68 = arith.constant 0 : index
    %126 = vector.load %arg3[%c0_66, %c0_67, %c0_68] : memref<5x128x32xf32, #tpu.memory_space<vmem>>, vector<1x128x32xf32>
    %127 = vector.shape_cast %126 : vector<1x128x32xf32> to vector<128x32xf32>
    %cst_69 = arith.constant dense<0.000000e+00> : vector<48x32xf32>
    %128 = tpu.matmul %125, %127, %cst_69 {dimension_numbers = #tpu.dot_dimension_numbers<[1], [0], [0], [1], [0, 0, 1, 1], [], []>} : vector<48x128xf32>, vector<128x32xf32>, vector<48x32xf32> -> vector<48x32xf32>
    %c10_70 = arith.constant 10 : index
    %c0_71 = arith.constant 0 : index
    %c0_72 = arith.constant 0 : index
    %129 = vector.load %arg5[%c10_70, %c0_71, %c0_72] : memref<47x1x32xf32, #tpu.memory_space<vmem>>, vector<1x1x32xf32>
    %130 = vector.shape_cast %129 : vector<1x1x32xf32> to vector<1x32xf32>
    %131 = vector.broadcast %130 : vector<1x32xf32> to vector<48x32xf32>
    %132 = arith.addf %128, %131 : vector<48x32xf32>
    %133 = arith.addf %81, %132 : vector<48x32xf32>
    %cst_73 = arith.constant dense<0.000000e+00> : vector<48xf32>
    %134 = vector.multi_reduction <add>, %133, %cst_73 [1] : vector<48x32xf32> to vector<48xf32>
    %135 = vector.shape_cast %134 : vector<48xf32> to vector<48x1xf32>
    %cst_74 = arith.constant 3.200000e+01 : f32
    %136 = vector.broadcast %cst_74 : f32 to vector<48x1xf32>
    %137 = arith.divf %135, %136 : vector<48x1xf32>
    %138 = vector.broadcast %137 : vector<48x1xf32> to vector<48x32xf32>
    %139 = arith.subf %133, %138 : vector<48x32xf32>
    %140 = arith.mulf %139, %139 : vector<48x32xf32>
    %cst_75 = arith.constant dense<0.000000e+00> : vector<48xf32>
    %141 = vector.multi_reduction <add>, %140, %cst_75 [1] : vector<48x32xf32> to vector<48xf32>
    %142 = vector.shape_cast %141 : vector<48xf32> to vector<48x1xf32>
    %cst_76 = arith.constant 3.200000e+01 : f32
    %143 = vector.broadcast %cst_76 : f32 to vector<48x1xf32>
    %144 = arith.divf %142, %143 : vector<48x1xf32>
    %cst_77 = arith.constant 9.99999974E-6 : f32
    %145 = vector.broadcast %cst_77 : f32 to vector<48x1xf32>
    %146 = arith.addf %144, %145 : vector<48x1xf32>
    %147 = math.rsqrt %146 : vector<48x1xf32>
    %148 = vector.broadcast %147 : vector<48x1xf32> to vector<48x32xf32>
    %149 = arith.mulf %139, %148 : vector<48x32xf32>
    %c19 = arith.constant 19 : index
    %c0_78 = arith.constant 0 : index
    %c0_79 = arith.constant 0 : index
    %150 = vector.load %arg5[%c19, %c0_78, %c0_79] : memref<47x1x32xf32, #tpu.memory_space<vmem>>, vector<1x1x32xf32>
    %151 = vector.shape_cast %150 : vector<1x1x32xf32> to vector<1x32xf32>
    %152 = vector.broadcast %151 : vector<1x32xf32> to vector<48x32xf32>
    %153 = arith.mulf %149, %152 : vector<48x32xf32>
    %c34 = arith.constant 34 : index
    %c0_80 = arith.constant 0 : index
    %c0_81 = arith.constant 0 : index
    %154 = vector.load %arg5[%c34, %c0_80, %c0_81] : memref<47x1x32xf32, #tpu.memory_space<vmem>>, vector<1x1x32xf32>
    %155 = vector.shape_cast %154 : vector<1x1x32xf32> to vector<1x32xf32>
    %156 = vector.broadcast %155 : vector<1x32xf32> to vector<48x32xf32>
    %157 = arith.addf %153, %156 : vector<48x32xf32>
    %c1 = arith.constant 1 : index
    %c0_82 = arith.constant 0 : index
    %c0_83 = arith.constant 0 : index
    %158 = vector.load %arg2[%c1, %c0_82, %c0_83] : memref<11x32x128xf32, #tpu.memory_space<vmem>>, vector<1x32x128xf32>
    %159 = vector.shape_cast %158 : vector<1x32x128xf32> to vector<32x128xf32>
    %cst_84 = arith.constant dense<0.000000e+00> : vector<48x128xf32>
    %160 = tpu.matmul %157, %159, %cst_84 {dimension_numbers = #tpu.dot_dimension_numbers<[1], [0], [0], [1], [0, 0, 1, 1], [], []>} : vector<48x32xf32>, vector<32x128xf32>, vector<48x128xf32> -> vector<48x128xf32>
    %c1_85 = arith.constant 1 : index
    %c0_86 = arith.constant 0 : index
    %c0_87 = arith.constant 0 : index
    %161 = vector.load %arg4[%c1_85, %c0_86, %c0_87] : memref<10x1x128xf32, #tpu.memory_space<vmem>>, vector<1x1x128xf32>
    %162 = vector.shape_cast %161 : vector<1x1x128xf32> to vector<1x128xf32>
    %163 = vector.broadcast %162 : vector<1x128xf32> to vector<48x128xf32>
    %164 = arith.addf %160, %163 : vector<48x128xf32>
    %c0_88 = arith.constant 0 : index
    %c0_89 = arith.constant 0 : index
    %c0_90 = arith.constant 0 : index
    %165 = vector.load %arg6[%c0_88, %c0_89, %c0_90] : memref<2x48x128xf32, #tpu.memory_space<vmem>>, vector<1x48x128xf32>
    %166 = vector.shape_cast %165 : vector<1x48x128xf32> to vector<48x128xf32>
    %167 = arith.mulf %164, %166 : vector<48x128xf32>
    %168 = vector.extract_strided_slice %167 {offsets = [0, 0], sizes = [48, 64], strides = [1, 1]} : vector<48x128xf32> to vector<48x64xf32>
    %169 = vector.extract_strided_slice %167 {offsets = [0, 64], sizes = [48, 64], strides = [1, 1]} : vector<48x128xf32> to vector<48x64xf32>
    %170 = arith.addf %168, %169 : vector<48x64xf32>
    %171 = vector.extract_strided_slice %170 {offsets = [0, 0], sizes = [48, 32], strides = [1, 1]} : vector<48x64xf32> to vector<48x32xf32>
    %172 = vector.extract_strided_slice %170 {offsets = [0, 32], sizes = [48, 32], strides = [1, 1]} : vector<48x64xf32> to vector<48x32xf32>
    %c1_91 = arith.constant 1 : index
    %c0_92 = arith.constant 0 : index
    %c0_93 = arith.constant 0 : index
    %173 = vector.load %arg1[%c1_91, %c0_92, %c0_93] : memref<12x32x32xf32, #tpu.memory_space<vmem>>, vector<1x32x32xf32>
    %174 = vector.shape_cast %173 : vector<1x32x32xf32> to vector<32x32xf32>
    %cst_94 = arith.constant dense<0.000000e+00> : vector<48x32xf32>
    %175 = tpu.matmul %157, %174, %cst_94 {dimension_numbers = #tpu.dot_dimension_numbers<[1], [0], [0], [1], [0, 0, 1, 1], [], []>} : vector<48x32xf32>, vector<32x32xf32>, vector<48x32xf32> -> vector<48x32xf32>
    %c1_95 = arith.constant 1 : index
    %c0_96 = arith.constant 0 : index
    %c0_97 = arith.constant 0 : index
    %176 = vector.load %arg5[%c1_95, %c0_96, %c0_97] : memref<47x1x32xf32, #tpu.memory_space<vmem>>, vector<1x1x32xf32>
    %177 = vector.shape_cast %176 : vector<1x1x32xf32> to vector<1x32xf32>
    %178 = vector.broadcast %177 : vector<1x32xf32> to vector<48x32xf32>
    %179 = arith.addf %175, %178 : vector<48x32xf32>
    %180 = tpu.concatenate %172, %172, %172, %172 in 0 : vector<48x32xf32>, vector<48x32xf32>, vector<48x32xf32>, vector<48x32xf32> -> vector<192x32xf32>
    %181 = arith.mulf %180, %0 : vector<192x32xf32>
    %182 = tpu.concatenate %179, %179, %179, %179 in 0 : vector<48x32xf32>, vector<48x32xf32>, vector<48x32xf32>, vector<48x32xf32> -> vector<192x32xf32>
    %183 = arith.mulf %182, %0 : vector<192x32xf32>
    %cst_98 = arith.constant dense<0.000000e+00> : vector<48x192xf32>
    %184 = tpu.matmul %171, %181, %cst_98 {dimension_numbers = #tpu.dot_dimension_numbers<[1], [1], [0], [0], [0, 0, 1, 0], [], []>} : vector<48x32xf32>, vector<192x32xf32>, vector<48x192xf32> -> vector<48x192xf32>
    %c0_99 = arith.constant 0 : index
    %c0_100 = arith.constant 0 : index
    %c0_101 = arith.constant 0 : index
    %185 = vector.load %arg7[%c0_99, %c0_100, %c0_101] : memref<2x48x192xf32, #tpu.memory_space<vmem>>, vector<1x48x192xf32>
    %186 = vector.shape_cast %185 : vector<1x48x192xf32> to vector<48x192xf32>
    %187 = arith.addf %184, %186 : vector<48x192xf32>
    %cst_102 = arith.constant dense<0xFF800000> : vector<48xf32>
    %188 = vector.multi_reduction <maximumf>, %187, %cst_102 [1] : vector<48x192xf32> to vector<48xf32>
    %189 = vector.shape_cast %188 : vector<48xf32> to vector<48x1xf32>
    %190 = vector.broadcast %189 : vector<48x1xf32> to vector<48x192xf32>
    %191 = arith.subf %187, %190 : vector<48x192xf32>
    %192 = math.exp %191 : vector<48x192xf32>
    %cst_103 = arith.constant dense<0.000000e+00> : vector<48x32xf32>
    %193 = tpu.matmul %192, %183, %cst_103 {dimension_numbers = #tpu.dot_dimension_numbers<[1], [0], [0], [1], [0, 0, 1, 1], [], []>} : vector<48x192xf32>, vector<192x32xf32>, vector<48x32xf32> -> vector<48x32xf32>
    %cst_104 = arith.constant dense<0.000000e+00> : vector<48x32xf32>
    %194 = tpu.matmul %192, %0, %cst_104 {dimension_numbers = #tpu.dot_dimension_numbers<[1], [0], [0], [1], [0, 0, 1, 1], [], []>} : vector<48x192xf32>, vector<192x32xf32>, vector<48x32xf32> -> vector<48x32xf32>
    %195 = tpu.reciprocal %194 : vector<48x32xf32> -> vector<48x32xf32>
    %196 = arith.mulf %193, %195 : vector<48x32xf32>
    %c6 = arith.constant 6 : index
    %c0_105 = arith.constant 0 : index
    %c0_106 = arith.constant 0 : index
    %197 = vector.load %arg1[%c6, %c0_105, %c0_106] : memref<12x32x32xf32, #tpu.memory_space<vmem>>, vector<1x32x32xf32>
    %198 = vector.shape_cast %197 : vector<1x32x32xf32> to vector<32x32xf32>
    %cst_107 = arith.constant dense<0.000000e+00> : vector<48x32xf32>
    %199 = tpu.matmul %196, %198, %cst_107 {dimension_numbers = #tpu.dot_dimension_numbers<[1], [0], [0], [1], [0, 0, 1, 1], [], []>} : vector<48x32xf32>, vector<32x32xf32>, vector<48x32xf32> -> vector<48x32xf32>
    %c6_108 = arith.constant 6 : index
    %c0_109 = arith.constant 0 : index
    %c0_110 = arith.constant 0 : index
    %200 = vector.load %arg5[%c6_108, %c0_109, %c0_110] : memref<47x1x32xf32, #tpu.memory_space<vmem>>, vector<1x1x32xf32>
    %201 = vector.shape_cast %200 : vector<1x1x32xf32> to vector<1x32xf32>
    %202 = vector.broadcast %201 : vector<1x32xf32> to vector<48x32xf32>
    %203 = arith.addf %199, %202 : vector<48x32xf32>
    %204 = arith.addf %133, %203 : vector<48x32xf32>
    %cst_111 = arith.constant dense<0.000000e+00> : vector<48xf32>
    %205 = vector.multi_reduction <add>, %204, %cst_111 [1] : vector<48x32xf32> to vector<48xf32>
    %206 = vector.shape_cast %205 : vector<48xf32> to vector<48x1xf32>
    %cst_112 = arith.constant 3.200000e+01 : f32
    %207 = vector.broadcast %cst_112 : f32 to vector<48x1xf32>
    %208 = arith.divf %206, %207 : vector<48x1xf32>
    %209 = vector.broadcast %208 : vector<48x1xf32> to vector<48x32xf32>
    %210 = arith.subf %204, %209 : vector<48x32xf32>
    %211 = arith.mulf %210, %210 : vector<48x32xf32>
    %cst_113 = arith.constant dense<0.000000e+00> : vector<48xf32>
    %212 = vector.multi_reduction <add>, %211, %cst_113 [1] : vector<48x32xf32> to vector<48xf32>
    %213 = vector.shape_cast %212 : vector<48xf32> to vector<48x1xf32>
    %cst_114 = arith.constant 3.200000e+01 : f32
    %214 = vector.broadcast %cst_114 : f32 to vector<48x1xf32>
    %215 = arith.divf %213, %214 : vector<48x1xf32>
    %cst_115 = arith.constant 9.99999974E-6 : f32
    %216 = vector.broadcast %cst_115 : f32 to vector<48x1xf32>
    %217 = arith.addf %215, %216 : vector<48x1xf32>
    %218 = math.rsqrt %217 : vector<48x1xf32>
    %219 = vector.broadcast %218 : vector<48x1xf32> to vector<48x32xf32>
    %220 = arith.mulf %210, %219 : vector<48x32xf32>
    %c20 = arith.constant 20 : index
    %c0_116 = arith.constant 0 : index
    %c0_117 = arith.constant 0 : index
    %221 = vector.load %arg5[%c20, %c0_116, %c0_117] : memref<47x1x32xf32, #tpu.memory_space<vmem>>, vector<1x1x32xf32>
    %222 = vector.shape_cast %221 : vector<1x1x32xf32> to vector<1x32xf32>
    %223 = vector.broadcast %222 : vector<1x32xf32> to vector<48x32xf32>
    %224 = arith.mulf %220, %223 : vector<48x32xf32>
    %c35 = arith.constant 35 : index
    %c0_118 = arith.constant 0 : index
    %c0_119 = arith.constant 0 : index
    %225 = vector.load %arg5[%c35, %c0_118, %c0_119] : memref<47x1x32xf32, #tpu.memory_space<vmem>>, vector<1x1x32xf32>
    %226 = vector.shape_cast %225 : vector<1x1x32xf32> to vector<1x32xf32>
    %227 = vector.broadcast %226 : vector<1x32xf32> to vector<48x32xf32>
    %228 = arith.addf %224, %227 : vector<48x32xf32>
    %c6_120 = arith.constant 6 : index
    %c0_121 = arith.constant 0 : index
    %c0_122 = arith.constant 0 : index
    %229 = vector.load %arg2[%c6_120, %c0_121, %c0_122] : memref<11x32x128xf32, #tpu.memory_space<vmem>>, vector<1x32x128xf32>
    %230 = vector.shape_cast %229 : vector<1x32x128xf32> to vector<32x128xf32>
    %cst_123 = arith.constant dense<0.000000e+00> : vector<48x128xf32>
    %231 = tpu.matmul %228, %230, %cst_123 {dimension_numbers = #tpu.dot_dimension_numbers<[1], [0], [0], [1], [0, 0, 1, 1], [], []>} : vector<48x32xf32>, vector<32x128xf32>, vector<48x128xf32> -> vector<48x128xf32>
    %c6_124 = arith.constant 6 : index
    %c0_125 = arith.constant 0 : index
    %c0_126 = arith.constant 0 : index
    %232 = vector.load %arg4[%c6_124, %c0_125, %c0_126] : memref<10x1x128xf32, #tpu.memory_space<vmem>>, vector<1x1x128xf32>
    %233 = vector.shape_cast %232 : vector<1x1x128xf32> to vector<1x128xf32>
    %234 = vector.broadcast %233 : vector<1x128xf32> to vector<48x128xf32>
    %235 = arith.addf %231, %234 : vector<48x128xf32>
    %cst_127 = arith.constant 5.000000e-01 : f32
    %236 = vector.broadcast %cst_127 : f32 to vector<48x128xf32>
    %237 = arith.mulf %236, %235 : vector<48x128xf32>
    %cst_128 = arith.constant 4.471500e-02 : f32
    %238 = vector.broadcast %cst_128 : f32 to vector<48x128xf32>
    %239 = arith.mulf %238, %235 : vector<48x128xf32>
    %240 = arith.mulf %239, %235 : vector<48x128xf32>
    %241 = arith.mulf %240, %235 : vector<48x128xf32>
    %242 = arith.addf %235, %241 : vector<48x128xf32>
    %cst_129 = arith.constant 0.797884583 : f32
    %243 = vector.broadcast %cst_129 : f32 to vector<48x128xf32>
    %244 = arith.mulf %243, %242 : vector<48x128xf32>
    %245 = math.tanh %244 : vector<48x128xf32>
    %cst_130 = arith.constant 1.000000e+00 : f32
    %246 = vector.broadcast %cst_130 : f32 to vector<48x128xf32>
    %247 = arith.addf %246, %245 : vector<48x128xf32>
    %248 = arith.mulf %237, %247 : vector<48x128xf32>
    %c1_131 = arith.constant 1 : index
    %c0_132 = arith.constant 0 : index
    %c0_133 = arith.constant 0 : index
    %249 = vector.load %arg3[%c1_131, %c0_132, %c0_133] : memref<5x128x32xf32, #tpu.memory_space<vmem>>, vector<1x128x32xf32>
    %250 = vector.shape_cast %249 : vector<1x128x32xf32> to vector<128x32xf32>
    %cst_134 = arith.constant dense<0.000000e+00> : vector<48x32xf32>
    %251 = tpu.matmul %248, %250, %cst_134 {dimension_numbers = #tpu.dot_dimension_numbers<[1], [0], [0], [1], [0, 0, 1, 1], [], []>} : vector<48x128xf32>, vector<128x32xf32>, vector<48x32xf32> -> vector<48x32xf32>
    %c11 = arith.constant 11 : index
    %c0_135 = arith.constant 0 : index
    %c0_136 = arith.constant 0 : index
    %252 = vector.load %arg5[%c11, %c0_135, %c0_136] : memref<47x1x32xf32, #tpu.memory_space<vmem>>, vector<1x1x32xf32>
    %253 = vector.shape_cast %252 : vector<1x1x32xf32> to vector<1x32xf32>
    %254 = vector.broadcast %253 : vector<1x32xf32> to vector<48x32xf32>
    %255 = arith.addf %251, %254 : vector<48x32xf32>
    %256 = arith.addf %204, %255 : vector<48x32xf32>
    %cst_137 = arith.constant dense<0.000000e+00> : vector<48xf32>
    %257 = vector.multi_reduction <add>, %256, %cst_137 [1] : vector<48x32xf32> to vector<48xf32>
    %258 = vector.shape_cast %257 : vector<48xf32> to vector<48x1xf32>
    %cst_138 = arith.constant 3.200000e+01 : f32
    %259 = vector.broadcast %cst_138 : f32 to vector<48x1xf32>
    %260 = arith.divf %258, %259 : vector<48x1xf32>
    %261 = vector.broadcast %260 : vector<48x1xf32> to vector<48x32xf32>
    %262 = arith.subf %256, %261 : vector<48x32xf32>
    %263 = arith.mulf %262, %262 : vector<48x32xf32>
    %cst_139 = arith.constant dense<0.000000e+00> : vector<48xf32>
    %264 = vector.multi_reduction <add>, %263, %cst_139 [1] : vector<48x32xf32> to vector<48xf32>
    %265 = vector.shape_cast %264 : vector<48xf32> to vector<48x1xf32>
    %cst_140 = arith.constant 3.200000e+01 : f32
    %266 = vector.broadcast %cst_140 : f32 to vector<48x1xf32>
    %267 = arith.divf %265, %266 : vector<48x1xf32>
    %cst_141 = arith.constant 9.99999974E-6 : f32
    %268 = vector.broadcast %cst_141 : f32 to vector<48x1xf32>
    %269 = arith.addf %267, %268 : vector<48x1xf32>
    %270 = math.rsqrt %269 : vector<48x1xf32>
    %271 = vector.broadcast %270 : vector<48x1xf32> to vector<48x32xf32>
    %272 = arith.mulf %262, %271 : vector<48x32xf32>
    %c21 = arith.constant 21 : index
    %c0_142 = arith.constant 0 : index
    %c0_143 = arith.constant 0 : index
    %273 = vector.load %arg5[%c21, %c0_142, %c0_143] : memref<47x1x32xf32, #tpu.memory_space<vmem>>, vector<1x1x32xf32>
    %274 = vector.shape_cast %273 : vector<1x1x32xf32> to vector<1x32xf32>
    %275 = vector.broadcast %274 : vector<1x32xf32> to vector<48x32xf32>
    %276 = arith.mulf %272, %275 : vector<48x32xf32>
    %c36 = arith.constant 36 : index
    %c0_144 = arith.constant 0 : index
    %c0_145 = arith.constant 0 : index
    %277 = vector.load %arg5[%c36, %c0_144, %c0_145] : memref<47x1x32xf32, #tpu.memory_space<vmem>>, vector<1x1x32xf32>
    %278 = vector.shape_cast %277 : vector<1x1x32xf32> to vector<1x32xf32>
    %279 = vector.broadcast %278 : vector<1x32xf32> to vector<48x32xf32>
    %280 = arith.addf %276, %279 : vector<48x32xf32>
    %c2 = arith.constant 2 : index
    %c0_146 = arith.constant 0 : index
    %c0_147 = arith.constant 0 : index
    %281 = vector.load %arg2[%c2, %c0_146, %c0_147] : memref<11x32x128xf32, #tpu.memory_space<vmem>>, vector<1x32x128xf32>
    %282 = vector.shape_cast %281 : vector<1x32x128xf32> to vector<32x128xf32>
    %cst_148 = arith.constant dense<0.000000e+00> : vector<48x128xf32>
    %283 = tpu.matmul %280, %282, %cst_148 {dimension_numbers = #tpu.dot_dimension_numbers<[1], [0], [0], [1], [0, 0, 1, 1], [], []>} : vector<48x32xf32>, vector<32x128xf32>, vector<48x128xf32> -> vector<48x128xf32>
    %c2_149 = arith.constant 2 : index
    %c0_150 = arith.constant 0 : index
    %c0_151 = arith.constant 0 : index
    %284 = vector.load %arg4[%c2_149, %c0_150, %c0_151] : memref<10x1x128xf32, #tpu.memory_space<vmem>>, vector<1x1x128xf32>
    %285 = vector.shape_cast %284 : vector<1x1x128xf32> to vector<1x128xf32>
    %286 = vector.broadcast %285 : vector<1x128xf32> to vector<48x128xf32>
    %287 = arith.addf %283, %286 : vector<48x128xf32>
    %c0_152 = arith.constant 0 : index
    %c0_153 = arith.constant 0 : index
    %c0_154 = arith.constant 0 : index
    %288 = vector.load %arg6[%c0_152, %c0_153, %c0_154] : memref<2x48x128xf32, #tpu.memory_space<vmem>>, vector<1x48x128xf32>
    %289 = vector.shape_cast %288 : vector<1x48x128xf32> to vector<48x128xf32>
    %290 = arith.mulf %287, %289 : vector<48x128xf32>
    %291 = vector.extract_strided_slice %290 {offsets = [0, 0], sizes = [48, 64], strides = [1, 1]} : vector<48x128xf32> to vector<48x64xf32>
    %292 = vector.extract_strided_slice %290 {offsets = [0, 64], sizes = [48, 64], strides = [1, 1]} : vector<48x128xf32> to vector<48x64xf32>
    %293 = arith.addf %291, %292 : vector<48x64xf32>
    %294 = vector.extract_strided_slice %293 {offsets = [0, 0], sizes = [48, 32], strides = [1, 1]} : vector<48x64xf32> to vector<48x32xf32>
    %295 = vector.extract_strided_slice %293 {offsets = [0, 32], sizes = [48, 32], strides = [1, 1]} : vector<48x64xf32> to vector<48x32xf32>
    %c2_155 = arith.constant 2 : index
    %c0_156 = arith.constant 0 : index
    %c0_157 = arith.constant 0 : index
    %296 = vector.load %arg1[%c2_155, %c0_156, %c0_157] : memref<12x32x32xf32, #tpu.memory_space<vmem>>, vector<1x32x32xf32>
    %297 = vector.shape_cast %296 : vector<1x32x32xf32> to vector<32x32xf32>
    %cst_158 = arith.constant dense<0.000000e+00> : vector<48x32xf32>
    %298 = tpu.matmul %280, %297, %cst_158 {dimension_numbers = #tpu.dot_dimension_numbers<[1], [0], [0], [1], [0, 0, 1, 1], [], []>} : vector<48x32xf32>, vector<32x32xf32>, vector<48x32xf32> -> vector<48x32xf32>
    %c2_159 = arith.constant 2 : index
    %c0_160 = arith.constant 0 : index
    %c0_161 = arith.constant 0 : index
    %299 = vector.load %arg5[%c2_159, %c0_160, %c0_161] : memref<47x1x32xf32, #tpu.memory_space<vmem>>, vector<1x1x32xf32>
    %300 = vector.shape_cast %299 : vector<1x1x32xf32> to vector<1x32xf32>
    %301 = vector.broadcast %300 : vector<1x32xf32> to vector<48x32xf32>
    %302 = arith.addf %298, %301 : vector<48x32xf32>
    %303 = tpu.concatenate %295, %295, %295, %295 in 0 : vector<48x32xf32>, vector<48x32xf32>, vector<48x32xf32>, vector<48x32xf32> -> vector<192x32xf32>
    %304 = arith.mulf %303, %0 : vector<192x32xf32>
    %305 = tpu.concatenate %302, %302, %302, %302 in 0 : vector<48x32xf32>, vector<48x32xf32>, vector<48x32xf32>, vector<48x32xf32> -> vector<192x32xf32>
    %306 = arith.mulf %305, %0 : vector<192x32xf32>
    %cst_162 = arith.constant dense<0.000000e+00> : vector<48x192xf32>
    %307 = tpu.matmul %294, %304, %cst_162 {dimension_numbers = #tpu.dot_dimension_numbers<[1], [1], [0], [0], [0, 0, 1, 0], [], []>} : vector<48x32xf32>, vector<192x32xf32>, vector<48x192xf32> -> vector<48x192xf32>
    %c0_163 = arith.constant 0 : index
    %c0_164 = arith.constant 0 : index
    %c0_165 = arith.constant 0 : index
    %308 = vector.load %arg7[%c0_163, %c0_164, %c0_165] : memref<2x48x192xf32, #tpu.memory_space<vmem>>, vector<1x48x192xf32>
    %309 = vector.shape_cast %308 : vector<1x48x192xf32> to vector<48x192xf32>
    %310 = arith.addf %307, %309 : vector<48x192xf32>
    %cst_166 = arith.constant dense<0xFF800000> : vector<48xf32>
    %311 = vector.multi_reduction <maximumf>, %310, %cst_166 [1] : vector<48x192xf32> to vector<48xf32>
    %312 = vector.shape_cast %311 : vector<48xf32> to vector<48x1xf32>
    %313 = vector.broadcast %312 : vector<48x1xf32> to vector<48x192xf32>
    %314 = arith.subf %310, %313 : vector<48x192xf32>
    %315 = math.exp %314 : vector<48x192xf32>
    %cst_167 = arith.constant dense<0.000000e+00> : vector<48x32xf32>
    %316 = tpu.matmul %315, %306, %cst_167 {dimension_numbers = #tpu.dot_dimension_numbers<[1], [0], [0], [1], [0, 0, 1, 1], [], []>} : vector<48x192xf32>, vector<192x32xf32>, vector<48x32xf32> -> vector<48x32xf32>
    %cst_168 = arith.constant dense<0.000000e+00> : vector<48x32xf32>
    %317 = tpu.matmul %315, %0, %cst_168 {dimension_numbers = #tpu.dot_dimension_numbers<[1], [0], [0], [1], [0, 0, 1, 1], [], []>} : vector<48x192xf32>, vector<192x32xf32>, vector<48x32xf32> -> vector<48x32xf32>
    %318 = tpu.reciprocal %317 : vector<48x32xf32> -> vector<48x32xf32>
    %319 = arith.mulf %316, %318 : vector<48x32xf32>
    %c7 = arith.constant 7 : index
    %c0_169 = arith.constant 0 : index
    %c0_170 = arith.constant 0 : index
    %320 = vector.load %arg1[%c7, %c0_169, %c0_170] : memref<12x32x32xf32, #tpu.memory_space<vmem>>, vector<1x32x32xf32>
    %321 = vector.shape_cast %320 : vector<1x32x32xf32> to vector<32x32xf32>
    %cst_171 = arith.constant dense<0.000000e+00> : vector<48x32xf32>
    %322 = tpu.matmul %319, %321, %cst_171 {dimension_numbers = #tpu.dot_dimension_numbers<[1], [0], [0], [1], [0, 0, 1, 1], [], []>} : vector<48x32xf32>, vector<32x32xf32>, vector<48x32xf32> -> vector<48x32xf32>
    %c7_172 = arith.constant 7 : index
    %c0_173 = arith.constant 0 : index
    %c0_174 = arith.constant 0 : index
    %323 = vector.load %arg5[%c7_172, %c0_173, %c0_174] : memref<47x1x32xf32, #tpu.memory_space<vmem>>, vector<1x1x32xf32>
    %324 = vector.shape_cast %323 : vector<1x1x32xf32> to vector<1x32xf32>
    %325 = vector.broadcast %324 : vector<1x32xf32> to vector<48x32xf32>
    %326 = arith.addf %322, %325 : vector<48x32xf32>
    %327 = arith.addf %256, %326 : vector<48x32xf32>
    %cst_175 = arith.constant dense<0.000000e+00> : vector<48xf32>
    %328 = vector.multi_reduction <add>, %327, %cst_175 [1] : vector<48x32xf32> to vector<48xf32>
    %329 = vector.shape_cast %328 : vector<48xf32> to vector<48x1xf32>
    %cst_176 = arith.constant 3.200000e+01 : f32
    %330 = vector.broadcast %cst_176 : f32 to vector<48x1xf32>
    %331 = arith.divf %329, %330 : vector<48x1xf32>
    %332 = vector.broadcast %331 : vector<48x1xf32> to vector<48x32xf32>
    %333 = arith.subf %327, %332 : vector<48x32xf32>
    %334 = arith.mulf %333, %333 : vector<48x32xf32>
    %cst_177 = arith.constant dense<0.000000e+00> : vector<48xf32>
    %335 = vector.multi_reduction <add>, %334, %cst_177 [1] : vector<48x32xf32> to vector<48xf32>
    %336 = vector.shape_cast %335 : vector<48xf32> to vector<48x1xf32>
    %cst_178 = arith.constant 3.200000e+01 : f32
    %337 = vector.broadcast %cst_178 : f32 to vector<48x1xf32>
    %338 = arith.divf %336, %337 : vector<48x1xf32>
    %cst_179 = arith.constant 9.99999974E-6 : f32
    %339 = vector.broadcast %cst_179 : f32 to vector<48x1xf32>
    %340 = arith.addf %338, %339 : vector<48x1xf32>
    %341 = math.rsqrt %340 : vector<48x1xf32>
    %342 = vector.broadcast %341 : vector<48x1xf32> to vector<48x32xf32>
    %343 = arith.mulf %333, %342 : vector<48x32xf32>
    %c22 = arith.constant 22 : index
    %c0_180 = arith.constant 0 : index
    %c0_181 = arith.constant 0 : index
    %344 = vector.load %arg5[%c22, %c0_180, %c0_181] : memref<47x1x32xf32, #tpu.memory_space<vmem>>, vector<1x1x32xf32>
    %345 = vector.shape_cast %344 : vector<1x1x32xf32> to vector<1x32xf32>
    %346 = vector.broadcast %345 : vector<1x32xf32> to vector<48x32xf32>
    %347 = arith.mulf %343, %346 : vector<48x32xf32>
    %c37 = arith.constant 37 : index
    %c0_182 = arith.constant 0 : index
    %c0_183 = arith.constant 0 : index
    %348 = vector.load %arg5[%c37, %c0_182, %c0_183] : memref<47x1x32xf32, #tpu.memory_space<vmem>>, vector<1x1x32xf32>
    %349 = vector.shape_cast %348 : vector<1x1x32xf32> to vector<1x32xf32>
    %350 = vector.broadcast %349 : vector<1x32xf32> to vector<48x32xf32>
    %351 = arith.addf %347, %350 : vector<48x32xf32>
    %c7_184 = arith.constant 7 : index
    %c0_185 = arith.constant 0 : index
    %c0_186 = arith.constant 0 : index
    %352 = vector.load %arg2[%c7_184, %c0_185, %c0_186] : memref<11x32x128xf32, #tpu.memory_space<vmem>>, vector<1x32x128xf32>
    %353 = vector.shape_cast %352 : vector<1x32x128xf32> to vector<32x128xf32>
    %cst_187 = arith.constant dense<0.000000e+00> : vector<48x128xf32>
    %354 = tpu.matmul %351, %353, %cst_187 {dimension_numbers = #tpu.dot_dimension_numbers<[1], [0], [0], [1], [0, 0, 1, 1], [], []>} : vector<48x32xf32>, vector<32x128xf32>, vector<48x128xf32> -> vector<48x128xf32>
    %c7_188 = arith.constant 7 : index
    %c0_189 = arith.constant 0 : index
    %c0_190 = arith.constant 0 : index
    %355 = vector.load %arg4[%c7_188, %c0_189, %c0_190] : memref<10x1x128xf32, #tpu.memory_space<vmem>>, vector<1x1x128xf32>
    %356 = vector.shape_cast %355 : vector<1x1x128xf32> to vector<1x128xf32>
    %357 = vector.broadcast %356 : vector<1x128xf32> to vector<48x128xf32>
    %358 = arith.addf %354, %357 : vector<48x128xf32>
    %cst_191 = arith.constant 5.000000e-01 : f32
    %359 = vector.broadcast %cst_191 : f32 to vector<48x128xf32>
    %360 = arith.mulf %359, %358 : vector<48x128xf32>
    %cst_192 = arith.constant 4.471500e-02 : f32
    %361 = vector.broadcast %cst_192 : f32 to vector<48x128xf32>
    %362 = arith.mulf %361, %358 : vector<48x128xf32>
    %363 = arith.mulf %362, %358 : vector<48x128xf32>
    %364 = arith.mulf %363, %358 : vector<48x128xf32>
    %365 = arith.addf %358, %364 : vector<48x128xf32>
    %cst_193 = arith.constant 0.797884583 : f32
    %366 = vector.broadcast %cst_193 : f32 to vector<48x128xf32>
    %367 = arith.mulf %366, %365 : vector<48x128xf32>
    %368 = math.tanh %367 : vector<48x128xf32>
    %cst_194 = arith.constant 1.000000e+00 : f32
    %369 = vector.broadcast %cst_194 : f32 to vector<48x128xf32>
    %370 = arith.addf %369, %368 : vector<48x128xf32>
    %371 = arith.mulf %360, %370 : vector<48x128xf32>
    %c2_195 = arith.constant 2 : index
    %c0_196 = arith.constant 0 : index
    %c0_197 = arith.constant 0 : index
    %372 = vector.load %arg3[%c2_195, %c0_196, %c0_197] : memref<5x128x32xf32, #tpu.memory_space<vmem>>, vector<1x128x32xf32>
    %373 = vector.shape_cast %372 : vector<1x128x32xf32> to vector<128x32xf32>
    %cst_198 = arith.constant dense<0.000000e+00> : vector<48x32xf32>
    %374 = tpu.matmul %371, %373, %cst_198 {dimension_numbers = #tpu.dot_dimension_numbers<[1], [0], [0], [1], [0, 0, 1, 1], [], []>} : vector<48x128xf32>, vector<128x32xf32>, vector<48x32xf32> -> vector<48x32xf32>
    %c12 = arith.constant 12 : index
    %c0_199 = arith.constant 0 : index
    %c0_200 = arith.constant 0 : index
    %375 = vector.load %arg5[%c12, %c0_199, %c0_200] : memref<47x1x32xf32, #tpu.memory_space<vmem>>, vector<1x1x32xf32>
    %376 = vector.shape_cast %375 : vector<1x1x32xf32> to vector<1x32xf32>
    %377 = vector.broadcast %376 : vector<1x32xf32> to vector<48x32xf32>
    %378 = arith.addf %374, %377 : vector<48x32xf32>
    %379 = arith.addf %327, %378 : vector<48x32xf32>
    %cst_201 = arith.constant dense<0.000000e+00> : vector<48xf32>
    %380 = vector.multi_reduction <add>, %379, %cst_201 [1] : vector<48x32xf32> to vector<48xf32>
    %381 = vector.shape_cast %380 : vector<48xf32> to vector<48x1xf32>
    %cst_202 = arith.constant 3.200000e+01 : f32
    %382 = vector.broadcast %cst_202 : f32 to vector<48x1xf32>
    %383 = arith.divf %381, %382 : vector<48x1xf32>
    %384 = vector.broadcast %383 : vector<48x1xf32> to vector<48x32xf32>
    %385 = arith.subf %379, %384 : vector<48x32xf32>
    %386 = arith.mulf %385, %385 : vector<48x32xf32>
    %cst_203 = arith.constant dense<0.000000e+00> : vector<48xf32>
    %387 = vector.multi_reduction <add>, %386, %cst_203 [1] : vector<48x32xf32> to vector<48xf32>
    %388 = vector.shape_cast %387 : vector<48xf32> to vector<48x1xf32>
    %cst_204 = arith.constant 3.200000e+01 : f32
    %389 = vector.broadcast %cst_204 : f32 to vector<48x1xf32>
    %390 = arith.divf %388, %389 : vector<48x1xf32>
    %cst_205 = arith.constant 9.99999974E-6 : f32
    %391 = vector.broadcast %cst_205 : f32 to vector<48x1xf32>
    %392 = arith.addf %390, %391 : vector<48x1xf32>
    %393 = math.rsqrt %392 : vector<48x1xf32>
    %394 = vector.broadcast %393 : vector<48x1xf32> to vector<48x32xf32>
    %395 = arith.mulf %385, %394 : vector<48x32xf32>
    %c23 = arith.constant 23 : index
    %c0_206 = arith.constant 0 : index
    %c0_207 = arith.constant 0 : index
    %396 = vector.load %arg5[%c23, %c0_206, %c0_207] : memref<47x1x32xf32, #tpu.memory_space<vmem>>, vector<1x1x32xf32>
    %397 = vector.shape_cast %396 : vector<1x1x32xf32> to vector<1x32xf32>
    %398 = vector.broadcast %397 : vector<1x32xf32> to vector<48x32xf32>
    %399 = arith.mulf %395, %398 : vector<48x32xf32>
    %c38 = arith.constant 38 : index
    %c0_208 = arith.constant 0 : index
    %c0_209 = arith.constant 0 : index
    %400 = vector.load %arg5[%c38, %c0_208, %c0_209] : memref<47x1x32xf32, #tpu.memory_space<vmem>>, vector<1x1x32xf32>
    %401 = vector.shape_cast %400 : vector<1x1x32xf32> to vector<1x32xf32>
    %402 = vector.broadcast %401 : vector<1x32xf32> to vector<48x32xf32>
    %403 = arith.addf %399, %402 : vector<48x32xf32>
    %c3 = arith.constant 3 : index
    %c0_210 = arith.constant 0 : index
    %c0_211 = arith.constant 0 : index
    %404 = vector.load %arg2[%c3, %c0_210, %c0_211] : memref<11x32x128xf32, #tpu.memory_space<vmem>>, vector<1x32x128xf32>
    %405 = vector.shape_cast %404 : vector<1x32x128xf32> to vector<32x128xf32>
    %cst_212 = arith.constant dense<0.000000e+00> : vector<48x128xf32>
    %406 = tpu.matmul %403, %405, %cst_212 {dimension_numbers = #tpu.dot_dimension_numbers<[1], [0], [0], [1], [0, 0, 1, 1], [], []>} : vector<48x32xf32>, vector<32x128xf32>, vector<48x128xf32> -> vector<48x128xf32>
    %c3_213 = arith.constant 3 : index
    %c0_214 = arith.constant 0 : index
    %c0_215 = arith.constant 0 : index
    %407 = vector.load %arg4[%c3_213, %c0_214, %c0_215] : memref<10x1x128xf32, #tpu.memory_space<vmem>>, vector<1x1x128xf32>
    %408 = vector.shape_cast %407 : vector<1x1x128xf32> to vector<1x128xf32>
    %409 = vector.broadcast %408 : vector<1x128xf32> to vector<48x128xf32>
    %410 = arith.addf %406, %409 : vector<48x128xf32>
    %c1_216 = arith.constant 1 : index
    %c0_217 = arith.constant 0 : index
    %c0_218 = arith.constant 0 : index
    %411 = vector.load %arg6[%c1_216, %c0_217, %c0_218] : memref<2x48x128xf32, #tpu.memory_space<vmem>>, vector<1x48x128xf32>
    %412 = vector.shape_cast %411 : vector<1x48x128xf32> to vector<48x128xf32>
    %413 = arith.mulf %410, %412 : vector<48x128xf32>
    %414 = vector.extract_strided_slice %413 {offsets = [0, 0], sizes = [48, 64], strides = [1, 1]} : vector<48x128xf32> to vector<48x64xf32>
    %415 = vector.extract_strided_slice %413 {offsets = [0, 64], sizes = [48, 64], strides = [1, 1]} : vector<48x128xf32> to vector<48x64xf32>
    %416 = arith.addf %414, %415 : vector<48x64xf32>
    %417 = vector.extract_strided_slice %416 {offsets = [0, 0], sizes = [48, 32], strides = [1, 1]} : vector<48x64xf32> to vector<48x32xf32>
    %418 = vector.extract_strided_slice %416 {offsets = [0, 32], sizes = [48, 32], strides = [1, 1]} : vector<48x64xf32> to vector<48x32xf32>
    %c3_219 = arith.constant 3 : index
    %c0_220 = arith.constant 0 : index
    %c0_221 = arith.constant 0 : index
    %419 = vector.load %arg1[%c3_219, %c0_220, %c0_221] : memref<12x32x32xf32, #tpu.memory_space<vmem>>, vector<1x32x32xf32>
    %420 = vector.shape_cast %419 : vector<1x32x32xf32> to vector<32x32xf32>
    %cst_222 = arith.constant dense<0.000000e+00> : vector<48x32xf32>
    %421 = tpu.matmul %403, %420, %cst_222 {dimension_numbers = #tpu.dot_dimension_numbers<[1], [0], [0], [1], [0, 0, 1, 1], [], []>} : vector<48x32xf32>, vector<32x32xf32>, vector<48x32xf32> -> vector<48x32xf32>
    %c3_223 = arith.constant 3 : index
    %c0_224 = arith.constant 0 : index
    %c0_225 = arith.constant 0 : index
    %422 = vector.load %arg5[%c3_223, %c0_224, %c0_225] : memref<47x1x32xf32, #tpu.memory_space<vmem>>, vector<1x1x32xf32>
    %423 = vector.shape_cast %422 : vector<1x1x32xf32> to vector<1x32xf32>
    %424 = vector.broadcast %423 : vector<1x32xf32> to vector<48x32xf32>
    %425 = arith.addf %421, %424 : vector<48x32xf32>
    %426 = tpu.concatenate %418, %418, %418, %418 in 0 : vector<48x32xf32>, vector<48x32xf32>, vector<48x32xf32>, vector<48x32xf32> -> vector<192x32xf32>
    %427 = arith.mulf %426, %0 : vector<192x32xf32>
    %428 = tpu.concatenate %425, %425, %425, %425 in 0 : vector<48x32xf32>, vector<48x32xf32>, vector<48x32xf32>, vector<48x32xf32> -> vector<192x32xf32>
    %429 = arith.mulf %428, %0 : vector<192x32xf32>
    %cst_226 = arith.constant dense<0.000000e+00> : vector<48x192xf32>
    %430 = tpu.matmul %417, %427, %cst_226 {dimension_numbers = #tpu.dot_dimension_numbers<[1], [1], [0], [0], [0, 0, 1, 0], [], []>} : vector<48x32xf32>, vector<192x32xf32>, vector<48x192xf32> -> vector<48x192xf32>
    %c1_227 = arith.constant 1 : index
    %c0_228 = arith.constant 0 : index
    %c0_229 = arith.constant 0 : index
    %431 = vector.load %arg7[%c1_227, %c0_228, %c0_229] : memref<2x48x192xf32, #tpu.memory_space<vmem>>, vector<1x48x192xf32>
    %432 = vector.shape_cast %431 : vector<1x48x192xf32> to vector<48x192xf32>
    %433 = arith.addf %430, %432 : vector<48x192xf32>
    %cst_230 = arith.constant dense<0xFF800000> : vector<48xf32>
    %434 = vector.multi_reduction <maximumf>, %433, %cst_230 [1] : vector<48x192xf32> to vector<48xf32>
    %435 = vector.shape_cast %434 : vector<48xf32> to vector<48x1xf32>
    %436 = vector.broadcast %435 : vector<48x1xf32> to vector<48x192xf32>
    %437 = arith.subf %433, %436 : vector<48x192xf32>
    %438 = math.exp %437 : vector<48x192xf32>
    %cst_231 = arith.constant dense<0.000000e+00> : vector<48x32xf32>
    %439 = tpu.matmul %438, %429, %cst_231 {dimension_numbers = #tpu.dot_dimension_numbers<[1], [0], [0], [1], [0, 0, 1, 1], [], []>} : vector<48x192xf32>, vector<192x32xf32>, vector<48x32xf32> -> vector<48x32xf32>
    %cst_232 = arith.constant dense<0.000000e+00> : vector<48x32xf32>
    %440 = tpu.matmul %438, %0, %cst_232 {dimension_numbers = #tpu.dot_dimension_numbers<[1], [0], [0], [1], [0, 0, 1, 1], [], []>} : vector<48x192xf32>, vector<192x32xf32>, vector<48x32xf32> -> vector<48x32xf32>
    %441 = tpu.reciprocal %440 : vector<48x32xf32> -> vector<48x32xf32>
    %442 = arith.mulf %439, %441 : vector<48x32xf32>
    %c8 = arith.constant 8 : index
    %c0_233 = arith.constant 0 : index
    %c0_234 = arith.constant 0 : index
    %443 = vector.load %arg1[%c8, %c0_233, %c0_234] : memref<12x32x32xf32, #tpu.memory_space<vmem>>, vector<1x32x32xf32>
    %444 = vector.shape_cast %443 : vector<1x32x32xf32> to vector<32x32xf32>
    %cst_235 = arith.constant dense<0.000000e+00> : vector<48x32xf32>
    %445 = tpu.matmul %442, %444, %cst_235 {dimension_numbers = #tpu.dot_dimension_numbers<[1], [0], [0], [1], [0, 0, 1, 1], [], []>} : vector<48x32xf32>, vector<32x32xf32>, vector<48x32xf32> -> vector<48x32xf32>
    %c8_236 = arith.constant 8 : index
    %c0_237 = arith.constant 0 : index
    %c0_238 = arith.constant 0 : index
    %446 = vector.load %arg5[%c8_236, %c0_237, %c0_238] : memref<47x1x32xf32, #tpu.memory_space<vmem>>, vector<1x1x32xf32>
    %447 = vector.shape_cast %446 : vector<1x1x32xf32> to vector<1x32xf32>
    %448 = vector.broadcast %447 : vector<1x32xf32> to vector<48x32xf32>
    %449 = arith.addf %445, %448 : vector<48x32xf32>
    %450 = arith.addf %379, %449 : vector<48x32xf32>
    %cst_239 = arith.constant dense<0.000000e+00> : vector<48xf32>
    %451 = vector.multi_reduction <add>, %450, %cst_239 [1] : vector<48x32xf32> to vector<48xf32>
    %452 = vector.shape_cast %451 : vector<48xf32> to vector<48x1xf32>
    %cst_240 = arith.constant 3.200000e+01 : f32
    %453 = vector.broadcast %cst_240 : f32 to vector<48x1xf32>
    %454 = arith.divf %452, %453 : vector<48x1xf32>
    %455 = vector.broadcast %454 : vector<48x1xf32> to vector<48x32xf32>
    %456 = arith.subf %450, %455 : vector<48x32xf32>
    %457 = arith.mulf %456, %456 : vector<48x32xf32>
    %cst_241 = arith.constant dense<0.000000e+00> : vector<48xf32>
    %458 = vector.multi_reduction <add>, %457, %cst_241 [1] : vector<48x32xf32> to vector<48xf32>
    %459 = vector.shape_cast %458 : vector<48xf32> to vector<48x1xf32>
    %cst_242 = arith.constant 3.200000e+01 : f32
    %460 = vector.broadcast %cst_242 : f32 to vector<48x1xf32>
    %461 = arith.divf %459, %460 : vector<48x1xf32>
    %cst_243 = arith.constant 9.99999974E-6 : f32
    %462 = vector.broadcast %cst_243 : f32 to vector<48x1xf32>
    %463 = arith.addf %461, %462 : vector<48x1xf32>
    %464 = math.rsqrt %463 : vector<48x1xf32>
    %465 = vector.broadcast %464 : vector<48x1xf32> to vector<48x32xf32>
    %466 = arith.mulf %456, %465 : vector<48x32xf32>
    %c24 = arith.constant 24 : index
    %c0_244 = arith.constant 0 : index
    %c0_245 = arith.constant 0 : index
    %467 = vector.load %arg5[%c24, %c0_244, %c0_245] : memref<47x1x32xf32, #tpu.memory_space<vmem>>, vector<1x1x32xf32>
    %468 = vector.shape_cast %467 : vector<1x1x32xf32> to vector<1x32xf32>
    %469 = vector.broadcast %468 : vector<1x32xf32> to vector<48x32xf32>
    %470 = arith.mulf %466, %469 : vector<48x32xf32>
    %c39 = arith.constant 39 : index
    %c0_246 = arith.constant 0 : index
    %c0_247 = arith.constant 0 : index
    %471 = vector.load %arg5[%c39, %c0_246, %c0_247] : memref<47x1x32xf32, #tpu.memory_space<vmem>>, vector<1x1x32xf32>
    %472 = vector.shape_cast %471 : vector<1x1x32xf32> to vector<1x32xf32>
    %473 = vector.broadcast %472 : vector<1x32xf32> to vector<48x32xf32>
    %474 = arith.addf %470, %473 : vector<48x32xf32>
    %c0_248 = arith.constant 0 : index
    %c0_249 = arith.constant 0 : index
    %475 = vector.load %arg8[%c0_248, %c0_249] : memref<48x48xf32, #tpu.memory_space<vmem>>, vector<48x48xf32>
    %cst_250 = arith.constant dense<0.000000e+00> : vector<48x32xf32>
    %476 = tpu.matmul %475, %474, %cst_250 {dimension_numbers = #tpu.dot_dimension_numbers<[1], [0], [0], [1], [0, 0, 1, 1], [], []>} : vector<48x48xf32>, vector<48x32xf32>, vector<48x32xf32> -> vector<48x32xf32>
    %c10_251 = arith.constant 10 : index
    %c0_252 = arith.constant 0 : index
    %c0_253 = arith.constant 0 : index
    %477 = vector.load %arg1[%c10_251, %c0_252, %c0_253] : memref<12x32x32xf32, #tpu.memory_space<vmem>>, vector<1x32x32xf32>
    %478 = vector.shape_cast %477 : vector<1x32x32xf32> to vector<32x32xf32>
    %cst_254 = arith.constant dense<0.000000e+00> : vector<48x32xf32>
    %479 = tpu.matmul %476, %478, %cst_254 {dimension_numbers = #tpu.dot_dimension_numbers<[1], [0], [0], [1], [0, 0, 1, 1], [], []>} : vector<48x32xf32>, vector<32x32xf32>, vector<48x32xf32> -> vector<48x32xf32>
    %c15 = arith.constant 15 : index
    %c0_255 = arith.constant 0 : index
    %c0_256 = arith.constant 0 : index
    %480 = vector.load %arg5[%c15, %c0_255, %c0_256] : memref<47x1x32xf32, #tpu.memory_space<vmem>>, vector<1x1x32xf32>
    %481 = vector.shape_cast %480 : vector<1x1x32xf32> to vector<1x32xf32>
    %482 = vector.broadcast %481 : vector<1x32xf32> to vector<48x32xf32>
    %483 = arith.addf %479, %482 : vector<48x32xf32>
    %484 = arith.addf %474, %483 : vector<48x32xf32>
    %cst_257 = arith.constant dense<0.000000e+00> : vector<48xf32>
    %485 = vector.multi_reduction <add>, %484, %cst_257 [1] : vector<48x32xf32> to vector<48xf32>
    %486 = vector.shape_cast %485 : vector<48xf32> to vector<48x1xf32>
    %cst_258 = arith.constant 3.200000e+01 : f32
    %487 = vector.broadcast %cst_258 : f32 to vector<48x1xf32>
    %488 = arith.divf %486, %487 : vector<48x1xf32>
    %489 = vector.broadcast %488 : vector<48x1xf32> to vector<48x32xf32>
    %490 = arith.subf %484, %489 : vector<48x32xf32>
    %491 = arith.mulf %490, %490 : vector<48x32xf32>
    %cst_259 = arith.constant dense<0.000000e+00> : vector<48xf32>
    %492 = vector.multi_reduction <add>, %491, %cst_259 [1] : vector<48x32xf32> to vector<48xf32>
    %493 = vector.shape_cast %492 : vector<48xf32> to vector<48x1xf32>
    %cst_260 = arith.constant 3.200000e+01 : f32
    %494 = vector.broadcast %cst_260 : f32 to vector<48x1xf32>
    %495 = arith.divf %493, %494 : vector<48x1xf32>
    %cst_261 = arith.constant 9.99999974E-6 : f32
    %496 = vector.broadcast %cst_261 : f32 to vector<48x1xf32>
    %497 = arith.addf %495, %496 : vector<48x1xf32>
    %498 = math.rsqrt %497 : vector<48x1xf32>
    %499 = vector.broadcast %498 : vector<48x1xf32> to vector<48x32xf32>
    %500 = arith.mulf %490, %499 : vector<48x32xf32>
    %c25 = arith.constant 25 : index
    %c0_262 = arith.constant 0 : index
    %c0_263 = arith.constant 0 : index
    %501 = vector.load %arg5[%c25, %c0_262, %c0_263] : memref<47x1x32xf32, #tpu.memory_space<vmem>>, vector<1x1x32xf32>
    %502 = vector.shape_cast %501 : vector<1x1x32xf32> to vector<1x32xf32>
    %503 = vector.broadcast %502 : vector<1x32xf32> to vector<48x32xf32>
    %504 = arith.mulf %500, %503 : vector<48x32xf32>
    %c40 = arith.constant 40 : index
    %c0_264 = arith.constant 0 : index
    %c0_265 = arith.constant 0 : index
    %505 = vector.load %arg5[%c40, %c0_264, %c0_265] : memref<47x1x32xf32, #tpu.memory_space<vmem>>, vector<1x1x32xf32>
    %506 = vector.shape_cast %505 : vector<1x1x32xf32> to vector<1x32xf32>
    %507 = vector.broadcast %506 : vector<1x32xf32> to vector<48x32xf32>
    %508 = arith.addf %504, %507 : vector<48x32xf32>
    %509 = arith.addf %450, %508 : vector<48x32xf32>
    %cst_266 = arith.constant dense<0.000000e+00> : vector<48xf32>
    %510 = vector.multi_reduction <add>, %509, %cst_266 [1] : vector<48x32xf32> to vector<48xf32>
    %511 = vector.shape_cast %510 : vector<48xf32> to vector<48x1xf32>
    %cst_267 = arith.constant 3.200000e+01 : f32
    %512 = vector.broadcast %cst_267 : f32 to vector<48x1xf32>
    %513 = arith.divf %511, %512 : vector<48x1xf32>
    %514 = vector.broadcast %513 : vector<48x1xf32> to vector<48x32xf32>
    %515 = arith.subf %509, %514 : vector<48x32xf32>
    %516 = arith.mulf %515, %515 : vector<48x32xf32>
    %cst_268 = arith.constant dense<0.000000e+00> : vector<48xf32>
    %517 = vector.multi_reduction <add>, %516, %cst_268 [1] : vector<48x32xf32> to vector<48xf32>
    %518 = vector.shape_cast %517 : vector<48xf32> to vector<48x1xf32>
    %cst_269 = arith.constant 3.200000e+01 : f32
    %519 = vector.broadcast %cst_269 : f32 to vector<48x1xf32>
    %520 = arith.divf %518, %519 : vector<48x1xf32>
    %cst_270 = arith.constant 9.99999974E-6 : f32
    %521 = vector.broadcast %cst_270 : f32 to vector<48x1xf32>
    %522 = arith.addf %520, %521 : vector<48x1xf32>
    %523 = math.rsqrt %522 : vector<48x1xf32>
    %524 = vector.broadcast %523 : vector<48x1xf32> to vector<48x32xf32>
    %525 = arith.mulf %515, %524 : vector<48x32xf32>
    %c26 = arith.constant 26 : index
    %c0_271 = arith.constant 0 : index
    %c0_272 = arith.constant 0 : index
    %526 = vector.load %arg5[%c26, %c0_271, %c0_272] : memref<47x1x32xf32, #tpu.memory_space<vmem>>, vector<1x1x32xf32>
    %527 = vector.shape_cast %526 : vector<1x1x32xf32> to vector<1x32xf32>
    %528 = vector.broadcast %527 : vector<1x32xf32> to vector<48x32xf32>
    %529 = arith.mulf %525, %528 : vector<48x32xf32>
    %c41 = arith.constant 41 : index
    %c0_273 = arith.constant 0 : index
    %c0_274 = arith.constant 0 : index
    %530 = vector.load %arg5[%c41, %c0_273, %c0_274] : memref<47x1x32xf32, #tpu.memory_space<vmem>>, vector<1x1x32xf32>
    %531 = vector.shape_cast %530 : vector<1x1x32xf32> to vector<1x32xf32>
    %532 = vector.broadcast %531 : vector<1x32xf32> to vector<48x32xf32>
    %533 = arith.addf %529, %532 : vector<48x32xf32>
    %c8_275 = arith.constant 8 : index
    %c0_276 = arith.constant 0 : index
    %c0_277 = arith.constant 0 : index
    %534 = vector.load %arg2[%c8_275, %c0_276, %c0_277] : memref<11x32x128xf32, #tpu.memory_space<vmem>>, vector<1x32x128xf32>
    %535 = vector.shape_cast %534 : vector<1x32x128xf32> to vector<32x128xf32>
    %cst_278 = arith.constant dense<0.000000e+00> : vector<48x128xf32>
    %536 = tpu.matmul %533, %535, %cst_278 {dimension_numbers = #tpu.dot_dimension_numbers<[1], [0], [0], [1], [0, 0, 1, 1], [], []>} : vector<48x32xf32>, vector<32x128xf32>, vector<48x128xf32> -> vector<48x128xf32>
    %c8_279 = arith.constant 8 : index
    %c0_280 = arith.constant 0 : index
    %c0_281 = arith.constant 0 : index
    %537 = vector.load %arg4[%c8_279, %c0_280, %c0_281] : memref<10x1x128xf32, #tpu.memory_space<vmem>>, vector<1x1x128xf32>
    %538 = vector.shape_cast %537 : vector<1x1x128xf32> to vector<1x128xf32>
    %539 = vector.broadcast %538 : vector<1x128xf32> to vector<48x128xf32>
    %540 = arith.addf %536, %539 : vector<48x128xf32>
    %cst_282 = arith.constant 5.000000e-01 : f32
    %541 = vector.broadcast %cst_282 : f32 to vector<48x128xf32>
    %542 = arith.mulf %541, %540 : vector<48x128xf32>
    %cst_283 = arith.constant 4.471500e-02 : f32
    %543 = vector.broadcast %cst_283 : f32 to vector<48x128xf32>
    %544 = arith.mulf %543, %540 : vector<48x128xf32>
    %545 = arith.mulf %544, %540 : vector<48x128xf32>
    %546 = arith.mulf %545, %540 : vector<48x128xf32>
    %547 = arith.addf %540, %546 : vector<48x128xf32>
    %cst_284 = arith.constant 0.797884583 : f32
    %548 = vector.broadcast %cst_284 : f32 to vector<48x128xf32>
    %549 = arith.mulf %548, %547 : vector<48x128xf32>
    %550 = math.tanh %549 : vector<48x128xf32>
    %cst_285 = arith.constant 1.000000e+00 : f32
    %551 = vector.broadcast %cst_285 : f32 to vector<48x128xf32>
    %552 = arith.addf %551, %550 : vector<48x128xf32>
    %553 = arith.mulf %542, %552 : vector<48x128xf32>
    %c3_286 = arith.constant 3 : index
    %c0_287 = arith.constant 0 : index
    %c0_288 = arith.constant 0 : index
    %554 = vector.load %arg3[%c3_286, %c0_287, %c0_288] : memref<5x128x32xf32, #tpu.memory_space<vmem>>, vector<1x128x32xf32>
    %555 = vector.shape_cast %554 : vector<1x128x32xf32> to vector<128x32xf32>
    %cst_289 = arith.constant dense<0.000000e+00> : vector<48x32xf32>
    %556 = tpu.matmul %553, %555, %cst_289 {dimension_numbers = #tpu.dot_dimension_numbers<[1], [0], [0], [1], [0, 0, 1, 1], [], []>} : vector<48x128xf32>, vector<128x32xf32>, vector<48x32xf32> -> vector<48x32xf32>
    %c13 = arith.constant 13 : index
    %c0_290 = arith.constant 0 : index
    %c0_291 = arith.constant 0 : index
    %557 = vector.load %arg5[%c13, %c0_290, %c0_291] : memref<47x1x32xf32, #tpu.memory_space<vmem>>, vector<1x1x32xf32>
    %558 = vector.shape_cast %557 : vector<1x1x32xf32> to vector<1x32xf32>
    %559 = vector.broadcast %558 : vector<1x32xf32> to vector<48x32xf32>
    %560 = arith.addf %556, %559 : vector<48x32xf32>
    %561 = arith.addf %509, %560 : vector<48x32xf32>
    %cst_292 = arith.constant dense<0.000000e+00> : vector<48xf32>
    %562 = vector.multi_reduction <add>, %561, %cst_292 [1] : vector<48x32xf32> to vector<48xf32>
    %563 = vector.shape_cast %562 : vector<48xf32> to vector<48x1xf32>
    %cst_293 = arith.constant 3.200000e+01 : f32
    %564 = vector.broadcast %cst_293 : f32 to vector<48x1xf32>
    %565 = arith.divf %563, %564 : vector<48x1xf32>
    %566 = vector.broadcast %565 : vector<48x1xf32> to vector<48x32xf32>
    %567 = arith.subf %561, %566 : vector<48x32xf32>
    %568 = arith.mulf %567, %567 : vector<48x32xf32>
    %cst_294 = arith.constant dense<0.000000e+00> : vector<48xf32>
    %569 = vector.multi_reduction <add>, %568, %cst_294 [1] : vector<48x32xf32> to vector<48xf32>
    %570 = vector.shape_cast %569 : vector<48xf32> to vector<48x1xf32>
    %cst_295 = arith.constant 3.200000e+01 : f32
    %571 = vector.broadcast %cst_295 : f32 to vector<48x1xf32>
    %572 = arith.divf %570, %571 : vector<48x1xf32>
    %cst_296 = arith.constant 9.99999974E-6 : f32
    %573 = vector.broadcast %cst_296 : f32 to vector<48x1xf32>
    %574 = arith.addf %572, %573 : vector<48x1xf32>
    %575 = math.rsqrt %574 : vector<48x1xf32>
    %576 = vector.broadcast %575 : vector<48x1xf32> to vector<48x32xf32>
    %577 = arith.mulf %567, %576 : vector<48x32xf32>
    %c27 = arith.constant 27 : index
    %c0_297 = arith.constant 0 : index
    %c0_298 = arith.constant 0 : index
    %578 = vector.load %arg5[%c27, %c0_297, %c0_298] : memref<47x1x32xf32, #tpu.memory_space<vmem>>, vector<1x1x32xf32>
    %579 = vector.shape_cast %578 : vector<1x1x32xf32> to vector<1x32xf32>
    %580 = vector.broadcast %579 : vector<1x32xf32> to vector<48x32xf32>
    %581 = arith.mulf %577, %580 : vector<48x32xf32>
    %c42 = arith.constant 42 : index
    %c0_299 = arith.constant 0 : index
    %c0_300 = arith.constant 0 : index
    %582 = vector.load %arg5[%c42, %c0_299, %c0_300] : memref<47x1x32xf32, #tpu.memory_space<vmem>>, vector<1x1x32xf32>
    %583 = vector.shape_cast %582 : vector<1x1x32xf32> to vector<1x32xf32>
    %584 = vector.broadcast %583 : vector<1x32xf32> to vector<48x32xf32>
    %585 = arith.addf %581, %584 : vector<48x32xf32>
    %c4 = arith.constant 4 : index
    %c0_301 = arith.constant 0 : index
    %c0_302 = arith.constant 0 : index
    %586 = vector.load %arg2[%c4, %c0_301, %c0_302] : memref<11x32x128xf32, #tpu.memory_space<vmem>>, vector<1x32x128xf32>
    %587 = vector.shape_cast %586 : vector<1x32x128xf32> to vector<32x128xf32>
    %cst_303 = arith.constant dense<0.000000e+00> : vector<48x128xf32>
    %588 = tpu.matmul %585, %587, %cst_303 {dimension_numbers = #tpu.dot_dimension_numbers<[1], [0], [0], [1], [0, 0, 1, 1], [], []>} : vector<48x32xf32>, vector<32x128xf32>, vector<48x128xf32> -> vector<48x128xf32>
    %c4_304 = arith.constant 4 : index
    %c0_305 = arith.constant 0 : index
    %c0_306 = arith.constant 0 : index
    %589 = vector.load %arg4[%c4_304, %c0_305, %c0_306] : memref<10x1x128xf32, #tpu.memory_space<vmem>>, vector<1x1x128xf32>
    %590 = vector.shape_cast %589 : vector<1x1x128xf32> to vector<1x128xf32>
    %591 = vector.broadcast %590 : vector<1x128xf32> to vector<48x128xf32>
    %592 = arith.addf %588, %591 : vector<48x128xf32>
    %c1_307 = arith.constant 1 : index
    %c0_308 = arith.constant 0 : index
    %c0_309 = arith.constant 0 : index
    %593 = vector.load %arg6[%c1_307, %c0_308, %c0_309] : memref<2x48x128xf32, #tpu.memory_space<vmem>>, vector<1x48x128xf32>
    %594 = vector.shape_cast %593 : vector<1x48x128xf32> to vector<48x128xf32>
    %595 = arith.mulf %592, %594 : vector<48x128xf32>
    %596 = vector.extract_strided_slice %595 {offsets = [0, 0], sizes = [48, 64], strides = [1, 1]} : vector<48x128xf32> to vector<48x64xf32>
    %597 = vector.extract_strided_slice %595 {offsets = [0, 64], sizes = [48, 64], strides = [1, 1]} : vector<48x128xf32> to vector<48x64xf32>
    %598 = arith.addf %596, %597 : vector<48x64xf32>
    %599 = vector.extract_strided_slice %598 {offsets = [0, 0], sizes = [48, 32], strides = [1, 1]} : vector<48x64xf32> to vector<48x32xf32>
    %600 = vector.extract_strided_slice %598 {offsets = [0, 32], sizes = [48, 32], strides = [1, 1]} : vector<48x64xf32> to vector<48x32xf32>
    %c4_310 = arith.constant 4 : index
    %c0_311 = arith.constant 0 : index
    %c0_312 = arith.constant 0 : index
    %601 = vector.load %arg1[%c4_310, %c0_311, %c0_312] : memref<12x32x32xf32, #tpu.memory_space<vmem>>, vector<1x32x32xf32>
    %602 = vector.shape_cast %601 : vector<1x32x32xf32> to vector<32x32xf32>
    %cst_313 = arith.constant dense<0.000000e+00> : vector<48x32xf32>
    %603 = tpu.matmul %585, %602, %cst_313 {dimension_numbers = #tpu.dot_dimension_numbers<[1], [0], [0], [1], [0, 0, 1, 1], [], []>} : vector<48x32xf32>, vector<32x32xf32>, vector<48x32xf32> -> vector<48x32xf32>
    %c4_314 = arith.constant 4 : index
    %c0_315 = arith.constant 0 : index
    %c0_316 = arith.constant 0 : index
    %604 = vector.load %arg5[%c4_314, %c0_315, %c0_316] : memref<47x1x32xf32, #tpu.memory_space<vmem>>, vector<1x1x32xf32>
    %605 = vector.shape_cast %604 : vector<1x1x32xf32> to vector<1x32xf32>
    %606 = vector.broadcast %605 : vector<1x32xf32> to vector<48x32xf32>
    %607 = arith.addf %603, %606 : vector<48x32xf32>
    %608 = tpu.concatenate %600, %600, %600, %600 in 0 : vector<48x32xf32>, vector<48x32xf32>, vector<48x32xf32>, vector<48x32xf32> -> vector<192x32xf32>
    %609 = arith.mulf %608, %0 : vector<192x32xf32>
    %610 = tpu.concatenate %607, %607, %607, %607 in 0 : vector<48x32xf32>, vector<48x32xf32>, vector<48x32xf32>, vector<48x32xf32> -> vector<192x32xf32>
    %611 = arith.mulf %610, %0 : vector<192x32xf32>
    %cst_317 = arith.constant dense<0.000000e+00> : vector<48x192xf32>
    %612 = tpu.matmul %599, %609, %cst_317 {dimension_numbers = #tpu.dot_dimension_numbers<[1], [1], [0], [0], [0, 0, 1, 0], [], []>} : vector<48x32xf32>, vector<192x32xf32>, vector<48x192xf32> -> vector<48x192xf32>
    %c1_318 = arith.constant 1 : index
    %c0_319 = arith.constant 0 : index
    %c0_320 = arith.constant 0 : index
    %613 = vector.load %arg7[%c1_318, %c0_319, %c0_320] : memref<2x48x192xf32, #tpu.memory_space<vmem>>, vector<1x48x192xf32>
    %614 = vector.shape_cast %613 : vector<1x48x192xf32> to vector<48x192xf32>
    %615 = arith.addf %612, %614 : vector<48x192xf32>
    %cst_321 = arith.constant dense<0xFF800000> : vector<48xf32>
    %616 = vector.multi_reduction <maximumf>, %615, %cst_321 [1] : vector<48x192xf32> to vector<48xf32>
    %617 = vector.shape_cast %616 : vector<48xf32> to vector<48x1xf32>
    %618 = vector.broadcast %617 : vector<48x1xf32> to vector<48x192xf32>
    %619 = arith.subf %615, %618 : vector<48x192xf32>
    %620 = math.exp %619 : vector<48x192xf32>
    %cst_322 = arith.constant dense<0.000000e+00> : vector<48x32xf32>
    %621 = tpu.matmul %620, %611, %cst_322 {dimension_numbers = #tpu.dot_dimension_numbers<[1], [0], [0], [1], [0, 0, 1, 1], [], []>} : vector<48x192xf32>, vector<192x32xf32>, vector<48x32xf32> -> vector<48x32xf32>
    %cst_323 = arith.constant dense<0.000000e+00> : vector<48x32xf32>
    %622 = tpu.matmul %620, %0, %cst_323 {dimension_numbers = #tpu.dot_dimension_numbers<[1], [0], [0], [1], [0, 0, 1, 1], [], []>} : vector<48x192xf32>, vector<192x32xf32>, vector<48x32xf32> -> vector<48x32xf32>
    %623 = tpu.reciprocal %622 : vector<48x32xf32> -> vector<48x32xf32>
    %624 = arith.mulf %621, %623 : vector<48x32xf32>
    %c9 = arith.constant 9 : index
    %c0_324 = arith.constant 0 : index
    %c0_325 = arith.constant 0 : index
    %625 = vector.load %arg1[%c9, %c0_324, %c0_325] : memref<12x32x32xf32, #tpu.memory_space<vmem>>, vector<1x32x32xf32>
    %626 = vector.shape_cast %625 : vector<1x32x32xf32> to vector<32x32xf32>
    %cst_326 = arith.constant dense<0.000000e+00> : vector<48x32xf32>
    %627 = tpu.matmul %624, %626, %cst_326 {dimension_numbers = #tpu.dot_dimension_numbers<[1], [0], [0], [1], [0, 0, 1, 1], [], []>} : vector<48x32xf32>, vector<32x32xf32>, vector<48x32xf32> -> vector<48x32xf32>
    %c9_327 = arith.constant 9 : index
    %c0_328 = arith.constant 0 : index
    %c0_329 = arith.constant 0 : index
    %628 = vector.load %arg5[%c9_327, %c0_328, %c0_329] : memref<47x1x32xf32, #tpu.memory_space<vmem>>, vector<1x1x32xf32>
    %629 = vector.shape_cast %628 : vector<1x1x32xf32> to vector<1x32xf32>
    %630 = vector.broadcast %629 : vector<1x32xf32> to vector<48x32xf32>
    %631 = arith.addf %627, %630 : vector<48x32xf32>
    %632 = arith.addf %561, %631 : vector<48x32xf32>
    %cst_330 = arith.constant dense<0.000000e+00> : vector<48xf32>
    %633 = vector.multi_reduction <add>, %632, %cst_330 [1] : vector<48x32xf32> to vector<48xf32>
    %634 = vector.shape_cast %633 : vector<48xf32> to vector<48x1xf32>
    %cst_331 = arith.constant 3.200000e+01 : f32
    %635 = vector.broadcast %cst_331 : f32 to vector<48x1xf32>
    %636 = arith.divf %634, %635 : vector<48x1xf32>
    %637 = vector.broadcast %636 : vector<48x1xf32> to vector<48x32xf32>
    %638 = arith.subf %632, %637 : vector<48x32xf32>
    %639 = arith.mulf %638, %638 : vector<48x32xf32>
    %cst_332 = arith.constant dense<0.000000e+00> : vector<48xf32>
    %640 = vector.multi_reduction <add>, %639, %cst_332 [1] : vector<48x32xf32> to vector<48xf32>
    %641 = vector.shape_cast %640 : vector<48xf32> to vector<48x1xf32>
    %cst_333 = arith.constant 3.200000e+01 : f32
    %642 = vector.broadcast %cst_333 : f32 to vector<48x1xf32>
    %643 = arith.divf %641, %642 : vector<48x1xf32>
    %cst_334 = arith.constant 9.99999974E-6 : f32
    %644 = vector.broadcast %cst_334 : f32 to vector<48x1xf32>
    %645 = arith.addf %643, %644 : vector<48x1xf32>
    %646 = math.rsqrt %645 : vector<48x1xf32>
    %647 = vector.broadcast %646 : vector<48x1xf32> to vector<48x32xf32>
    %648 = arith.mulf %638, %647 : vector<48x32xf32>
    %c28 = arith.constant 28 : index
    %c0_335 = arith.constant 0 : index
    %c0_336 = arith.constant 0 : index
    %649 = vector.load %arg5[%c28, %c0_335, %c0_336] : memref<47x1x32xf32, #tpu.memory_space<vmem>>, vector<1x1x32xf32>
    %650 = vector.shape_cast %649 : vector<1x1x32xf32> to vector<1x32xf32>
    %651 = vector.broadcast %650 : vector<1x32xf32> to vector<48x32xf32>
    %652 = arith.mulf %648, %651 : vector<48x32xf32>
    %c43 = arith.constant 43 : index
    %c0_337 = arith.constant 0 : index
    %c0_338 = arith.constant 0 : index
    %653 = vector.load %arg5[%c43, %c0_337, %c0_338] : memref<47x1x32xf32, #tpu.memory_space<vmem>>, vector<1x1x32xf32>
    %654 = vector.shape_cast %653 : vector<1x1x32xf32> to vector<1x32xf32>
    %655 = vector.broadcast %654 : vector<1x32xf32> to vector<48x32xf32>
    %656 = arith.addf %652, %655 : vector<48x32xf32>
    %c0_339 = arith.constant 0 : index
    %c0_340 = arith.constant 0 : index
    %657 = vector.load %arg8[%c0_339, %c0_340] : memref<48x48xf32, #tpu.memory_space<vmem>>, vector<48x48xf32>
    %cst_341 = arith.constant dense<0.000000e+00> : vector<48x32xf32>
    %658 = tpu.matmul %657, %656, %cst_341 {dimension_numbers = #tpu.dot_dimension_numbers<[1], [0], [0], [1], [0, 0, 1, 1], [], []>} : vector<48x48xf32>, vector<48x32xf32>, vector<48x32xf32> -> vector<48x32xf32>
    %c11_342 = arith.constant 11 : index
    %c0_343 = arith.constant 0 : index
    %c0_344 = arith.constant 0 : index
    %659 = vector.load %arg1[%c11_342, %c0_343, %c0_344] : memref<12x32x32xf32, #tpu.memory_space<vmem>>, vector<1x32x32xf32>
    %660 = vector.shape_cast %659 : vector<1x32x32xf32> to vector<32x32xf32>
    %cst_345 = arith.constant dense<0.000000e+00> : vector<48x32xf32>
    %661 = tpu.matmul %658, %660, %cst_345 {dimension_numbers = #tpu.dot_dimension_numbers<[1], [0], [0], [1], [0, 0, 1, 1], [], []>} : vector<48x32xf32>, vector<32x32xf32>, vector<48x32xf32> -> vector<48x32xf32>
    %c16 = arith.constant 16 : index
    %c0_346 = arith.constant 0 : index
    %c0_347 = arith.constant 0 : index
    %662 = vector.load %arg5[%c16, %c0_346, %c0_347] : memref<47x1x32xf32, #tpu.memory_space<vmem>>, vector<1x1x32xf32>
    %663 = vector.shape_cast %662 : vector<1x1x32xf32> to vector<1x32xf32>
    %664 = vector.broadcast %663 : vector<1x32xf32> to vector<48x32xf32>
    %665 = arith.addf %661, %664 : vector<48x32xf32>
    %666 = arith.addf %656, %665 : vector<48x32xf32>
    %cst_348 = arith.constant dense<0.000000e+00> : vector<48xf32>
    %667 = vector.multi_reduction <add>, %666, %cst_348 [1] : vector<48x32xf32> to vector<48xf32>
    %668 = vector.shape_cast %667 : vector<48xf32> to vector<48x1xf32>
    %cst_349 = arith.constant 3.200000e+01 : f32
    %669 = vector.broadcast %cst_349 : f32 to vector<48x1xf32>
    %670 = arith.divf %668, %669 : vector<48x1xf32>
    %671 = vector.broadcast %670 : vector<48x1xf32> to vector<48x32xf32>
    %672 = arith.subf %666, %671 : vector<48x32xf32>
    %673 = arith.mulf %672, %672 : vector<48x32xf32>
    %cst_350 = arith.constant dense<0.000000e+00> : vector<48xf32>
    %674 = vector.multi_reduction <add>, %673, %cst_350 [1] : vector<48x32xf32> to vector<48xf32>
    %675 = vector.shape_cast %674 : vector<48xf32> to vector<48x1xf32>
    %cst_351 = arith.constant 3.200000e+01 : f32
    %676 = vector.broadcast %cst_351 : f32 to vector<48x1xf32>
    %677 = arith.divf %675, %676 : vector<48x1xf32>
    %cst_352 = arith.constant 9.99999974E-6 : f32
    %678 = vector.broadcast %cst_352 : f32 to vector<48x1xf32>
    %679 = arith.addf %677, %678 : vector<48x1xf32>
    %680 = math.rsqrt %679 : vector<48x1xf32>
    %681 = vector.broadcast %680 : vector<48x1xf32> to vector<48x32xf32>
    %682 = arith.mulf %672, %681 : vector<48x32xf32>
    %c29 = arith.constant 29 : index
    %c0_353 = arith.constant 0 : index
    %c0_354 = arith.constant 0 : index
    %683 = vector.load %arg5[%c29, %c0_353, %c0_354] : memref<47x1x32xf32, #tpu.memory_space<vmem>>, vector<1x1x32xf32>
    %684 = vector.shape_cast %683 : vector<1x1x32xf32> to vector<1x32xf32>
    %685 = vector.broadcast %684 : vector<1x32xf32> to vector<48x32xf32>
    %686 = arith.mulf %682, %685 : vector<48x32xf32>
    %c44 = arith.constant 44 : index
    %c0_355 = arith.constant 0 : index
    %c0_356 = arith.constant 0 : index
    %687 = vector.load %arg5[%c44, %c0_355, %c0_356] : memref<47x1x32xf32, #tpu.memory_space<vmem>>, vector<1x1x32xf32>
    %688 = vector.shape_cast %687 : vector<1x1x32xf32> to vector<1x32xf32>
    %689 = vector.broadcast %688 : vector<1x32xf32> to vector<48x32xf32>
    %690 = arith.addf %686, %689 : vector<48x32xf32>
    %691 = arith.addf %632, %690 : vector<48x32xf32>
    %cst_357 = arith.constant dense<0.000000e+00> : vector<48xf32>
    %692 = vector.multi_reduction <add>, %691, %cst_357 [1] : vector<48x32xf32> to vector<48xf32>
    %693 = vector.shape_cast %692 : vector<48xf32> to vector<48x1xf32>
    %cst_358 = arith.constant 3.200000e+01 : f32
    %694 = vector.broadcast %cst_358 : f32 to vector<48x1xf32>
    %695 = arith.divf %693, %694 : vector<48x1xf32>
    %696 = vector.broadcast %695 : vector<48x1xf32> to vector<48x32xf32>
    %697 = arith.subf %691, %696 : vector<48x32xf32>
    %698 = arith.mulf %697, %697 : vector<48x32xf32>
    %cst_359 = arith.constant dense<0.000000e+00> : vector<48xf32>
    %699 = vector.multi_reduction <add>, %698, %cst_359 [1] : vector<48x32xf32> to vector<48xf32>
    %700 = vector.shape_cast %699 : vector<48xf32> to vector<48x1xf32>
    %cst_360 = arith.constant 3.200000e+01 : f32
    %701 = vector.broadcast %cst_360 : f32 to vector<48x1xf32>
    %702 = arith.divf %700, %701 : vector<48x1xf32>
    %cst_361 = arith.constant 9.99999974E-6 : f32
    %703 = vector.broadcast %cst_361 : f32 to vector<48x1xf32>
    %704 = arith.addf %702, %703 : vector<48x1xf32>
    %705 = math.rsqrt %704 : vector<48x1xf32>
    %706 = vector.broadcast %705 : vector<48x1xf32> to vector<48x32xf32>
    %707 = arith.mulf %697, %706 : vector<48x32xf32>
    %c30 = arith.constant 30 : index
    %c0_362 = arith.constant 0 : index
    %c0_363 = arith.constant 0 : index
    %708 = vector.load %arg5[%c30, %c0_362, %c0_363] : memref<47x1x32xf32, #tpu.memory_space<vmem>>, vector<1x1x32xf32>
    %709 = vector.shape_cast %708 : vector<1x1x32xf32> to vector<1x32xf32>
    %710 = vector.broadcast %709 : vector<1x32xf32> to vector<48x32xf32>
    %711 = arith.mulf %707, %710 : vector<48x32xf32>
    %c45 = arith.constant 45 : index
    %c0_364 = arith.constant 0 : index
    %c0_365 = arith.constant 0 : index
    %712 = vector.load %arg5[%c45, %c0_364, %c0_365] : memref<47x1x32xf32, #tpu.memory_space<vmem>>, vector<1x1x32xf32>
    %713 = vector.shape_cast %712 : vector<1x1x32xf32> to vector<1x32xf32>
    %714 = vector.broadcast %713 : vector<1x32xf32> to vector<48x32xf32>
    %715 = arith.addf %711, %714 : vector<48x32xf32>
    %c9_366 = arith.constant 9 : index
    %c0_367 = arith.constant 0 : index
    %c0_368 = arith.constant 0 : index
    %716 = vector.load %arg2[%c9_366, %c0_367, %c0_368] : memref<11x32x128xf32, #tpu.memory_space<vmem>>, vector<1x32x128xf32>
    %717 = vector.shape_cast %716 : vector<1x32x128xf32> to vector<32x128xf32>
    %cst_369 = arith.constant dense<0.000000e+00> : vector<48x128xf32>
    %718 = tpu.matmul %715, %717, %cst_369 {dimension_numbers = #tpu.dot_dimension_numbers<[1], [0], [0], [1], [0, 0, 1, 1], [], []>} : vector<48x32xf32>, vector<32x128xf32>, vector<48x128xf32> -> vector<48x128xf32>
    %c9_370 = arith.constant 9 : index
    %c0_371 = arith.constant 0 : index
    %c0_372 = arith.constant 0 : index
    %719 = vector.load %arg4[%c9_370, %c0_371, %c0_372] : memref<10x1x128xf32, #tpu.memory_space<vmem>>, vector<1x1x128xf32>
    %720 = vector.shape_cast %719 : vector<1x1x128xf32> to vector<1x128xf32>
    %721 = vector.broadcast %720 : vector<1x128xf32> to vector<48x128xf32>
    %722 = arith.addf %718, %721 : vector<48x128xf32>
    %cst_373 = arith.constant 5.000000e-01 : f32
    %723 = vector.broadcast %cst_373 : f32 to vector<48x128xf32>
    %724 = arith.mulf %723, %722 : vector<48x128xf32>
    %cst_374 = arith.constant 4.471500e-02 : f32
    %725 = vector.broadcast %cst_374 : f32 to vector<48x128xf32>
    %726 = arith.mulf %725, %722 : vector<48x128xf32>
    %727 = arith.mulf %726, %722 : vector<48x128xf32>
    %728 = arith.mulf %727, %722 : vector<48x128xf32>
    %729 = arith.addf %722, %728 : vector<48x128xf32>
    %cst_375 = arith.constant 0.797884583 : f32
    %730 = vector.broadcast %cst_375 : f32 to vector<48x128xf32>
    %731 = arith.mulf %730, %729 : vector<48x128xf32>
    %732 = math.tanh %731 : vector<48x128xf32>
    %cst_376 = arith.constant 1.000000e+00 : f32
    %733 = vector.broadcast %cst_376 : f32 to vector<48x128xf32>
    %734 = arith.addf %733, %732 : vector<48x128xf32>
    %735 = arith.mulf %724, %734 : vector<48x128xf32>
    %c4_377 = arith.constant 4 : index
    %c0_378 = arith.constant 0 : index
    %c0_379 = arith.constant 0 : index
    %736 = vector.load %arg3[%c4_377, %c0_378, %c0_379] : memref<5x128x32xf32, #tpu.memory_space<vmem>>, vector<1x128x32xf32>
    %737 = vector.shape_cast %736 : vector<1x128x32xf32> to vector<128x32xf32>
    %cst_380 = arith.constant dense<0.000000e+00> : vector<48x32xf32>
    %738 = tpu.matmul %735, %737, %cst_380 {dimension_numbers = #tpu.dot_dimension_numbers<[1], [0], [0], [1], [0, 0, 1, 1], [], []>} : vector<48x128xf32>, vector<128x32xf32>, vector<48x32xf32> -> vector<48x32xf32>
    %c14 = arith.constant 14 : index
    %c0_381 = arith.constant 0 : index
    %c0_382 = arith.constant 0 : index
    %739 = vector.load %arg5[%c14, %c0_381, %c0_382] : memref<47x1x32xf32, #tpu.memory_space<vmem>>, vector<1x1x32xf32>
    %740 = vector.shape_cast %739 : vector<1x1x32xf32> to vector<1x32xf32>
    %741 = vector.broadcast %740 : vector<1x32xf32> to vector<48x32xf32>
    %742 = arith.addf %738, %741 : vector<48x32xf32>
    %743 = arith.addf %691, %742 : vector<48x32xf32>
    %cst_383 = arith.constant dense<0.000000e+00> : vector<48xf32>
    %744 = vector.multi_reduction <add>, %743, %cst_383 [1] : vector<48x32xf32> to vector<48xf32>
    %745 = vector.shape_cast %744 : vector<48xf32> to vector<48x1xf32>
    %cst_384 = arith.constant 3.200000e+01 : f32
    %746 = vector.broadcast %cst_384 : f32 to vector<48x1xf32>
    %747 = arith.divf %745, %746 : vector<48x1xf32>
    %748 = vector.broadcast %747 : vector<48x1xf32> to vector<48x32xf32>
    %749 = arith.subf %743, %748 : vector<48x32xf32>
    %750 = arith.mulf %749, %749 : vector<48x32xf32>
    %cst_385 = arith.constant dense<0.000000e+00> : vector<48xf32>
    %751 = vector.multi_reduction <add>, %750, %cst_385 [1] : vector<48x32xf32> to vector<48xf32>
    %752 = vector.shape_cast %751 : vector<48xf32> to vector<48x1xf32>
    %cst_386 = arith.constant 3.200000e+01 : f32
    %753 = vector.broadcast %cst_386 : f32 to vector<48x1xf32>
    %754 = arith.divf %752, %753 : vector<48x1xf32>
    %cst_387 = arith.constant 9.99999974E-6 : f32
    %755 = vector.broadcast %cst_387 : f32 to vector<48x1xf32>
    %756 = arith.addf %754, %755 : vector<48x1xf32>
    %757 = math.rsqrt %756 : vector<48x1xf32>
    %758 = vector.broadcast %757 : vector<48x1xf32> to vector<48x32xf32>
    %759 = arith.mulf %749, %758 : vector<48x32xf32>
    %c31 = arith.constant 31 : index
    %c0_388 = arith.constant 0 : index
    %c0_389 = arith.constant 0 : index
    %760 = vector.load %arg5[%c31, %c0_388, %c0_389] : memref<47x1x32xf32, #tpu.memory_space<vmem>>, vector<1x1x32xf32>
    %761 = vector.shape_cast %760 : vector<1x1x32xf32> to vector<1x32xf32>
    %762 = vector.broadcast %761 : vector<1x32xf32> to vector<48x32xf32>
    %763 = arith.mulf %759, %762 : vector<48x32xf32>
    %c46 = arith.constant 46 : index
    %c0_390 = arith.constant 0 : index
    %c0_391 = arith.constant 0 : index
    %764 = vector.load %arg5[%c46, %c0_390, %c0_391] : memref<47x1x32xf32, #tpu.memory_space<vmem>>, vector<1x1x32xf32>
    %765 = vector.shape_cast %764 : vector<1x1x32xf32> to vector<1x32xf32>
    %766 = vector.broadcast %765 : vector<1x32xf32> to vector<48x32xf32>
    %767 = arith.addf %763, %766 : vector<48x32xf32>
    %cst_392 = arith.constant dense<0.000000e+00> : vector<48x128xf32>
    %768 = tpu.matmul %767, %2, %cst_392 {dimension_numbers = #tpu.dot_dimension_numbers<[1], [0], [0], [1], [0, 0, 1, 1], [], []>} : vector<48x32xf32>, vector<32x128xf32>, vector<48x128xf32> -> vector<48x128xf32>
    %c0_393 = arith.constant 0 : index
    %c0_394 = arith.constant 0 : index
    %769 = vector.load %arg10[%c0_393, %c0_394] : memref<48x128xf32, #tpu.memory_space<vmem>>, vector<48x128xf32>
    tpu.vector_store %arg10[%c0_393, %c0_394], %768 {strides = array<i32>} : memref<48x128xf32, #tpu.memory_space<vmem>>, vector<48x128xf32>,
    return
  }
}

</mosaic_0001>

<bundles_post_ra>
// kernel: gpt_forward_fused.1
= control target key start
LH: loop header
LB: loop body
LE: loop exit
PB: predicated region body
PF: predicated region fallthrough
CT: control target
= control target key end

     0   :  { %15 = vsyncpa [#allocation3], 0  ;;  %s16440_s0 = inlined_call_operand.vmem [shape: s32[48,1], index: 0, kind: input, shape index: {}]   ;;  %s16441_s1 = inlined_call_operand.vmem [shape: f32[12,32,32], index: 1, kind: input, shape index: {}]   ;;  %s16442_s2 = inlined_call_operand.vmem [shape: f32[11,32,128], index: 2, kind: input, shape index: {}]   ;;  %s16443_s3 = inlined_call_operand.vmem [shape: f32[5,128,32], index: 3, kind: input, shape index: {}]   ;;  %s16444_s4 = inlined_call_operand.hbm [shape: f32[10,1,128], index: 4, kind: input, shape index: {}]   ;;  %s16445_s5 = inlined_call_operand.vmem [shape: f32[47,1,32], index: 5, kind: input, shape index: {}]   ;;  %s16446_s6 = inlined_call_operand.vmem [shape: f32[2,48,128], index: 6, kind: input, shape index: {}]   ;;  %s16447_s7 = inlined_call_operand.vmem [shape: f32[2,48,192], index: 7, kind: input, shape index: {}]   ;;  %s16448_s8 = inlined_call_operand.hbm [shape: f32[48,48], index: 8, kind: input, shape index: {}]   ;;  %s16449_s9 = inlined_call_operand.vmem [shape: f32[192,32], index: 9, kind: input, shape index: {}]   ;;  %s16450_s10 = inlined_call_operand.hbm [shape: f32[48,128], index: 10, kind: output, shape index: {}]  }
   0x1   :  { %16 = vsyncpa [#allocation6], 0 }
   0x2   :  { %17 = vsyncpa [#allocation4], 0  ;;  %s12555_s13 = smov [#allocation2]   ;;  %s12483_s17 = scalar_lea.hbm %s16444_s4, 160 }
   0x3   :  { %s31_s14 = sshll.u32 %s12555_s13, 4  ;;  %p12484_p0 = scmp.ne.s32.totalorder %s16444_s4, %s12483_s17  ;;  %s32_s14 = int_to_ptr.vmem [resolvable:$true] %s31_s14 }
   0x4   :  { %p12487_p1 = scmp.lt.u32.totalorder %s12483_s17, %s16444_s4 }
   0x6   :  { %p12489_p2 = pnand %p12487_p1, %p12484_p0 }
   0x8   :  { %12492 = shalt.err (!%p12489_p2)
}
   0x9   :  { %s12493_s22 = scalar_lea.vmem %s32_s14, 160  ;;  %p12498_p4 = scmp.lt.s32.totalorder %s32_s14, %s32_s14 }
   0xa   :  { %p12494_p3 = scmp.ne.s32.totalorder %s32_s14, %s12493_s22  ;;  %p12499_p5 = scmp.lt.s32.totalorder %s12493_s22, %s12493_s22 }
   0xc   :  { %p12500_p6 = por %p12499_p5, %p12498_p4 }
   0xe   :  { %p12501_p7 = pnand %p12500_p6, %p12494_p3 }
  0x10   :  { %12504 = shalt.err (!%p12501_p7)
}
  0x11   :  { %s12556_s23 = smov 16   ;;  %s12557_s24 = smov 1  }
  0x12   :  { %37 = dma.hbm_to_vmem [thread:$0]  %s16444_s4, 160, %s32_s14, [#allocation3], %s12556_s23, %s12556_s23, %s12557_s24  }
  0x13   :  { %s12558_s27 = smov [#allocation5]   ;;  %s12505_s11 = scalar_lea.hbm %s16448_s8, 768 }
  0x14   :  { %s49_s28 = sshll.u32 %s12558_s27, 4  ;;  %p12506_p8 = scmp.ne.s32.totalorder %s16448_s8, %s12505_s11  ;;  %s50_s28 = int_to_ptr.vmem [resolvable:$true] %s49_s28 }
  0x15   :  { %p12509_p9 = scmp.lt.u32.totalorder %s12505_s11, %s16448_s8 }
  0x17   :  { %p12511_p10 = pnand %p12509_p9, %p12506_p8 }
  0x19   :  { %12514 = shalt.err (!%p12511_p10)
}
  0x1a   :  { %s12515_s17 = scalar_lea.vmem %s50_s28, 768  ;;  %p12520_p12 = scmp.lt.s32.totalorder %s50_s28, %s50_s28 }
  0x1b   :  { %p12516_p11 = scmp.ne.s32.totalorder %s50_s28, %s12515_s17  ;;  %p12521_p13 = scmp.lt.s32.totalorder %s12515_s17, %s12515_s17 }
  0x1d   :  { %p12522_p0 = por %p12521_p13, %p12520_p12 }
  0x1f   :  { %p12523_p1 = pnand %p12522_p0, %p12516_p11 }
  0x21   :  { %12526 = shalt.err (!%p12523_p1)
}
  0x22   :  { %s12559_s4 = smov 128   ;;  %s12560_s14 = smov 8  }
  0x23   :  { %55 = dma.hbm_to_vmem [thread:$0]  %s16448_s8, 768, %s50_s28, [#allocation6], %s12559_s4, %s12559_s4, %s12560_s14  }
  0x24   :  { %12549 = dma.done.wait [#allocation3], 160  }
  0x25   :  { %12550 = vsyncadd [#allocation3], 4294967136 }
  0x26   :  { %12551 = dma.done.wait [#allocation6], 768  }
  0x27   :  { %12552 = vsyncadd [#allocation6], 4294966528  ;;  %v12561_v0 = vmov 0   ;;  %v97_v1 = vld [vmem:[%s16440_s0 + $0x10] sm:$0xff]  ;;  %v95_v2 = vld [vmem:[%s16440_s0] sm:$0xff]  ;;  %v93_v13 = vlaneseq  ;;  %v12562_v17 = vmov 1.0  }
  0x28   :  { %11606 = vset.pattern.permute.xlu1 %v12561_v0  ;;  %11605 = vset.pattern.permute.xlu0 %v12561_v0  ;;  %v98_v3 = vld [vmem:[%s16440_s0 + $0x18] sm:$0xff]  ;;  %v96_v4 = vld [vmem:[%s16440_s0 + $0x8] sm:$0xff]  ;;  %v8951_v5 = vld [vmem:[%s16442_s2 + $0x140] sm:$0xff]  ;;  %vm226_vm6 = vcmask 261120   ;;  %s12563_s20 = smov 32   ;;  %s12565_s21 = smov 64  }
  0x29   :  { %108 = vperm.xlu1 %11606, %v97_v1   ;;  %102 = vperm.xlu0 %11605, %v95_v2   ;;  %v8952_v6 = vld [vmem:[%s16442_s2 + $0x148] sm:$0xff]  ;;  %v8953_v7 = vld [vmem:[%s16442_s2 + $0x150] sm:$0xff]  ;;  %v8954_v9 = vld [vmem:[%s16442_s2 + $0x158] sm:$0xff]  ;;  %v94_v14 = vand.u32 127, %v93_v13  ;;  %s12566_s24 = smov 96   ;;  %vm1001_vm8 = vcmask 523264  }
  0x2a   :  { %v12672_v8 = vpack.c.bf16 %v8952_v6, %v8951_v5  ;;  %v12677_v10 = vpack.c.bf16 %v8954_v9, %v8953_v7  ;;  %v100_v11 = vld [vmem:[%s16440_s0 + $0x28] sm:$0xff]  ;;  %v99_v12 = vld [vmem:[%s16440_s0 + $0x20] sm:$0xff]  ;;  %v336_v6 = vld [vmem:[%s16442_s2 + $0x10] sm:$0xff]  ;;  %vm6006_vm9 = vcmask 392192  }
  0x2b   :  { %v334_v0 = vld [vmem:[%s16442_s2] sm:$0xff]  ;;  %v335_v1 = vld [vmem:[%s16442_s2 + $0x8] sm:$0xff]  ;;  %v337_v7 = vld [vmem:[%s16442_s2 + $0x18] sm:$0xff] }
  0x2c   :  { %16529 = vst [vmem:[#allocation11_spill] sm:$0xff] %v12672_v8  ;;  %16530 = vst [vmem:[#allocation12_spill] sm:$0xff] %v12677_v10  ;;  %10616 = vmatprep.subr.bf16.mxu0 %v12672_v8  ;;  %v500_v2 = vld [vmem:[%s16441_s1] sm:$0xff]  ;;  %v502_v9 = vld [vmem:[%s16441_s1 + $0x10] sm:$0xff] }
  0x2d   :  { %111 = vperm.xlu1 %11606, %v98_v3   ;;  %105 = vperm.xlu0 %11605, %v96_v4   ;;  %v10623_v3 = vpack.c.bf16 %v335_v1, %v334_v0  ;;  %v501_v4 = vld [vmem:[%s16441_s1 + $0x8] sm:$0xff]  ;;  %vm13186_vm7 = vmpackc.low %vm226_vm6, %vm226_vm6 }
  0x2e   :  { %10618 = vmatpush3.bf16.xpose.msra.mxu0 %v12672_v8  ;;  %v10631_v5 = vpack.c.bf16 %v501_v4, %v500_v2  ;;  %v12806_v2 = vld [vmem:[#allocation2] ss:$0 sm:$0xff]  ;;  %v459_v4 = vld [vmem:[%s16446_s6 + $0x8] sm:$0xff] }
  0x2f   :  { %10620 = vmatprep.subr.bf16.mxu0 %v12677_v10 }
  0x30   :  { %10632 = vmatprep.subr.bf16.mxu1 %v10631_v5 }
  0x31   :  { %117 = vperm.xlu1 %11606, %v100_v11   ;;  %114 = vperm.xlu0 %11605, %v99_v12   ;;  %v10627_v11 = vpack.c.bf16 %v337_v7, %v336_v6  ;;  %v503_v12 = vld [vmem:[%s16441_s1 + $0x18] sm:$0xff]  ;;  %v12819_v6 = vld [vmem:[%s16449_s9 + $0x8] sm:$0xff] }
  0x32   :  { %10634 = vmatpush3.bf16.msra.mxu1 %v10631_v5  ;;  %v10635_v13 = vpack.c.bf16 %v503_v12, %v502_v9  ;;  %v12824_v7 = vld [vmem:[%s16449_s9 + $0x38] sm:$0xff]  ;;  %v12829_v9 = vld [vmem:[%s16449_s9 + $0x68] sm:$0xff] }
  0x34   :  { %10636 = vmatprep.subr.bf16.mxu1 %v10635_v13 }
  0x36   :  { %10622 = vmatpush3.bf16.xpose.msra.mxu0 %v12677_v10  ;;  %10638 = vmatpush3.bf16.msra.mxu1 %v10635_v13  ;;  %v12835_v13 = vld [vmem:[%s16449_s9 + $0x98] sm:$0xff] }
  0x37   :  { %10624 = vmatprep.subr.bf16.mxu0 %v10623_v3 }
  0xa8   :  { %v109_v15 = vpop.permute.xlu1 %108  ;;  %v103_v16 = vpop.permute.xlu0 %102 }
  0xa9   :  { %vm119_vm0 = vcmp.eq.s32.totalorder %v94_v14, %v103_v16  ;;  %vm121_vm1 = vcmp.eq.s32.totalorder %v94_v14, %v109_v15 }
  0xaa   :  { %9968 = vmatprep.mubr.msk.f32.mxu0 %vm119_vm0, %v12562_v17 }
  0xac   :  { %v112_v18 = vpop.permute.xlu1 %111  ;;  %v106_v19 = vpop.permute.xlu0 %105 }
  0xad   :  { %vm120_vm2 = vcmp.eq.s32.totalorder %v94_v14, %v106_v19  ;;  %vm122_vm3 = vcmp.eq.s32.totalorder %v94_v14, %v112_v18 }
  0xae   :  { %9969 = vmatmul.mubr.msk.f32.vlgmr.msra.gmra.mrb[0].mxu0 %vm120_vm2, %v12562_v17 }
  0xaf   :  { %9971 = vmatprep.mubr.msk.f32.mxu0 %vm121_vm1, %v12562_v17  ;;  %10626 = vmatpush3.bf16.msra.mxu0 %v10623_v3  ;;  %v12811_v3 = vld [vmem:[%s16445_s5] ss:$0 sm:$0xff] }
  0xb0   :  { %v115_v20 = vpop.permute.xlu0 %114  ;;  %v118_v21 = vpop.permute.xlu1 %117  ;;  %10628 = vmatprep.subr.bf16.mxu0 %v10627_v11 }
  0xb1   :  { %vm123_vm4 = vcmp.eq.s32.totalorder %v94_v14, %v115_v20  ;;  %vm124_vm5 = vcmp.eq.s32.totalorder %v94_v14, %v118_v21 }
  0xb2   :  { %9972 = vmatmul.mubr.msk.f32.gmra.mrb[2].mxu0 %vm122_vm3, %v12562_v17 }
  0xb3   :  { %9974 = vmatprep.mubr.msk.f32.mxu0 %vm123_vm4, %v12562_v17  ;;  %10630 = vmatpush3.bf16.msra.mxu0 %v10627_v11 }
  0xb6   :  { %9975 = vmatmul.mubr.msk.f32.gmra.mrb[4].mxu0 %vm124_vm5, %v12562_v17 }
 0x181   :  { %v12689_v22 = vpop.f32.mrb[0].mxu0 }
 0x182   :  { %v12691_v23 = vpop.f32.mrb[1].mxu0  ;;  %v230_v24 = vsel %vm226_vm6, %v12689_v22, 0.0 }
 0x183   :  { %231 = vadd.xlane.f32.xlu1 %v230_v24  ;;  %v227_v25 = vsel %vm226_vm6, %v12691_v23, 0.0 }
 0x184   :  { %228 = vadd.xlane.f32.xlu0 %v227_v25 }
 0x185   :  { %v12697_v26 = vpop.f32.mrb[2].mxu0 }
 0x186   :  { %v12699_v27 = vpop.f32.mrb[3].mxu0  ;;  %v236_v31 = vsel %vm226_vm6, %v12697_v26, 0.0 }
 0x187   :  { %v233_v28 = vsel %vm226_vm6, %v12699_v27, 0.0 }
 0x188   :  { %234 = vadd.xlane.f32.xlu0 %v233_v28 }
 0x189   :  { %v12703_v29 = vpop.f32.mrb[4].mxu0 }
 0x18a   :  { %v12705_v30 = vpop.f32.mrb[5].mxu0  ;;  %v242_v33 = vsel %vm226_vm6, %v12703_v29, 0.0 }
 0x18b   :  { %16531 = vst [vmem:[#allocation13_spill] sm:$0xff] %v12705_v30  ;;  %v239_v32 = vsel %vm226_vm6, %v12705_v30, 0.0 }
 0x18c   :  { %237 = vadd.xlane.f32.xlu0 %v236_v31  ;;  %240 = vadd.xlane.f32.xlu1 %v239_v32 }
 0x190   :  { %243 = vadd.xlane.f32.xlu0 %v242_v33 }
 0x210   :  { %v232_v34 = vpop.xlane.xlu1 %231 }
 0x211   :  { %v247_v35 = vmul.f32 0.03125, %v232_v34  ;;  %v229_v36 = vpop.xlane.xlu0 %228 }
 0x212   :  { %v246_v37 = vmul.f32 0.03125, %v229_v36 }
 0x213   :  { %v12714_v38 = vsub.f32 %v12689_v22, %v247_v35 }
 0x214   :  { %v12717_v39 = vsub.f32 %v12691_v23, %v246_v37 }
 0x215   :  { %v235_v40 = vpop.xlane.xlu0 %234  ;;  %v259_v41 = vmul.f32 %v12714_v38, %v12714_v38 }
 0x216   :  { %v248_v42 = vmul.f32 0.03125, %v235_v40  ;;  %v258_v43 = vmul.f32 %v12717_v39, %v12717_v39  ;;  %v8962_v40 = vld [vmem:[%s16445_s5 + $0x11] ss:$0 sm:$0xff] }
 0x217   :  { %v267_v44 = vsel %vm226_vm6, %v259_v41, 0.0 }
 0x218   :  { %v12725_v45 = vsub.f32 %v12699_v27, %v248_v42  ;;  %268 = vadd.xlane.f32.xlu0 %v267_v44  ;;  %v264_v46 = vsel %vm226_vm6, %v258_v43, 0.0 }
 0x219   :  { %v238_v47 = vpop.xlane.xlu0 %237  ;;  %265 = vadd.xlane.f32.xlu1 %v264_v46  ;;  %v241_v48 = vpop.xlane.xlu1 %240 }
 0x21a   :  { %v249_v49 = vmul.f32 0.03125, %v238_v47  ;;  %v250_v50 = vmul.f32 0.03125, %v241_v48  ;;  %v260_v51 = vmul.f32 %v12725_v45, %v12725_v45  ;;  %v8964_v47 = vld [vmem:[%s16445_s5 + $0x20] ss:$0 sm:$0xff] }
 0x21c   :  { %v12731_v52 = vsub.f32 %v12697_v26, %v249_v49  ;;  %v12734_v53 = vsub.f32 %v12705_v30, %v250_v50  ;;  %v270_v54 = vsel %vm226_vm6, %v260_v51, 0.0 }
 0x21d   :  { %v244_v55 = vpop.xlane.xlu0 %243  ;;  %271 = vadd.xlane.f32.xlu1 %v270_v54 }
 0x21e   :  { %v251_v56 = vmul.f32 0.03125, %v244_v55  ;;  %v261_v57 = vmul.f32 %v12731_v52, %v12731_v52  ;;  %v262_v58 = vmul.f32 %v12734_v53, %v12734_v53 }
 0x220   :  { %v12742_v59 = vsub.f32 %v12703_v29, %v251_v56  ;;  %v273_v60 = vsel %vm226_vm6, %v261_v57, 0.0  ;;  %v276_v61 = vsel %vm226_vm6, %v262_v58, 0.0 }
 0x221   :  { %274 = vadd.xlane.f32.xlu0 %v273_v60  ;;  %277 = vadd.xlane.f32.xlu1 %v276_v61 }
 0x222   :  { %v263_v62 = vmul.f32 %v12742_v59, %v12742_v59 }
 0x224   :  { %v279_v63 = vsel %vm226_vm6, %v263_v62, 0.0 }
 0x225   :  { %280 = vadd.xlane.f32.xlu0 %v279_v63 }
 0x2a5   :  { %v269_v14 = vpop.xlane.xlu0 %268 }
 0x2a6   :  { %v283_v15 = vmul.f32 0.03125, %v269_v14  ;;  %v266_v16 = vpop.xlane.xlu1 %265 }
 0x2a7   :  { %v282_v17 = vmul.f32 0.03125, %v266_v16  ;;  %v458_v16 = vld [vmem:[%s16446_s6] sm:$0xff] }
 0x2a8   :  { %v289_v18 = vadd.f32 1e-05, %v283_v15 }
 0x2a9   :  { %v288_v19 = vadd.f32 1e-05, %v282_v17  ;;  %v12844_v17 = vld [vmem:[%s16449_s9 + $0x30] sm:$0xff] }
 0x2aa   :  { %11907 = vrsqrt.f32 %v289_v18  ;;  %v272_v20 = vpop.xlane.xlu1 %271 }
 0x2ab   :  { %11909 = vrsqrt.f32 %v288_v19  ;;  %v284_v21 = vmul.f32 0.03125, %v272_v20  ;;  %v12850_v20 = vld [vmem:[%s16449_s9 + $0x60] sm:$0xff] }
 0x2ad   :  { %v290_v24 = vadd.f32 1e-05, %v284_v21  ;;  %v12855_v21 = vld [vmem:[%s16449_s9 + $0x90] sm:$0xff] }
 0x2ae   :  { %v275_v25 = vpop.xlane.xlu0 %274  ;;  %v278_v28 = vpop.xlane.xlu1 %277 }
 0x2af   :  { %11911 = vrsqrt.f32 %v290_v24  ;;  %v285_v31 = vmul.f32 0.03125, %v275_v25  ;;  %v286_v32 = vmul.f32 0.03125, %v278_v28 }
 0x2b1   :  { %v291_v33 = vadd.f32 1e-05, %v285_v31  ;;  %v292_v34 = vadd.f32 1e-05, %v286_v32 }
 0x2b2   :  { %v281_v35 = vpop.xlane.xlu0 %280 }
 0x2b3   :  { %11913 = vrsqrt.f32 %v291_v33  ;;  %v287_v36 = vmul.f32 0.03125, %v281_v35 }
 0x2b4   :  { %v11908_v37 = vpop.eup %11907  ;;  %11915 = vrsqrt.f32 %v292_v34 }
 0x2b5   :  { %v11910_v41 = vpop.eup %11909  ;;  %v301_v42 = vmul.f32 %v11908_v37, %v12714_v38  ;;  %v293_v43 = vadd.f32 1e-05, %v287_v36 }
 0x2b6   :  { %v300_v44 = vmul.f32 %v11910_v41, %v12717_v39  ;;  %v461_v41 = vld [vmem:[%s16446_s6 + $0x18] sm:$0xff] }
 0x2b7   :  { %v315_v46 = vmul.f32 %v8962_v40, %v301_v42  ;;  %11917 = vrsqrt.f32 %v293_v43 }
 0x2b8   :  { %v314_v48 = vmul.f32 %v8962_v40, %v300_v44 }
 0x2b9   :  { %v11912_v49 = vpop.eup %11911  ;;  %v329_v54 = vadd.f32 %v8964_v47, %v315_v46  ;;  %v12894_v46 = vld [vmem:[%s16449_s9 + $0x18] sm:$0xff] }
 0x2ba   :  { %v328_v50 = vadd.f32 %v8964_v47, %v314_v48  ;;  %v302_v51 = vmul.f32 %v11912_v49, %v12725_v45  ;;  %v12904_v48 = vld [vmem:[%s16449_s9 + $0x78] sm:$0xff] }
 0x2bc   :  { %9985 = vmatprep.mubr.msk.f32.mxu0 %vm226_vm6, %v328_v50  ;;  %10002 = vmatprep.mubr.msk.f32.mxu1 %vm226_vm6, %v328_v50  ;;  %v316_v38 = vmul.f32 %v8962_v40, %v302_v51 }
 0x2bd   :  { %v11914_v55 = vpop.eup %11913  ;;  %9986 = vmatmul.mubr.msk.f32.vlgmr.msra.gmra.mrb[6].mxu0 %vm226_vm6, %v329_v54  ;;  %10003 = vmatmul.mubr.msk.f32.vlgmr.msra.gmra.mrb[0].mxu1 %vm226_vm6, %v329_v54 }
 0x2be   :  { %v11916_v39 = vpop.eup %11915  ;;  %v330_v56 = vadd.f32 %v8964_v47, %v316_v38  ;;  %v303_v57 = vmul.f32 %v11914_v55, %v12731_v52 }
 0x2bf   :  { %v304_v58 = vmul.f32 %v11916_v39, %v12734_v53  ;;  %v12800_v53 = vld [vmem:[%s16449_s9] sm:$0xff]  ;;  %v460_v39 = vld [vmem:[%s16446_s6 + $0x10] sm:$0xff] }
 0x2c0   :  { %9988 = vmatprep.mubr.msk.f32.mxu0 %vm226_vm6, %v330_v56  ;;  %10005 = vmatprep.mubr.msk.f32.mxu1 %vm226_vm6, %v330_v56  ;;  %v317_v45 = vmul.f32 %v8962_v40, %v303_v57  ;;  %v12918_v56 = vld [vmem:[%s16449_s9 + $0x10] sm:$0xff]  ;;  %v12923_v57 = vld [vmem:[%s16449_s9 + $0x40] sm:$0xff] }
 0x2c1   :  { %v11918_v60 = vpop.eup %11917  ;;  %v318_v61 = vmul.f32 %v8962_v40, %v304_v58  ;;  %630 = vrot.lane.b32.xlu1 %v12800_v53, %s12563_s20 }
 0x2c2   :  { %v331_v62 = vadd.f32 %v8964_v47, %v317_v45  ;;  %v305_v63 = vmul.f32 %v11918_v60, %v12742_v59  ;;  %v16451_v59 = vmov 0.0|0.0   ;;  %v12928_v45 = vld [vmem:[%s16449_s9 + $0xa8] sm:$0xff] }
 0x2c3   :  { %v332_v0 = vadd.f32 %v8964_v47, %v318_v61  ;;  %10687 = vmatprep.subr.bf16.mxu1 %v16451_v59  ;;  %10639 = vmatprep.subr.bf16.mxu0 %v16451_v59  ;;  %v12934_v61 = vld [vmem:[%s16449_s9 + $0x70] sm:$0xff] }
 0x2c4   :  { %9989 = vmatmul.mubr.msk.f32.gmra.mrb[8].mxu0 %vm226_vm6, %v331_v62  ;;  %10006 = vmatmul.mubr.msk.f32.gmra.mrb[2].mxu1 %vm226_vm6, %v331_v62  ;;  %v319_v1 = vmul.f32 %v8962_v40, %v305_v63  ;;  %v12939_v62 = vld [vmem:[%s16449_s9 + $0xa0] sm:$0xff] }
 0x2c5   :  { %9991 = vmatprep.mubr.msk.f32.mxu0 %vm226_vm6, %v332_v0  ;;  %10008 = vmatprep.mubr.msk.f32.mxu1 %vm226_vm6, %v332_v0 }
 0x2c6   :  { %v333_v52 = vadd.f32 %v8964_v47, %v319_v1  ;;  %v12899_v47 = vld [vmem:[%s16449_s9 + $0x48] sm:$0xff] }
 0x2c8   :  { %9992 = vmatmul.mubr.msk.f32.gmra.mrb[10].mxu0 %vm226_vm6, %v333_v52  ;;  %10009 = vmatmul.mubr.msk.f32.gmra.mrb[4].mxu1 %vm226_vm6, %v333_v52 }
 0x390   :  { %v9987_v5 = vpop.f32.mrb[6].mxu0  ;;  %v10004_v11 = vpop.f32.mrb[0].mxu1 }
 0x391   :  { %v435_v12 = vadd.f32 %v9987_v5, %v12806_v2  ;;  %v583_v14 = vadd.f32 %v10004_v11, %v12811_v3  ;;  %v429_v15 = vpop.f32.mrb[7].mxu0  ;;  %v577_v18 = vpop.f32.mrb[1].mxu1 }
 0x392   :  { %v430_v19 = vadd.f32 %v12806_v2, %v429_v15  ;;  %v578_v24 = vadd.f32 %v12811_v3, %v577_v18  ;;  %v12959_v15 = vld [vmem:[%s16449_s9 + $0x28] sm:$0xff] }
 0x393   :  { %v12858_v25 = vmul.f32 %v459_v4, %v435_v12  ;;  %v727_v28 = vmul.f32 %v583_v14, %v12819_v6  ;;  %v12862_v31 = vmul.f32 %v583_v14, %v12824_v7  ;;  %v12865_v32 = vmul.f32 %v583_v14, %v12829_v9  ;;  %v12969_v18 = vld [vmem:[%s16449_s9 + $0x88] sm:$0xff] }
 0x394   :  { %v12868_v33 = vmul.f32 %v583_v14, %v12835_v13  ;;  %v12870_v34 = vmul.f32 %v458_v16, %v430_v19  ;;  %v726_v35 = vmul.f32 %v578_v24, %v12800_v53  ;;  %v12874_v36 = vmul.f32 %v578_v24, %v12844_v17  ;;  %v12964_v16 = vld [vmem:[%s16449_s9 + $0x58] sm:$0xff] }
 0x395   :  { %v12877_v37 = vmul.f32 %v578_v24, %v12850_v20  ;;  %v12880_v40 = vmul.f32 %v578_v24, %v12855_v21  ;;  %478 = vrot.lane.b32.xlu0 %v12858_v25, %s12565_s21 }
 0x396   :  { %476 = vrot.lane.b32.xlu1 %v12870_v34, %s12565_s21  ;;  %v10688_v42 = vpack.c.bf16 %v727_v28, %v726_v35 }
 0x397   :  { %v9990_v44 = vpop.f32.mrb[8].mxu0  ;;  %v10007_v49 = vpop.f32.mrb[2].mxu1 }
 0x398   :  { %v445_v54 = vadd.f32 %v9990_v44, %v12806_v2  ;;  %v593_v38 = vadd.f32 %v10007_v49, %v12811_v3  ;;  %v439_v55 = vpop.f32.mrb[9].mxu0  ;;  %v587_v58 = vpop.f32.mrb[3].mxu1  ;;  %10689 = vmatpush1.bf16.msra.mxu1 %v10688_v42  ;;  %v12987_v49 = vld [vmem:[%s16449_s9 + $0x20] sm:$0xff] }
 0x399   :  { %v440_v60 = vadd.f32 %v12806_v2, %v439_v55  ;;  %v588_v63 = vadd.f32 %v12811_v3, %v587_v58  ;;  %10690 = vmatprep.subr.bf16.mxu1 %v16451_v59  ;;  %v12997_v55 = vld [vmem:[%s16449_s9 + $0x80] sm:$0xff] }
 0x39a   :  { %v12943_v0 = vmul.f32 %v461_v41, %v445_v54  ;;  %v729_v1 = vmul.f32 %v593_v38, %v12894_v46  ;;  %v735_v52 = vmul.f32 %v593_v38, %v12899_v47  ;;  %632 = vrot.lane.b32.xlu1 %v12819_v6, %s12563_s20  ;;  %v12950_v4 = vmul.f32 %v593_v38, %v12904_v48  ;;  %v12981_v41 = vld [vmem:[%s16449_s9 + $0xb8] sm:$0xff]  ;;  %v12992_v54 = vld [vmem:[%s16449_s9 + $0x50] sm:$0xff] }
 0x39b   :  { %v12952_v5 = vmul.f32 %v460_v39, %v440_v60  ;;  %v728_v11 = vmul.f32 %v588_v63, %v12918_v56  ;;  %v734_v12 = vmul.f32 %v588_v63, %v12923_v57  ;;  %v9993_v14 = vpop.f32.mrb[10].mxu0  ;;  %v10010_v19 = vpop.f32.mrb[4].mxu1  ;;  %v12972_v24 = vmul.f32 %v593_v38, %v12928_v45  ;;  %v13002_v39 = vld [vmem:[%s16449_s9 + $0xb0] sm:$0xff] }
 0x39c   :  { %v740_v28 = vmul.f32 %v588_v63, %v12934_v61  ;;  %v12976_v35 = vmul.f32 %v588_v63, %v12939_v62  ;;  %v603_v42 = vadd.f32 %v10010_v19, %v12811_v3  ;;  %v449_v44 = vpop.f32.mrb[11].mxu0  ;;  %v597_v38 = vpop.f32.mrb[5].mxu1  ;;  %v455_v19 = vadd.f32 %v9993_v14, %v12806_v2 }
 0x39d   :  { %v598_v58 = vadd.f32 %v12811_v3, %v597_v38  ;;  %480 = vrot.lane.b32.xlu0 %v12952_v5, %s12565_s21  ;;  %v10691_v60 = vpack.c.bf16 %v729_v1, %v728_v11  ;;  %v10700_v63 = vpack.c.bf16 %v735_v52, %v734_v12  ;;  %v450_v3 = vadd.f32 %v12806_v2, %v449_v44  ;;  %v462_v52 = vld [vmem:[%s16446_s6 + $0x20] sm:$0xff] }
 0x39e   :  { %v731_v51 = vmul.f32 %v603_v42, %v12959_v15  ;;  %v737_v50 = vmul.f32 %v603_v42, %v12964_v16  ;;  %v743_v43 = vmul.f32 %v603_v42, %v12969_v18  ;;  %482 = vrot.lane.b32.xlu1 %v12943_v0, %s12565_s21  ;;  %v749_v59 = vmul.f32 %v603_v42, %v12981_v41  ;;  %v463_v42 = vld [vmem:[%s16446_s6 + $0x28] sm:$0xff] }
 0x39f   :  { %v730_v38 = vmul.f32 %v598_v58, %v12987_v49  ;;  %v736_v1 = vmul.f32 %v598_v58, %v12992_v54  ;;  %10692 = vmatpush1.bf16.msra.mxu1 %v10691_v60  ;;  %v742_v11 = vmul.f32 %v598_v58, %v12997_v55  ;;  %v748_v12 = vmul.f32 %v598_v58, %v13002_v39 }
 0x3a0   :  { %v16532_v14 = vmov 0.0|0.0   ;;  %v10709_v10 = vpack.c.bf16 %v12950_v4, %v740_v28  ;;  %v10718_v2 = vpack.c.bf16 %v12972_v24, %v12976_v35  ;;  %v468_v30 = vmul.f32 %v462_v52, %v450_v3 }
 0x3a1   :  { %10693 = vmatprep.subr.bf16.mxu1 %v16532_v14  ;;  %634 = vrot.lane.b32.xlu0 %v12918_v56, %s12563_s20  ;;  %v10694_v44 = vpack.c.bf16 %v731_v51, %v730_v38  ;;  %v10703_v60 = vpack.c.bf16 %v737_v50, %v736_v1  ;;  %v10712_v58 = vpack.c.bf16 %v743_v43, %v742_v11 }
 0x3a2   :  { %636 = vrot.lane.b32.xlu1 %v12894_v46, %s12563_s20  ;;  %v10721_v8 = vpack.c.bf16 %v749_v59, %v748_v12  ;;  %v469_v4 = vmul.f32 %v463_v42, %v455_v19  ;;  %v16533_v24 = vpack.c.bf16 %v12862_v31, %v12874_v36  ;;  %v16534_v59 = vpack.c.bf16 %v12865_v32, %v12877_v37  ;;  %v13080_v31 = vpop.permute.xlu1 %630 }
 0x3a3   :  { %10695 = vmatpush1.bf16.msra.mxu1 %v10694_v44 }
 0x3a4   :  { %10696 = vmatprep.subr.bf16.mxu1 %v16532_v14 }
 0x3a5   :  { %484 = vrot.lane.b32.xlu0 %v468_v30, %s12565_s21 }
 0x3a6   :  { %486 = vrot.lane.b32.xlu1 %v469_v4, %s12565_s21 }
 0x3a7   :  { %10698 = vmatpush1.bf16.msra.mxu1 %v16533_v24 }
 0x3a8   :  { %10699 = vmatprep.subr.bf16.mxu1 %v16532_v14 }
 0x3a9   :  { %638 = vrot.lane.b32.xlu0 %v12987_v49, %s12563_s20 }
 0x3aa   :  { %640 = vrot.lane.b32.xlu1 %v12959_v15, %s12563_s20 }
 0x3ab   :  { %10701 = vmatpush1.bf16.msra.mxu1 %v10700_v63 }
 0x3ac   :  { %10702 = vmatprep.subr.bf16.mxu1 %v16532_v14 }
 0x3ad   :  { %642 = vrot.lane.b32.xlu0 %v12844_v17, %s12563_s20 }
 0x3ae   :  { %644 = vrot.lane.b32.xlu1 %v12824_v7, %s12563_s20 }
 0x3af   :  { %10704 = vmatpush1.bf16.msra.mxu1 %v10703_v60 }
 0x3b0   :  { %10705 = vmatprep.subr.bf16.mxu1 %v16532_v14 }
 0x3b1   :  { %646 = vrot.lane.b32.xlu0 %v12923_v57, %s12563_s20 }
 0x3b2   :  { %648 = vrot.lane.b32.xlu1 %v12899_v47, %s12563_s20 }
 0x3b3   :  { %10707 = vmatpush1.bf16.msra.mxu1 %v16534_v59 }
 0x3b4   :  { %10708 = vmatprep.subr.bf16.mxu1 %v16532_v14 }
 0x3b5   :  { %650 = vrot.lane.b32.xlu0 %v12992_v54, %s12563_s20 }
 0x3b6   :  { %652 = vrot.lane.b32.xlu1 %v12964_v16, %s12563_s20 }
 0x3b7   :  { %10710 = vmatpush1.bf16.msra.mxu1 %v10709_v10  ;;  %v16535_v10 = vpack.c.bf16 %v12868_v33, %v12880_v40 }
 0x3b8   :  { %10711 = vmatprep.subr.bf16.mxu1 %v16532_v14 }
 0x3b9   :  { %654 = vrot.lane.b32.xlu0 %v12850_v20, %s12563_s20 }
 0x3ba   :  { %656 = vrot.lane.b32.xlu1 %v12829_v9, %s12563_s20 }
 0x3bb   :  { %10713 = vmatpush1.bf16.msra.mxu1 %v10712_v58 }
 0x3bc   :  { %10714 = vmatprep.subr.bf16.mxu1 %v16532_v14 }
 0x3bd   :  { %658 = vrot.lane.b32.xlu0 %v12934_v61, %s12563_s20 }
 0x3be   :  { %660 = vrot.lane.b32.xlu1 %v12904_v48, %s12563_s20 }
 0x3bf   :  { %10716 = vmatpush1.bf16.msra.mxu1 %v16535_v10 }
 0x3c0   :  { %10717 = vmatprep.subr.bf16.mxu1 %v16532_v14 }
 0x3c2   :  { %662 = vrot.lane.b32.xlu1 %v12997_v55, %s12563_s20 }
 0x3c3   :  { %10719 = vmatpush1.bf16.msra.mxu1 %v10718_v2 }
 0x3c4   :  { %10720 = vmatprep.subr.bf16.mxu1 %v16532_v14 }
 0x3c7   :  { %10722 = vmatpush1.bf16.msra.mxu1 %v10721_v8 }
 0x3c8   :  { %10723 = vmatprep.subr.bf16.mxu1 %v16532_v14 }
 0x407   :  { %v479_v32 = vpop.permute.xlu0 %478 }
 0x408   :  { %v477_v36 = vpop.permute.xlu1 %476  ;;  %v13086_v33 = vadd.f32 %v479_v32, %v12858_v25 }
 0x409   :  { %v13083_v37 = vadd.f32 %v477_v36, %v12870_v34 }
 0x40b   :  { %v702_v43 = vmul.f32 %v13080_v31, %v13083_v37 }
 0x40c   :  { %v13088_v40 = vpop.permute.xlu1 %632 }
 0x40d   :  { %v703_v8 = vmul.f32 %v13088_v40, %v13086_v33 }
 0x40f   :  { %v481_v50 = vpop.permute.xlu0 %480  ;;  %v11607_v51 = vpack.i.bf16 %v703_v8, %v702_v43 }
 0x410   :  { %v483_v28 = vpop.permute.xlu1 %482  ;;  %v13096_v34 = vadd.f32 %v481_v50, %v12952_v5 }
 0x411   :  { %11608 = vrot.lane.b32.xlu0 %v11607_v51, %s12566_s24  ;;  %v13099_v25 = vadd.f32 %v483_v28, %v12943_v0 }
 0x413   :  { %v13101_v35 = vpop.permute.xlu0 %634 }
 0x414   :  { %v13103_v63 = vpop.permute.xlu1 %636  ;;  %v704_v19 = vmul.f32 %v13101_v35, %v13096_v34 }
 0x415   :  { %16536 = vst [vmem:[#allocation14_spill] sm:$0xff] %v13103_v63  ;;  %664 = vrot.lane.b32.xlu0 %v12969_v18, %s12563_s20  ;;  %v705_v3 = vmul.f32 %v13103_v63, %v13099_v25 }
 0x417   :  { %v485_v38 = vpop.permute.xlu0 %484  ;;  %v11612_v1 = vpack.i.bf16 %v705_v3, %v704_v19 }
 0x418   :  { %v487_v5 = vpop.permute.xlu1 %486  ;;  %v13114_v0 = vadd.f32 %v485_v38, %v468_v30 }
 0x419   :  { %666 = vrot.lane.b32.xlu0 %v12855_v21, %s12563_s20  ;;  %11613 = vrot.lane.b32.xlu1 %v11612_v1, %s12566_s24  ;;  %v13116_v52 = vadd.f32 %v487_v5, %v469_v4 }
 0x41b   :  { %v13118_v11 = vpop.permute.xlu0 %638 }
 0x41c   :  { %16537 = vst [vmem:[#allocation15_spill] sm:$0xff] %v13118_v11  ;;  %v13120_v12 = vpop.permute.xlu1 %640  ;;  %v706_v2 = vmul.f32 %v13118_v11, %v13114_v0 }
 0x41d   :  { %16538 = vst [vmem:[#allocation16_spill] sm:$0xff] %v13120_v12  ;;  %668 = vrot.lane.b32.xlu1 %v12835_v13, %s12563_s20  ;;  %v707_v42 = vmul.f32 %v13120_v12, %v13116_v52 }
 0x41f   :  { %v13128_v44 = vpop.permute.xlu0 %642  ;;  %v11617_v60 = vpack.i.bf16 %v707_v42, %v706_v2 }
 0x420   :  { %16539 = vst [vmem:[#allocation17_spill] sm:$0xff] %v13128_v44  ;;  %v13130_v30 = vpop.permute.xlu1 %644  ;;  %v708_v58 = vmul.f32 %v13128_v44, %v13083_v37 }
 0x421   :  { %16540 = vst [vmem:[#allocation18_spill] sm:$0xff] %v13130_v30  ;;  %670 = vrot.lane.b32.xlu1 %v12939_v62, %s12563_s20  ;;  %11618 = vrot.lane.b32.xlu0 %v11617_v60, %s12566_s24  ;;  %v709_v4 = vmul.f32 %v13130_v30, %v13086_v33 }
 0x423   :  { %v13139_v24 = vpop.permute.xlu0 %646  ;;  %v11622_v59 = vpack.i.bf16 %v709_v4, %v708_v58 }
 0x424   :  { %16541 = vst [vmem:[#allocation19_spill] sm:$0xff] %v13139_v24  ;;  %v13141_v10 = vpop.permute.xlu1 %648  ;;  %v710_v36 = vmul.f32 %v13139_v24, %v13096_v34 }
 0x425   :  { %16542 = vst [vmem:[#allocation20_spill] sm:$0xff] %v13141_v10  ;;  %672 = vrot.lane.b32.xlu0 %v12928_v45, %s12563_s20  ;;  %11623 = vrot.lane.b32.xlu1 %v11622_v59, %s12566_s24  ;;  %v711_v43 = vmul.f32 %v13141_v10, %v13099_v25 }
 0x427   :  { %v13146_v32 = vpop.permute.xlu0 %650  ;;  %v11627_v19 = vpack.i.bf16 %v711_v43, %v710_v36 }
 0x428   :  { %16543 = vst [vmem:[#allocation21_spill] sm:$0xff] %v13146_v32  ;;  %v13152_v8 = vpop.permute.xlu1 %652  ;;  %v712_v50 = vmul.f32 %v13146_v32, %v13114_v0 }
 0x429   :  { %16544 = vst [vmem:[#allocation22_spill] sm:$0xff] %v13152_v8  ;;  %674 = vrot.lane.b32.xlu0 %v13002_v39, %s12563_s20  ;;  %676 = vrot.lane.b32.xlu1 %v12981_v41, %s12563_s20  ;;  %v713_v51 = vmul.f32 %v13152_v8, %v13116_v52 }
 0x42b   :  { %v13162_v28 = vpop.permute.xlu0 %654  ;;  %v11632_v3 = vpack.i.bf16 %v713_v51, %v712_v50 }
 0x42c   :  { %16545 = vst [vmem:[#allocation23_spill] sm:$0xff] %v13162_v28  ;;  %v13164_v38 = vpop.permute.xlu1 %656  ;;  %v714_v1 = vmul.f32 %v13162_v28, %v13083_v37 }
 0x42d   :  { %16546 = vst [vmem:[#allocation24_spill] sm:$0xff] %v13164_v38  ;;  %11628 = vrot.lane.b32.xlu0 %v11627_v19, %s12566_s24  ;;  %11633 = vrot.lane.b32.xlu1 %v11632_v3, %s12566_s24  ;;  %v715_v5 = vmul.f32 %v13164_v38, %v13086_v33  ;;  %v16550_v19 = vmov 0 }
 0x42e   :  { %v16551_v19 = vsel %vm13186_vm7, 4294967295, %v16550_v19 }
 0x42f   :  { %v13172_v2 = vpop.permute.xlu0 %658  ;;  %v11637_v42 = vpack.i.bf16 %v715_v5, %v714_v1  ;;  %16552 = vst [vmem:[#allocation28_spill] sm:$0xff] %v16551_v19 }
 0x430   :  { %16547 = vst [vmem:[#allocation25_spill] sm:$0xff] %v13172_v2  ;;  %v13174_v60 = vpop.permute.xlu1 %660  ;;  %v716_v58 = vmul.f32 %v13172_v2, %v13096_v34 }
 0x431   :  { %16548 = vst [vmem:[#allocation26_spill] sm:$0xff] %v13174_v60  ;;  %11638 = vrot.lane.b32.xlu0 %v11637_v42, %s12566_s24  ;;  %v717_v4 = vmul.f32 %v13174_v60, %v13099_v25 }
 0x433   :  { %v11642_v59 = vpack.i.bf16 %v717_v4, %v716_v58 }
 0x434   :  { %v13182_v51 = vpop.permute.xlu1 %662 }
 0x435   :  { %11643 = vrot.lane.b32.xlu1 %v11642_v59, %s12566_s24  ;;  %16549 = vst [vmem:[#allocation27_spill] sm:$0xff] %v13182_v51  ;;  %v718_v5 = vmul.f32 %v13182_v51, %v13114_v0 }
 0x483   :  { %v11609_v36 = vpop.permute.xlu0 %11608 }
 0x484   :  { %v11611_v43 = vunpack.i.h.bf16 %v11609_v36  ;;  %v11610_v50 = vunpack.i.l.bf16 %v11609_v36 }
 0x486   :  { %v10640_v3 = vpack.c.bf16 %v11611_v43, %v11610_v50 }
 0x487   :  { %v13190_v1 = vpop.permute.xlu0 %664 }
 0x488   :  { %16553 = vst [vmem:[#allocation29_spill] sm:$0xff] %v13190_v1  ;;  %10642 = vmatpush1.bf16.xpose.msk.msra.mxu0 %vm13186_vm7, %v10640_v3  ;;  %v719_v42 = vmul.f32 %v13190_v1, %v13116_v52 }
 0x489   :  { %10643 = vmatprep.subr.bf16.mxu0 %v16532_v14 }
 0x48a   :  { %v11647_v58 = vpack.i.bf16 %v719_v42, %v718_v5 }
 0x48b   :  { %v11614_v4 = vpop.permute.xlu1 %11613  ;;  %v13200_v43 = vpop.permute.xlu0 %666 }
 0x48c   :  { %v11616_v59 = vunpack.i.h.bf16 %v11614_v4  ;;  %v11615_v36 = vunpack.i.l.bf16 %v11614_v4  ;;  %11648 = vrot.lane.b32.xlu0 %v11647_v58, %s12566_s24  ;;  %16554 = vst [vmem:[#allocation30_spill] sm:$0xff] %v13200_v43  ;;  %v720_v3 = vmul.f32 %v13200_v43, %v13083_v37 }
 0x48e   :  { %v10644_v50 = vpack.c.bf16 %v11616_v59, %v11615_v36 }
 0x48f   :  { %v13202_v2 = vpop.permute.xlu1 %668 }
 0x490   :  { %16555 = vst [vmem:[#allocation31_spill] sm:$0xff] %v13202_v2  ;;  %10646 = vmatpush1.bf16.xpose.msk.msra.mxu0 %vm13186_vm7, %v10644_v50  ;;  %v721_v1 = vmul.f32 %v13202_v2, %v13086_v33 }
 0x491   :  { %10647 = vmatprep.subr.bf16.mxu0 %v16532_v14 }
 0x492   :  { %v11652_v5 = vpack.i.bf16 %v721_v1, %v720_v3 }
 0x493   :  { %v11619_v42 = vpop.permute.xlu0 %11618  ;;  %v13211_v4 = vpop.permute.xlu1 %670 }
 0x494   :  { %16556 = vst [vmem:[#allocation32_spill] sm:$0xff] %v13211_v4  ;;  %v11621_v58 = vunpack.i.h.bf16 %v11619_v42  ;;  %v11620_v51 = vunpack.i.l.bf16 %v11619_v42  ;;  %11653 = vrot.lane.b32.xlu1 %v11652_v5, %s12566_s24  ;;  %v722_v2 = vmul.f32 %v13211_v4, %v13096_v34 }
 0x496   :  { %v10648_v59 = vpack.c.bf16 %v11621_v58, %v11620_v51 }
 0x497   :  { %v13214_v36 = vpop.permute.xlu0 %672  ;;  %v11624_v50 = vpop.permute.xlu1 %11623 }
 0x498   :  { %16557 = vst [vmem:[#allocation33_spill] sm:$0xff] %v13214_v36  ;;  %10650 = vmatpush1.bf16.xpose.msk.msra.mxu0 %vm13186_vm7, %v10648_v59  ;;  %v723_v1 = vmul.f32 %v13214_v36, %v13099_v25  ;;  %v11626_v3 = vunpack.i.h.bf16 %v11624_v50  ;;  %v11625_v43 = vunpack.i.l.bf16 %v11624_v50  ;;  %v16476_v59 = vmov 0.0  }
 0x499   :  { %10651 = vmatprep.subr.bf16.mxu0 %v16532_v14  ;;  %964 = vmatprep.mubr.f32.mxu0 %v16476_v59 }
 0x49a   :  { %v11657_v42 = vpack.i.bf16 %v723_v1, %v722_v2  ;;  %v10652_v4 = vpack.c.bf16 %v11626_v3, %v11625_v43 }
 0x49b   :  { %v13223_v28 = vpop.permute.xlu0 %674  ;;  %v13225_v51 = vpop.permute.xlu1 %676 }
 0x49c   :  { %16558 = vst [vmem:[#allocation34_spill] sm:$0xff] %v13223_v28  ;;  %16559 = vst [vmem:[#allocation35_spill] sm:$0xff] %v13225_v51  ;;  %11658 = vrot.lane.b32.xlu0 %v11657_v42, %s12566_s24  ;;  %v724_v5 = vmul.f32 %v13223_v28, %v13114_v0  ;;  %v725_v58 = vmul.f32 %v13225_v51, %v13116_v52 }
 0x49e   :  { %v11662_v36 = vpack.i.bf16 %v725_v58, %v724_v5 }
 0x49f   :  { %v11629_v60 = vpop.permute.xlu0 %11628  ;;  %v11634_v42 = vpop.permute.xlu1 %11633 }
 0x4a0   :  { %11663 = vrot.lane.b32.xlu1 %v11662_v36, %s12566_s24  ;;  %10654 = vmatpush1.bf16.xpose.msk.msra.mxu0 %vm13186_vm7, %v10652_v4  ;;  %v11631_v2 = vunpack.i.h.bf16 %v11629_v60  ;;  %v11630_v50 = vunpack.i.l.bf16 %v11629_v60  ;;  %v11636_v59 = vunpack.i.h.bf16 %v11634_v42  ;;  %v11635_v43 = vunpack.i.l.bf16 %v11634_v42 }
 0x4a1   :  { %10655 = vmatprep.subr.bf16.mxu0 %v16532_v14 }
 0x4a2   :  { %v10656_v1 = vpack.c.bf16 %v11631_v2, %v11630_v50  ;;  %v10660_v3 = vpack.c.bf16 %v11636_v59, %v11635_v43 }
 0x4a3   :  { %v11639_v5 = vpop.permute.xlu0 %11638 }
 0x4a4   :  { %v11641_v4 = vunpack.i.h.bf16 %v11639_v5  ;;  %v11640_v36 = vunpack.i.l.bf16 %v11639_v5 }
 0x4a6   :  { %v10664_v58 = vpack.c.bf16 %v11641_v4, %v11640_v36 }
 0x4a7   :  { %v11644_v60 = vpop.permute.xlu1 %11643 }
 0x4a8   :  { %10658 = vmatpush1.bf16.xpose.msk.msra.mxu0 %vm13186_vm7, %v10656_v1  ;;  %v11646_v2 = vunpack.i.h.bf16 %v11644_v60  ;;  %v11645_v50 = vunpack.i.l.bf16 %v11644_v60 }
 0x4a9   :  { %10659 = vmatprep.subr.bf16.mxu0 %v16532_v14 }
 0x4aa   :  { %v10668_v1 = vpack.c.bf16 %v11646_v2, %v11645_v50 }
 0x4b0   :  { %10662 = vmatpush1.bf16.xpose.msk.msra.mxu0 %vm13186_vm7, %v10660_v3 }
 0x4b1   :  { %10663 = vmatprep.subr.bf16.mxu0 %v16532_v14 }
 0x4b8   :  { %10666 = vmatpush1.bf16.xpose.msk.msra.mxu0 %vm13186_vm7, %v10664_v58 }
 0x4b9   :  { %10667 = vmatprep.subr.bf16.mxu0 %v16532_v14 }
 0x4c0   :  { %10670 = vmatpush1.bf16.xpose.msk.msra.mxu0 %vm13186_vm7, %v10668_v1 }
 0x4c1   :  { %10671 = vmatprep.subr.bf16.mxu0 %v16532_v14 }
 0x4fe   :  { %v11649_v59 = vpop.permute.xlu0 %11648 }
 0x4ff   :  { %v11651_v42 = vunpack.i.h.bf16 %v11649_v59  ;;  %v11650_v43 = vunpack.i.l.bf16 %v11649_v59 }
 0x501   :  { %v10672_v3 = vpack.c.bf16 %v11651_v42, %v11650_v43 }
 0x503   :  { %10674 = vmatpush1.bf16.xpose.msk.msra.mxu0 %vm13186_vm7, %v10672_v3 }
 0x504   :  { %10675 = vmatprep.subr.bf16.mxu0 %v16532_v14 }
 0x506   :  { %v11654_v5 = vpop.permute.xlu1 %11653 }
 0x507   :  { %v11656_v4 = vunpack.i.h.bf16 %v11654_v5  ;;  %v11655_v36 = vunpack.i.l.bf16 %v11654_v5  ;;  %v16560_v5 = vmov 0.0  }
 0x509   :  { %v10676_v58 = vpack.c.bf16 %v11656_v4, %v11655_v36 }
 0x50b   :  { %10678 = vmatpush1.bf16.xpose.msk.msra.mxu0 %vm13186_vm7, %v10676_v58 }
 0x50c   :  { %10679 = vmatprep.subr.bf16.mxu0 %v16532_v14 }
 0x50e   :  { %v11659_v60 = vpop.permute.xlu0 %11658 }
 0x50f   :  { %v11661_v2 = vunpack.i.h.bf16 %v11659_v60  ;;  %v11660_v50 = vunpack.i.l.bf16 %v11659_v60 }
 0x511   :  { %v10680_v1 = vpack.c.bf16 %v11661_v2, %v11660_v50 }
 0x512   :  { %v11664_v59 = vpop.permute.xlu1 %11663 }
 0x513   :  { %10682 = vmatpush1.bf16.xpose.msk.msra.mxu0 %vm13186_vm7, %v10680_v1  ;;  %v11666_v42 = vunpack.i.h.bf16 %v11664_v59  ;;  %v11665_v43 = vunpack.i.l.bf16 %v11664_v59 }
 0x514   :  { %10683 = vmatprep.subr.bf16.mxu0 %v16532_v14 }
 0x515   :  { %v10684_v3 = vpack.c.bf16 %v11666_v42, %v11665_v43  ;;  %v755_v42 = vld [vmem:[%s16447_s7 + $0x28] sm:$0xff]  ;;  %v754_v43 = vld [vmem:[%s16447_s7 + $0x20] sm:$0xff] }
 0x51b   :  { %10686 = vmatpush1.bf16.xpose.msk.msra.mxu0 %vm13186_vm7, %v10684_v3 }
 0x522   :  { %9003 = vmatmul.mubr.msk.f32.vlgmr.msra.gmra.mrb[12].mxu0 %vm226_vm6, %v13083_v37  ;;  %v751_v37 = vld [vmem:[%s16447_s7 + $0x8] sm:$0xff] }
 0x523   :  { %970 = vmatprep.mubr.f32.mxu0 %v16560_v5 }
 0x526   :  { %9004 = vmatmul.mubr.msk.f32.gmra.mrb[14].mxu0 %vm226_vm6, %v13086_v33  ;;  %v750_v33 = vld [vmem:[%s16447_s7] sm:$0xff] }
 0x527   :  { %976 = vmatprep.mubr.f32.mxu0 %v16560_v5 }
 0x52a   :  { %9005 = vmatmul.mubr.msk.f32.gmra.mrb[16].mxu0 %vm226_vm6, %v13096_v34 }
 0x52b   :  { %982 = vmatprep.mubr.f32.mxu0 %v16560_v5 }
 0x52e   :  { %9006 = vmatmul.mubr.msk.f32.gmra.mrb[18].mxu0 %vm226_vm6, %v13099_v25 }
 0x52f   :  { %988 = vmatprep.mubr.f32.mxu0 %v16560_v5 }
 0x532   :  { %9007 = vmatmul.mubr.msk.f32.gmra.mrb[20].mxu0 %vm226_vm6, %v13114_v0  ;;  %v753_v0 = vld [vmem:[%s16447_s7 + $0x18] sm:$0xff] }
 0x533   :  { %994 = vmatprep.mubr.f32.mxu0 %v16560_v5 }
 0x536   :  { %9008 = vmatmul.mubr.msk.f32.gmra.mrb[22].mxu0 %vm226_vm6, %v13116_v52  ;;  %v752_v52 = vld [vmem:[%s16447_s7 + $0x10] sm:$0xff] }
 0x5f5   :  { %v966_v34 = vpop.f32.mrb[12].mxu0 }
 0x5f6   :  { %v968_v25 = vpop.f32.mrb[13].mxu0  ;;  %v967_v36 = vadd.f32 %v966_v34, %v750_v33 }
 0x5f7   :  { %v969_v4 = vadd.f32 %v968_v25, %v751_v37 }
 0x5f9   :  { %v972_v58 = vpop.f32.mrb[14].mxu0  ;;  %v1002_v60 = vsel %vm1001_vm8, %v969_v4, -inf }
 0x5fa   :  { %v974_v2 = vpop.f32.mrb[15].mxu0  ;;  %v1003_v50 = vmax.f32 %v967_v36, %v1002_v60  ;;  %v973_v59 = vadd.f32 %v972_v58, %v752_v52  ;;  %v756_v52 = vld [vmem:[%s16447_s7 + $0x30] sm:$0xff] }
 0x5fb   :  { %v975_v1 = vadd.f32 %v974_v2, %v753_v0  ;;  %v757_v0 = vld [vmem:[%s16447_s7 + $0x38] sm:$0xff] }
 0x5fc   :  { %1004 = vmax.xlane.f32.xlu0 %v1003_v50 }
 0x5fd   :  { %v978_v3 = vpop.f32.mrb[16].mxu0  ;;  %v1006_v37 = vsel %vm1001_vm8, %v975_v1, -inf }
 0x5fe   :  { %v980_v33 = vpop.f32.mrb[17].mxu0  ;;  %v1007_v34 = vmax.f32 %v973_v59, %v1006_v37  ;;  %v979_v19 = vadd.f32 %v978_v3, %v754_v43  ;;  %v758_v43 = vld [vmem:[%s16447_s7 + $0x40] sm:$0xff] }
 0x5ff   :  { %v981_v25 = vadd.f32 %v980_v33, %v755_v42  ;;  %v759_v42 = vld [vmem:[%s16447_s7 + $0x48] sm:$0xff] }
 0x600   :  { %1008 = vmax.xlane.f32.xlu1 %v1007_v34 }
 0x601   :  { %v984_v58 = vpop.f32.mrb[18].mxu0  ;;  %v1010_v60 = vsel %vm1001_vm8, %v981_v25, -inf }
 0x602   :  { %v986_v2 = vpop.f32.mrb[19].mxu0  ;;  %v1011_v50 = vmax.f32 %v979_v19, %v1010_v60  ;;  %v985_v28 = vadd.f32 %v984_v58, %v756_v52  ;;  %v760_v52 = vld [vmem:[%s16447_s7 + $0x50] sm:$0xff] }
 0x603   :  { %v987_v51 = vadd.f32 %v986_v2, %v757_v0  ;;  %v761_v0 = vld [vmem:[%s16447_s7 + $0x58] sm:$0xff] }
 0x604   :  { %1012 = vmax.xlane.f32.xlu0 %v1011_v50 }
 0x605   :  { %v990_v3 = vpop.f32.mrb[20].mxu0  ;;  %v1014_v37 = vsel %vm1001_vm8, %v987_v51, -inf }
 0x606   :  { %v992_v33 = vpop.f32.mrb[21].mxu0  ;;  %v1015_v34 = vmax.f32 %v985_v28, %v1014_v37  ;;  %v991_v24 = vadd.f32 %v990_v3, %v758_v43 }
 0x607   :  { %v993_v38 = vadd.f32 %v992_v33, %v759_v42 }
 0x608   :  { %1016 = vmax.xlane.f32.xlu0 %v1015_v34 }
 0x609   :  { %v996_v58 = vpop.f32.mrb[22].mxu0  ;;  %v1018_v60 = vsel %vm1001_vm8, %v993_v38, -inf }
 0x60a   :  { %v998_v2 = vpop.f32.mrb[23].mxu0  ;;  %v1019_v50 = vmax.f32 %v991_v24, %v1018_v60  ;;  %v997_v8 = vadd.f32 %v996_v58, %v760_v52 }
 0x60b   :  { %v999_v10 = vadd.f32 %v998_v2, %v761_v0 }
 0x60c   :  { %1020 = vmax.xlane.f32.xlu1 %v1019_v50 }
 0x60d   :  { %v1022_v42 = vsel %vm1001_vm8, %v999_v10, -inf }
 0x60e   :  { %v1023_v43 = vmax.f32 %v997_v8, %v1022_v42 }
 0x610   :  { %1024 = vmax.xlane.f32.xlu0 %v1023_v43 }
 0x689   :  { %v1005_v3 = vpop.xlane.xlu0 %1004 }
 0x68a   :  { %v1026_v37 = vsub.f32 %v967_v36, %v1005_v3  ;;  %v1027_v33 = vsub.f32 %v969_v4, %v1005_v3 }
 0x68c   :  { %v1038_v34 = vmul.f32 1.442695, %v1026_v37  ;;  %v1040_v32 = vmul.f32 1.442695, %v1027_v33 }
 0x68d   :  { %v1009_v12 = vpop.xlane.xlu1 %1008 }
 0x68e   :  { %11919 = vpow2.f32 %v1038_v34  ;;  %v1028_v11 = vsub.f32 %v973_v59, %v1009_v12  ;;  %v1029_v30 = vsub.f32 %v975_v1, %v1009_v12 }
 0x68f   :  { %11921 = vpow2.f32 %v1040_v32 }
 0x690   :  { %v1042_v44 = vmul.f32 1.442695, %v1028_v11  ;;  %v1044_v63 = vmul.f32 1.442695, %v1029_v30  ;;  %v13323_v11 = vpack.c.bf16 %v12819_v6, %v12800_v53  ;;  %v13332_v53 = vpack.c.bf16 %v12894_v46, %v12918_v56 }
 0x691   :  { %v1013_v60 = vpop.xlane.xlu0 %1012  ;;  %v13340_v46 = vpack.c.bf16 %v12959_v15, %v12987_v49  ;;  %v13354_v49 = vpack.c.bf16 %v12899_v47, %v12923_v57  ;;  %v13369_v47 = vpack.c.bf16 %v12829_v9, %v12850_v20  ;;  %v13375_v57 = vpack.c.bf16 %v12904_v48, %v12934_v61  ;;  %v9023_v61 = vld [vmem:[%s16441_s1 + $0xb0] sm:$0xff] }
 0x692   :  { %11923 = vpow2.f32 %v1042_v44  ;;  %v1030_v0 = vsub.f32 %v979_v19, %v1013_v60  ;;  %v1031_v52 = vsub.f32 %v981_v25, %v1013_v60  ;;  %v13387_v9 = vpack.c.bf16 %v12835_v13, %v12855_v21  ;;  %v9021_v13 = vld [vmem:[%s16441_s1 + $0xa0] sm:$0xff]  ;;  %v9022_v21 = vld [vmem:[%s16441_s1 + $0xa8] sm:$0xff] }
 0x693   :  { %11925 = vpow2.f32 %v1044_v63  ;;  %16561 = vst [vmem:[#allocation36_spill] sm:$0xff] %v13369_v47  ;;  %16562 = vst [vmem:[#allocation37_spill] sm:$0xff] %v13375_v57  ;;  %v13393_v20 = vpack.c.bf16 %v12928_v45, %v12939_v62  ;;  %v13399_v48 = vpack.c.bf16 %v12981_v41, %v13002_v39  ;;  %v10759_v45 = vpack.c.bf16 %v9022_v21, %v9021_v13  ;;  %v9024_v62 = vld [vmem:[%s16441_s1 + $0xb8] sm:$0xff]  ;;  %v9026_v13 = vld [vmem:[%s16445_s5 + $0x5] ss:$0 sm:$0xff] }
 0x694   :  { %v1046_v58 = vmul.f32 1.442695, %v1030_v0  ;;  %v1048_v2 = vmul.f32 1.442695, %v1031_v52  ;;  %16564 = vst [vmem:[#allocation39_spill] sm:$0xff] %v13387_v9 }
 0x695   :  { %v1017_v50 = vpop.xlane.xlu0 %1016  ;;  %16565 = vst [vmem:[#allocation40_spill] sm:$0xff] %v13393_v20  ;;  %16566 = vst [vmem:[#allocation41_spill] sm:$0xff] %v13399_v48 }
 0x696   :  { %11927 = vpow2.f32 %v1046_v58  ;;  %v1032_v36 = vsub.f32 %v985_v28, %v1017_v50  ;;  %v1033_v4 = vsub.f32 %v987_v51, %v1017_v50 }
 0x697   :  { %11929 = vpow2.f32 %v1048_v2 }
 0x698   :  { %v13319_v42 = vpop.eup %11919  ;;  %v1050_v43 = vmul.f32 1.442695, %v1032_v36  ;;  %v1052_v59 = vmul.f32 1.442695, %v1033_v4 }
 0x699   :  { %v11922_v12 = vpop.eup %11921  ;;  %v1021_v44 = vpop.xlane.xlu1 %1020 }
 0x69a   :  { %11931 = vpow2.f32 %v1050_v43  ;;  %v1034_v30 = vsub.f32 %v991_v24, %v1021_v44  ;;  %v1035_v63 = vsub.f32 %v993_v38, %v1021_v44  ;;  %9009 = vmatprep.mubr.msk.f32.mxu1 %vm1001_vm8, %v11922_v12 }
 0x69b   :  { %11933 = vpow2.f32 %v1052_v59  ;;  %1145 = vmatmul.mubr.f32.vlgmr.msra.gmra.mrb[6].mxu1 %v13319_v42 }
 0x69c   :  { %v13327_v32 = vpop.eup %11923  ;;  %v1054_v28 = vmul.f32 1.442695, %v1034_v30  ;;  %v1056_v19 = vmul.f32 1.442695, %v1035_v63  ;;  %10725 = vmatpush1.bf16.msra.mxu1 %v13323_v11 }
 0x69d   :  { %v11926_v6 = vpop.eup %11925  ;;  %v1025_v51 = vpop.xlane.xlu0 %1024  ;;  %10726 = vmatprep.subr.bf16.mxu1 %v16532_v14 }
 0x69e   :  { %11935 = vpow2.f32 %v1054_v28  ;;  %v1036_v24 = vsub.f32 %v997_v8, %v1025_v51  ;;  %v1037_v38 = vsub.f32 %v999_v10, %v1025_v51  ;;  %9010 = vmatprep.mubr.msk.f32.mxu1 %vm1001_vm8, %v11926_v6  ;;  %v13347_v8 = vpack.c.bf16 %v12824_v7, %v12844_v17 }
 0x69f   :  { %11937 = vpow2.f32 %v1056_v19  ;;  %1150 = vmatmul.mubr.f32.gmra.mrb[8].mxu1 %v13327_v32  ;;  %v13361_v17 = vpack.c.bf16 %v12964_v16, %v12992_v54  ;;  %v13381_v16 = vpack.c.bf16 %v12969_v18, %v12997_v55  ;;  %v10763_v18 = vpack.c.bf16 %v9024_v62, %v9023_v61 }
 0x6a0   :  { %v11928_v1 = vpop.eup %11927  ;;  %v1058_v25 = vmul.f32 1.442695, %v1036_v24  ;;  %v1060_v3 = vmul.f32 1.442695, %v1037_v38  ;;  %10728 = vmatpush1.bf16.msra.mxu1 %v13332_v53 }
 0x6a1   :  { %v11930_v56 = vpop.eup %11929  ;;  %10729 = vmatprep.subr.bf16.mxu1 %v16532_v14  ;;  %16563 = vst [vmem:[#allocation38_spill] sm:$0xff] %v13381_v16 }
 0x6a2   :  { %11939 = vpow2.f32 %v1058_v25  ;;  %9011 = vmatprep.mubr.msk.f32.mxu1 %vm1001_vm8, %v11930_v56 }
 0x6a3   :  { %11941 = vpow2.f32 %v1060_v3  ;;  %1155 = vmatmul.mubr.f32.gmra.mrb[10].mxu1 %v11928_v1 }
 0x6a4   :  { %v11932_v10 = vpop.eup %11931  ;;  %10731 = vmatpush1.bf16.msra.mxu1 %v13340_v46 }
 0x6a5   :  { %v11934_v37 = vpop.eup %11933  ;;  %10732 = vmatprep.subr.bf16.mxu1 %v16532_v14 }
 0x6a6   :  { %9012 = vmatprep.mubr.msk.f32.mxu1 %vm1001_vm8, %v11934_v37 }
 0x6a7   :  { %1160 = vmatmul.mubr.f32.gmra.mrb[12].mxu1 %v11932_v10 }
 0x6a8   :  { %v11936_v15 = vpop.eup %11935  ;;  %10734 = vmatpush1.bf16.msra.mxu1 %v13347_v8 }
 0x6a9   :  { %v11938_v33 = vpop.eup %11937  ;;  %10735 = vmatprep.subr.bf16.mxu1 %v16532_v14 }
 0x6aa   :  { %9013 = vmatprep.mubr.msk.f32.mxu1 %vm1001_vm8, %v11938_v33 }
 0x6ab   :  { %1165 = vmatmul.mubr.f32.gmra.mrb[14].mxu1 %v11936_v15 }
 0x6ac   :  { %v11940_v7 = vpop.eup %11939  ;;  %10737 = vmatpush1.bf16.msra.mxu1 %v13354_v49 }
 0x6ad   :  { %v11942_v34 = vpop.eup %11941  ;;  %10738 = vmatprep.subr.bf16.mxu1 %v16532_v14 }
 0x6ae   :  { %9014 = vmatprep.mubr.msk.f32.mxu1 %vm1001_vm8, %v11942_v34 }
 0x6af   :  { %1170 = vmatmul.mubr.f32.gmra.mrb[16].mxu1 %v11940_v7 }
 0x6b0   :  { %10740 = vmatpush1.bf16.msra.mxu1 %v13361_v17  ;;  %9015 = vmatprep.mubr.msk.f32.mxu1 %vm1001_vm8, %v11922_v12 }
 0x6b1   :  { %10741 = vmatprep.subr.bf16.mxu1 %v16532_v14 }
 0x6b4   :  { %10743 = vmatpush1.bf16.msra.mxu1 %v13369_v47 }
 0x6b5   :  { %10744 = vmatprep.subr.bf16.mxu1 %v16532_v14 }
 0x6b8   :  { %10746 = vmatpush1.bf16.msra.mxu1 %v13375_v57 }
 0x6b9   :  { %10747 = vmatprep.subr.bf16.mxu1 %v16532_v14 }
 0x6bc   :  { %10749 = vmatpush1.bf16.msra.mxu1 %v13381_v16 }
 0x6bd   :  { %10750 = vmatprep.subr.bf16.mxu1 %v16532_v14 }
 0x6c0   :  { %10752 = vmatpush1.bf16.msra.mxu1 %v13387_v9 }
 0x6c1   :  { %10753 = vmatprep.subr.bf16.mxu1 %v16532_v14 }
 0x6c4   :  { %10755 = vmatpush1.bf16.msra.mxu1 %v13393_v20 }
 0x6c5   :  { %10756 = vmatprep.subr.bf16.mxu1 %v16532_v14 }
 0x6c8   :  { %10758 = vmatpush1.bf16.msra.mxu1 %v13399_v48 }
 0x6c9   :  { %10760 = vmatprep.subr.bf16.mxu1 %v10759_v45 }
 0x6cb   :  { %1240 = vmatmul.mubr.f32.vlgmr.msra.gmra.mrb[18].mxu1 %v13319_v42 }
 0x6cc   :  { %9016 = vmatprep.mubr.msk.f32.mxu1 %vm1001_vm8, %v11926_v6  ;;  %10762 = vmatpush3.bf16.msra.mxu1 %v10759_v45 }
 0x6cd   :  { %10764 = vmatprep.subr.bf16.mxu1 %v10763_v18 }
 0x6cf   :  { %1245 = vmatmul.mubr.f32.gmra.mrb[20].mxu1 %v13327_v32 }
 0x6d0   :  { %9017 = vmatprep.mubr.msk.f32.mxu1 %vm1001_vm8, %v11930_v56  ;;  %10766 = vmatpush3.bf16.msra.mxu1 %v10763_v18 }
 0x6d3   :  { %1250 = vmatmul.mubr.f32.gmra.mrb[22].mxu1 %v11928_v1 }
 0x6d4   :  { %9018 = vmatprep.mubr.msk.f32.mxu1 %vm1001_vm8, %v11934_v37 }
 0x6d7   :  { %1255 = vmatmul.mubr.f32.gmra.mrb[24].mxu1 %v11932_v10 }
 0x6d8   :  { %9019 = vmatprep.mubr.msk.f32.mxu1 %vm1001_vm8, %v11938_v33 }
 0x6db   :  { %1260 = vmatmul.mubr.f32.gmra.mrb[26].mxu1 %v11936_v15 }
 0x6dc   :  { %9020 = vmatprep.mubr.msk.f32.mxu1 %vm1001_vm8, %v11942_v34 }
 0x6df   :  { %1265 = vmatmul.mubr.f32.gmra.mrb[28].mxu1 %v11940_v7 }
 0x76e   :  { %v1146_v41 = vpop.f32.mrb[6].mxu1 }
 0x76f   :  { %v1148_v54 = vpop.f32.mrb[7].mxu1 }
 0x772   :  { %v1151_v55 = vpop.f32.mrb[8].mxu1 }
 0x773   :  { %v1153_v39 = vpop.f32.mrb[9].mxu1 }
 0x776   :  { %v1156_v60 = vpop.f32.mrb[10].mxu1 }
 0x777   :  { %v1158_v0 = vpop.f32.mrb[11].mxu1 }
 0x77a   :  { %v1161_v52 = vpop.f32.mrb[12].mxu1 }
 0x77b   :  { %v1163_v58 = vpop.f32.mrb[13].mxu1 }
 0x77e   :  { %v1166_v2 = vpop.f32.mrb[14].mxu1 }
 0x77f   :  { %v1168_v50 = vpop.f32.mrb[15].mxu1 }
 0x782   :  { %v1171_v36 = vpop.f32.mrb[16].mxu1 }
 0x783   :  { %v1173_v4 = vpop.f32.mrb[17].mxu1 }
 0x79e   :  { %v1241_v42 = vpop.f32.mrb[18].mxu1 }
 0x79f   :  { %11943 = vrcp.f32 %v1241_v42  ;;  %v1243_v43 = vpop.f32.mrb[19].mxu1 }
 0x7a2   :  { %v1246_v59 = vpop.f32.mrb[20].mxu1 }
 0x7a3   :  { %11945 = vrcp.f32 %v1246_v59  ;;  %v1248_v12 = vpop.f32.mrb[21].mxu1 }
 0x7a6   :  { %v1251_v44 = vpop.f32.mrb[22].mxu1 }
 0x7a7   :  { %11947 = vrcp.f32 %v1251_v44  ;;  %v1253_v30 = vpop.f32.mrb[23].mxu1 }
 0x7a9   :  { %v11944_v63 = vpop.eup %11943 }
 0x7aa   :  { %v1256_v32 = vpop.f32.mrb[24].mxu1  ;;  %v1276_v28 = vmul.f32 %v11944_v63, %v1146_v41 }
 0x7ab   :  { %11949 = vrcp.f32 %v1256_v32  ;;  %v1258_v19 = vpop.f32.mrb[25].mxu1 }
 0x7ac   :  { %10019 = vmatprep.mubr.msk.f32.mxu1 %vm226_vm6, %v1276_v28 }
 0x7ad   :  { %v11946_v6 = vpop.eup %11945 }
 0x7ae   :  { %v1277_v51 = vmul.f32 %v11946_v6, %v1151_v55  ;;  %v1261_v24 = vpop.f32.mrb[26].mxu1 }
 0x7af   :  { %11951 = vrcp.f32 %v1261_v24  ;;  %v1263_v38 = vpop.f32.mrb[27].mxu1 }
 0x7b0   :  { %10020 = vmatmul.mubr.msk.f32.vlgmr.msra.gmra.mrb[30].mxu1 %vm226_vm6, %v1277_v51 }
 0x7b1   :  { %v11948_v1 = vpop.eup %11947 }
 0x7b2   :  { %v1266_v25 = vpop.f32.mrb[28].mxu1  ;;  %v1278_v3 = vmul.f32 %v11948_v1, %v1156_v60 }
 0x7b3   :  { %11953 = vrcp.f32 %v1266_v25  ;;  %v1268_v56 = vpop.f32.mrb[29].mxu1 }
 0x7b4   :  { %10022 = vmatprep.mubr.msk.f32.mxu1 %vm226_vm6, %v1278_v3 }
 0x7b5   :  { %v11950_v10 = vpop.eup %11949 }
 0x7b6   :  { %v1279_v37 = vmul.f32 %v11950_v10, %v1161_v52 }
 0x7b8   :  { %10023 = vmatmul.mubr.msk.f32.gmra.mrb[32].mxu1 %vm226_vm6, %v1279_v37 }
 0x7b9   :  { %v11952_v15 = vpop.eup %11951 }
 0x7ba   :  { %v1280_v33 = vmul.f32 %v11952_v15, %v1166_v2 }
 0x7bc   :  { %10025 = vmatprep.mubr.msk.f32.mxu1 %vm226_vm6, %v1280_v33 }
 0x7bd   :  { %v11954_v7 = vpop.eup %11953 }
 0x7be   :  { %v1281_v34 = vmul.f32 %v11954_v7, %v1171_v36 }
 0x7c0   :  { %10026 = vmatmul.mubr.msk.f32.gmra.mrb[34].mxu1 %vm226_vm6, %v1281_v34 }
 0x883   :  { %v10021_v21 = vpop.f32.mrb[30].mxu1 }
 0x884   :  { %v1385_v45 = vadd.f32 %v10021_v21, %v9026_v13  ;;  %v1379_v61 = vpop.f32.mrb[31].mxu1 }
 0x885   :  { %v1380_v62 = vadd.f32 %v9026_v13, %v1379_v61 }
 0x886   :  { %v13432_v18 = vadd.f32 %v12689_v22, %v1385_v45 }
 0x887   :  { %v13435_v41 = vadd.f32 %v1380_v62, %v12691_v23 }
 0x888   :  { %v1417_v54 = vsel %vm226_vm6, %v13432_v18, 0.0 }
 0x889   :  { %1418 = vadd.xlane.f32.xlu0 %v1417_v54  ;;  %v1414_v55 = vsel %vm226_vm6, %v13435_v41, 0.0 }
 0x88a   :  { %1415 = vadd.xlane.f32.xlu1 %v1414_v55 }
 0x88b   :  { %v10024_v39 = vpop.f32.mrb[32].mxu1 }
 0x88c   :  { %v1395_v60 = vadd.f32 %v10024_v39, %v9026_v13  ;;  %v1389_v0 = vpop.f32.mrb[33].mxu1 }
 0x88d   :  { %v1390_v52 = vadd.f32 %v9026_v13, %v1389_v0  ;;  %v9037_v0 = vld [vmem:[%s16442_s2 + $0xa0] sm:$0xff] }
 0x88e   :  { %v13442_v58 = vadd.f32 %v12697_v26, %v1395_v60  ;;  %v16567_v26 = vld [vmem:[#allocation13_spill] sm:$0xff] }
 0x88f   :  { %v13445_v22 = vadd.f32 %v1390_v52, %v12699_v27  ;;  %v9038_v52 = vld [vmem:[%s16442_s2 + $0xa8] sm:$0xff] }
 0x890   :  { %v1423_v23 = vsel %vm226_vm6, %v13442_v58, 0.0 }
 0x891   :  { %1424 = vadd.xlane.f32.xlu0 %v1423_v23  ;;  %v1420_v2 = vsel %vm226_vm6, %v13445_v22, 0.0  ;;  %v10767_v23 = vpack.c.bf16 %v9038_v52, %v9037_v0 }
 0x892   :  { %1421 = vadd.xlane.f32.xlu1 %v1420_v2  ;;  %v9039_v2 = vld [vmem:[%s16442_s2 + $0xb0] sm:$0xff] }
 0x893   :  { %v10027_v50 = vpop.f32.mrb[34].mxu1  ;;  %10768 = vmatprep.subr.bf16.mxu1 %v10767_v23 }
 0x894   :  { %v1405_v36 = vadd.f32 %v10027_v50, %v9026_v13  ;;  %v1399_v4 = vpop.f32.mrb[35].mxu1  ;;  %10770 = vmatpush3.bf16.msra.mxu1 %v10767_v23  ;;  %v9040_v50 = vld [vmem:[%s16442_s2 + $0xb8] sm:$0xff] }
 0x895   :  { %v1400_v42 = vadd.f32 %v9026_v13, %v1399_v4  ;;  %v1700_v4 = vld [vmem:[%s16443_s3] sm:$0xff] }
 0x896   :  { %v13452_v43 = vadd.f32 %v12703_v29, %v1405_v36  ;;  %v10771_v36 = vpack.c.bf16 %v9040_v50, %v9039_v2 }
 0x897   :  { %v13455_v59 = vadd.f32 %v1400_v42, %v16567_v26  ;;  %v1701_v42 = vld [vmem:[%s16443_s3 + $0x8] sm:$0xff] }
 0x898   :  { %v1429_v27 = vsel %vm226_vm6, %v13452_v43, 0.0  ;;  %10772 = vmatprep.subr.bf16.mxu1 %v10771_v36  ;;  %v10775_v26 = vpack.c.bf16 %v1701_v42, %v1700_v4 }
 0x899   :  { %1430 = vadd.xlane.f32.xlu0 %v1429_v27  ;;  %v1426_v12 = vsel %vm226_vm6, %v13455_v59, 0.0  ;;  %10774 = vmatpush3.bf16.msra.mxu1 %v10771_v36 }
 0x89a   :  { %1427 = vadd.xlane.f32.xlu1 %v1426_v12  ;;  %10776 = vmatprep.subr.bf16.mxu0 %v10775_v26 }
 0x89b   :  { %10778 = vmatpush3.bf16.msra.mxu0 %v10775_v26 }
 0x916   :  { %v1419_v44 = vpop.xlane.xlu0 %1418 }
 0x917   :  { %v1433_v30 = vmul.f32 0.03125, %v1419_v44  ;;  %v1416_v63 = vpop.xlane.xlu1 %1415 }
 0x918   :  { %v1432_v32 = vmul.f32 0.03125, %v1416_v63 }
 0x919   :  { %v13462_v28 = vsub.f32 %v13432_v18, %v1433_v30 }
 0x91a   :  { %v13465_v29 = vsub.f32 %v13435_v41, %v1432_v32 }
 0x91b   :  { %v1445_v19 = vmul.f32 %v13462_v28, %v13462_v28 }
 0x91c   :  { %v1444_v6 = vmul.f32 %v13465_v29, %v13465_v29 }
 0x91d   :  { %v1453_v51 = vsel %vm226_vm6, %v1445_v19, 0.0 }
 0x91e   :  { %v1425_v24 = vpop.xlane.xlu0 %1424  ;;  %1454 = vadd.xlane.f32.xlu0 %v1453_v51  ;;  %v1450_v38 = vsel %vm226_vm6, %v1444_v6, 0.0 }
 0x91f   :  { %v1435_v1 = vmul.f32 0.03125, %v1425_v24  ;;  %1451 = vadd.xlane.f32.xlu1 %v1450_v38  ;;  %v1422_v25 = vpop.xlane.xlu1 %1421 }
 0x920   :  { %v1434_v3 = vmul.f32 0.03125, %v1422_v25 }
 0x921   :  { %v13474_v56 = vsub.f32 %v13442_v58, %v1435_v1 }
 0x922   :  { %v13477_v10 = vsub.f32 %v13445_v22, %v1434_v3  ;;  %v9034_v3 = vld [vmem:[%s16445_s5 + $0x12] ss:$0 sm:$0xff] }
 0x923   :  { %v1447_v37 = vmul.f32 %v13474_v56, %v13474_v56 }
 0x924   :  { %v1446_v15 = vmul.f32 %v13477_v10, %v13477_v10 }
 0x925   :  { %v1459_v33 = vsel %vm226_vm6, %v1447_v37, 0.0 }
 0x926   :  { %1460 = vadd.xlane.f32.xlu0 %v1459_v33  ;;  %v1431_v7 = vpop.xlane.xlu0 %1430  ;;  %v1456_v34 = vsel %vm226_vm6, %v1446_v15, 0.0 }
 0x927   :  { %v1437_v13 = vmul.f32 0.03125, %v1431_v7  ;;  %1457 = vadd.xlane.f32.xlu1 %v1456_v34  ;;  %v1428_v21 = vpop.xlane.xlu1 %1427 }
 0x928   :  { %v1436_v45 = vmul.f32 0.03125, %v1428_v21 }
 0x929   :  { %v13486_v61 = vsub.f32 %v13452_v43, %v1437_v13 }
 0x92a   :  { %v13489_v62 = vsub.f32 %v13455_v59, %v1436_v45 }
 0x92b   :  { %v1449_v54 = vmul.f32 %v13486_v61, %v13486_v61 }
 0x92c   :  { %v1448_v55 = vmul.f32 %v13489_v62, %v13489_v62 }
 0x92d   :  { %v1465_v39 = vsel %vm226_vm6, %v1449_v54, 0.0  ;;  %v9036_v54 = vld [vmem:[%s16445_s5 + $0x21] ss:$0 sm:$0xff] }
 0x92e   :  { %1466 = vadd.xlane.f32.xlu0 %v1465_v39  ;;  %v1462_v60 = vsel %vm226_vm6, %v1448_v55, 0.0 }
 0x92f   :  { %1463 = vadd.xlane.f32.xlu1 %v1462_v60 }
 0x9ab   :  { %v1455_v27 = vpop.xlane.xlu0 %1454 }
 0x9ac   :  { %v1469_v12 = vmul.f32 0.03125, %v1455_v27  ;;  %v1452_v44 = vpop.xlane.xlu1 %1451 }
 0x9ad   :  { %v1468_v30 = vmul.f32 0.03125, %v1452_v44 }
 0x9ae   :  { %v1475_v63 = vadd.f32 1e-05, %v1469_v12 }
 0x9af   :  { %v1474_v32 = vadd.f32 1e-05, %v1468_v30 }
 0x9b0   :  { %11955 = vrsqrt.f32 %v1475_v63 }
 0x9b1   :  { %11957 = vrsqrt.f32 %v1474_v32 }
 0x9b3   :  { %v1461_v19 = vpop.xlane.xlu0 %1460 }
 0x9b4   :  { %v1471_v6 = vmul.f32 0.03125, %v1461_v19  ;;  %v1458_v51 = vpop.xlane.xlu1 %1457  ;;  %v1703_v19 = vld [vmem:[%s16443_s3 + $0x18] sm:$0xff] }
 0x9b5   :  { %v1470_v24 = vmul.f32 0.03125, %v1458_v51 }
 0x9b6   :  { %v1477_v38 = vadd.f32 1e-05, %v1471_v6 }
 0x9b7   :  { %v1476_v1 = vadd.f32 1e-05, %v1470_v24  ;;  %v1706_v24 = vld [vmem:[%s16443_s3 + $0x30] sm:$0xff] }
 0x9b8   :  { %11959 = vrsqrt.f32 %v1477_v38  ;;  %v1707_v38 = vld [vmem:[%s16443_s3 + $0x38] sm:$0xff] }
 0x9b9   :  { %11961 = vrsqrt.f32 %v1476_v1  ;;  %v10787_v1 = vpack.c.bf16 %v1707_v38, %v1706_v24 }
 0x9ba   :  { %v11956_v25 = vpop.eup %11955 }
 0x9bb   :  { %v11958_v37 = vpop.eup %11957  ;;  %v1487_v15 = vmul.f32 %v11956_v25, %v13462_v28  ;;  %v1467_v33 = vpop.xlane.xlu0 %1466  ;;  %v1708_v25 = vld [vmem:[%s16443_s3 + $0x40] sm:$0xff] }
 0x9bc   :  { %v1473_v7 = vmul.f32 0.03125, %v1467_v33  ;;  %v1464_v34 = vpop.xlane.xlu1 %1463  ;;  %v1486_v13 = vmul.f32 %v11958_v37, %v13465_v29  ;;  %v1711_v33 = vld [vmem:[%s16443_s3 + $0x58] sm:$0xff] }
 0x9bd   :  { %v1501_v21 = vmul.f32 %v9034_v3, %v1487_v15  ;;  %v1472_v45 = vmul.f32 0.03125, %v1464_v34  ;;  %v1710_v15 = vld [vmem:[%s16443_s3 + $0x50] sm:$0xff]  ;;  %v1712_v34 = vld [vmem:[%s16443_s3 + $0x60] sm:$0xff] }
 0x9be   :  { %v1479_v55 = vadd.f32 1e-05, %v1473_v7  ;;  %v1500_v39 = vmul.f32 %v9034_v3, %v1486_v13  ;;  %v10795_v7 = vpack.c.bf16 %v1711_v33, %v1710_v15  ;;  %v1713_v13 = vld [vmem:[%s16443_s3 + $0x68] sm:$0xff] }
 0x9bf   :  { %v1478_v60 = vadd.f32 1e-05, %v1472_v45  ;;  %v1515_v52 = vadd.f32 %v9036_v54, %v1501_v21  ;;  %v10799_v21 = vpack.c.bf16 %v1713_v13, %v1712_v34  ;;  %v1714_v45 = vld [vmem:[%s16443_s3 + $0x70] sm:$0xff] }
 0x9c0   :  { %11963 = vrsqrt.f32 %v1479_v55  ;;  %v1514_v0 = vadd.f32 %v9036_v54, %v1500_v39  ;;  %v9041_v39 = vld [vmem:[#allocation2 + $0x5] ss:$0 sm:$0xff] }
 0x9c1   :  { %11965 = vrsqrt.f32 %v1478_v60 }
 0x9c2   :  { %v11960_v23 = vpop.eup %11959  ;;  %10036 = vmatprep.mubr.msk.f32.mxu1 %vm226_vm6, %v1514_v0 }
 0x9c3   :  { %v11962_v28 = vpop.eup %11961  ;;  %10037 = vmatmul.mubr.msk.f32.vlgmr.msra.gmra.mrb[36].mxu1 %vm226_vm6, %v1515_v52  ;;  %v1489_v29 = vmul.f32 %v11960_v23, %v13474_v56 }
 0x9c4   :  { %v1488_v2 = vmul.f32 %v11962_v28, %v13477_v10  ;;  %v1702_v10 = vld [vmem:[%s16443_s3 + $0x10] sm:$0xff] }
 0x9c5   :  { %v1503_v50 = vmul.f32 %v9034_v3, %v1489_v29  ;;  %v10779_v6 = vpack.c.bf16 %v1703_v19, %v1702_v10 }
 0x9c6   :  { %v1502_v36 = vmul.f32 %v9034_v3, %v1488_v2 }
 0x9c7   :  { %v1517_v42 = vadd.f32 %v9036_v54, %v1503_v50  ;;  %10780 = vmatprep.subr.bf16.mxu0 %v10779_v6 }
 0x9c8   :  { %v1516_v4 = vadd.f32 %v9036_v54, %v1502_v36  ;;  %10782 = vmatpush3.bf16.msra.mxu0 %v10779_v6 }
 0x9ca   :  { %v11964_v26 = vpop.eup %11963  ;;  %10039 = vmatprep.mubr.msk.f32.mxu1 %vm226_vm6, %v1516_v4 }
 0x9cb   :  { %v11966_v27 = vpop.eup %11965  ;;  %10040 = vmatmul.mubr.msk.f32.gmra.mrb[38].mxu1 %vm226_vm6, %v1517_v42  ;;  %v1491_v12 = vmul.f32 %v11964_v26, %v13486_v61  ;;  %v1704_v61 = vld [vmem:[%s16443_s3 + $0x20] sm:$0xff] }
 0x9cc   :  { %v1490_v44 = vmul.f32 %v11966_v27, %v13489_v62  ;;  %v1705_v62 = vld [vmem:[%s16443_s3 + $0x28] sm:$0xff] }
 0x9cd   :  { %v1505_v30 = vmul.f32 %v9034_v3, %v1491_v12  ;;  %v10783_v51 = vpack.c.bf16 %v1705_v62, %v1704_v61 }
 0x9ce   :  { %v1504_v63 = vmul.f32 %v9034_v3, %v1490_v44  ;;  %v1709_v3 = vld [vmem:[%s16443_s3 + $0x48] sm:$0xff] }
 0x9cf   :  { %v1519_v56 = vadd.f32 %v9036_v54, %v1505_v30  ;;  %10784 = vmatprep.subr.bf16.mxu0 %v10783_v51  ;;  %v10791_v37 = vpack.c.bf16 %v1709_v3, %v1708_v25 }
 0x9d0   :  { %v1518_v32 = vadd.f32 %v9036_v54, %v1504_v63  ;;  %10786 = vmatpush3.bf16.msra.mxu0 %v10783_v51  ;;  %v1715_v54 = vld [vmem:[%s16443_s3 + $0x78] sm:$0xff] }
 0x9d1   :  { %10788 = vmatprep.subr.bf16.mxu0 %v10787_v1  ;;  %v10803_v55 = vpack.c.bf16 %v1715_v54, %v1714_v45 }
 0x9d2   :  { %10042 = vmatprep.mubr.msk.f32.mxu1 %vm226_vm6, %v1518_v32 }
 0x9d3   :  { %10043 = vmatmul.mubr.msk.f32.gmra.mrb[40].mxu1 %vm226_vm6, %v1519_v56 }
 0x9d4   :  { %10790 = vmatpush3.bf16.msra.mxu0 %v10787_v1 }
 0x9d5   :  { %10792 = vmatprep.subr.bf16.mxu0 %v10791_v37 }
 0x9d8   :  { %10794 = vmatpush3.bf16.msra.mxu0 %v10791_v37 }
 0x9d9   :  { %10796 = vmatprep.subr.bf16.mxu0 %v10795_v7 }
 0x9dc   :  { %10798 = vmatpush3.bf16.msra.mxu0 %v10795_v7 }
 0x9dd   :  { %10800 = vmatprep.subr.bf16.mxu0 %v10799_v21 }
 0x9e0   :  { %10802 = vmatpush3.bf16.msra.mxu0 %v10799_v21 }
 0x9e1   :  { %10804 = vmatprep.subr.bf16.mxu0 %v10803_v55 }
 0x9e4   :  { %10806 = vmatpush3.bf16.msra.mxu0 %v10803_v55 }
 0x9e5   :  { %10871 = vmatprep.subr.bf16.mxu0 %v16532_v14 }
 0xa96   :  { %v10038_v60 = vpop.f32.mrb[36].mxu1 }
 0xa97   :  { %v1623_v0 = vadd.f32 %v10038_v60, %v9041_v39  ;;  %v1617_v52 = vpop.f32.mrb[37].mxu1 }
 0xa98   :  { %v1618_v23 = vadd.f32 %v9041_v39, %v1617_v52 }
 0xa99   :  { %v1653_v28 = vmul.f32 0.044715, %v1623_v0 }
 0xa9a   :  { %v1652_v29 = vmul.f32 0.044715, %v1618_v23  ;;  %v1646_v52 = vmul.f32 0.5, %v1618_v23 }
 0xa9b   :  { %v1659_v2 = vmul.f32 %v1653_v28, %v1623_v0 }
 0xa9c   :  { %v1658_v50 = vmul.f32 %v1652_v29, %v1618_v23 }
 0xa9d   :  { %v1665_v36 = vmul.f32 %v1659_v2, %v1623_v0  ;;  %v1647_v2 = vmul.f32 0.5, %v1623_v0 }
 0xa9e   :  { %v10041_v4 = vpop.f32.mrb[38].mxu1  ;;  %v1664_v42 = vmul.f32 %v1658_v50, %v1618_v23 }
 0xa9f   :  { %v1671_v26 = vadd.f32 %v1665_v36, %v1623_v0  ;;  %v1633_v27 = vadd.f32 %v10041_v4, %v9041_v39  ;;  %v1627_v12 = vpop.f32.mrb[39].mxu1 }
 0xaa0   :  { %v1628_v44 = vadd.f32 %v9041_v39, %v1627_v12  ;;  %v1670_v30 = vadd.f32 %v1664_v42, %v1618_v23 }
 0xaa1   :  { %v1677_v63 = vmul.f32 0.7978846, %v1671_v26  ;;  %v1655_v32 = vmul.f32 0.044715, %v1633_v27 }
 0xaa2   :  { %v1654_v56 = vmul.f32 0.044715, %v1628_v44  ;;  %v1676_v10 = vmul.f32 0.7978846, %v1670_v30 }
 0xaa3   :  { %11967 = vtanh.f32 %v1677_v63  ;;  %v1661_v19 = vmul.f32 %v1655_v32, %v1633_v27  ;;  %v1648_v63 = vmul.f32 0.5, %v1628_v44 }
 0xaa4   :  { %v1660_v6 = vmul.f32 %v1654_v56, %v1628_v44  ;;  %11969 = vtanh.f32 %v1676_v10  ;;  %v1649_v56 = vmul.f32 0.5, %v1633_v27 }
 0xaa5   :  { %v1667_v61 = vmul.f32 %v1661_v19, %v1633_v27 }
 0xaa6   :  { %v10044_v62 = vpop.f32.mrb[40].mxu1  ;;  %v1666_v51 = vmul.f32 %v1660_v6, %v1628_v44 }
 0xaa7   :  { %v1643_v24 = vadd.f32 %v10044_v62, %v9041_v39  ;;  %v1637_v38 = vpop.f32.mrb[41].mxu1  ;;  %v1673_v1 = vadd.f32 %v1667_v61, %v1633_v27 }
 0xaa8   :  { %v1638_v25 = vadd.f32 %v9041_v39, %v1637_v38  ;;  %v1672_v3 = vadd.f32 %v1666_v51, %v1628_v44  ;;  %v9049_v44 = vld [vmem:[%s16445_s5 + $0xa] ss:$0 sm:$0xff] }
 0xaa9   :  { %v1657_v37 = vmul.f32 0.044715, %v1643_v24  ;;  %v1679_v15 = vmul.f32 0.7978846, %v1673_v1  ;;  %v1651_v51 = vmul.f32 0.5, %v1643_v24 }
 0xaaa   :  { %v1656_v33 = vmul.f32 0.044715, %v1638_v25  ;;  %v1678_v7 = vmul.f32 0.7978846, %v1672_v3  ;;  %v1650_v61 = vmul.f32 0.5, %v1638_v25 }
 0xaab   :  { %v1663_v34 = vmul.f32 %v1657_v37, %v1643_v24  ;;  %11971 = vtanh.f32 %v1679_v15 }
 0xaac   :  { %v1662_v13 = vmul.f32 %v1656_v33, %v1638_v25  ;;  %11973 = vtanh.f32 %v1678_v7 }
 0xaad   :  { %v11968_v21 = vpop.eup %11967  ;;  %v1669_v45 = vmul.f32 %v1663_v34, %v1643_v24 }
 0xaae   :  { %v11970_v54 = vpop.eup %11969  ;;  %v1689_v55 = vadd.f32 1.0, %v11968_v21  ;;  %v1668_v60 = vmul.f32 %v1662_v13, %v1638_v25 }
 0xaaf   :  { %v1688_v28 = vadd.f32 1.0, %v11970_v54  ;;  %v1675_v29 = vadd.f32 %v1669_v45, %v1643_v24 }
 0xab0   :  { %v1674_v50 = vadd.f32 %v1668_v60, %v1638_v25  ;;  %v1695_v4 = vmul.f32 %v1689_v55, %v1647_v2 }
 0xab1   :  { %v1694_v39 = vmul.f32 %v1688_v28, %v1646_v52  ;;  %v1681_v36 = vmul.f32 0.7978846, %v1675_v29 }
 0xab2   :  { %v1680_v42 = vmul.f32 0.7978846, %v1674_v50 }
 0xab3   :  { %10077 = vmatprep.mubr.f32.mxu0 %v1694_v39  ;;  %11975 = vtanh.f32 %v1681_v36 }
 0xab4   :  { %10078 = vmatmul.mubr.f32.vlgmr.msra.gmra.mrb[24].mxu0 %v1695_v4  ;;  %11977 = vtanh.f32 %v1680_v42 }
 0xab5   :  { %v11972_v26 = vpop.eup %11971 }
 0xab6   :  { %v11974_v12 = vpop.eup %11973  ;;  %v1691_v30 = vadd.f32 1.0, %v11972_v26 }
 0xab7   :  { %v1690_v32 = vadd.f32 1.0, %v11974_v12 }
 0xab8   :  { %v1697_v23 = vmul.f32 %v1691_v30, %v1649_v56 }
 0xab9   :  { %v1696_v10 = vmul.f32 %v1690_v32, %v1648_v63 }
 0xabb   :  { %10080 = vmatprep.mubr.f32.mxu0 %v1696_v10 }
 0xabc   :  { %10081 = vmatmul.mubr.f32.gmra.mrb[26].mxu0 %v1697_v23 }
 0xabd   :  { %v11976_v0 = vpop.eup %11975 }
 0xabe   :  { %v11978_v19 = vpop.eup %11977  ;;  %v1693_v6 = vadd.f32 1.0, %v11976_v0 }
 0xabf   :  { %v1692_v62 = vadd.f32 1.0, %v11978_v19 }
 0xac0   :  { %v1699_v1 = vmul.f32 %v1693_v6, %v1651_v51 }
 0xac1   :  { %v1698_v38 = vmul.f32 %v1692_v62, %v1650_v61 }
 0xac3   :  { %10083 = vmatprep.mubr.f32.mxu0 %v1698_v38 }
 0xac4   :  { %10084 = vmatmul.mubr.f32.gmra.mrb[28].mxu0 %v1699_v1 }
 0xb87   :  { %v10079_v3 = vpop.f32.mrb[24].mxu0 }
 0xb88   :  { %v1796_v27 = vadd.f32 %v10079_v3, %v9049_v44  ;;  %v1790_v37 = vpop.f32.mrb[25].mxu0 }
 0xb89   :  { %v1791_v15 = vadd.f32 %v9049_v44, %v1790_v37 }
 0xb8a   :  { %v13580_v33 = vadd.f32 %v1796_v27, %v13432_v18 }
 0xb8b   :  { %v13583_v7 = vadd.f32 %v1791_v15, %v13435_v41 }
 0xb8c   :  { %v1828_v24 = vsel %vm226_vm6, %v13580_v33, 0.0 }
 0xb8d   :  { %1829 = vadd.xlane.f32.xlu0 %v1828_v24  ;;  %v1825_v25 = vsel %vm226_vm6, %v13583_v7, 0.0 }
 0xb8e   :  { %1826 = vadd.xlane.f32.xlu1 %v1825_v25 }
 0xb8f   :  { %v10082_v34 = vpop.f32.mrb[26].mxu0 }
 0xb90   :  { %v1806_v13 = vadd.f32 %v10082_v34, %v9049_v44  ;;  %v1800_v21 = vpop.f32.mrb[27].mxu0 }
 0xb91   :  { %v1801_v45 = vadd.f32 %v9049_v44, %v1800_v21  ;;  %v9055_v21 = vld [vmem:[%s16442_s2 + $0x28] sm:$0xff] }
 0xb92   :  { %v13590_v54 = vadd.f32 %v1806_v13, %v13442_v58  ;;  %v9054_v13 = vld [vmem:[%s16442_s2 + $0x20] sm:$0xff] }
 0xb93   :  { %v13593_v18 = vadd.f32 %v1801_v45, %v13445_v22  ;;  %v10807_v45 = vpack.c.bf16 %v9055_v21, %v9054_v13 }
 0xb94   :  { %v1834_v41 = vsel %vm226_vm6, %v13590_v54, 0.0 }
 0xb95   :  { %1835 = vadd.xlane.f32.xlu0 %v1834_v41  ;;  %v1831_v55 = vsel %vm226_vm6, %v13593_v18, 0.0  ;;  %10808 = vmatprep.subr.bf16.mxu1 %v10807_v45  ;;  %v9056_v41 = vld [vmem:[%s16442_s2 + $0x30] sm:$0xff] }
 0xb96   :  { %1832 = vadd.xlane.f32.xlu1 %v1831_v55  ;;  %10810 = vmatpush3.bf16.msra.mxu1 %v10807_v45  ;;  %v9057_v55 = vld [vmem:[%s16442_s2 + $0x38] sm:$0xff] }
 0xb97   :  { %v10085_v60 = vpop.f32.mrb[28].mxu0 }
 0xb98   :  { %v1816_v52 = vadd.f32 %v10085_v60, %v9049_v44  ;;  %v1810_v28 = vpop.f32.mrb[29].mxu0  ;;  %v10811_v60 = vpack.c.bf16 %v9057_v55, %v9056_v41 }
 0xb99   :  { %v1811_v29 = vadd.f32 %v9049_v44, %v1810_v28  ;;  %v9066_v28 = vld [vmem:[%s16441_s1 + $0x28] sm:$0xff] }
 0xb9a   :  { %v13600_v2 = vadd.f32 %v1816_v52, %v13452_v43  ;;  %10812 = vmatprep.subr.bf16.mxu1 %v10811_v60  ;;  %v9065_v52 = vld [vmem:[%s16441_s1 + $0x20] sm:$0xff] }
 0xb9b   :  { %v13603_v58 = vadd.f32 %v1811_v29, %v13455_v59  ;;  %10814 = vmatpush3.bf16.msra.mxu1 %v10811_v60  ;;  %v10815_v29 = vpack.c.bf16 %v9066_v28, %v9065_v52 }
 0xb9c   :  { %v1840_v22 = vsel %vm226_vm6, %v13600_v2, 0.0 }
 0xb9d   :  { %1841 = vadd.xlane.f32.xlu0 %v1840_v22  ;;  %v1837_v50 = vsel %vm226_vm6, %v13603_v58, 0.0  ;;  %10816 = vmatprep.subr.bf16.mxu1 %v10815_v29 }
 0xb9e   :  { %1838 = vadd.xlane.f32.xlu1 %v1837_v50 }
 0xc1a   :  { %v1830_v39 = vpop.xlane.xlu0 %1829 }
 0xc1b   :  { %v1844_v36 = vmul.f32 0.03125, %v1830_v39  ;;  %v1827_v4 = vpop.xlane.xlu1 %1826 }
 0xc1c   :  { %v1843_v42 = vmul.f32 0.03125, %v1827_v4 }
 0xc1d   :  { %v13610_v26 = vsub.f32 %v13580_v33, %v1844_v36 }
 0xc1e   :  { %v13613_v43 = vsub.f32 %v13583_v7, %v1843_v42 }
 0xc1f   :  { %v1856_v59 = vmul.f32 %v13610_v26, %v13610_v26 }
 0xc20   :  { %v1855_v12 = vmul.f32 %v13613_v43, %v13613_v43 }
 0xc21   :  { %v1864_v30 = vsel %vm226_vm6, %v1856_v59, 0.0 }
 0xc22   :  { %v1836_v63 = vpop.xlane.xlu0 %1835  ;;  %1865 = vadd.xlane.f32.xlu0 %v1864_v30  ;;  %v1861_v32 = vsel %vm226_vm6, %v1855_v12, 0.0 }
 0xc23   :  { %v1846_v56 = vmul.f32 0.03125, %v1836_v63  ;;  %1862 = vadd.xlane.f32.xlu1 %v1861_v32  ;;  %v1833_v10 = vpop.xlane.xlu1 %1832 }
 0xc24   :  { %v1845_v23 = vmul.f32 0.03125, %v1833_v10 }
 0xc25   :  { %v13622_v0 = vsub.f32 %v13590_v54, %v1846_v56 }
 0xc26   :  { %v13625_v19 = vsub.f32 %v13593_v18, %v1845_v23  ;;  %v9051_v23 = vld [vmem:[%s16445_s5 + $0x13] ss:$0 sm:$0xff] }
 0xc27   :  { %v1858_v6 = vmul.f32 %v13622_v0, %v13622_v0 }
 0xc28   :  { %v1857_v61 = vmul.f32 %v13625_v19, %v13625_v19 }
 0xc29   :  { %v1870_v62 = vsel %vm226_vm6, %v1858_v6, 0.0 }
 0xc2a   :  { %1871 = vadd.xlane.f32.xlu0 %v1870_v62  ;;  %v1842_v51 = vpop.xlane.xlu0 %1841  ;;  %v1867_v38 = vsel %vm226_vm6, %v1857_v61, 0.0 }
 0xc2b   :  { %v1848_v1 = vmul.f32 0.03125, %v1842_v51  ;;  %1868 = vadd.xlane.f32.xlu1 %v1867_v38  ;;  %v1839_v44 = vpop.xlane.xlu1 %1838 }
 0xc2c   :  { %v1847_v3 = vmul.f32 0.03125, %v1839_v44 }
 0xc2d   :  { %v13634_v27 = vsub.f32 %v13600_v2, %v1848_v1 }
 0xc2e   :  { %v13637_v37 = vsub.f32 %v13603_v58, %v1847_v3 }
 0xc2f   :  { %v1860_v15 = vmul.f32 %v13634_v27, %v13634_v27 }
 0xc30   :  { %v1859_v24 = vmul.f32 %v13637_v37, %v13637_v37 }
 0xc31   :  { %v1876_v25 = vsel %vm226_vm6, %v1860_v15, 0.0  ;;  %v9053_v15 = vld [vmem:[%s16445_s5 + $0x22] ss:$0 sm:$0xff] }
 0xc32   :  { %1877 = vadd.xlane.f32.xlu0 %v1876_v25  ;;  %v1873_v34 = vsel %vm226_vm6, %v1859_v24, 0.0 }
 0xc33   :  { %1874 = vadd.xlane.f32.xlu1 %v1873_v34  ;;  %v9067_v34 = vld [vmem:[%s16441_s1 + $0x30] sm:$0xff] }
 0xcaf   :  { %v1866_v22 = vpop.xlane.xlu0 %1865 }
 0xcb0   :  { %v1880_v50 = vmul.f32 0.03125, %v1866_v22  ;;  %v1863_v39 = vpop.xlane.xlu1 %1862 }
 0xcb1   :  { %v1879_v36 = vmul.f32 0.03125, %v1863_v39 }
 0xcb2   :  { %v1886_v4 = vadd.f32 1e-05, %v1880_v50 }
 0xcb3   :  { %v1885_v42 = vadd.f32 1e-05, %v1879_v36 }
 0xcb4   :  { %11979 = vrsqrt.f32 %v1886_v4 }
 0xcb5   :  { %11981 = vrsqrt.f32 %v1885_v42 }
 0xcb7   :  { %v1872_v59 = vpop.xlane.xlu0 %1871 }
 0xcb8   :  { %v1882_v12 = vmul.f32 0.03125, %v1872_v59  ;;  %v1869_v30 = vpop.xlane.xlu1 %1868 }
 0xcb9   :  { %v1881_v63 = vmul.f32 0.03125, %v1869_v30 }
 0xcba   :  { %v1888_v32 = vadd.f32 1e-05, %v1882_v12 }
 0xcbb   :  { %v1887_v56 = vadd.f32 1e-05, %v1881_v63 }
 0xcbc   :  { %11983 = vrsqrt.f32 %v1888_v32 }
 0xcbd   :  { %11985 = vrsqrt.f32 %v1887_v56  ;;  %v12327_v56 = vld [vmem:[%s16446_s6 + $0x8] sm:$0xff] }
 0xcbe   :  { %v11980_v10 = vpop.eup %11979 }
 0xcbf   :  { %v11982_v6 = vpop.eup %11981  ;;  %v1898_v61 = vmul.f32 %v11980_v10, %v13610_v26  ;;  %v1878_v62 = vpop.xlane.xlu0 %1877  ;;  %v9068_v26 = vld [vmem:[%s16441_s1 + $0x38] sm:$0xff] }
 0xcc0   :  { %v1884_v51 = vmul.f32 0.03125, %v1878_v62  ;;  %v1875_v38 = vpop.xlane.xlu1 %1874  ;;  %v1897_v1 = vmul.f32 %v11982_v6, %v13613_v43  ;;  %v10819_v45 = vpack.c.bf16 %v9068_v26, %v9067_v34 }
 0xcc1   :  { %v1912_v44 = vmul.f32 %v9051_v23, %v1898_v61  ;;  %v1883_v3 = vmul.f32 0.03125, %v1875_v38 }
 0xcc2   :  { %v1890_v24 = vadd.f32 1e-05, %v1884_v51  ;;  %v1911_v25 = vmul.f32 %v9051_v23, %v1897_v1  ;;  %v12329_v1 = vld [vmem:[%s16446_s6 + $0x10] sm:$0xff] }
 0xcc3   :  { %v1889_v13 = vadd.f32 1e-05, %v1883_v3  ;;  %v1926_v43 = vadd.f32 %v9053_v15, %v1912_v44  ;;  %v12330_v3 = vld [vmem:[%s16446_s6 + $0x18] sm:$0xff] }
 0xcc4   :  { %11987 = vrsqrt.f32 %v1890_v24  ;;  %v1925_v21 = vadd.f32 %v9053_v15, %v1911_v25 }
 0xcc5   :  { %11989 = vrsqrt.f32 %v1889_v13  ;;  %v9070_v13 = vld [vmem:[%s16445_s5 + $0x1] ss:$0 sm:$0xff] }
 0xcc6   :  { %v11984_v41 = vpop.eup %11983  ;;  %10094 = vmatprep.mubr.msk.f32.mxu1 %vm226_vm6, %v1925_v21 }
 0xcc7   :  { %v11986_v55 = vpop.eup %11985  ;;  %10095 = vmatmul.mubr.msk.f32.vlgmr.msra.gmra.mrb[42].mxu1 %vm226_vm6, %v1926_v43  ;;  %v1900_v60 = vmul.f32 %v11984_v41, %v13622_v0 }
 0xcc8   :  { %v1899_v52 = vmul.f32 %v11986_v55, %v13625_v19  ;;  %10818 = vmatpush3.bf16.msra.mxu1 %v10815_v29 }
 0xcc9   :  { %v1914_v28 = vmul.f32 %v9051_v23, %v1900_v60  ;;  %10820 = vmatprep.subr.bf16.mxu1 %v10819_v45 }
 0xcca   :  { %v1913_v22 = vmul.f32 %v9051_v23, %v1899_v52 }
 0xccb   :  { %v1928_v39 = vadd.f32 %v9053_v15, %v1914_v28 }
 0xccc   :  { %v1927_v50 = vadd.f32 %v9053_v15, %v1913_v22  ;;  %10822 = vmatpush3.bf16.msra.mxu1 %v10819_v45  ;;  %v12332_v45 = vld [vmem:[%s16446_s6 + $0x20] sm:$0xff]  ;;  %v12333_v22 = vld [vmem:[%s16449_s9 + $0x8] sm:$0xff] }
 0xccd   :  { %10823 = vmatprep.subr.bf16.mxu1 %v16532_v14 }
 0xcce   :  { %v11988_v36 = vpop.eup %11987  ;;  %10097 = vmatprep.mubr.msk.f32.mxu1 %vm226_vm6, %v1927_v50 }
 0xccf   :  { %v11990_v4 = vpop.eup %11989  ;;  %10098 = vmatmul.mubr.msk.f32.gmra.mrb[44].mxu1 %vm226_vm6, %v1928_v39  ;;  %v1902_v42 = vmul.f32 %v11988_v36, %v13634_v27  ;;  %v9058_v27 = vld [vmem:[#allocation2 + $0x1] ss:$0 sm:$0xff] }
 0xcd0   :  { %v1901_v0 = vmul.f32 %v11990_v4, %v13637_v37  ;;  %v12335_v4 = vld [vmem:[%s16449_s9 + $0x68] sm:$0xff] }
 0xcd1   :  { %v1916_v19 = vmul.f32 %v9051_v23, %v1902_v42 }
 0xcd2   :  { %v1915_v29 = vmul.f32 %v9051_v23, %v1901_v0  ;;  %v12328_v23 = vld [vmem:[%s16446_s6] sm:$0xff] }
 0xcd3   :  { %v1930_v12 = vadd.f32 %v9053_v15, %v1916_v19  ;;  %v12336_v0 = vld [vmem:[%s16449_s9] sm:$0xff] }
 0xcd4   :  { %v1929_v59 = vadd.f32 %v9053_v15, %v1915_v29  ;;  %v12337_v29 = vld [vmem:[%s16449_s9 + $0x30] sm:$0xff] }
 0xcd6   :  { %10100 = vmatprep.mubr.msk.f32.mxu1 %vm226_vm6, %v1929_v59 }
 0xcd7   :  { %10101 = vmatmul.mubr.msk.f32.gmra.mrb[46].mxu1 %vm226_vm6, %v1930_v12 }
 0xcd8   :  { %10111 = vmatprep.mubr.msk.f32.mxu1 %vm226_vm6, %v1925_v21  ;;  %v12331_v21 = vld [vmem:[%s16446_s6 + $0x28] sm:$0xff] }
 0xcdb   :  { %10112 = vmatmul.mubr.msk.f32.vlgmr.msra.gmra.mrb[48].mxu1 %vm226_vm6, %v1926_v43 }
 0xcdc   :  { %10114 = vmatprep.mubr.msk.f32.mxu1 %vm226_vm6, %v1927_v50 }
 0xcdf   :  { %10115 = vmatmul.mubr.msk.f32.gmra.mrb[50].mxu1 %vm226_vm6, %v1928_v39  ;;  %v12334_v39 = vld [vmem:[%s16449_s9 + $0x38] sm:$0xff] }
 0xce0   :  { %10117 = vmatprep.mubr.msk.f32.mxu1 %vm226_vm6, %v1929_v59 }
 0xce3   :  { %10118 = vmatmul.mubr.msk.f32.gmra.mrb[52].mxu1 %vm226_vm6, %v1930_v12  ;;  %v12338_v12 = vld [vmem:[%s16449_s9 + $0x60] sm:$0xff] }
 0xce4   :  { %2451 = vmatprep.mubr.f32.mxu1 %v16560_v5 }
 0xd9a   :  { %v10096_v37 = vpop.f32.mrb[42].mxu1 }
 0xd9b   :  { %v2034_v30 = vadd.f32 %v10096_v37, %v9058_v27  ;;  %v2028_v63 = vpop.f32.mrb[43].mxu1 }
 0xd9c   :  { %v2029_v32 = vadd.f32 %v9058_v27, %v2028_v63 }
 0xd9d   :  { %v13698_v10 = vmul.f32 %v12327_v56, %v2034_v30  ;;  %v12339_v30 = vld [vmem:[%s16449_s9 + $0x98] sm:$0xff] }
 0xd9e   :  { %v13703_v6 = vmul.f32 %v12328_v23, %v2029_v32  ;;  %v12340_v32 = vld [vmem:[%s16449_s9 + $0x90] sm:$0xff] }
 0xd9f   :  { %2071 = vrot.lane.b32.xlu0 %v13698_v10, %s12565_s21 }
 0xda0   :  { %2069 = vrot.lane.b32.xlu1 %v13703_v6, %s12565_s21 }
 0xda2   :  { %v10099_v61 = vpop.f32.mrb[44].mxu1 }
 0xda3   :  { %v2038_v62 = vpop.f32.mrb[45].mxu1  ;;  %v2044_v38 = vadd.f32 %v10099_v61, %v9058_v27 }
 0xda4   :  { %v2039_v51 = vadd.f32 %v9058_v27, %v2038_v62 }
 0xda5   :  { %v13719_v15 = vmul.f32 %v12330_v3, %v2044_v38  ;;  %v12341_v3 = vld [vmem:[%s16449_s9 + $0x18] sm:$0xff] }
 0xda6   :  { %v13712_v44 = vmul.f32 %v12329_v1, %v2039_v51 }
 0xda8   :  { %2073 = vrot.lane.b32.xlu1 %v13712_v44, %s12565_s21 }
 0xdaa   :  { %v10102_v24 = vpop.f32.mrb[46].mxu1 }
 0xdab   :  { %v2054_v25 = vadd.f32 %v10102_v24, %v9058_v27  ;;  %v2048_v34 = vpop.f32.mrb[47].mxu1 }
 0xdac   :  { %v2049_v26 = vadd.f32 %v9058_v27, %v2048_v34  ;;  %2075 = vrot.lane.b32.xlu1 %v13719_v15, %s12565_s21 }
 0xdad   :  { %v13729_v43 = vmul.f32 %v12331_v21, %v2054_v25  ;;  %v12342_v25 = vld [vmem:[%s16449_s9 + $0x48] sm:$0xff] }
 0xdae   :  { %v13734_v41 = vmul.f32 %v12332_v45, %v2049_v26  ;;  %v10113_v55 = vpop.f32.mrb[48].mxu1  ;;  %v12343_v26 = vld [vmem:[%s16449_s9 + $0x78] sm:$0xff]  ;;  %v12344_v45 = vld [vmem:[%s16449_s9 + $0x10] sm:$0xff] }
 0xdaf   :  { %v2178_v60 = vadd.f32 %v10113_v55, %v9070_v13  ;;  %v2172_v52 = vpop.f32.mrb[49].mxu1 }
 0xdb0   :  { %v2173_v28 = vadd.f32 %v9070_v13, %v2172_v52  ;;  %2079 = vrot.lane.b32.xlu1 %v13729_v43, %s12565_s21  ;;  %2077 = vrot.lane.b32.xlu0 %v13734_v41, %s12565_s21 }
 0xdb1   :  { %v2226_v50 = vmul.f32 %v12333_v22, %v2178_v60  ;;  %v13746_v36 = vmul.f32 %v12334_v39, %v2178_v60  ;;  %v13751_v42 = vmul.f32 %v12335_v4, %v2178_v60  ;;  %v13769_v63 = vmul.f32 %v12339_v30, %v2178_v60  ;;  %v12345_v60 = vld [vmem:[%s16449_s9 + $0x40] sm:$0xff]  ;;  %v12347_v39 = vld [vmem:[%s16449_s9 + $0xa8] sm:$0xff] }
 0xdb2   :  { %v2225_v19 = vmul.f32 %v12336_v0, %v2173_v28  ;;  %v13759_v59 = vmul.f32 %v12337_v29, %v2173_v28  ;;  %v13764_v27 = vmul.f32 %v12338_v12, %v2173_v28  ;;  %v10116_v37 = vpop.f32.mrb[50].mxu1  ;;  %v13774_v56 = vmul.f32 %v12340_v32, %v2173_v28  ;;  %v12346_v28 = vld [vmem:[%s16449_s9 + $0x70] sm:$0xff]  ;;  %v12348_v4 = vld [vmem:[%s16449_s9 + $0xa0] sm:$0xff]  ;;  %v12349_v30 = vld [vmem:[%s16449_s9 + $0x28] sm:$0xff] }
 0xdb3   :  { %v2188_v23 = vadd.f32 %v10116_v37, %v9070_v13  ;;  %v2182_v61 = vpop.f32.mrb[51].mxu1 }
 0xdb4   :  { %v2183_v62 = vadd.f32 %v9070_v13, %v2182_v61  ;;  %v10872_v51 = vpack.c.bf16 %v2226_v50, %v2225_v19  ;;  %v10881_v38 = vpack.c.bf16 %v13746_v36, %v13759_v59  ;;  %v10890_v1 = vpack.c.bf16 %v13751_v42, %v13764_v27 }
 0xdb5   :  { %v2228_v24 = vmul.f32 %v12341_v3, %v2188_v23  ;;  %v2234_v34 = vmul.f32 %v12342_v25, %v2188_v23  ;;  %v2240_v21 = vmul.f32 %v12343_v26, %v2188_v23  ;;  %v2246_v36 = vmul.f32 %v12347_v39, %v2188_v23  ;;  %v12350_v23 = vld [vmem:[%s16449_s9 + $0x58] sm:$0xff] }
 0xdb6   :  { %v2227_v55 = vmul.f32 %v12344_v45, %v2183_v62  ;;  %v2233_v52 = vmul.f32 %v12345_v60, %v2183_v62  ;;  %v2239_v22 = vmul.f32 %v12346_v28, %v2183_v62  ;;  %v10119_v50 = vpop.f32.mrb[52].mxu1  ;;  %10873 = vmatpush1.bf16.msra.mxu0 %v10872_v51  ;;  %v2245_v42 = vmul.f32 %v12348_v4, %v2183_v62  ;;  %v12351_v62 = vld [vmem:[%s16449_s9 + $0x88] sm:$0xff] }
 0xdb7   :  { %v2198_v0 = vadd.f32 %v10119_v50, %v9070_v13  ;;  %v2192_v19 = vpop.f32.mrb[53].mxu1  ;;  %10874 = vmatprep.subr.bf16.mxu0 %v16532_v14  ;;  %v10899_v29 = vpack.c.bf16 %v13769_v63, %v13774_v56  ;;  %v12353_v56 = vld [vmem:[%s16449_s9 + $0x20] sm:$0xff] }
 0xdb8   :  { %v2193_v59 = vadd.f32 %v9070_v13, %v2192_v19  ;;  %v10875_v12 = vpack.c.bf16 %v2228_v24, %v2227_v55  ;;  %v10884_v27 = vpack.c.bf16 %v2234_v34, %v2233_v52  ;;  %v10893_v37 = vpack.c.bf16 %v2240_v21, %v2239_v22  ;;  %v12352_v13 = vld [vmem:[%s16449_s9 + $0xb8] sm:$0xff]  ;;  %v12354_v24 = vld [vmem:[%s16449_s9 + $0x50] sm:$0xff]  ;;  %v12355_v34 = vld [vmem:[%s16449_s9 + $0x80] sm:$0xff] }
 0xdb9   :  { %v2230_v32 = vmul.f32 %v12349_v30, %v2198_v0  ;;  %v2236_v61 = vmul.f32 %v12350_v23, %v2198_v0  ;;  %v2242_v51 = vmul.f32 %v12351_v62, %v2198_v0  ;;  %v2248_v63 = vmul.f32 %v12352_v13, %v2198_v0  ;;  %v12356_v21 = vld [vmem:[%s16449_s9 + $0xb0] sm:$0xff]  ;;  %v16569_v30 = vld [vmem:[#allocation17_spill] sm:$0xff]  ;;  %v16570_v23 = vld [vmem:[#allocation18_spill] sm:$0xff] }
 0xdba   :  { %v2229_v3 = vmul.f32 %v12353_v56, %v2193_v59  ;;  %v2235_v25 = vmul.f32 %v12354_v24, %v2193_v59  ;;  %v2241_v26 = vmul.f32 %v12355_v34, %v2193_v59  ;;  %v2247_v45 = vmul.f32 %v12356_v21, %v2193_v59  ;;  %10876 = vmatpush1.bf16.msra.mxu0 %v10875_v12  ;;  %v16568_v59 = vld [vmem:[#allocation14_spill] sm:$0xff]  ;;  %v16575_v21 = vld [vmem:[#allocation20_spill] sm:$0xff] }
 0xdbb   :  { %10877 = vmatprep.subr.bf16.mxu0 %v16532_v14  ;;  %v10902_v55 = vpack.c.bf16 %v2246_v36, %v2245_v42 }
 0xdbc   :  { %v10878_v60 = vpack.c.bf16 %v2230_v32, %v2229_v3  ;;  %v10887_v52 = vpack.c.bf16 %v2236_v61, %v2235_v25  ;;  %v10896_v28 = vpack.c.bf16 %v2242_v51, %v2241_v26  ;;  %v10905_v22 = vpack.c.bf16 %v2248_v63, %v2247_v45  ;;  %v16571_v51 = vld [vmem:[#allocation15_spill] sm:$0xff]  ;;  %v16572_v63 = vld [vmem:[#allocation16_spill] sm:$0xff]  ;;  %v16573_v25 = vld [vmem:[#allocation21_spill] sm:$0xff] }
 0xdbd   :  { %v16574_v26 = vld [vmem:[#allocation22_spill] sm:$0xff]  ;;  %v16576_v45 = vld [vmem:[#allocation19_spill] sm:$0xff] }
 0xdbe   :  { %10879 = vmatpush1.bf16.msra.mxu0 %v10878_v60  ;;  %v16577_v60 = vld [vmem:[#allocation24_spill] sm:$0xff] }
 0xdbf   :  { %10880 = vmatprep.subr.bf16.mxu0 %v16532_v14 }
 0xdc2   :  { %10882 = vmatpush1.bf16.msra.mxu0 %v10881_v38 }
 0xdc3   :  { %10883 = vmatprep.subr.bf16.mxu0 %v16532_v14 }
 0xdc6   :  { %10885 = vmatpush1.bf16.msra.mxu0 %v10884_v27 }
 0xdc7   :  { %10886 = vmatprep.subr.bf16.mxu0 %v16532_v14 }
 0xdca   :  { %10888 = vmatpush1.bf16.msra.mxu0 %v10887_v52 }
 0xdcb   :  { %10889 = vmatprep.subr.bf16.mxu0 %v16532_v14 }
 0xdce   :  { %10891 = vmatpush1.bf16.msra.mxu0 %v10890_v1 }
 0xdcf   :  { %10892 = vmatprep.subr.bf16.mxu0 %v16532_v14 }
 0xdd2   :  { %10894 = vmatpush1.bf16.msra.mxu0 %v10893_v37 }
 0xdd3   :  { %10895 = vmatprep.subr.bf16.mxu0 %v16532_v14 }
 0xdd6   :  { %10897 = vmatpush1.bf16.msra.mxu0 %v10896_v28 }
 0xdd7   :  { %10898 = vmatprep.subr.bf16.mxu0 %v16532_v14 }
 0xdda   :  { %10900 = vmatpush1.bf16.msra.mxu0 %v10899_v29 }
 0xddb   :  { %10901 = vmatprep.subr.bf16.mxu0 %v16532_v14 }
 0xdde   :  { %10903 = vmatpush1.bf16.msra.mxu0 %v10902_v55 }
 0xddf   :  { %10904 = vmatprep.subr.bf16.mxu0 %v16532_v14 }
 0xde2   :  { %10906 = vmatpush1.bf16.msra.mxu0 %v10905_v22 }
 0xde3   :  { %10907 = vmatprep.subr.bf16.mxu0 %v16532_v14 }
 0xe11   :  { %v2072_v38 = vpop.permute.xlu0 %2071 }
 0xe12   :  { %v13843_v1 = vadd.f32 %v2072_v38, %v13698_v10  ;;  %v2070_v50 = vpop.permute.xlu1 %2069  ;;  %v16578_v38 = vld [vmem:[#allocation26_spill] sm:$0xff] }
 0xe13   :  { %v13846_v39 = vadd.f32 %v2070_v50, %v13703_v6 }
 0xe14   :  { %v2202_v36 = vmul.f32 %v13843_v1, %v13088_v40  ;;  %v2208_v61 = vmul.f32 %v13843_v1, %v16570_v23  ;;  %v2214_v52 = vmul.f32 %v13843_v1, %v16577_v60 }
 0xe15   :  { %v2201_v4 = vmul.f32 %v13846_v39, %v13080_v31  ;;  %v2207_v32 = vmul.f32 %v13846_v39, %v16569_v30 }
 0xe17   :  { %v11667_v42 = vpack.i.bf16 %v2202_v36, %v2201_v4  ;;  %v11682_v3 = vpack.i.bf16 %v2208_v61, %v2207_v32  ;;  %v16579_v36 = vld [vmem:[#allocation23_spill] sm:$0xff] }
 0xe18   :  { %v2213_v4 = vmul.f32 %v13846_v39, %v16579_v36  ;;  %v16583_v61 = vld [vmem:[#allocation27_spill] sm:$0xff] }
 0xe19   :  { %11668 = vrot.lane.b32.xlu0 %v11667_v42, %s12566_s24  ;;  %v16580_v42 = vld [vmem:[#allocation25_spill] sm:$0xff] }
 0xe1a   :  { %v2074_v0 = vpop.permute.xlu1 %2073  ;;  %v11697_v32 = vpack.i.bf16 %v2214_v52, %v2213_v4 }
 0xe1b   :  { %v13854_v19 = vadd.f32 %v2074_v0, %v13712_v44 }
 0xe1d   :  { %v2203_v6 = vmul.f32 %v13854_v19, %v13101_v35  ;;  %v2209_v55 = vmul.f32 %v13854_v19, %v16576_v45  ;;  %v2215_v0 = vmul.f32 %v13854_v19, %v16580_v42 }
 0xe1e   :  { %v2076_v29 = vpop.permute.xlu1 %2075 }
 0xe1f   :  { %v13857_v10 = vadd.f32 %v2076_v29, %v13719_v15  ;;  %v16581_v29 = vld [vmem:[#allocation30_spill] sm:$0xff] }
 0xe21   :  { %v2204_v12 = vmul.f32 %v13857_v10, %v16568_v59  ;;  %v2216_v50 = vmul.f32 %v13857_v10, %v16578_v38 }
 0xe22   :  { %v2078_v27 = vpop.permute.xlu0 %2077  ;;  %v2080_v37 = vpop.permute.xlu1 %2079 }
 0xe23   :  { %v13868_v44 = vadd.f32 %v2078_v27, %v13734_v41  ;;  %v13871_v15 = vadd.f32 %v2080_v37, %v13729_v43  ;;  %v11672_v62 = vpack.i.bf16 %v2204_v12, %v2203_v6  ;;  %v2210_v43 = vmul.f32 %v13857_v10, %v16575_v21  ;;  %v16582_v12 = vld [vmem:[#allocation31_spill] sm:$0xff] }
 0xe24   :  { %v2219_v6 = vmul.f32 %v13846_v39, %v16581_v29  ;;  %v2220_v27 = vmul.f32 %v13843_v1, %v16582_v12  ;;  %v11702_v37 = vpack.i.bf16 %v2216_v50, %v2215_v0 }
 0xe25   :  { %11673 = vrot.lane.b32.xlu1 %v11672_v62, %s12566_s24  ;;  %v2205_v13 = vmul.f32 %v13868_v44, %v16571_v51  ;;  %v2206_v56 = vmul.f32 %v13871_v15, %v16572_v63  ;;  %v2211_v34 = vmul.f32 %v13868_v44, %v16573_v25  ;;  %v2212_v41 = vmul.f32 %v13871_v15, %v16574_v26 }
 0xe26   :  { %v11687_v22 = vpack.i.bf16 %v2210_v43, %v2209_v55  ;;  %v2217_v62 = vmul.f32 %v13868_v44, %v16583_v61  ;;  %v16586_v43 = vld [vmem:[#allocation35_spill] sm:$0xff] }
 0xe27   :  { %v11677_v24 = vpack.i.bf16 %v2206_v56, %v2205_v13  ;;  %v11692_v28 = vpack.i.bf16 %v2212_v41, %v2211_v34  ;;  %v16584_v13 = vld [vmem:[#allocation29_spill] sm:$0xff]  ;;  %v16585_v34 = vld [vmem:[#allocation34_spill] sm:$0xff]  ;;  %v2224_v55 = vmul.f32 %v13871_v15, %v16586_v43 }
 0xe28   :  { %v2218_v56 = vmul.f32 %v13871_v15, %v16584_v13  ;;  %v2223_v41 = vmul.f32 %v13868_v44, %v16585_v34 }
 0xe29   :  { %11683 = vrot.lane.b32.xlu1 %v11682_v3, %s12566_s24  ;;  %11678 = vrot.lane.b32.xlu0 %v11677_v24, %s12566_s24  ;;  %v11712_v3 = vpack.i.bf16 %v2220_v27, %v2219_v6 }
 0xe2a   :  { %v11707_v24 = vpack.i.bf16 %v2218_v56, %v2217_v62  ;;  %v11722_v4 = vpack.i.bf16 %v2224_v55, %v2223_v41 }
 0xe2d   :  { %11693 = vrot.lane.b32.xlu1 %v11692_v28, %s12566_s24  ;;  %11688 = vrot.lane.b32.xlu0 %v11687_v22, %s12566_s24  ;;  %v16587_v28 = vld [vmem:[#allocation33_spill] sm:$0xff]  ;;  %v16588_v22 = vld [vmem:[#allocation32_spill] sm:$0xff] }
 0xe2e   :  { %v2222_v52 = vmul.f32 %v13857_v10, %v16587_v28  ;;  %v2221_v50 = vmul.f32 %v13854_v19, %v16588_v22 }
 0xe30   :  { %v11717_v0 = vpack.i.bf16 %v2222_v52, %v2221_v50 }
 0xe31   :  { %11703 = vrot.lane.b32.xlu1 %v11702_v37, %s12566_s24  ;;  %11698 = vrot.lane.b32.xlu0 %v11697_v32, %s12566_s24 }
 0xe35   :  { %11713 = vrot.lane.b32.xlu1 %v11712_v3, %s12566_s24  ;;  %11708 = vrot.lane.b32.xlu0 %v11707_v24, %s12566_s24 }
 0xe39   :  { %11723 = vrot.lane.b32.xlu1 %v11722_v4, %s12566_s24  ;;  %11718 = vrot.lane.b32.xlu0 %v11717_v0, %s12566_s24 }
 0xe8b   :  { %v11669_v6 = vpop.permute.xlu0 %11668 }
 0xe8c   :  { %v11671_v27 = vunpack.i.h.bf16 %v11669_v6  ;;  %v11670_v37 = vunpack.i.l.bf16 %v11669_v6 }
 0xe8e   :  { %v10824_v32 = vpack.c.bf16 %v11671_v27, %v11670_v37 }
 0xe90   :  { %10826 = vmatpush1.bf16.xpose.msk.msra.mxu1 %vm13186_vm7, %v10824_v32 }
 0xe91   :  { %10827 = vmatprep.subr.bf16.mxu1 %v16532_v14 }
 0xe97   :  { %v11674_v56 = vpop.permute.xlu1 %11673 }
 0xe98   :  { %v11676_v3 = vunpack.i.h.bf16 %v11674_v56  ;;  %v11675_v24 = vunpack.i.l.bf16 %v11674_v56 }
 0xe9a   :  { %v10828_v28 = vpack.c.bf16 %v11676_v3, %v11675_v24 }
 0xe9b   :  { %v11679_v22 = vpop.permute.xlu0 %11678  ;;  %v11684_v50 = vpop.permute.xlu1 %11683 }
 0xe9c   :  { %10830 = vmatpush1.bf16.xpose.msk.msra.mxu1 %vm13186_vm7, %v10828_v28  ;;  %v11681_v41 = vunpack.i.h.bf16 %v11679_v22  ;;  %v11680_v55 = vunpack.i.l.bf16 %v11679_v22  ;;  %v11686_v4 = vunpack.i.h.bf16 %v11684_v50  ;;  %v11685_v0 = vunpack.i.l.bf16 %v11684_v50 }
 0xe9d   :  { %10831 = vmatprep.subr.bf16.mxu1 %v16532_v14 }
 0xe9e   :  { %v10832_v52 = vpack.c.bf16 %v11681_v41, %v11680_v55  ;;  %v10836_v6 = vpack.c.bf16 %v11686_v4, %v11685_v0 }
 0xe9f   :  { %v11689_v27 = vpop.permute.xlu0 %11688  ;;  %v11694_v22 = vpop.permute.xlu1 %11693 }
 0xea0   :  { %v11691_v28 = vunpack.i.h.bf16 %v11689_v27  ;;  %v11690_v37 = vunpack.i.l.bf16 %v11689_v27  ;;  %v11696_v56 = vunpack.i.h.bf16 %v11694_v22  ;;  %v11695_v3 = vunpack.i.l.bf16 %v11694_v22 }
 0xea2   :  { %v10840_v32 = vpack.c.bf16 %v11691_v28, %v11690_v37  ;;  %v10844_v24 = vpack.c.bf16 %v11696_v56, %v11695_v3 }
 0xea3   :  { %v11699_v41 = vpop.permute.xlu0 %11698  ;;  %v11704_v4 = vpop.permute.xlu1 %11703 }
 0xea4   :  { %10834 = vmatpush1.bf16.xpose.msk.msra.mxu1 %vm13186_vm7, %v10832_v52  ;;  %v11701_v55 = vunpack.i.h.bf16 %v11699_v41  ;;  %v11700_v52 = vunpack.i.l.bf16 %v11699_v41  ;;  %v11706_v0 = vunpack.i.h.bf16 %v11704_v4 }
 0xea5   :  { %10835 = vmatprep.subr.bf16.mxu1 %v16532_v14 }
 0xea6   :  { %v10848_v50 = vpack.c.bf16 %v11701_v55, %v11700_v52 }
 0xea7   :  { %v11709_v28 = vpop.permute.xlu0 %11708  ;;  %v11714_v56 = vpop.permute.xlu1 %11713 }
 0xea8   :  { %v11711_v37 = vunpack.i.h.bf16 %v11709_v28  ;;  %v11716_v3 = vunpack.i.h.bf16 %v11714_v56 }
 0xeab   :  { %v11719_v55 = vpop.permute.xlu0 %11718 }
 0xeac   :  { %10838 = vmatpush1.bf16.xpose.msk.msra.mxu1 %vm13186_vm7, %v10836_v6  ;;  %v11705_v6 = vunpack.i.l.bf16 %v11704_v4  ;;  %v11721_v52 = vunpack.i.h.bf16 %v11719_v55 }
 0xead   :  { %10839 = vmatprep.subr.bf16.mxu1 %v16532_v14 }
 0xeae   :  { %v10852_v27 = vpack.c.bf16 %v11706_v0, %v11705_v6  ;;  %v11724_v0 = vpop.permute.xlu1 %11723 }
 0xeaf   :  { %v11726_v6 = vunpack.i.h.bf16 %v11724_v0 }
 0xeb4   :  { %10842 = vmatpush1.bf16.xpose.msk.msra.mxu1 %vm13186_vm7, %v10840_v32  ;;  %v11710_v32 = vunpack.i.l.bf16 %v11709_v28 }
 0xeb5   :  { %10843 = vmatprep.subr.bf16.mxu1 %v16532_v14 }
 0xeb6   :  { %v10856_v22 = vpack.c.bf16 %v11711_v37, %v11710_v32 }
 0xebc   :  { %10846 = vmatpush1.bf16.xpose.msk.msra.mxu1 %vm13186_vm7, %v10844_v24  ;;  %v11715_v24 = vunpack.i.l.bf16 %v11714_v56 }
 0xebd   :  { %10847 = vmatprep.subr.bf16.mxu1 %v16532_v14 }
 0xebe   :  { %v10860_v41 = vpack.c.bf16 %v11716_v3, %v11715_v24 }
 0xec4   :  { %10850 = vmatpush1.bf16.xpose.msk.msra.mxu1 %vm13186_vm7, %v10848_v50  ;;  %v11720_v50 = vunpack.i.l.bf16 %v11719_v55 }
 0xec5   :  { %10851 = vmatprep.subr.bf16.mxu1 %v16532_v14 }
 0xec6   :  { %v10864_v4 = vpack.c.bf16 %v11721_v52, %v11720_v50 }
 0xecc   :  { %10854 = vmatpush1.bf16.xpose.msk.msra.mxu1 %vm13186_vm7, %v10852_v27  ;;  %v11725_v27 = vunpack.i.l.bf16 %v11724_v0 }
 0xecd   :  { %10855 = vmatprep.subr.bf16.mxu1 %v16532_v14 }
 0xece   :  { %v10868_v28 = vpack.c.bf16 %v11726_v6, %v11725_v27  ;;  %v12361_v6 = vld [vmem:[%s16447_s7 + $0x28] sm:$0xff] }
 0xed4   :  { %10858 = vmatpush1.bf16.xpose.msk.msra.mxu1 %vm13186_vm7, %v10856_v22 }
 0xed5   :  { %10859 = vmatprep.subr.bf16.mxu1 %v16532_v14 }
 0xedc   :  { %10862 = vmatpush1.bf16.xpose.msk.msra.mxu1 %vm13186_vm7, %v10860_v41  ;;  %v12360_v41 = vld [vmem:[%s16447_s7 + $0x10] sm:$0xff] }
 0xedd   :  { %10863 = vmatprep.subr.bf16.mxu1 %v16532_v14 }
 0xee4   :  { %10866 = vmatpush1.bf16.xpose.msk.msra.mxu1 %vm13186_vm7, %v10864_v4 }
 0xee5   :  { %10867 = vmatprep.subr.bf16.mxu1 %v16532_v14 }
 0xeec   :  { %10870 = vmatpush1.bf16.xpose.msk.msra.mxu1 %vm13186_vm7, %v10868_v28  ;;  %v12362_v28 = vld [vmem:[%s16447_s7 + $0x20] sm:$0xff] }
 0xef3   :  { %9101 = vmatmul.mubr.msk.f32.vlgmr.msra.gmra.mrb[54].mxu1 %vm226_vm6, %v13846_v39 }
 0xef4   :  { %2457 = vmatprep.mubr.f32.mxu1 %v16560_v5 }
 0xef7   :  { %9102 = vmatmul.mubr.msk.f32.gmra.mrb[56].mxu1 %vm226_vm6, %v13843_v1 }
 0xef8   :  { %2463 = vmatprep.mubr.f32.mxu1 %v16560_v5 }
 0xefb   :  { %9103 = vmatmul.mubr.msk.f32.gmra.mrb[58].mxu1 %vm226_vm6, %v13854_v19  ;;  %v12357_v19 = vld [vmem:[%s16447_s7 + $0x8] sm:$0xff] }
 0xefc   :  { %2469 = vmatprep.mubr.f32.mxu1 %v16560_v5 }
 0xeff   :  { %9104 = vmatmul.mubr.msk.f32.gmra.mrb[60].mxu1 %vm226_vm6, %v13857_v10  ;;  %v12358_v10 = vld [vmem:[%s16447_s7] sm:$0xff] }
 0xf00   :  { %2475 = vmatprep.mubr.f32.mxu1 %v16560_v5 }
 0xf03   :  { %9105 = vmatmul.mubr.msk.f32.gmra.mrb[62].mxu1 %vm226_vm6, %v13868_v44 }
 0xf04   :  { %2481 = vmatprep.mubr.f32.mxu1 %v16560_v5 }
 0xf07   :  { %9106 = vmatmul.mubr.msk.f32.gmra.mrb[64].mxu1 %vm226_vm6, %v13871_v15  ;;  %v12359_v15 = vld [vmem:[%s16447_s7 + $0x18] sm:$0xff] }
 0xfc6   :  { %v2453_v1 = vpop.f32.mrb[54].mxu1 }
 0xfc7   :  { %v2455_v39 = vpop.f32.mrb[55].mxu1  ;;  %v2454_v32 = vadd.f32 %v12358_v10, %v2453_v1 }
 0xfc8   :  { %v2456_v37 = vadd.f32 %v12357_v19, %v2455_v39 }
 0xfca   :  { %v2488_v22 = vsel %vm1001_vm8, %v2456_v37, -inf  ;;  %v2459_v44 = vpop.f32.mrb[56].mxu1 }
 0xfcb   :  { %v2489_v56 = vmax.f32 %v2454_v32, %v2488_v22  ;;  %v2461_v3 = vpop.f32.mrb[57].mxu1  ;;  %v2460_v55 = vadd.f32 %v12360_v41, %v2459_v44  ;;  %v12363_v44 = vld [vmem:[%s16447_s7 + $0x38] sm:$0xff] }
 0xfcc   :  { %v2462_v24 = vadd.f32 %v12359_v15, %v2461_v3  ;;  %v12364_v3 = vld [vmem:[%s16447_s7 + $0x30] sm:$0xff] }
 0xfcd   :  { %2490 = vmax.xlane.f32.xlu0 %v2489_v56 }
 0xfce   :  { %v2492_v52 = vsel %vm1001_vm8, %v2462_v24, -inf  ;;  %v2465_v50 = vpop.f32.mrb[58].mxu1 }
 0xfcf   :  { %v2493_v4 = vmax.f32 %v2460_v55, %v2492_v52  ;;  %v2467_v0 = vpop.f32.mrb[59].mxu1  ;;  %v2466_v1 = vadd.f32 %v12362_v28, %v2465_v50  ;;  %v12366_v28 = vld [vmem:[%s16447_s7 + $0x40] sm:$0xff] }
 0xfd0   :  { %v2468_v27 = vadd.f32 %v12361_v6, %v2467_v0  ;;  %v12365_v0 = vld [vmem:[%s16447_s7 + $0x48] sm:$0xff] }
 0xfd1   :  { %2494 = vmax.xlane.f32.xlu1 %v2493_v4 }
 0xfd2   :  { %v2496_v39 = vsel %vm1001_vm8, %v2468_v27, -inf  ;;  %v2471_v19 = vpop.f32.mrb[60].mxu1 }
 0xfd3   :  { %v2497_v10 = vmax.f32 %v2466_v1, %v2496_v39  ;;  %v2473_v22 = vpop.f32.mrb[61].mxu1  ;;  %v2472_v15 = vadd.f32 %v12364_v3, %v2471_v19  ;;  %v12367_v3 = vld [vmem:[%s16447_s7 + $0x58] sm:$0xff] }
 0xfd4   :  { %v2474_v56 = vadd.f32 %v12363_v44, %v2473_v22 }
 0xfd5   :  { %2498 = vmax.xlane.f32.xlu0 %v2497_v10 }
 0xfd6   :  { %v2500_v41 = vsel %vm1001_vm8, %v2474_v56, -inf  ;;  %v2477_v52 = vpop.f32.mrb[62].mxu1 }
 0xfd7   :  { %v2501_v50 = vmax.f32 %v2472_v15, %v2500_v41  ;;  %v2479_v4 = vpop.f32.mrb[63].mxu1  ;;  %v2478_v39 = vadd.f32 %v12366_v28, %v2477_v52 }
 0xfd8   :  { %v2480_v6 = vadd.f32 %v12365_v0, %v2479_v4  ;;  %v12368_v4 = vld [vmem:[%s16447_s7 + $0x50] sm:$0xff] }
 0xfd9   :  { %2502 = vmax.xlane.f32.xlu0 %v2501_v50 }
 0xfda   :  { %v2504_v22 = vsel %vm1001_vm8, %v2480_v6, -inf  ;;  %v2483_v19 = vpop.f32.mrb[64].mxu1 }
 0xfdb   :  { %v2505_v10 = vmax.f32 %v2478_v39, %v2504_v22  ;;  %v2485_v44 = vpop.f32.mrb[65].mxu1  ;;  %v2484_v0 = vadd.f32 %v12368_v4, %v2483_v19 }
 0xfdc   :  { %v2486_v41 = vadd.f32 %v12367_v3, %v2485_v44 }
 0xfdd   :  { %2506 = vmax.xlane.f32.xlu1 %v2505_v10 }
 0xfde   :  { %v2508_v62 = vsel %vm1001_vm8, %v2486_v41, -inf }
 0xfdf   :  { %v2509_v52 = vmax.f32 %v2484_v0, %v2508_v62 }
 0xfe1   :  { %2510 = vmax.xlane.f32.xlu0 %v2509_v52 }
0x105a   :  { %v2491_v50 = vpop.xlane.xlu0 %2490 }
0x105b   :  { %v2512_v28 = vsub.f32 %v2454_v32, %v2491_v50  ;;  %v2513_v43 = vsub.f32 %v2456_v37, %v2491_v50 }
0x105d   :  { %v2524_v22 = vmul.f32 1.442695, %v2512_v28  ;;  %v2526_v34 = vmul.f32 1.442695, %v2513_v43 }
0x105e   :  { %v2495_v13 = vpop.xlane.xlu1 %2494 }
0x105f   :  { %11991 = vpow2.f32 %v2524_v22  ;;  %v2514_v61 = vsub.f32 %v2460_v55, %v2495_v13  ;;  %v2515_v12 = vsub.f32 %v2462_v24, %v2495_v13 }
0x1060   :  { %11993 = vpow2.f32 %v2526_v34 }
0x1061   :  { %v2528_v44 = vmul.f32 1.442695, %v2514_v61  ;;  %v2530_v3 = vmul.f32 1.442695, %v2515_v12 }
0x1062   :  { %v2499_v29 = vpop.xlane.xlu0 %2498 }
0x1063   :  { %11995 = vpow2.f32 %v2528_v44  ;;  %v2516_v19 = vsub.f32 %v2466_v1, %v2499_v29  ;;  %v2517_v10 = vsub.f32 %v2468_v27, %v2499_v29 }
0x1064   :  { %11997 = vpow2.f32 %v2530_v3 }
0x1065   :  { %v2532_v4 = vmul.f32 1.442695, %v2516_v19  ;;  %v2534_v62 = vmul.f32 1.442695, %v2517_v10 }
0x1066   :  { %v2503_v52 = vpop.xlane.xlu0 %2502 }
0x1067   :  { %11999 = vpow2.f32 %v2532_v4  ;;  %v2518_v32 = vsub.f32 %v2472_v15, %v2503_v52  ;;  %v2519_v37 = vsub.f32 %v2474_v56, %v2503_v52  ;;  %v9120_v52 = vld [vmem:[%s16441_s1 + $0xc8] sm:$0xff] }
0x1068   :  { %12001 = vpow2.f32 %v2534_v62  ;;  %v9119_v62 = vld [vmem:[%s16441_s1 + $0xc0] sm:$0xff] }
0x1069   :  { %v14014_v43 = vpop.eup %11991  ;;  %v2536_v50 = vmul.f32 1.442695, %v2518_v32  ;;  %v2538_v55 = vmul.f32 1.442695, %v2519_v37  ;;  %v10943_v32 = vpack.c.bf16 %v9120_v52, %v9119_v62  ;;  %v9121_v37 = vld [vmem:[%s16441_s1 + $0xd0] sm:$0xff] }
0x106a   :  { %v11994_v13 = vpop.eup %11993  ;;  %v2507_v34 = vpop.xlane.xlu1 %2506 }
0x106b   :  { %12003 = vpow2.f32 %v2536_v50  ;;  %v2520_v12 = vsub.f32 %v2478_v39, %v2507_v34  ;;  %v2521_v61 = vsub.f32 %v2480_v6, %v2507_v34  ;;  %9107 = vmatprep.mubr.msk.f32.mxu0 %vm1001_vm8, %v11994_v13  ;;  %10944 = vmatprep.subr.bf16.mxu1 %v10943_v32 }
0x106c   :  { %12005 = vpow2.f32 %v2538_v55  ;;  %2631 = vmatmul.mubr.f32.vlgmr.msra.gmra.mrb[30].mxu0 %v14014_v43  ;;  %10946 = vmatpush3.bf16.msra.mxu1 %v10943_v32 }
0x106d   :  { %v11996_v29 = vpop.eup %11995  ;;  %v2540_v24 = vmul.f32 1.442695, %v2520_v12  ;;  %v2542_v27 = vmul.f32 1.442695, %v2521_v61  ;;  %10909 = vmatpush1.bf16.msra.mxu0 %v13323_v11 }
0x106e   :  { %v11998_v1 = vpop.eup %11997  ;;  %10910 = vmatprep.subr.bf16.mxu0 %v16532_v14  ;;  %v2511_v56 = vpop.xlane.xlu0 %2510 }
0x106f   :  { %12007 = vpow2.f32 %v2540_v24  ;;  %9108 = vmatprep.mubr.msk.f32.mxu0 %vm1001_vm8, %v11998_v1  ;;  %v2522_v15 = vsub.f32 %v2484_v0, %v2511_v56  ;;  %v2523_v39 = vsub.f32 %v2486_v41, %v2511_v56 }
0x1070   :  { %12009 = vpow2.f32 %v2542_v27  ;;  %2636 = vmatmul.mubr.f32.gmra.mrb[32].mxu0 %v11996_v29 }
0x1071   :  { %v12000_v6 = vpop.eup %11999  ;;  %v2544_v28 = vmul.f32 1.442695, %v2522_v15  ;;  %v2546_v22 = vmul.f32 1.442695, %v2523_v39  ;;  %10912 = vmatpush1.bf16.msra.mxu0 %v13332_v53 }
0x1072   :  { %v12002_v44 = vpop.eup %12001  ;;  %10913 = vmatprep.subr.bf16.mxu0 %v16532_v14 }
0x1073   :  { %12011 = vpow2.f32 %v2544_v28  ;;  %9109 = vmatprep.mubr.msk.f32.mxu0 %vm1001_vm8, %v12002_v44 }
0x1074   :  { %12013 = vpow2.f32 %v2546_v22  ;;  %2641 = vmatmul.mubr.f32.gmra.mrb[34].mxu0 %v12000_v6 }
0x1075   :  { %v12004_v3 = vpop.eup %12003  ;;  %10915 = vmatpush1.bf16.msra.mxu0 %v13340_v46 }
0x1076   :  { %v12006_v0 = vpop.eup %12005  ;;  %10916 = vmatprep.subr.bf16.mxu0 %v16532_v14 }
0x1077   :  { %9110 = vmatprep.mubr.msk.f32.mxu0 %vm1001_vm8, %v12006_v0 }
0x1078   :  { %2646 = vmatmul.mubr.f32.gmra.mrb[36].mxu0 %v12004_v3 }
0x1079   :  { %v12008_v41 = vpop.eup %12007  ;;  %10918 = vmatpush1.bf16.msra.mxu0 %v13347_v8 }
0x107a   :  { %v12010_v19 = vpop.eup %12009  ;;  %10919 = vmatprep.subr.bf16.mxu0 %v16532_v14 }
0x107b   :  { %9111 = vmatprep.mubr.msk.f32.mxu0 %vm1001_vm8, %v12010_v19 }
0x107c   :  { %2651 = vmatmul.mubr.f32.gmra.mrb[38].mxu0 %v12008_v41 }
0x107d   :  { %v12012_v10 = vpop.eup %12011  ;;  %10921 = vmatpush1.bf16.msra.mxu0 %v13354_v49 }
0x107e   :  { %v12014_v4 = vpop.eup %12013  ;;  %10922 = vmatprep.subr.bf16.mxu0 %v16532_v14 }
0x107f   :  { %9112 = vmatprep.mubr.msk.f32.mxu0 %vm1001_vm8, %v12014_v4 }
0x1080   :  { %2656 = vmatmul.mubr.f32.gmra.mrb[40].mxu0 %v12012_v10 }
0x1081   :  { %10924 = vmatpush1.bf16.msra.mxu0 %v13361_v17  ;;  %9113 = vmatprep.mubr.msk.f32.mxu0 %vm1001_vm8, %v11994_v13 }
0x1082   :  { %10925 = vmatprep.subr.bf16.mxu0 %v16532_v14 }
0x1085   :  { %10927 = vmatpush1.bf16.msra.mxu0 %v13369_v47 }
0x1086   :  { %10928 = vmatprep.subr.bf16.mxu0 %v16532_v14 }
0x1089   :  { %10930 = vmatpush1.bf16.msra.mxu0 %v13375_v57 }
0x108a   :  { %10931 = vmatprep.subr.bf16.mxu0 %v16532_v14 }
0x108d   :  { %10933 = vmatpush1.bf16.msra.mxu0 %v13381_v16 }
0x108e   :  { %10934 = vmatprep.subr.bf16.mxu0 %v16532_v14 }
0x1091   :  { %10936 = vmatpush1.bf16.msra.mxu0 %v13387_v9 }
0x1092   :  { %10937 = vmatprep.subr.bf16.mxu0 %v16532_v14 }
0x1095   :  { %10939 = vmatpush1.bf16.msra.mxu0 %v13393_v20 }
0x1096   :  { %10940 = vmatprep.subr.bf16.mxu0 %v16532_v14 }
0x1099   :  { %10942 = vmatpush1.bf16.msra.mxu0 %v13399_v48 }
0x109c   :  { %2726 = vmatmul.mubr.f32.vlgmr.msra.gmra.mrb[42].mxu0 %v14014_v43  ;;  %v9122_v43 = vld [vmem:[%s16441_s1 + $0xd8] sm:$0xff] }
0x109d   :  { %9114 = vmatprep.mubr.msk.f32.mxu0 %vm1001_vm8, %v11998_v1  ;;  %v10947_v50 = vpack.c.bf16 %v9122_v43, %v9121_v37 }
0x109f   :  { %10948 = vmatprep.subr.bf16.mxu1 %v10947_v50 }
0x10a0   :  { %2731 = vmatmul.mubr.f32.gmra.mrb[44].mxu0 %v11996_v29  ;;  %10950 = vmatpush3.bf16.msra.mxu1 %v10947_v50 }
0x10a1   :  { %9115 = vmatprep.mubr.msk.f32.mxu0 %vm1001_vm8, %v12002_v44 }
0x10a4   :  { %2736 = vmatmul.mubr.f32.gmra.mrb[46].mxu0 %v12000_v6 }
0x10a5   :  { %9116 = vmatprep.mubr.msk.f32.mxu0 %vm1001_vm8, %v12006_v0 }
0x10a8   :  { %2741 = vmatmul.mubr.f32.gmra.mrb[48].mxu0 %v12004_v3 }
0x10a9   :  { %9117 = vmatprep.mubr.msk.f32.mxu0 %vm1001_vm8, %v12010_v19 }
0x10ac   :  { %2746 = vmatmul.mubr.f32.gmra.mrb[50].mxu0 %v12008_v41 }
0x10ad   :  { %9118 = vmatprep.mubr.msk.f32.mxu0 %vm1001_vm8, %v12014_v4 }
0x10b0   :  { %2751 = vmatmul.mubr.f32.gmra.mrb[52].mxu0 %v12012_v10 }
0x113f   :  { %v2632_v55 = vpop.f32.mrb[30].mxu0 }
0x1140   :  { %v2634_v13 = vpop.f32.mrb[31].mxu0 }
0x1143   :  { %v2637_v34 = vpop.f32.mrb[32].mxu0 }
0x1144   :  { %v2639_v12 = vpop.f32.mrb[33].mxu0 }
0x1147   :  { %v2642_v61 = vpop.f32.mrb[34].mxu0 }
0x1148   :  { %v2644_v29 = vpop.f32.mrb[35].mxu0 }
0x114b   :  { %v2647_v24 = vpop.f32.mrb[36].mxu0 }
0x114c   :  { %v2649_v27 = vpop.f32.mrb[37].mxu0 }
0x114f   :  { %v2652_v1 = vpop.f32.mrb[38].mxu0 }
0x1150   :  { %v2654_v56 = vpop.f32.mrb[39].mxu0 }
0x1153   :  { %v2657_v15 = vpop.f32.mrb[40].mxu0 }
0x1154   :  { %v2659_v39 = vpop.f32.mrb[41].mxu0 }
0x116f   :  { %v2727_v6 = vpop.f32.mrb[42].mxu0 }
0x1170   :  { %12015 = vrcp.f32 %v2727_v6  ;;  %v2729_v28 = vpop.f32.mrb[43].mxu0 }
0x1173   :  { %v2732_v22 = vpop.f32.mrb[44].mxu0 }
0x1174   :  { %12017 = vrcp.f32 %v2732_v22  ;;  %v2734_v44 = vpop.f32.mrb[45].mxu0 }
0x1177   :  { %v2737_v3 = vpop.f32.mrb[46].mxu0 }
0x1178   :  { %12019 = vrcp.f32 %v2737_v3  ;;  %v2739_v0 = vpop.f32.mrb[47].mxu0 }
0x117a   :  { %v12016_v41 = vpop.eup %12015 }
0x117b   :  { %v2742_v19 = vpop.f32.mrb[48].mxu0  ;;  %v2762_v10 = vmul.f32 %v12016_v41, %v2632_v55 }
0x117c   :  { %12021 = vrcp.f32 %v2742_v19  ;;  %v2744_v4 = vpop.f32.mrb[49].mxu0 }
0x117d   :  { %10128 = vmatprep.mubr.msk.f32.mxu1 %vm226_vm6, %v2762_v10 }
0x117e   :  { %v12018_v62 = vpop.eup %12017 }
0x117f   :  { %v2763_v52 = vmul.f32 %v12018_v62, %v2637_v34  ;;  %v2747_v32 = vpop.f32.mrb[50].mxu0 }
0x1180   :  { %12023 = vrcp.f32 %v2747_v32  ;;  %v2749_v37 = vpop.f32.mrb[51].mxu0 }
0x1181   :  { %10129 = vmatmul.mubr.msk.f32.vlgmr.msra.gmra.mrb[66].mxu1 %vm226_vm6, %v2763_v52 }
0x1182   :  { %v12020_v43 = vpop.eup %12019 }
0x1183   :  { %v2752_v50 = vpop.f32.mrb[52].mxu0  ;;  %v2764_v13 = vmul.f32 %v12020_v43, %v2642_v61  ;;  %v9124_v61 = vld [vmem:[%s16445_s5 + $0x6] ss:$0 sm:$0xff] }
0x1184   :  { %12025 = vrcp.f32 %v2752_v50  ;;  %v2754_v12 = vpop.f32.mrb[53].mxu0 }
0x1185   :  { %10131 = vmatprep.mubr.msk.f32.mxu1 %vm226_vm6, %v2764_v13 }
0x1186   :  { %v12022_v29 = vpop.eup %12021 }
0x1187   :  { %v2765_v55 = vmul.f32 %v12022_v29, %v2647_v24 }
0x1189   :  { %10132 = vmatmul.mubr.msk.f32.gmra.mrb[68].mxu1 %vm226_vm6, %v2765_v55 }
0x118a   :  { %v12024_v27 = vpop.eup %12023 }
0x118b   :  { %v2766_v56 = vmul.f32 %v12024_v27, %v2652_v1 }
0x118d   :  { %10134 = vmatprep.mubr.msk.f32.mxu1 %vm226_vm6, %v2766_v56 }
0x118e   :  { %v12026_v34 = vpop.eup %12025 }
0x118f   :  { %v2767_v39 = vmul.f32 %v12026_v34, %v2657_v15 }
0x1191   :  { %10135 = vmatmul.mubr.msk.f32.gmra.mrb[70].mxu1 %vm226_vm6, %v2767_v39 }
0x1254   :  { %v10130_v6 = vpop.f32.mrb[66].mxu1 }
0x1255   :  { %v2871_v28 = vadd.f32 %v10130_v6, %v9124_v61  ;;  %v2865_v22 = vpop.f32.mrb[67].mxu1 }
0x1256   :  { %v2866_v44 = vadd.f32 %v9124_v61, %v2865_v22 }
0x1257   :  { %v14075_v24 = vadd.f32 %v2871_v28, %v13580_v33 }
0x1258   :  { %v14078_v3 = vadd.f32 %v2866_v44, %v13583_v7 }
0x1259   :  { %v2903_v1 = vsel %vm226_vm6, %v14075_v24, 0.0 }
0x125a   :  { %2904 = vadd.xlane.f32.xlu0 %v2903_v1  ;;  %v2900_v15 = vsel %vm226_vm6, %v14078_v3, 0.0 }
0x125b   :  { %2901 = vadd.xlane.f32.xlu1 %v2900_v15 }
0x125c   :  { %v10133_v0 = vpop.f32.mrb[68].mxu1 }
0x125d   :  { %v2881_v41 = vadd.f32 %v10133_v0, %v9124_v61  ;;  %v2875_v19 = vpop.f32.mrb[69].mxu1 }
0x125e   :  { %v2876_v10 = vadd.f32 %v9124_v61, %v2875_v19 }
0x125f   :  { %v14085_v4 = vadd.f32 %v2881_v41, %v13590_v54 }
0x1260   :  { %v14088_v33 = vadd.f32 %v2876_v10, %v13593_v18 }
0x1261   :  { %v2909_v7 = vsel %vm226_vm6, %v14085_v4, 0.0 }
0x1262   :  { %2910 = vadd.xlane.f32.xlu0 %v2909_v7  ;;  %v2906_v62 = vsel %vm226_vm6, %v14088_v33, 0.0 }
0x1263   :  { %2907 = vadd.xlane.f32.xlu1 %v2906_v62 }
0x1264   :  { %v10136_v52 = vpop.f32.mrb[70].mxu1 }
0x1265   :  { %v2891_v32 = vadd.f32 %v10136_v52, %v9124_v61  ;;  %v2885_v37 = vpop.f32.mrb[71].mxu1 }
0x1266   :  { %v2886_v43 = vadd.f32 %v9124_v61, %v2885_v37 }
0x1267   :  { %v14095_v50 = vadd.f32 %v2891_v32, %v13600_v2 }
0x1268   :  { %v14098_v54 = vadd.f32 %v2886_v43, %v13603_v58 }
0x1269   :  { %v2915_v18 = vsel %vm226_vm6, %v14095_v50, 0.0 }
0x126a   :  { %2916 = vadd.xlane.f32.xlu0 %v2915_v18  ;;  %v2912_v13 = vsel %vm226_vm6, %v14098_v54, 0.0 }
0x126b   :  { %2913 = vadd.xlane.f32.xlu1 %v2912_v13 }
0x12e7   :  { %v2905_v12 = vpop.xlane.xlu0 %2904 }
0x12e8   :  { %v2919_v29 = vmul.f32 0.03125, %v2905_v12  ;;  %v2902_v55 = vpop.xlane.xlu1 %2901 }
0x12e9   :  { %v2918_v27 = vmul.f32 0.03125, %v2902_v55  ;;  %v9135_v55 = vld [vmem:[%s16442_s2 + $0xc0] sm:$0xff] }
0x12ea   :  { %v14105_v56 = vsub.f32 %v14075_v24, %v2919_v29 }
0x12eb   :  { %v14108_v2 = vsub.f32 %v14078_v3, %v2918_v27  ;;  %v9136_v27 = vld [vmem:[%s16442_s2 + $0xc8] sm:$0xff] }
0x12ec   :  { %v2931_v58 = vmul.f32 %v14105_v56, %v14105_v56 }
0x12ed   :  { %v2930_v34 = vmul.f32 %v14108_v2, %v14108_v2 }
0x12ee   :  { %v2939_v39 = vsel %vm226_vm6, %v2931_v58, 0.0  ;;  %v10951_v58 = vpack.c.bf16 %v9136_v27, %v9135_v55  ;;  %v9132_v55 = vld [vmem:[%s16445_s5 + $0x14] ss:$0 sm:$0xff] }
0x12ef   :  { %v2911_v61 = vpop.xlane.xlu0 %2910  ;;  %2940 = vadd.xlane.f32.xlu0 %v2939_v39  ;;  %v2936_v6 = vsel %vm226_vm6, %v2930_v34, 0.0  ;;  %v9137_v34 = vld [vmem:[%s16442_s2 + $0xd0] sm:$0xff]  ;;  %v9138_v39 = vld [vmem:[%s16442_s2 + $0xd8] sm:$0xff] }
0x12f0   :  { %v2921_v28 = vmul.f32 0.03125, %v2911_v61  ;;  %v2908_v22 = vpop.xlane.xlu1 %2907  ;;  %2937 = vadd.xlane.f32.xlu1 %v2936_v6  ;;  %10952 = vmatprep.subr.bf16.mxu0 %v10951_v58  ;;  %v10955_v61 = vpack.c.bf16 %v9138_v39, %v9137_v34  ;;  %v9146_v6 = vld [vmem:[%s16443_s3 + $0x80] sm:$0xff] }
0x12f1   :  { %v2920_v44 = vmul.f32 0.03125, %v2908_v22  ;;  %10954 = vmatpush3.bf16.msra.mxu0 %v10951_v58 }
0x12f2   :  { %v14117_v1 = vsub.f32 %v14085_v4, %v2921_v28  ;;  %10956 = vmatprep.subr.bf16.mxu0 %v10955_v61  ;;  %v9147_v28 = vld [vmem:[%s16443_s3 + $0x88] sm:$0xff] }
0x12f3   :  { %v14120_v15 = vsub.f32 %v14088_v33, %v2920_v44  ;;  %v10959_v22 = vpack.c.bf16 %v9147_v28, %v9146_v6 }
0x12f4   :  { %v2933_v0 = vmul.f32 %v14117_v1, %v14117_v1 }
0x12f5   :  { %v2932_v41 = vmul.f32 %v14120_v15, %v14120_v15  ;;  %10958 = vmatpush3.bf16.msra.mxu0 %v10955_v61  ;;  %10960 = vmatprep.subr.bf16.mxu1 %v10959_v22 }
0x12f6   :  { %v2945_v19 = vsel %vm226_vm6, %v2933_v0, 0.0  ;;  %10962 = vmatpush3.bf16.msra.mxu1 %v10959_v22 }
0x12f7   :  { %2946 = vadd.xlane.f32.xlu0 %v2945_v19  ;;  %v2917_v10 = vpop.xlane.xlu0 %2916  ;;  %v2942_v7 = vsel %vm226_vm6, %v2932_v41, 0.0 }
0x12f8   :  { %v2923_v62 = vmul.f32 0.03125, %v2917_v10  ;;  %2943 = vadd.xlane.f32.xlu1 %v2942_v7  ;;  %v2914_v52 = vpop.xlane.xlu1 %2913 }
0x12f9   :  { %v2922_v32 = vmul.f32 0.03125, %v2914_v52 }
0x12fa   :  { %v14129_v37 = vsub.f32 %v14095_v50, %v2923_v62 }
0x12fb   :  { %v14132_v43 = vsub.f32 %v14098_v54, %v2922_v32 }
0x12fc   :  { %v2935_v18 = vmul.f32 %v14129_v37, %v14129_v37 }
0x12fd   :  { %v2934_v13 = vmul.f32 %v14132_v43, %v14132_v43 }
0x12fe   :  { %v2951_v12 = vsel %vm226_vm6, %v2935_v18, 0.0 }
0x12ff   :  { %2952 = vadd.xlane.f32.xlu0 %v2951_v12  ;;  %v2948_v29 = vsel %vm226_vm6, %v2934_v13, 0.0 }
0x1300   :  { %2949 = vadd.xlane.f32.xlu1 %v2948_v29 }
0x137c   :  { %v2941_v44 = vpop.xlane.xlu0 %2940 }
0x137d   :  { %v2955_v0 = vmul.f32 0.03125, %v2941_v44  ;;  %v2938_v41 = vpop.xlane.xlu1 %2937  ;;  %v9134_v44 = vld [vmem:[%s16445_s5 + $0x23] ss:$0 sm:$0xff] }
0x137e   :  { %v2954_v19 = vmul.f32 0.03125, %v2938_v41 }
0x137f   :  { %v2961_v10 = vadd.f32 1e-05, %v2955_v0 }
0x1380   :  { %v2960_v7 = vadd.f32 1e-05, %v2954_v19 }
0x1381   :  { %12027 = vrsqrt.f32 %v2961_v10 }
0x1382   :  { %12029 = vrsqrt.f32 %v2960_v7 }
0x1384   :  { %v2947_v62 = vpop.xlane.xlu0 %2946 }
0x1385   :  { %v2957_v52 = vmul.f32 0.03125, %v2947_v62  ;;  %v2944_v32 = vpop.xlane.xlu1 %2943 }
0x1386   :  { %v2956_v18 = vmul.f32 0.03125, %v2944_v32 }
0x1387   :  { %v2963_v13 = vadd.f32 1e-05, %v2957_v52 }
0x1388   :  { %v2962_v12 = vadd.f32 1e-05, %v2956_v18 }
0x1389   :  { %12031 = vrsqrt.f32 %v2963_v13 }
0x138a   :  { %12033 = vrsqrt.f32 %v2962_v12 }
0x138b   :  { %v12028_v29 = vpop.eup %12027 }
0x138c   :  { %v12030_v27 = vpop.eup %12029  ;;  %v2973_v58 = vmul.f32 %v12028_v29, %v14105_v56  ;;  %v2953_v34 = vpop.xlane.xlu0 %2952 }
0x138d   :  { %v2959_v39 = vmul.f32 0.03125, %v2953_v34  ;;  %v2950_v61 = vpop.xlane.xlu1 %2949  ;;  %v2972_v6 = vmul.f32 %v12030_v27, %v14108_v2 }
0x138e   :  { %v2987_v28 = vmul.f32 %v9132_v55, %v2973_v58  ;;  %v2958_v22 = vmul.f32 0.03125, %v2950_v61 }
0x138f   :  { %v2965_v0 = vadd.f32 1e-05, %v2959_v39  ;;  %v2986_v41 = vmul.f32 %v9132_v55, %v2972_v6 }
0x1390   :  { %v2964_v19 = vadd.f32 1e-05, %v2958_v22  ;;  %v3001_v7 = vadd.f32 %v9134_v44, %v2987_v28  ;;  %v9149_v28 = vld [vmem:[%s16443_s3 + $0x98] sm:$0xff] }
0x1391   :  { %12035 = vrsqrt.f32 %v2965_v0  ;;  %v3000_v10 = vadd.f32 %v9134_v44, %v2986_v41  ;;  %v9153_v0 = vld [vmem:[%s16443_s3 + $0xb8] sm:$0xff] }
0x1392   :  { %12037 = vrsqrt.f32 %v2964_v19  ;;  %v9154_v19 = vld [vmem:[%s16443_s3 + $0xc0] sm:$0xff] }
0x1393   :  { %v12032_v62 = vpop.eup %12031  ;;  %10145 = vmatprep.mubr.msk.f32.mxu0 %vm226_vm6, %v3000_v10  ;;  %v9155_v10 = vld [vmem:[%s16443_s3 + $0xc8] sm:$0xff] }
0x1394   :  { %v12034_v56 = vpop.eup %12033  ;;  %10146 = vmatmul.mubr.msk.f32.vlgmr.msra.gmra.mrb[54].mxu0 %vm226_vm6, %v3001_v7  ;;  %v2975_v2 = vmul.f32 %v12032_v62, %v14117_v1  ;;  %v10975_v7 = vpack.c.bf16 %v9155_v10, %v9154_v19  ;;  %v9156_v62 = vld [vmem:[%s16443_s3 + $0xd0] sm:$0xff] }
0x1395   :  { %v2974_v52 = vmul.f32 %v12034_v56, %v14120_v15  ;;  %v9148_v15 = vld [vmem:[%s16443_s3 + $0x90] sm:$0xff]  ;;  %v9157_v56 = vld [vmem:[%s16443_s3 + $0xd8] sm:$0xff] }
0x1396   :  { %v2989_v32 = vmul.f32 %v9132_v55, %v2975_v2  ;;  %v10963_v22 = vpack.c.bf16 %v9149_v28, %v9148_v15  ;;  %v10979_v2 = vpack.c.bf16 %v9157_v56, %v9156_v62 }
0x1397   :  { %v2988_v18 = vmul.f32 %v9132_v55, %v2974_v52  ;;  %v9158_v52 = vld [vmem:[%s16443_s3 + $0xe0] sm:$0xff] }
0x1398   :  { %v3003_v12 = vadd.f32 %v9134_v44, %v2989_v32  ;;  %10964 = vmatprep.subr.bf16.mxu1 %v10963_v22  ;;  %v9159_v32 = vld [vmem:[%s16443_s3 + $0xe8] sm:$0xff] }
0x1399   :  { %v3002_v13 = vadd.f32 %v9134_v44, %v2988_v18  ;;  %10966 = vmatpush3.bf16.msra.mxu1 %v10963_v22  ;;  %v10983_v18 = vpack.c.bf16 %v9159_v32, %v9158_v52 }
0x139b   :  { %v12036_v29 = vpop.eup %12035  ;;  %10148 = vmatprep.mubr.msk.f32.mxu0 %vm226_vm6, %v3002_v13  ;;  %v9160_v13 = vld [vmem:[%s16443_s3 + $0xf0] sm:$0xff] }
0x139c   :  { %v12038_v27 = vpop.eup %12037  ;;  %10149 = vmatmul.mubr.msk.f32.gmra.mrb[56].mxu0 %vm226_vm6, %v3003_v12  ;;  %v2977_v58 = vmul.f32 %v12036_v29, %v14129_v37  ;;  %v9150_v37 = vld [vmem:[%s16443_s3 + $0xa0] sm:$0xff]  ;;  %v9161_v12 = vld [vmem:[%s16443_s3 + $0xf8] sm:$0xff] }
0x139d   :  { %v2976_v34 = vmul.f32 %v12038_v27, %v14132_v43  ;;  %v9151_v43 = vld [vmem:[%s16443_s3 + $0xa8] sm:$0xff]  ;;  %v10987_v29 = vpack.c.bf16 %v9161_v12, %v9160_v13  ;;  %v9139_v27 = vld [vmem:[#allocation2 + $0x6] ss:$0 sm:$0xff] }
0x139e   :  { %v2991_v39 = vmul.f32 %v9132_v55, %v2977_v58 }
0x139f   :  { %v2990_v61 = vmul.f32 %v9132_v55, %v2976_v34  ;;  %v10967_v55 = vpack.c.bf16 %v9151_v43, %v9150_v37 }
0x13a0   :  { %v3005_v1 = vadd.f32 %v9134_v44, %v2991_v39 }
0x13a1   :  { %v3004_v6 = vadd.f32 %v9134_v44, %v2990_v61  ;;  %10968 = vmatprep.subr.bf16.mxu1 %v10967_v55  ;;  %v9152_v44 = vld [vmem:[%s16443_s3 + $0xb0] sm:$0xff] }
0x13a2   :  { %10970 = vmatpush3.bf16.msra.mxu1 %v10967_v55  ;;  %v10971_v41 = vpack.c.bf16 %v9153_v0, %v9152_v44 }
0x13a3   :  { %10151 = vmatprep.mubr.msk.f32.mxu0 %vm226_vm6, %v3004_v6 }
0x13a4   :  { %10152 = vmatmul.mubr.msk.f32.gmra.mrb[58].mxu0 %vm226_vm6, %v3005_v1  ;;  %10972 = vmatprep.subr.bf16.mxu1 %v10971_v41 }
0x13a6   :  { %10974 = vmatpush3.bf16.msra.mxu1 %v10971_v41 }
0x13a7   :  { %10976 = vmatprep.subr.bf16.mxu1 %v10975_v7 }
0x13aa   :  { %10978 = vmatpush3.bf16.msra.mxu1 %v10975_v7 }
0x13ab   :  { %10980 = vmatprep.subr.bf16.mxu1 %v10979_v2 }
0x13ae   :  { %10982 = vmatpush3.bf16.msra.mxu1 %v10979_v2 }
0x13af   :  { %10984 = vmatprep.subr.bf16.mxu1 %v10983_v18 }
0x13b2   :  { %10986 = vmatpush3.bf16.msra.mxu1 %v10983_v18 }
0x13b3   :  { %10988 = vmatprep.subr.bf16.mxu1 %v10987_v29 }
0x13b6   :  { %10990 = vmatpush3.bf16.msra.mxu1 %v10987_v29 }
0x13b7   :  { %11055 = vmatprep.subr.bf16.mxu1 %v16532_v14 }
0x1467   :  { %v10147_v58 = vpop.f32.mrb[54].mxu0 }
0x1468   :  { %v3109_v34 = vadd.f32 %v10147_v58, %v9139_v27  ;;  %v3103_v39 = vpop.f32.mrb[55].mxu0 }
0x1469   :  { %v3104_v61 = vadd.f32 %v9139_v27, %v3103_v39 }
0x146a   :  { %v3139_v6 = vmul.f32 0.044715, %v3109_v34 }
0x146b   :  { %v3138_v1 = vmul.f32 0.044715, %v3104_v61 }
0x146c   :  { %v3145_v15 = vmul.f32 %v3139_v6, %v3109_v34 }
0x146d   :  { %v3144_v28 = vmul.f32 %v3138_v1, %v3104_v61 }
0x146e   :  { %v3151_v22 = vmul.f32 %v3145_v15, %v3109_v34 }
0x146f   :  { %v10150_v37 = vpop.f32.mrb[56].mxu0  ;;  %v3150_v43 = vmul.f32 %v3144_v28, %v3104_v61 }
0x1470   :  { %v3157_v55 = vadd.f32 %v3151_v22, %v3109_v34  ;;  %v3119_v44 = vadd.f32 %v10150_v37, %v9139_v27  ;;  %v3113_v0 = vpop.f32.mrb[57].mxu0 }
0x1471   :  { %v3114_v41 = vadd.f32 %v9139_v27, %v3113_v0  ;;  %v3156_v19 = vadd.f32 %v3150_v43, %v3104_v61 }
0x1472   :  { %v3163_v10 = vmul.f32 0.7978846, %v3157_v55  ;;  %v3141_v7 = vmul.f32 0.044715, %v3119_v44 }
0x1473   :  { %v3140_v62 = vmul.f32 0.044715, %v3114_v41  ;;  %v3162_v56 = vmul.f32 0.7978846, %v3156_v19 }
0x1474   :  { %12039 = vtanh.f32 %v3163_v10  ;;  %v3147_v2 = vmul.f32 %v3141_v7, %v3119_v44 }
0x1475   :  { %v3146_v52 = vmul.f32 %v3140_v62, %v3114_v41  ;;  %12041 = vtanh.f32 %v3162_v56  ;;  %v3132_v62 = vmul.f32 0.5, %v3104_v61 }
0x1476   :  { %v3153_v32 = vmul.f32 %v3147_v2, %v3119_v44 }
0x1477   :  { %v10153_v18 = vpop.f32.mrb[58].mxu0  ;;  %v3152_v13 = vmul.f32 %v3146_v52, %v3114_v41  ;;  %v3133_v52 = vmul.f32 0.5, %v3109_v34 }
0x1478   :  { %v3129_v12 = vadd.f32 %v10153_v18, %v9139_v27  ;;  %v3123_v29 = vpop.f32.mrb[59].mxu0  ;;  %v3159_v58 = vadd.f32 %v3153_v32, %v3119_v44 }
0x1479   :  { %v3124_v39 = vadd.f32 %v9139_v27, %v3123_v29  ;;  %v3158_v6 = vadd.f32 %v3152_v13, %v3114_v41 }
0x147a   :  { %v3143_v1 = vmul.f32 0.044715, %v3129_v12  ;;  %v3165_v15 = vmul.f32 0.7978846, %v3159_v58 }
0x147b   :  { %v3142_v28 = vmul.f32 0.044715, %v3124_v39  ;;  %v3164_v22 = vmul.f32 0.7978846, %v3158_v6 }
0x147c   :  { %v3149_v37 = vmul.f32 %v3143_v1, %v3129_v12  ;;  %12043 = vtanh.f32 %v3165_v15  ;;  %v3134_v15 = vmul.f32 0.5, %v3114_v41  ;;  %v9163_v41 = vld [vmem:[%s16445_s5 + $0xb] ss:$0 sm:$0xff] }
0x147d   :  { %v3148_v43 = vmul.f32 %v3142_v28, %v3124_v39  ;;  %12045 = vtanh.f32 %v3164_v22  ;;  %v3135_v22 = vmul.f32 0.5, %v3119_v44 }
0x147e   :  { %v12040_v55 = vpop.eup %12039  ;;  %v3155_v0 = vmul.f32 %v3149_v37, %v3129_v12 }
0x147f   :  { %v12042_v19 = vpop.eup %12041  ;;  %v3175_v10 = vadd.f32 1.0, %v12040_v55  ;;  %v3154_v7 = vmul.f32 %v3148_v43, %v3124_v39 }
0x1480   :  { %v3174_v56 = vadd.f32 1.0, %v12042_v19  ;;  %v3161_v2 = vadd.f32 %v3155_v0, %v3129_v12  ;;  %v3136_v0 = vmul.f32 0.5, %v3124_v39 }
0x1481   :  { %v3160_v32 = vadd.f32 %v3154_v7, %v3124_v39  ;;  %v3181_v13 = vmul.f32 %v3175_v10, %v3133_v52  ;;  %v3137_v10 = vmul.f32 0.5, %v3129_v12 }
0x1482   :  { %v3180_v27 = vmul.f32 %v3174_v56, %v3132_v62  ;;  %v3167_v18 = vmul.f32 0.7978846, %v3161_v2 }
0x1483   :  { %v3166_v29 = vmul.f32 0.7978846, %v3160_v32 }
0x1484   :  { %10186 = vmatprep.mubr.f32.mxu1 %v3180_v27  ;;  %12047 = vtanh.f32 %v3167_v18 }
0x1485   :  { %10187 = vmatmul.mubr.f32.vlgmr.msra.gmra.mrb[72].mxu1 %v3181_v13  ;;  %12049 = vtanh.f32 %v3166_v29 }
0x1486   :  { %v12044_v58 = vpop.eup %12043 }
0x1487   :  { %v12046_v6 = vpop.eup %12045  ;;  %v3177_v1 = vadd.f32 1.0, %v12044_v58 }
0x1488   :  { %v3176_v28 = vadd.f32 1.0, %v12046_v6 }
0x1489   :  { %v3183_v61 = vmul.f32 %v3177_v1, %v3135_v22 }
0x148a   :  { %v3182_v37 = vmul.f32 %v3176_v28, %v3134_v15 }
0x148c   :  { %10189 = vmatprep.mubr.f32.mxu1 %v3182_v37 }
0x148d   :  { %10190 = vmatmul.mubr.f32.gmra.mrb[74].mxu1 %v3183_v61 }
0x148e   :  { %v12048_v34 = vpop.eup %12047 }
0x148f   :  { %v12050_v43 = vpop.eup %12049  ;;  %v3179_v55 = vadd.f32 1.0, %v12048_v34 }
0x1490   :  { %v3178_v19 = vadd.f32 1.0, %v12050_v43 }
0x1491   :  { %v3185_v62 = vmul.f32 %v3179_v55, %v3137_v10 }
0x1492   :  { %v3184_v7 = vmul.f32 %v3178_v19, %v3136_v0 }
0x1494   :  { %10192 = vmatprep.mubr.f32.mxu1 %v3184_v7 }
0x1495   :  { %10193 = vmatmul.mubr.f32.gmra.mrb[76].mxu1 %v3185_v62 }
0x1558   :  { %v10188_v56 = vpop.f32.mrb[72].mxu1 }
0x1559   :  { %v3283_v44 = vadd.f32 %v10188_v56, %v9163_v41  ;;  %v3277_v2 = vpop.f32.mrb[73].mxu1 }
0x155a   :  { %v3278_v52 = vadd.f32 %v9163_v41, %v3277_v2 }
0x155b   :  { %v14223_v32 = vadd.f32 %v3283_v44, %v14075_v24 }
0x155c   :  { %v14226_v27 = vadd.f32 %v3278_v52, %v14078_v3 }
0x155d   :  { %v3315_v12 = vsel %vm226_vm6, %v14223_v32, 0.0 }
0x155e   :  { %3316 = vadd.xlane.f32.xlu0 %v3315_v12  ;;  %v3312_v39 = vsel %vm226_vm6, %v14226_v27, 0.0 }
0x155f   :  { %3313 = vadd.xlane.f32.xlu1 %v3312_v39 }
0x1560   :  { %v10191_v18 = vpop.f32.mrb[74].mxu1 }
0x1561   :  { %v3293_v13 = vadd.f32 %v10191_v18, %v9163_v41  ;;  %v3287_v29 = vpop.f32.mrb[75].mxu1 }
0x1562   :  { %v3288_v58 = vadd.f32 %v9163_v41, %v3287_v29 }
0x1563   :  { %v14233_v6 = vadd.f32 %v3293_v13, %v14085_v4 }
0x1564   :  { %v14236_v24 = vadd.f32 %v3288_v58, %v14088_v33 }
0x1565   :  { %16590 = vst [vmem:[#allocation13_spill] sm:$0xff] %v14233_v6  ;;  %v3321_v3 = vsel %vm226_vm6, %v14233_v6, 0.0 }
0x1566   :  { %16591 = vst [vmem:[#allocation14_spill] sm:$0xff] %v14236_v24  ;;  %3322 = vadd.xlane.f32.xlu0 %v3321_v3  ;;  %v3318_v1 = vsel %vm226_vm6, %v14236_v24, 0.0 }
0x1567   :  { %3319 = vadd.xlane.f32.xlu1 %v3318_v1 }
0x1568   :  { %v10194_v15 = vpop.f32.mrb[76].mxu1 }
0x1569   :  { %v3303_v28 = vadd.f32 %v10194_v15, %v9163_v41  ;;  %v3297_v22 = vpop.f32.mrb[77].mxu1 }
0x156a   :  { %v3298_v37 = vadd.f32 %v9163_v41, %v3297_v22 }
0x156b   :  { %v14243_v61 = vadd.f32 %v3303_v28, %v14095_v50 }
0x156c   :  { %v14246_v4 = vadd.f32 %v3298_v37, %v14098_v54 }
0x156d   :  { %16592 = vst [vmem:[#allocation17_spill] sm:$0xff] %v14243_v61  ;;  %v3327_v33 = vsel %vm226_vm6, %v14243_v61, 0.0 }
0x156e   :  { %16593 = vst [vmem:[#allocation18_spill] sm:$0xff] %v14246_v4  ;;  %3328 = vadd.xlane.f32.xlu0 %v3327_v33  ;;  %v3324_v34 = vsel %vm226_vm6, %v14246_v4, 0.0 }
0x156f   :  { %3325 = vadd.xlane.f32.xlu1 %v3324_v34 }
0x15eb   :  { %v3317_v43 = vpop.xlane.xlu0 %3316 }
0x15ec   :  { %v3331_v55 = vmul.f32 0.03125, %v3317_v43  ;;  %v3314_v0 = vpop.xlane.xlu1 %3313 }
0x15ed   :  { %v3330_v19 = vmul.f32 0.03125, %v3314_v0  ;;  %v9168_v0 = vld [vmem:[%s16442_s2 + $0x40] sm:$0xff] }
0x15ee   :  { %v14253_v10 = vsub.f32 %v14223_v32, %v3331_v55 }
0x15ef   :  { %v14256_v50 = vsub.f32 %v14226_v27, %v3330_v19  ;;  %v9169_v19 = vld [vmem:[%s16442_s2 + $0x48] sm:$0xff] }
0x15f0   :  { %v3343_v54 = vmul.f32 %v14253_v10, %v14253_v10 }
0x15f1   :  { %v3342_v7 = vmul.f32 %v14256_v50, %v14256_v50 }
0x15f2   :  { %v3351_v62 = vsel %vm226_vm6, %v3343_v54, 0.0  ;;  %v10991_v54 = vpack.c.bf16 %v9169_v19, %v9168_v0  ;;  %v9165_v0 = vld [vmem:[%s16445_s5 + $0x15] ss:$0 sm:$0xff] }
0x15f3   :  { %v3323_v41 = vpop.xlane.xlu0 %3322  ;;  %3352 = vadd.xlane.f32.xlu0 %v3351_v62  ;;  %v3348_v56 = vsel %vm226_vm6, %v3342_v7, 0.0  ;;  %v9170_v7 = vld [vmem:[%s16442_s2 + $0x50] sm:$0xff]  ;;  %v9171_v62 = vld [vmem:[%s16442_s2 + $0x58] sm:$0xff] }
0x15f4   :  { %v3333_v44 = vmul.f32 0.03125, %v3323_v41  ;;  %3349 = vadd.xlane.f32.xlu1 %v3348_v56  ;;  %v3320_v2 = vpop.xlane.xlu1 %3319  ;;  %10992 = vmatprep.subr.bf16.mxu0 %v10991_v54  ;;  %v10995_v41 = vpack.c.bf16 %v9171_v62, %v9170_v7  ;;  %v9179_v56 = vld [vmem:[%s16441_s1 + $0x40] sm:$0xff] }
0x15f5   :  { %v3332_v52 = vmul.f32 0.03125, %v3320_v2  ;;  %10994 = vmatpush3.bf16.msra.mxu0 %v10991_v54 }
0x15f6   :  { %v14265_v12 = vsub.f32 %v14233_v6, %v3333_v44  ;;  %10996 = vmatprep.subr.bf16.mxu0 %v10995_v41  ;;  %v9180_v44 = vld [vmem:[%s16441_s1 + $0x48] sm:$0xff] }
0x15f7   :  { %v14268_v39 = vsub.f32 %v14236_v24, %v3332_v52  ;;  %v10999_v2 = vpack.c.bf16 %v9180_v44, %v9179_v56 }
0x15f8   :  { %v3345_v18 = vmul.f32 %v14265_v12, %v14265_v12 }
0x15f9   :  { %v3344_v13 = vmul.f32 %v14268_v39, %v14268_v39  ;;  %10998 = vmatpush3.bf16.msra.mxu0 %v10995_v41 }
0x15fa   :  { %v3357_v29 = vsel %vm226_vm6, %v3345_v18, 0.0  ;;  %11000 = vmatprep.subr.bf16.mxu0 %v10999_v2 }
0x15fb   :  { %3358 = vadd.xlane.f32.xlu0 %v3357_v29  ;;  %v3329_v58 = vpop.xlane.xlu0 %3328  ;;  %v3354_v3 = vsel %vm226_vm6, %v3344_v13, 0.0 }
0x15fc   :  { %v3335_v1 = vmul.f32 0.03125, %v3329_v58  ;;  %3355 = vadd.xlane.f32.xlu1 %v3354_v3  ;;  %v3326_v15 = vpop.xlane.xlu1 %3325 }
0x15fd   :  { %v3334_v28 = vmul.f32 0.03125, %v3326_v15 }
0x15fe   :  { %v14277_v22 = vsub.f32 %v14243_v61, %v3335_v1 }
0x15ff   :  { %v14280_v37 = vsub.f32 %v14246_v4, %v3334_v28 }
0x1600   :  { %v3347_v33 = vmul.f32 %v14277_v22, %v14277_v22 }
0x1601   :  { %v3346_v34 = vmul.f32 %v14280_v37, %v14280_v37 }
0x1602   :  { %v3363_v43 = vsel %vm226_vm6, %v3347_v33, 0.0 }
0x1603   :  { %3364 = vadd.xlane.f32.xlu0 %v3363_v43  ;;  %v3360_v55 = vsel %vm226_vm6, %v3346_v34, 0.0 }
0x1604   :  { %3361 = vadd.xlane.f32.xlu1 %v3360_v55 }
0x1680   :  { %v3353_v52 = vpop.xlane.xlu0 %3352 }
0x1681   :  { %v3367_v18 = vmul.f32 0.03125, %v3353_v52  ;;  %v3350_v13 = vpop.xlane.xlu1 %3349 }
0x1682   :  { %v3366_v29 = vmul.f32 0.03125, %v3350_v13 }
0x1683   :  { %v3373_v58 = vadd.f32 1e-05, %v3367_v18  ;;  %v9167_v18 = vld [vmem:[%s16445_s5 + $0x24] ss:$0 sm:$0xff] }
0x1684   :  { %v3372_v3 = vadd.f32 1e-05, %v3366_v29 }
0x1685   :  { %12051 = vrsqrt.f32 %v3373_v58  ;;  %v9181_v58 = vld [vmem:[%s16441_s1 + $0x50] sm:$0xff] }
0x1686   :  { %12053 = vrsqrt.f32 %v3372_v3 }
0x1688   :  { %v3359_v1 = vpop.xlane.xlu0 %3358 }
0x1689   :  { %v3369_v15 = vmul.f32 0.03125, %v3359_v1  ;;  %v3356_v28 = vpop.xlane.xlu1 %3355 }
0x168a   :  { %v3368_v33 = vmul.f32 0.03125, %v3356_v28 }
0x168b   :  { %v3375_v34 = vadd.f32 1e-05, %v3369_v15 }
0x168c   :  { %v3374_v43 = vadd.f32 1e-05, %v3368_v33 }
0x168d   :  { %12055 = vrsqrt.f32 %v3375_v34 }
0x168e   :  { %12057 = vrsqrt.f32 %v3374_v43 }
0x168f   :  { %v12052_v55 = vpop.eup %12051 }
0x1690   :  { %v12054_v19 = vpop.eup %12053  ;;  %v3385_v54 = vmul.f32 %v12052_v55, %v14253_v10  ;;  %v3365_v7 = vpop.xlane.xlu0 %3364  ;;  %v9182_v10 = vld [vmem:[%s16441_s1 + $0x58] sm:$0xff] }
0x1691   :  { %v3371_v62 = vmul.f32 0.03125, %v3365_v7  ;;  %v3362_v41 = vpop.xlane.xlu1 %3361  ;;  %v3384_v56 = vmul.f32 %v12054_v19, %v14256_v50  ;;  %v11003_v15 = vpack.c.bf16 %v9182_v10, %v9181_v58  ;;  %v12370_v10 = vld [vmem:[%s16446_s6] sm:$0xff] }
0x1692   :  { %v3399_v44 = vmul.f32 %v9165_v0, %v3385_v54  ;;  %v3370_v52 = vmul.f32 0.03125, %v3362_v41 }
0x1693   :  { %v3377_v13 = vadd.f32 1e-05, %v3371_v62  ;;  %v3398_v29 = vmul.f32 %v9165_v0, %v3384_v56 }
0x1694   :  { %v3376_v3 = vadd.f32 1e-05, %v3370_v52  ;;  %v3413_v50 = vadd.f32 %v9167_v18, %v3399_v44 }
0x1695   :  { %12059 = vrsqrt.f32 %v3377_v13  ;;  %v3412_v1 = vadd.f32 %v9167_v18, %v3398_v29  ;;  %v12369_v29 = vld [vmem:[%s16446_s6 + $0x8] sm:$0xff] }
0x1696   :  { %12061 = vrsqrt.f32 %v3376_v3 }
0x1697   :  { %v12056_v28 = vpop.eup %12055  ;;  %10203 = vmatprep.mubr.msk.f32.mxu0 %vm226_vm6, %v3412_v1 }
0x1698   :  { %v12058_v33 = vpop.eup %12057  ;;  %10204 = vmatmul.mubr.msk.f32.vlgmr.msra.gmra.mrb[60].mxu0 %vm226_vm6, %v3413_v50  ;;  %v3387_v34 = vmul.f32 %v12056_v28, %v14265_v12 }
0x1699   :  { %v3386_v43 = vmul.f32 %v12058_v33, %v14268_v39  ;;  %11002 = vmatpush3.bf16.msra.mxu0 %v10999_v2  ;;  %v12371_v33 = vld [vmem:[%s16446_s6 + $0x10] sm:$0xff] }
0x169a   :  { %v3401_v55 = vmul.f32 %v9165_v0, %v3387_v34  ;;  %11004 = vmatprep.subr.bf16.mxu0 %v11003_v15 }
0x169b   :  { %v3400_v19 = vmul.f32 %v9165_v0, %v3386_v43  ;;  %v12372_v43 = vld [vmem:[%s16446_s6 + $0x18] sm:$0xff] }
0x169c   :  { %v3415_v7 = vadd.f32 %v9167_v18, %v3401_v55 }
0x169d   :  { %v3414_v54 = vadd.f32 %v9167_v18, %v3400_v19  ;;  %11006 = vmatpush3.bf16.msra.mxu0 %v11003_v15 }
0x169e   :  { %11007 = vmatprep.subr.bf16.mxu0 %v16532_v14 }
0x169f   :  { %v12060_v62 = vpop.eup %12059  ;;  %10206 = vmatprep.mubr.msk.f32.mxu0 %vm226_vm6, %v3414_v54 }
0x16a0   :  { %v12062_v41 = vpop.eup %12061  ;;  %10207 = vmatmul.mubr.msk.f32.gmra.mrb[62].mxu0 %vm226_vm6, %v3415_v7  ;;  %v3389_v56 = vmul.f32 %v12060_v62, %v14277_v22  ;;  %v9172_v22 = vld [vmem:[#allocation2 + $0x2] ss:$0 sm:$0xff] }
0x16a1   :  { %v3388_v12 = vmul.f32 %v12062_v41, %v14280_v37  ;;  %v9184_v41 = vld [vmem:[%s16445_s5 + $0x2] ss:$0 sm:$0xff] }
0x16a2   :  { %v3403_v39 = vmul.f32 %v9165_v0, %v3389_v56  ;;  %v12373_v56 = vld [vmem:[%s16446_s6 + $0x28] sm:$0xff] }
0x16a3   :  { %v3402_v2 = vmul.f32 %v9165_v0, %v3388_v12 }
0x16a4   :  { %v3417_v52 = vadd.f32 %v9167_v18, %v3403_v39  ;;  %v12374_v39 = vld [vmem:[%s16446_s6 + $0x20] sm:$0xff] }
0x16a5   :  { %v3416_v44 = vadd.f32 %v9167_v18, %v3402_v2 }
0x16a7   :  { %10209 = vmatprep.mubr.msk.f32.mxu0 %vm226_vm6, %v3416_v44 }
0x16a8   :  { %10210 = vmatmul.mubr.msk.f32.gmra.mrb[64].mxu0 %vm226_vm6, %v3417_v52 }
0x16a9   :  { %10220 = vmatprep.mubr.msk.f32.mxu0 %vm226_vm6, %v3412_v1 }
0x16ac   :  { %10221 = vmatmul.mubr.msk.f32.vlgmr.msra.gmra.mrb[66].mxu0 %vm226_vm6, %v3413_v50 }
0x16ad   :  { %10223 = vmatprep.mubr.msk.f32.mxu0 %vm226_vm6, %v3414_v54 }
0x16b0   :  { %10224 = vmatmul.mubr.msk.f32.gmra.mrb[68].mxu0 %vm226_vm6, %v3415_v7 }
0x16b1   :  { %10226 = vmatprep.mubr.msk.f32.mxu0 %vm226_vm6, %v3416_v44 }
0x16b4   :  { %10227 = vmatmul.mubr.msk.f32.gmra.mrb[70].mxu0 %vm226_vm6, %v3417_v52 }
0x16b5   :  { %3938 = vmatprep.mubr.f32.mxu0 %v16560_v5 }
0x176b   :  { %v10205_v37 = vpop.f32.mrb[60].mxu0 }
0x176c   :  { %v3521_v0 = vadd.f32 %v10205_v37, %v9172_v22  ;;  %v3515_v18 = vpop.f32.mrb[61].mxu0 }
0x176d   :  { %v3516_v13 = vadd.f32 %v9172_v22, %v3515_v18 }
0x176e   :  { %v14341_v58 = vmul.f32 %v12369_v29, %v3521_v0  ;;  %v12375_v0 = vld [vmem:[%s16449_s9 + $0x8] sm:$0xff] }
0x176f   :  { %v14346_v3 = vmul.f32 %v12370_v10, %v3516_v13  ;;  %v12376_v13 = vld [vmem:[%s16449_s9 + $0x38] sm:$0xff]  ;;  %v12377_v10 = vld [vmem:[%s16449_s9 + $0x68] sm:$0xff] }
0x1770   :  { %3558 = vrot.lane.b32.xlu0 %v14341_v58, %s12565_s21 }
0x1771   :  { %3556 = vrot.lane.b32.xlu1 %v14346_v3, %s12565_s21 }
0x1773   :  { %v10208_v1 = vpop.f32.mrb[62].mxu0 }
0x1774   :  { %v3525_v50 = vpop.f32.mrb[63].mxu0  ;;  %v3531_v28 = vadd.f32 %v10208_v1, %v9172_v22 }
0x1775   :  { %v3526_v15 = vadd.f32 %v9172_v22, %v3525_v50  ;;  %v12378_v50 = vld [vmem:[%s16449_s9] sm:$0xff] }
0x1776   :  { %v14362_v55 = vmul.f32 %v12372_v43, %v3531_v28  ;;  %v12379_v28 = vld [vmem:[%s16449_s9 + $0x30] sm:$0xff]  ;;  %v12380_v43 = vld [vmem:[%s16449_s9 + $0x60] sm:$0xff] }
0x1777   :  { %v14355_v34 = vmul.f32 %v12371_v33, %v3526_v15 }
0x1779   :  { %3560 = vrot.lane.b32.xlu1 %v14355_v34, %s12565_s21 }
0x177b   :  { %v10211_v19 = vpop.f32.mrb[64].mxu0 }
0x177c   :  { %v3541_v54 = vadd.f32 %v10211_v19, %v9172_v22  ;;  %v3535_v7 = vpop.f32.mrb[65].mxu0 }
0x177d   :  { %v3536_v62 = vadd.f32 %v9172_v22, %v3535_v7  ;;  %3562 = vrot.lane.b32.xlu1 %v14362_v55, %s12565_s21  ;;  %v12381_v7 = vld [vmem:[%s16449_s9 + $0x98] sm:$0xff] }
0x177e   :  { %v14372_v12 = vmul.f32 %v12373_v56, %v3541_v54  ;;  %v12382_v56 = vld [vmem:[%s16449_s9 + $0x90] sm:$0xff] }
0x177f   :  { %v14377_v2 = vmul.f32 %v12374_v39, %v3536_v62  ;;  %v10222_v44 = vpop.f32.mrb[66].mxu0 }
0x1780   :  { %v3665_v52 = vadd.f32 %v10222_v44, %v9184_v41  ;;  %v3659_v22 = vpop.f32.mrb[67].mxu0 }
0x1781   :  { %v3660_v37 = vadd.f32 %v9184_v41, %v3659_v22  ;;  %3566 = vrot.lane.b32.xlu1 %v14372_v12, %s12565_s21  ;;  %3564 = vrot.lane.b32.xlu0 %v14377_v2, %s12565_s21 }
0x1782   :  { %v3713_v18 = vmul.f32 %v12375_v0, %v3665_v52  ;;  %v14389_v29 = vmul.f32 %v12376_v13, %v3665_v52  ;;  %v14394_v1 = vmul.f32 %v12377_v10, %v3665_v52  ;;  %v14412_v62 = vmul.f32 %v12381_v7, %v3665_v52  ;;  %v12383_v52 = vld [vmem:[%s16449_s9 + $0x18] sm:$0xff] }
0x1783   :  { %v3712_v15 = vmul.f32 %v12378_v50, %v3660_v37  ;;  %v14402_v33 = vmul.f32 %v12379_v28, %v3660_v37  ;;  %v14407_v19 = vmul.f32 %v12380_v43, %v3660_v37  ;;  %v10225_v54 = vpop.f32.mrb[68].mxu0  ;;  %v14417_v39 = vmul.f32 %v12382_v56, %v3660_v37  ;;  %v12384_v37 = vld [vmem:[%s16449_s9 + $0x48] sm:$0xff] }
0x1784   :  { %v3675_v44 = vadd.f32 %v10225_v54, %v9184_v41  ;;  %v3669_v22 = vpop.f32.mrb[69].mxu0  ;;  %v12388_v54 = vld [vmem:[%s16449_s9 + $0x70] sm:$0xff] }
0x1785   :  { %v3670_v0 = vadd.f32 %v9184_v41, %v3669_v22  ;;  %v11056_v13 = vpack.c.bf16 %v3713_v18, %v3712_v15  ;;  %v11065_v10 = vpack.c.bf16 %v14389_v29, %v14402_v33  ;;  %v11074_v50 = vpack.c.bf16 %v14394_v1, %v14407_v19  ;;  %v12385_v18 = vld [vmem:[%s16449_s9 + $0x78] sm:$0xff]  ;;  %v12386_v29 = vld [vmem:[%s16449_s9 + $0x10] sm:$0xff]  ;;  %v12387_v33 = vld [vmem:[%s16449_s9 + $0x40] sm:$0xff] }
0x1786   :  { %v3715_v28 = vmul.f32 %v12383_v52, %v3675_v44  ;;  %v3721_v43 = vmul.f32 %v12384_v37, %v3675_v44  ;;  %v3727_v15 = vmul.f32 %v12385_v18, %v3675_v44  ;;  %v12389_v22 = vld [vmem:[%s16449_s9 + $0xa8] sm:$0xff]  ;;  %v12390_v37 = vld [vmem:[%s16449_s9 + $0xa0] sm:$0xff] }
0x1787   :  { %v3714_v1 = vmul.f32 %v12386_v29, %v3670_v0  ;;  %v3720_v19 = vmul.f32 %v12387_v33, %v3670_v0  ;;  %v3726_v7 = vmul.f32 %v12388_v54, %v3670_v0  ;;  %v10228_v56 = vpop.f32.mrb[70].mxu0  ;;  %11057 = vmatpush1.bf16.msra.mxu1 %v11056_v13  ;;  %v3733_v52 = vmul.f32 %v12389_v22, %v3675_v44  ;;  %v12391_v44 = vld [vmem:[%s16449_s9 + $0x28] sm:$0xff] }
0x1788   :  { %v3732_v18 = vmul.f32 %v12390_v37, %v3670_v0  ;;  %v3685_v29 = vadd.f32 %v10228_v56, %v9184_v41  ;;  %v3679_v4 = vpop.f32.mrb[71].mxu0  ;;  %11058 = vmatprep.subr.bf16.mxu1 %v16532_v14  ;;  %v11083_v33 = vpack.c.bf16 %v14412_v62, %v14417_v39  ;;  %v12392_v0 = vld [vmem:[%s16449_s9 + $0x58] sm:$0xff]  ;;  %v12393_v37 = vld [vmem:[%s16449_s9 + $0x88] sm:$0xff]  ;;  %v12395_v62 = vld [vmem:[%s16449_s9 + $0x20] sm:$0xff] }
0x1789   :  { %v3680_v54 = vadd.f32 %v9184_v41, %v3679_v4  ;;  %v11059_v61 = vpack.c.bf16 %v3715_v28, %v3714_v1  ;;  %v11068_v13 = vpack.c.bf16 %v3721_v43, %v3720_v19  ;;  %v11077_v24 = vpack.c.bf16 %v3727_v15, %v3726_v7  ;;  %v12394_v4 = vld [vmem:[%s16449_s9 + $0xb8] sm:$0xff]  ;;  %v12396_v28 = vld [vmem:[%s16449_s9 + $0x50] sm:$0xff]  ;;  %v12397_v15 = vld [vmem:[%s16449_s9 + $0x80] sm:$0xff] }
0x178a   :  { %v3717_v22 = vmul.f32 %v12391_v44, %v3685_v29  ;;  %v3723_v56 = vmul.f32 %v12392_v0, %v3685_v29  ;;  %v3729_v6 = vmul.f32 %v12393_v37, %v3685_v29  ;;  %v3735_v41 = vmul.f32 %v12394_v4, %v3685_v29  ;;  %v12398_v19 = vld [vmem:[%s16449_s9 + $0xb0] sm:$0xff] }
0x178b   :  { %v3716_v39 = vmul.f32 %v12395_v62, %v3680_v54  ;;  %v3722_v43 = vmul.f32 %v12396_v28, %v3680_v54  ;;  %v3728_v1 = vmul.f32 %v12397_v15, %v3680_v54  ;;  %v3734_v7 = vmul.f32 %v12398_v19, %v3680_v54  ;;  %11060 = vmatpush1.bf16.msra.mxu1 %v11059_v61 }
0x178c   :  { %11061 = vmatprep.subr.bf16.mxu1 %v16532_v14  ;;  %v11086_v29 = vpack.c.bf16 %v3733_v52, %v3732_v18 }
0x178d   :  { %v11062_v44 = vpack.c.bf16 %v3717_v22, %v3716_v39  ;;  %v11071_v0 = vpack.c.bf16 %v3723_v56, %v3722_v43  ;;  %v11080_v37 = vpack.c.bf16 %v3729_v6, %v3728_v1  ;;  %v11089_v4 = vpack.c.bf16 %v3735_v41, %v3734_v7 }
0x178f   :  { %11063 = vmatpush1.bf16.msra.mxu1 %v11062_v44 }
0x1790   :  { %11064 = vmatprep.subr.bf16.mxu1 %v16532_v14 }
0x1793   :  { %11066 = vmatpush1.bf16.msra.mxu1 %v11065_v10 }
0x1794   :  { %11067 = vmatprep.subr.bf16.mxu1 %v16532_v14 }
0x1797   :  { %11069 = vmatpush1.bf16.msra.mxu1 %v11068_v13 }
0x1798   :  { %11070 = vmatprep.subr.bf16.mxu1 %v16532_v14 }
0x179b   :  { %11072 = vmatpush1.bf16.msra.mxu1 %v11071_v0 }
0x179c   :  { %11073 = vmatprep.subr.bf16.mxu1 %v16532_v14 }
0x179f   :  { %11075 = vmatpush1.bf16.msra.mxu1 %v11074_v50 }
0x17a0   :  { %11076 = vmatprep.subr.bf16.mxu1 %v16532_v14 }
0x17a3   :  { %11078 = vmatpush1.bf16.msra.mxu1 %v11077_v24 }
0x17a4   :  { %11079 = vmatprep.subr.bf16.mxu1 %v16532_v14 }
0x17a7   :  { %11081 = vmatpush1.bf16.msra.mxu1 %v11080_v37 }
0x17a8   :  { %11082 = vmatprep.subr.bf16.mxu1 %v16532_v14 }
0x17ab   :  { %11084 = vmatpush1.bf16.msra.mxu1 %v11083_v33 }
0x17ac   :  { %11085 = vmatprep.subr.bf16.mxu1 %v16532_v14 }
0x17af   :  { %11087 = vmatpush1.bf16.msra.mxu1 %v11086_v29 }
0x17b0   :  { %11088 = vmatprep.subr.bf16.mxu1 %v16532_v14 }
0x17b3   :  { %11090 = vmatpush1.bf16.msra.mxu1 %v11089_v4 }
0x17b4   :  { %11091 = vmatprep.subr.bf16.mxu1 %v16532_v14 }
0x17e2   :  { %v3559_v6 = vpop.permute.xlu0 %3558 }
0x17e3   :  { %v14486_v61 = vadd.f32 %v3559_v6, %v14341_v58  ;;  %v3557_v10 = vpop.permute.xlu1 %3556 }
0x17e4   :  { %v14489_v24 = vadd.f32 %v3557_v10, %v14346_v3 }
0x17e5   :  { %v3689_v50 = vmul.f32 %v14486_v61, %v13088_v40  ;;  %v3695_v39 = vmul.f32 %v14486_v61, %v16570_v23  ;;  %v3701_v44 = vmul.f32 %v14486_v61, %v16577_v60 }
0x17e6   :  { %v3688_v52 = vmul.f32 %v14489_v24, %v13080_v31  ;;  %v3694_v62 = vmul.f32 %v14489_v24, %v16569_v30  ;;  %v3700_v6 = vmul.f32 %v14489_v24, %v16579_v36 }
0x17e8   :  { %v11727_v18 = vpack.i.bf16 %v3689_v50, %v3688_v52  ;;  %v11742_v1 = vpack.i.bf16 %v3695_v39, %v3694_v62  ;;  %v16594_v50 = vld [vmem:[#allocation30_spill] sm:$0xff] }
0x17e9   :  { %v3706_v52 = vmul.f32 %v14489_v24, %v16594_v50 }
0x17ea   :  { %11728 = vrot.lane.b32.xlu0 %v11727_v18, %s12566_s24  ;;  %v16595_v18 = vld [vmem:[#allocation31_spill] sm:$0xff] }
0x17eb   :  { %v3561_v33 = vpop.permute.xlu1 %3560 }
0x17ec   :  { %v14497_v54 = vadd.f32 %v3561_v33, %v14355_v34  ;;  %v3707_v33 = vmul.f32 %v14486_v61, %v16595_v18 }
0x17ee   :  { %v3690_v3 = vmul.f32 %v14497_v54, %v13101_v35  ;;  %v3696_v29 = vmul.f32 %v14497_v54, %v16576_v45  ;;  %v3702_v10 = vmul.f32 %v14497_v54, %v16580_v42  ;;  %v11772_v39 = vpack.i.bf16 %v3707_v33, %v3706_v52 }
0x17ef   :  { %v3563_v13 = vpop.permute.xlu1 %3562 }
0x17f0   :  { %v14500_v58 = vadd.f32 %v3563_v13, %v14362_v55 }
0x17f2   :  { %v3691_v22 = vmul.f32 %v14500_v58, %v16568_v59  ;;  %v3703_v4 = vmul.f32 %v14500_v58, %v16578_v38 }
0x17f3   :  { %v3565_v56 = vpop.permute.xlu0 %3564  ;;  %v3567_v41 = vpop.permute.xlu1 %3566 }
0x17f4   :  { %v14511_v34 = vadd.f32 %v3565_v56, %v14377_v2  ;;  %v14514_v55 = vadd.f32 %v3567_v41, %v14372_v12  ;;  %v11732_v28 = vpack.i.bf16 %v3691_v22, %v3690_v3  ;;  %v3697_v12 = vmul.f32 %v14500_v58, %v16575_v21  ;;  %v16596_v22 = vld [vmem:[#allocation27_spill] sm:$0xff]  ;;  %v16597_v41 = vld [vmem:[#allocation29_spill] sm:$0xff] }
0x17f5   :  { %v11762_v13 = vpack.i.bf16 %v3703_v4, %v3702_v10  ;;  %v11757_v3 = vpack.i.bf16 %v3701_v44, %v3700_v6 }
0x17f6   :  { %11733 = vrot.lane.b32.xlu1 %v11732_v28, %s12566_s24  ;;  %v3692_v43 = vmul.f32 %v14511_v34, %v16571_v51  ;;  %v3693_v15 = vmul.f32 %v14514_v55, %v16572_v63  ;;  %v3698_v7 = vmul.f32 %v14511_v34, %v16573_v25  ;;  %v3699_v2 = vmul.f32 %v14514_v55, %v16574_v26 }
0x17f7   :  { %v11747_v37 = vpack.i.bf16 %v3697_v12, %v3696_v29  ;;  %v3704_v56 = vmul.f32 %v14511_v34, %v16596_v22  ;;  %v3705_v62 = vmul.f32 %v14514_v55, %v16597_v41  ;;  %v16601_v12 = vld [vmem:[#allocation32_spill] sm:$0xff] }
0x17f8   :  { %v11737_v19 = vpack.i.bf16 %v3693_v15, %v3692_v43  ;;  %v11752_v0 = vpack.i.bf16 %v3699_v2, %v3698_v7  ;;  %v16598_v43 = vld [vmem:[#allocation34_spill] sm:$0xff]  ;;  %v16600_v7 = vld [vmem:[#allocation33_spill] sm:$0xff]  ;;  %v3708_v29 = vmul.f32 %v14497_v54, %v16601_v12 }
0x17f9   :  { %v11767_v28 = vpack.i.bf16 %v3705_v62, %v3704_v56  ;;  %v3710_v15 = vmul.f32 %v14511_v34, %v16598_v43  ;;  %v3709_v2 = vmul.f32 %v14500_v58, %v16600_v7 }
0x17fa   :  { %11743 = vrot.lane.b32.xlu1 %v11742_v1, %s12566_s24  ;;  %11738 = vrot.lane.b32.xlu0 %v11737_v19, %s12566_s24  ;;  %v16599_v1 = vld [vmem:[#allocation35_spill] sm:$0xff] }
0x17fb   :  { %v3711_v19 = vmul.f32 %v14514_v55, %v16599_v1 }
0x17fd   :  { %v11782_v44 = vpack.i.bf16 %v3711_v19, %v3710_v15 }
0x17fe   :  { %11753 = vrot.lane.b32.xlu1 %v11752_v0, %s12566_s24  ;;  %11748 = vrot.lane.b32.xlu0 %v11747_v37, %s12566_s24  ;;  %v11777_v0 = vpack.i.bf16 %v3709_v2, %v3708_v29 }
0x1802   :  { %11763 = vrot.lane.b32.xlu1 %v11762_v13, %s12566_s24  ;;  %11758 = vrot.lane.b32.xlu0 %v11757_v3, %s12566_s24 }
0x1806   :  { %11773 = vrot.lane.b32.xlu1 %v11772_v39, %s12566_s24  ;;  %11768 = vrot.lane.b32.xlu0 %v11767_v28, %s12566_s24 }
0x180a   :  { %11783 = vrot.lane.b32.xlu1 %v11782_v44, %s12566_s24  ;;  %11778 = vrot.lane.b32.xlu0 %v11777_v0, %s12566_s24 }
0x185c   :  { %v11729_v37 = vpop.permute.xlu0 %11728 }
0x185d   :  { %v11731_v4 = vunpack.i.h.bf16 %v11729_v37  ;;  %v11730_v6 = vunpack.i.l.bf16 %v11729_v37 }
0x185f   :  { %v11008_v10 = vpack.c.bf16 %v11731_v4, %v11730_v6 }
0x1861   :  { %11010 = vmatpush1.bf16.xpose.msk.msra.mxu0 %vm13186_vm7, %v11008_v10 }
0x1862   :  { %11011 = vmatprep.subr.bf16.mxu0 %v16532_v14 }
0x1868   :  { %v11734_v33 = vpop.permute.xlu1 %11733 }
0x1869   :  { %v11736_v13 = vunpack.i.h.bf16 %v11734_v33  ;;  %v11735_v3 = vunpack.i.l.bf16 %v11734_v33 }
0x186b   :  { %v11012_v56 = vpack.c.bf16 %v11736_v13, %v11735_v3 }
0x186c   :  { %v11739_v62 = vpop.permute.xlu0 %11738  ;;  %v11744_v19 = vpop.permute.xlu1 %11743 }
0x186d   :  { %11014 = vmatpush1.bf16.xpose.msk.msra.mxu0 %vm13186_vm7, %v11012_v56  ;;  %v11741_v39 = vunpack.i.h.bf16 %v11739_v62  ;;  %v11740_v28 = vunpack.i.l.bf16 %v11739_v62  ;;  %v11746_v2 = vunpack.i.h.bf16 %v11744_v19  ;;  %v11745_v29 = vunpack.i.l.bf16 %v11744_v19 }
0x186e   :  { %11015 = vmatprep.subr.bf16.mxu0 %v16532_v14 }
0x186f   :  { %v11016_v15 = vpack.c.bf16 %v11741_v39, %v11740_v28  ;;  %v11020_v44 = vpack.c.bf16 %v11746_v2, %v11745_v29 }
0x1870   :  { %v11749_v0 = vpop.permute.xlu0 %11748  ;;  %v11754_v10 = vpop.permute.xlu1 %11753 }
0x1871   :  { %v11751_v37 = vunpack.i.h.bf16 %v11749_v0  ;;  %v11750_v4 = vunpack.i.l.bf16 %v11749_v0  ;;  %v11756_v33 = vunpack.i.h.bf16 %v11754_v10  ;;  %v11755_v13 = vunpack.i.l.bf16 %v11754_v10 }
0x1873   :  { %v11024_v6 = vpack.c.bf16 %v11751_v37, %v11750_v4  ;;  %v11028_v3 = vpack.c.bf16 %v11756_v33, %v11755_v13 }
0x1874   :  { %v11759_v56 = vpop.permute.xlu0 %11758 }
0x1875   :  { %11018 = vmatpush1.bf16.xpose.msk.msra.mxu0 %vm13186_vm7, %v11016_v15  ;;  %v11761_v62 = vunpack.i.h.bf16 %v11759_v56  ;;  %v11760_v39 = vunpack.i.l.bf16 %v11759_v56  ;;  %v11764_v15 = vpop.permute.xlu1 %11763 }
0x1876   :  { %11019 = vmatprep.subr.bf16.mxu0 %v16532_v14  ;;  %v11766_v19 = vunpack.i.h.bf16 %v11764_v15  ;;  %v11765_v2 = vunpack.i.l.bf16 %v11764_v15 }
0x1877   :  { %v11032_v28 = vpack.c.bf16 %v11761_v62, %v11760_v39 }
0x1878   :  { %v11036_v29 = vpack.c.bf16 %v11766_v19, %v11765_v2 }
0x187d   :  { %11022 = vmatpush1.bf16.xpose.msk.msra.mxu0 %vm13186_vm7, %v11020_v44  ;;  %v11769_v44 = vpop.permute.xlu0 %11768 }
0x187e   :  { %11023 = vmatprep.subr.bf16.mxu0 %v16532_v14  ;;  %v11771_v0 = vunpack.i.h.bf16 %v11769_v44  ;;  %v11770_v37 = vunpack.i.l.bf16 %v11769_v44 }
0x1880   :  { %v11040_v4 = vpack.c.bf16 %v11771_v0, %v11770_v37 }
0x1885   :  { %11026 = vmatpush1.bf16.xpose.msk.msra.mxu0 %vm13186_vm7, %v11024_v6  ;;  %v11774_v6 = vpop.permute.xlu1 %11773 }
0x1886   :  { %11027 = vmatprep.subr.bf16.mxu0 %v16532_v14  ;;  %v11776_v10 = vunpack.i.h.bf16 %v11774_v6  ;;  %v11775_v33 = vunpack.i.l.bf16 %v11774_v6 }
0x1888   :  { %v11044_v13 = vpack.c.bf16 %v11776_v10, %v11775_v33  ;;  %v12402_v10 = vld [vmem:[%s16447_s7 + $0x10] sm:$0xff] }
0x188d   :  { %11030 = vmatpush1.bf16.xpose.msk.msra.mxu0 %vm13186_vm7, %v11028_v3  ;;  %v11779_v3 = vpop.permute.xlu0 %11778 }
0x188e   :  { %11031 = vmatprep.subr.bf16.mxu0 %v16532_v14  ;;  %v11781_v56 = vunpack.i.h.bf16 %v11779_v3  ;;  %v11780_v62 = vunpack.i.l.bf16 %v11779_v3 }
0x1890   :  { %v11048_v39 = vpack.c.bf16 %v11781_v56, %v11780_v62 }
0x1895   :  { %11034 = vmatpush1.bf16.xpose.msk.msra.mxu0 %vm13186_vm7, %v11032_v28  ;;  %v11784_v28 = vpop.permute.xlu1 %11783 }
0x1896   :  { %11035 = vmatprep.subr.bf16.mxu0 %v16532_v14  ;;  %v11786_v15 = vunpack.i.h.bf16 %v11784_v28  ;;  %v11785_v19 = vunpack.i.l.bf16 %v11784_v28 }
0x1898   :  { %v11052_v2 = vpack.c.bf16 %v11786_v15, %v11785_v19  ;;  %v12404_v15 = vld [vmem:[%s16447_s7 + $0x20] sm:$0xff] }
0x189d   :  { %11038 = vmatpush1.bf16.xpose.msk.msra.mxu0 %vm13186_vm7, %v11036_v29 }
0x189e   :  { %11039 = vmatprep.subr.bf16.mxu0 %v16532_v14 }
0x18a5   :  { %11042 = vmatpush1.bf16.xpose.msk.msra.mxu0 %vm13186_vm7, %v11040_v4 }
0x18a6   :  { %11043 = vmatprep.subr.bf16.mxu0 %v16532_v14 }
0x18ad   :  { %11046 = vmatpush1.bf16.xpose.msk.msra.mxu0 %vm13186_vm7, %v11044_v13 }
0x18ae   :  { %11047 = vmatprep.subr.bf16.mxu0 %v16532_v14 }
0x18b5   :  { %11050 = vmatpush1.bf16.xpose.msk.msra.mxu0 %vm13186_vm7, %v11048_v39  ;;  %v12403_v39 = vld [vmem:[%s16447_s7 + $0x28] sm:$0xff] }
0x18b6   :  { %11051 = vmatprep.subr.bf16.mxu0 %v16532_v14 }
0x18bd   :  { %11054 = vmatpush1.bf16.xpose.msk.msra.mxu0 %vm13186_vm7, %v11052_v2 }
0x18c4   :  { %9215 = vmatmul.mubr.msk.f32.vlgmr.msra.gmra.mrb[72].mxu0 %vm226_vm6, %v14489_v24 }
0x18c5   :  { %3944 = vmatprep.mubr.f32.mxu0 %v16560_v5 }
0x18c8   :  { %9216 = vmatmul.mubr.msk.f32.gmra.mrb[74].mxu0 %vm226_vm6, %v14486_v61 }
0x18c9   :  { %3950 = vmatprep.mubr.f32.mxu0 %v16560_v5 }
0x18cc   :  { %9217 = vmatmul.mubr.msk.f32.gmra.mrb[76].mxu0 %vm226_vm6, %v14497_v54  ;;  %v12399_v54 = vld [vmem:[%s16447_s7 + $0x8] sm:$0xff] }
0x18cd   :  { %3956 = vmatprep.mubr.f32.mxu0 %v16560_v5 }
0x18d0   :  { %9218 = vmatmul.mubr.msk.f32.gmra.mrb[78].mxu0 %vm226_vm6, %v14500_v58  ;;  %v12400_v58 = vld [vmem:[%s16447_s7] sm:$0xff] }
0x18d1   :  { %3962 = vmatprep.mubr.f32.mxu0 %v16560_v5 }
0x18d4   :  { %9219 = vmatmul.mubr.msk.f32.gmra.mrb[80].mxu0 %vm226_vm6, %v14511_v34 }
0x18d5   :  { %3968 = vmatprep.mubr.f32.mxu0 %v16560_v5 }
0x18d8   :  { %9220 = vmatmul.mubr.msk.f32.gmra.mrb[82].mxu0 %vm226_vm6, %v14514_v55  ;;  %v12401_v55 = vld [vmem:[%s16447_s7 + $0x18] sm:$0xff] }
0x1997   :  { %v3940_v61 = vpop.f32.mrb[72].mxu0 }
0x1998   :  { %v3942_v24 = vpop.f32.mrb[73].mxu0  ;;  %v3941_v44 = vadd.f32 %v12400_v58, %v3940_v61  ;;  %v12405_v58 = vld [vmem:[%s16447_s7 + $0x38] sm:$0xff] }
0x1999   :  { %v3943_v29 = vadd.f32 %v12399_v54, %v3942_v24 }
0x199b   :  { %v3975_v0 = vsel %vm1001_vm8, %v3943_v29, -inf  ;;  %v3946_v34 = vpop.f32.mrb[74].mxu0 }
0x199c   :  { %v3976_v37 = vmax.f32 %v3941_v44, %v3975_v0  ;;  %v3948_v4 = vpop.f32.mrb[75].mxu0  ;;  %v3947_v33 = vadd.f32 %v12402_v10, %v3946_v34  ;;  %v12406_v34 = vld [vmem:[%s16447_s7 + $0x30] sm:$0xff] }
0x199d   :  { %v3949_v6 = vadd.f32 %v12401_v55, %v3948_v4 }
0x199e   :  { %3977 = vmax.xlane.f32.xlu0 %v3976_v37 }
0x199f   :  { %v3979_v13 = vsel %vm1001_vm8, %v3949_v6, -inf  ;;  %v3952_v3 = vpop.f32.mrb[76].mxu0 }
0x19a0   :  { %v3980_v56 = vmax.f32 %v3947_v33, %v3979_v13  ;;  %v3954_v62 = vpop.f32.mrb[77].mxu0  ;;  %v3953_v19 = vadd.f32 %v12404_v15, %v3952_v3  ;;  %v12407_v3 = vld [vmem:[%s16447_s7 + $0x48] sm:$0xff] }
0x19a1   :  { %v3955_v28 = vadd.f32 %v12403_v39, %v3954_v62  ;;  %v12408_v62 = vld [vmem:[%s16447_s7 + $0x40] sm:$0xff] }
0x19a2   :  { %3981 = vmax.xlane.f32.xlu1 %v3980_v56 }
0x19a3   :  { %v3983_v2 = vsel %vm1001_vm8, %v3955_v28, -inf  ;;  %v3958_v61 = vpop.f32.mrb[78].mxu0 }
0x19a4   :  { %v3984_v24 = vmax.f32 %v3953_v19, %v3983_v2  ;;  %v3960_v54 = vpop.f32.mrb[79].mxu0  ;;  %v3959_v37 = vadd.f32 %v12406_v34, %v3958_v61  ;;  %v12410_v34 = vld [vmem:[%s16447_s7 + $0x50] sm:$0xff] }
0x19a5   :  { %v3961_v0 = vadd.f32 %v12405_v58, %v3960_v54  ;;  %v12409_v54 = vld [vmem:[%s16447_s7 + $0x58] sm:$0xff] }
0x19a6   :  { %3985 = vmax.xlane.f32.xlu0 %v3984_v24 }
0x19a7   :  { %v3987_v4 = vsel %vm1001_vm8, %v3961_v0, -inf  ;;  %v3964_v55 = vpop.f32.mrb[80].mxu0 }
0x19a8   :  { %v3988_v10 = vmax.f32 %v3959_v37, %v3987_v4  ;;  %v3966_v13 = vpop.f32.mrb[81].mxu0  ;;  %v3965_v39 = vadd.f32 %v12408_v62, %v3964_v55 }
0x19a9   :  { %v3967_v56 = vadd.f32 %v12407_v3, %v3966_v13 }
0x19aa   :  { %3989 = vmax.xlane.f32.xlu0 %v3988_v10 }
0x19ab   :  { %v3991_v15 = vsel %vm1001_vm8, %v3967_v56, -inf  ;;  %v3970_v2 = vpop.f32.mrb[82].mxu0 }
0x19ac   :  { %v3992_v61 = vmax.f32 %v3965_v39, %v3991_v15  ;;  %v3972_v24 = vpop.f32.mrb[83].mxu0  ;;  %v3971_v4 = vadd.f32 %v12410_v34, %v3970_v2 }
0x19ad   :  { %v3973_v58 = vadd.f32 %v12409_v54, %v3972_v24 }
0x19ae   :  { %3993 = vmax.xlane.f32.xlu1 %v3992_v61 }
0x19af   :  { %v3995_v13 = vsel %vm1001_vm8, %v3973_v58, -inf }
0x19b0   :  { %v3996_v55 = vmax.f32 %v3971_v4, %v3995_v13 }
0x19b2   :  { %3997 = vmax.xlane.f32.xlu0 %v3996_v55 }
0x1a2b   :  { %v3978_v10 = vpop.xlane.xlu0 %3977 }
0x1a2c   :  { %v3999_v3 = vsub.f32 %v3941_v44, %v3978_v10  ;;  %v4000_v62 = vsub.f32 %v3943_v29, %v3978_v10 }
0x1a2e   :  { %v4011_v15 = vmul.f32 1.442695, %v3999_v3  ;;  %v4013_v52 = vmul.f32 1.442695, %v4000_v62 }
0x1a2f   :  { %v3982_v12 = vpop.xlane.xlu1 %3981 }
0x1a30   :  { %12063 = vpow2.f32 %v4011_v15  ;;  %v4001_v7 = vsub.f32 %v3947_v33, %v3982_v12  ;;  %v4002_v1 = vsub.f32 %v3949_v6, %v3982_v12 }
0x1a31   :  { %12065 = vpow2.f32 %v4013_v52 }
0x1a32   :  { %v4015_v24 = vmul.f32 1.442695, %v4001_v7  ;;  %v4017_v54 = vmul.f32 1.442695, %v4002_v1 }
0x1a33   :  { %v3986_v43 = vpop.xlane.xlu0 %3985 }
0x1a34   :  { %12067 = vpow2.f32 %v4015_v24  ;;  %v4003_v2 = vsub.f32 %v3953_v19, %v3986_v43  ;;  %v4004_v61 = vsub.f32 %v3955_v28, %v3986_v43 }
0x1a35   :  { %12069 = vpow2.f32 %v4017_v54 }
0x1a36   :  { %v4019_v34 = vmul.f32 1.442695, %v4003_v2  ;;  %v4021_v13 = vmul.f32 1.442695, %v4004_v61 }
0x1a37   :  { %v3990_v55 = vpop.xlane.xlu0 %3989 }
0x1a38   :  { %12071 = vpow2.f32 %v4019_v34  ;;  %v4005_v44 = vsub.f32 %v3959_v37, %v3990_v55  ;;  %v4006_v29 = vsub.f32 %v3961_v0, %v3990_v55  ;;  %v9234_v55 = vld [vmem:[%s16441_s1 + $0xe8] sm:$0xff] }
0x1a39   :  { %12073 = vpow2.f32 %v4021_v13  ;;  %v9233_v13 = vld [vmem:[%s16441_s1 + $0xe0] sm:$0xff] }
0x1a3a   :  { %v14657_v10 = vpop.eup %12063  ;;  %v4023_v3 = vmul.f32 1.442695, %v4005_v44  ;;  %v4025_v33 = vmul.f32 1.442695, %v4006_v29  ;;  %v11127_v44 = vpack.c.bf16 %v9234_v55, %v9233_v13  ;;  %v9235_v29 = vld [vmem:[%s16441_s1 + $0xf0] sm:$0xff] }
0x1a3b   :  { %v12066_v12 = vpop.eup %12065  ;;  %v3994_v52 = vpop.xlane.xlu1 %3993 }
0x1a3c   :  { %12075 = vpow2.f32 %v4023_v3  ;;  %v4007_v1 = vsub.f32 %v3965_v39, %v3994_v52  ;;  %v4008_v7 = vsub.f32 %v3967_v56, %v3994_v52  ;;  %9221 = vmatprep.mubr.msk.f32.mxu1 %vm1001_vm8, %v12066_v12  ;;  %11128 = vmatprep.subr.bf16.mxu0 %v11127_v44 }
0x1a3d   :  { %12077 = vpow2.f32 %v4025_v33  ;;  %4118 = vmatmul.mubr.f32.vlgmr.msra.gmra.mrb[78].mxu1 %v14657_v10  ;;  %11130 = vmatpush3.bf16.msra.mxu0 %v11127_v44 }
0x1a3e   :  { %v12068_v43 = vpop.eup %12067  ;;  %v4027_v6 = vmul.f32 1.442695, %v4007_v1  ;;  %v4029_v28 = vmul.f32 1.442695, %v4008_v7  ;;  %11093 = vmatpush1.bf16.msra.mxu1 %v13323_v11 }
0x1a3f   :  { %v12070_v19 = vpop.eup %12069  ;;  %11094 = vmatprep.subr.bf16.mxu1 %v16532_v14  ;;  %v3998_v0 = vpop.xlane.xlu0 %3997 }
0x1a40   :  { %12079 = vpow2.f32 %v4027_v6  ;;  %9222 = vmatprep.mubr.msk.f32.mxu1 %vm1001_vm8, %v12070_v19  ;;  %v4009_v37 = vsub.f32 %v3971_v4, %v3998_v0  ;;  %v4010_v39 = vsub.f32 %v3973_v58, %v3998_v0 }
0x1a41   :  { %12081 = vpow2.f32 %v4029_v28  ;;  %4123 = vmatmul.mubr.f32.gmra.mrb[80].mxu1 %v12068_v43 }
0x1a42   :  { %v12072_v56 = vpop.eup %12071  ;;  %v4031_v62 = vmul.f32 1.442695, %v4009_v37  ;;  %v4033_v15 = vmul.f32 1.442695, %v4010_v39  ;;  %11096 = vmatpush1.bf16.msra.mxu1 %v13332_v53 }
0x1a43   :  { %v12074_v24 = vpop.eup %12073  ;;  %11097 = vmatprep.subr.bf16.mxu1 %v16532_v14 }
0x1a44   :  { %12083 = vpow2.f32 %v4031_v62  ;;  %9223 = vmatprep.mubr.msk.f32.mxu1 %vm1001_vm8, %v12074_v24 }
0x1a45   :  { %12085 = vpow2.f32 %v4033_v15  ;;  %4128 = vmatmul.mubr.f32.gmra.mrb[82].mxu1 %v12072_v56 }
0x1a46   :  { %v12076_v54 = vpop.eup %12075  ;;  %11099 = vmatpush1.bf16.msra.mxu1 %v13340_v46 }
0x1a47   :  { %v12078_v4 = vpop.eup %12077  ;;  %11100 = vmatprep.subr.bf16.mxu1 %v16532_v14 }
0x1a48   :  { %9224 = vmatprep.mubr.msk.f32.mxu1 %vm1001_vm8, %v12078_v4 }
0x1a49   :  { %4133 = vmatmul.mubr.f32.gmra.mrb[84].mxu1 %v12076_v54 }
0x1a4a   :  { %v12080_v58 = vpop.eup %12079  ;;  %11102 = vmatpush1.bf16.msra.mxu1 %v13347_v8 }
0x1a4b   :  { %v12082_v2 = vpop.eup %12081  ;;  %11103 = vmatprep.subr.bf16.mxu1 %v16532_v14 }
0x1a4c   :  { %9225 = vmatprep.mubr.msk.f32.mxu1 %vm1001_vm8, %v12082_v2 }
0x1a4d   :  { %4138 = vmatmul.mubr.f32.gmra.mrb[86].mxu1 %v12080_v58 }
0x1a4e   :  { %v12084_v61 = vpop.eup %12083  ;;  %11105 = vmatpush1.bf16.msra.mxu1 %v13354_v49 }
0x1a4f   :  { %v12086_v34 = vpop.eup %12085  ;;  %11106 = vmatprep.subr.bf16.mxu1 %v16532_v14 }
0x1a50   :  { %9226 = vmatprep.mubr.msk.f32.mxu1 %vm1001_vm8, %v12086_v34 }
0x1a51   :  { %4143 = vmatmul.mubr.f32.gmra.mrb[88].mxu1 %v12084_v61 }
0x1a52   :  { %11108 = vmatpush1.bf16.msra.mxu1 %v13361_v17  ;;  %9227 = vmatprep.mubr.msk.f32.mxu1 %vm1001_vm8, %v12066_v12 }
0x1a53   :  { %11109 = vmatprep.subr.bf16.mxu1 %v16532_v14 }
0x1a56   :  { %11111 = vmatpush1.bf16.msra.mxu1 %v13369_v47 }
0x1a57   :  { %11112 = vmatprep.subr.bf16.mxu1 %v16532_v14 }
0x1a5a   :  { %11114 = vmatpush1.bf16.msra.mxu1 %v13375_v57 }
0x1a5b   :  { %11115 = vmatprep.subr.bf16.mxu1 %v16532_v14 }
0x1a5e   :  { %11117 = vmatpush1.bf16.msra.mxu1 %v13381_v16 }
0x1a5f   :  { %11118 = vmatprep.subr.bf16.mxu1 %v16532_v14 }
0x1a62   :  { %11120 = vmatpush1.bf16.msra.mxu1 %v13387_v9 }
0x1a63   :  { %11121 = vmatprep.subr.bf16.mxu1 %v16532_v14 }
0x1a66   :  { %11123 = vmatpush1.bf16.msra.mxu1 %v13393_v20 }
0x1a67   :  { %11124 = vmatprep.subr.bf16.mxu1 %v16532_v14 }
0x1a6a   :  { %11126 = vmatpush1.bf16.msra.mxu1 %v13399_v48 }
0x1a6d   :  { %4213 = vmatmul.mubr.f32.vlgmr.msra.gmra.mrb[90].mxu1 %v14657_v10  ;;  %v9236_v10 = vld [vmem:[%s16441_s1 + $0xf8] sm:$0xff] }
0x1a6e   :  { %9228 = vmatprep.mubr.msk.f32.mxu1 %vm1001_vm8, %v12070_v19  ;;  %v11131_v3 = vpack.c.bf16 %v9236_v10, %v9235_v29 }
0x1a70   :  { %11132 = vmatprep.subr.bf16.mxu0 %v11131_v3 }
0x1a71   :  { %4218 = vmatmul.mubr.f32.gmra.mrb[92].mxu1 %v12068_v43  ;;  %11134 = vmatpush3.bf16.msra.mxu0 %v11131_v3 }
0x1a72   :  { %9229 = vmatprep.mubr.msk.f32.mxu1 %vm1001_vm8, %v12074_v24 }
0x1a75   :  { %4223 = vmatmul.mubr.f32.gmra.mrb[94].mxu1 %v12072_v56 }
0x1a76   :  { %9230 = vmatprep.mubr.msk.f32.mxu1 %vm1001_vm8, %v12078_v4 }
0x1a79   :  { %4228 = vmatmul.mubr.f32.gmra.mrb[96].mxu1 %v12076_v54 }
0x1a7a   :  { %9231 = vmatprep.mubr.msk.f32.mxu1 %vm1001_vm8, %v12082_v2 }
0x1a7d   :  { %4233 = vmatmul.mubr.f32.gmra.mrb[98].mxu1 %v12080_v58 }
0x1a7e   :  { %9232 = vmatprep.mubr.msk.f32.mxu1 %vm1001_vm8, %v12086_v34 }
0x1a81   :  { %4238 = vmatmul.mubr.f32.gmra.mrb[100].mxu1 %v12084_v61 }
0x1b10   :  { %v4119_v33 = vpop.f32.mrb[78].mxu1 }
0x1b11   :  { %v4121_v12 = vpop.f32.mrb[79].mxu1 }
0x1b14   :  { %v4124_v52 = vpop.f32.mrb[80].mxu1 }
0x1b15   :  { %v4126_v1 = vpop.f32.mrb[81].mxu1 }
0x1b18   :  { %v4129_v7 = vpop.f32.mrb[82].mxu1 }
0x1b19   :  { %v4131_v43 = vpop.f32.mrb[83].mxu1 }
0x1b1c   :  { %v4134_v6 = vpop.f32.mrb[84].mxu1 }
0x1b1d   :  { %v4136_v28 = vpop.f32.mrb[85].mxu1 }
0x1b20   :  { %v4139_v19 = vpop.f32.mrb[86].mxu1 }
0x1b21   :  { %v4141_v0 = vpop.f32.mrb[87].mxu1 }
0x1b24   :  { %v4144_v37 = vpop.f32.mrb[88].mxu1 }
0x1b25   :  { %v4146_v39 = vpop.f32.mrb[89].mxu1 }
0x1b40   :  { %v4214_v56 = vpop.f32.mrb[90].mxu1 }
0x1b41   :  { %12087 = vrcp.f32 %v4214_v56  ;;  %v4216_v62 = vpop.f32.mrb[91].mxu1 }
0x1b44   :  { %v4219_v15 = vpop.f32.mrb[92].mxu1 }
0x1b45   :  { %12089 = vrcp.f32 %v4219_v15  ;;  %v4221_v24 = vpop.f32.mrb[93].mxu1 }
0x1b48   :  { %v4224_v54 = vpop.f32.mrb[94].mxu1 }
0x1b49   :  { %12091 = vrcp.f32 %v4224_v54  ;;  %v4226_v4 = vpop.f32.mrb[95].mxu1 }
0x1b4b   :  { %v12088_v58 = vpop.eup %12087 }
0x1b4c   :  { %v4229_v2 = vpop.f32.mrb[96].mxu1  ;;  %v4249_v61 = vmul.f32 %v12088_v58, %v4119_v33 }
0x1b4d   :  { %12093 = vrcp.f32 %v4229_v2  ;;  %v4231_v34 = vpop.f32.mrb[97].mxu1 }
0x1b4e   :  { %10237 = vmatprep.mubr.msk.f32.mxu0 %vm226_vm6, %v4249_v61  ;;  %v16603_v34 = vld [vmem:[#allocation13_spill] sm:$0xff] }
0x1b4f   :  { %v12090_v13 = vpop.eup %12089 }
0x1b50   :  { %v4250_v55 = vmul.f32 %v12090_v13, %v4124_v52  ;;  %v4234_v44 = vpop.f32.mrb[98].mxu1 }
0x1b51   :  { %12095 = vrcp.f32 %v4234_v44  ;;  %v4236_v29 = vpop.f32.mrb[99].mxu1 }
0x1b52   :  { %10238 = vmatmul.mubr.msk.f32.vlgmr.msra.gmra.mrb[84].mxu0 %vm226_vm6, %v4250_v55 }
0x1b53   :  { %v12092_v10 = vpop.eup %12091 }
0x1b54   :  { %v4239_v3 = vpop.f32.mrb[100].mxu1  ;;  %v4251_v12 = vmul.f32 %v12092_v10, %v4129_v7  ;;  %v9238_v7 = vld [vmem:[%s16445_s5 + $0x7] ss:$0 sm:$0xff] }
0x1b55   :  { %12097 = vrcp.f32 %v4239_v3  ;;  %v4241_v1 = vpop.f32.mrb[101].mxu1 }
0x1b56   :  { %10240 = vmatprep.mubr.msk.f32.mxu0 %vm226_vm6, %v4251_v12  ;;  %v16605_v1 = vld [vmem:[#allocation17_spill] sm:$0xff] }
0x1b57   :  { %v12094_v43 = vpop.eup %12093 }
0x1b58   :  { %v4252_v33 = vmul.f32 %v12094_v43, %v4134_v6 }
0x1b5a   :  { %10241 = vmatmul.mubr.msk.f32.gmra.mrb[86].mxu0 %vm226_vm6, %v4252_v33  ;;  %v16606_v33 = vld [vmem:[#allocation18_spill] sm:$0xff] }
0x1b5b   :  { %v12096_v28 = vpop.eup %12095 }
0x1b5c   :  { %v4253_v0 = vmul.f32 %v12096_v28, %v4139_v19 }
0x1b5e   :  { %10243 = vmatprep.mubr.msk.f32.mxu0 %vm226_vm6, %v4253_v0 }
0x1b5f   :  { %v12098_v52 = vpop.eup %12097 }
0x1b60   :  { %v4254_v39 = vmul.f32 %v12098_v52, %v4144_v37 }
0x1b62   :  { %10244 = vmatmul.mubr.msk.f32.gmra.mrb[88].mxu0 %vm226_vm6, %v4254_v39 }
0x1c25   :  { %v10239_v56 = vpop.f32.mrb[84].mxu0 }
0x1c26   :  { %v4358_v62 = vadd.f32 %v10239_v56, %v9238_v7  ;;  %v4352_v15 = vpop.f32.mrb[85].mxu0 }
0x1c27   :  { %v4353_v24 = vadd.f32 %v9238_v7, %v4352_v15 }
0x1c28   :  { %v14718_v6 = vadd.f32 %v4358_v62, %v14223_v32  ;;  %v16604_v32 = vld [vmem:[#allocation14_spill] sm:$0xff] }
0x1c29   :  { %v14721_v54 = vadd.f32 %v4353_v24, %v14226_v27 }
0x1c2a   :  { %v4390_v19 = vsel %vm226_vm6, %v14718_v6, 0.0 }
0x1c2b   :  { %4391 = vadd.xlane.f32.xlu0 %v4390_v19  ;;  %v4387_v37 = vsel %vm226_vm6, %v14721_v54, 0.0 }
0x1c2c   :  { %4388 = vadd.xlane.f32.xlu1 %v4387_v37 }
0x1c2d   :  { %v10242_v4 = vpop.f32.mrb[86].mxu0 }
0x1c2e   :  { %v4368_v58 = vadd.f32 %v10242_v4, %v9238_v7  ;;  %v4362_v2 = vpop.f32.mrb[87].mxu0 }
0x1c2f   :  { %v4363_v61 = vadd.f32 %v9238_v7, %v4362_v2 }
0x1c30   :  { %v14728_v13 = vadd.f32 %v4368_v58, %v16603_v34 }
0x1c31   :  { %v14731_v55 = vadd.f32 %v4363_v61, %v16604_v32 }
0x1c32   :  { %v4396_v27 = vsel %vm226_vm6, %v14728_v13, 0.0 }
0x1c33   :  { %4397 = vadd.xlane.f32.xlu0 %v4396_v27  ;;  %v4393_v44 = vsel %vm226_vm6, %v14731_v55, 0.0 }
0x1c34   :  { %4394 = vadd.xlane.f32.xlu1 %v4393_v44 }
0x1c35   :  { %v10245_v29 = vpop.f32.mrb[88].mxu0 }
0x1c36   :  { %v4378_v10 = vadd.f32 %v10245_v29, %v9238_v7  ;;  %v4372_v3 = vpop.f32.mrb[89].mxu0 }
0x1c37   :  { %v4373_v12 = vadd.f32 %v9238_v7, %v4372_v3 }
0x1c38   :  { %v14738_v43 = vadd.f32 %v4378_v10, %v16605_v1 }
0x1c39   :  { %v14741_v28 = vadd.f32 %v4373_v12, %v16606_v33 }
0x1c3a   :  { %v4402_v0 = vsel %vm226_vm6, %v14738_v43, 0.0 }
0x1c3b   :  { %4403 = vadd.xlane.f32.xlu0 %v4402_v0  ;;  %v4399_v52 = vsel %vm226_vm6, %v14741_v28, 0.0 }
0x1c3c   :  { %4400 = vadd.xlane.f32.xlu1 %v4399_v52 }
0x1cb8   :  { %v4392_v39 = vpop.xlane.xlu0 %4391 }
0x1cb9   :  { %v4406_v56 = vmul.f32 0.03125, %v4392_v39  ;;  %v4389_v62 = vpop.xlane.xlu1 %4388 }
0x1cba   :  { %v4405_v15 = vmul.f32 0.03125, %v4389_v62 }
0x1cbb   :  { %v14748_v7 = vsub.f32 %v14718_v6, %v4406_v56 }
0x1cbc   :  { %v14751_v24 = vsub.f32 %v14721_v54, %v4405_v15 }
0x1cbd   :  { %v4418_v19 = vmul.f32 %v14748_v7, %v14748_v7 }
0x1cbe   :  { %v4417_v37 = vmul.f32 %v14751_v24, %v14751_v24 }
0x1cbf   :  { %v4426_v4 = vsel %vm226_vm6, %v4418_v19, 0.0 }
0x1cc0   :  { %v4398_v58 = vpop.xlane.xlu0 %4397  ;;  %4427 = vadd.xlane.f32.xlu0 %v4426_v4  ;;  %v4423_v2 = vsel %vm226_vm6, %v4417_v37, 0.0  ;;  %v9249_v4 = vld [vmem:[%s16442_s2 + $0xe0] sm:$0xff] }
0x1cc1   :  { %v4408_v61 = vmul.f32 0.03125, %v4398_v58  ;;  %v4395_v34 = vpop.xlane.xlu1 %4394  ;;  %4424 = vadd.xlane.f32.xlu1 %v4423_v2  ;;  %v9250_v58 = vld [vmem:[%s16442_s2 + $0xe8] sm:$0xff] }
0x1cc2   :  { %v4407_v32 = vmul.f32 0.03125, %v4395_v34  ;;  %v11135_v2 = vpack.c.bf16 %v9250_v58, %v9249_v4  ;;  %v9252_v34 = vld [vmem:[%s16442_s2 + $0xf8] sm:$0xff] }
0x1cc3   :  { %v14760_v27 = vsub.f32 %v14728_v13, %v4408_v61  ;;  %v9251_v61 = vld [vmem:[%s16442_s2 + $0xf0] sm:$0xff] }
0x1cc4   :  { %v14763_v44 = vsub.f32 %v14731_v55, %v4407_v32  ;;  %11136 = vmatprep.subr.bf16.mxu1 %v11135_v2  ;;  %v11139_v32 = vpack.c.bf16 %v9252_v34, %v9251_v61  ;;  %v9246_v34 = vld [vmem:[%s16445_s5 + $0x16] ss:$0 sm:$0xff] }
0x1cc5   :  { %v4420_v29 = vmul.f32 %v14760_v27, %v14760_v27  ;;  %11138 = vmatpush3.bf16.msra.mxu1 %v11135_v2 }
0x1cc6   :  { %v4419_v10 = vmul.f32 %v14763_v44, %v14763_v44  ;;  %11140 = vmatprep.subr.bf16.mxu1 %v11139_v32 }
0x1cc7   :  { %v4432_v3 = vsel %vm226_vm6, %v4420_v29, 0.0  ;;  %v9260_v29 = vld [vmem:[%s16443_s3 + $0x100] sm:$0xff] }
0x1cc8   :  { %4433 = vadd.xlane.f32.xlu0 %v4432_v3  ;;  %v4404_v12 = vpop.xlane.xlu0 %4403  ;;  %v4429_v1 = vsel %vm226_vm6, %v4419_v10, 0.0  ;;  %v9261_v10 = vld [vmem:[%s16443_s3 + $0x108] sm:$0xff] }
0x1cc9   :  { %v4410_v33 = vmul.f32 0.03125, %v4404_v12  ;;  %4430 = vadd.xlane.f32.xlu1 %v4429_v1  ;;  %v4401_v0 = vpop.xlane.xlu1 %4400  ;;  %11142 = vmatpush3.bf16.msra.mxu1 %v11139_v32  ;;  %v11143_v3 = vpack.c.bf16 %v9261_v10, %v9260_v29 }
0x1cca   :  { %v4409_v52 = vmul.f32 0.03125, %v4401_v0 }
0x1ccb   :  { %v14772_v39 = vsub.f32 %v14738_v43, %v4410_v33  ;;  %11144 = vmatprep.subr.bf16.mxu0 %v11143_v3 }
0x1ccc   :  { %v14775_v56 = vsub.f32 %v14741_v28, %v4409_v52  ;;  %11146 = vmatpush3.bf16.msra.mxu0 %v11143_v3 }
0x1ccd   :  { %v4422_v62 = vmul.f32 %v14772_v39, %v14772_v39 }
0x1cce   :  { %v4421_v15 = vmul.f32 %v14775_v56, %v14775_v56 }
0x1ccf   :  { %v4438_v19 = vsel %vm226_vm6, %v4422_v62, 0.0 }
0x1cd0   :  { %4439 = vadd.xlane.f32.xlu0 %v4438_v19  ;;  %v4435_v37 = vsel %vm226_vm6, %v4421_v15, 0.0 }
0x1cd1   :  { %4436 = vadd.xlane.f32.xlu1 %v4435_v37 }
0x1d4d   :  { %v4428_v12 = vpop.xlane.xlu0 %4427 }
0x1d4e   :  { %v4442_v1 = vmul.f32 0.03125, %v4428_v12  ;;  %v4425_v33 = vpop.xlane.xlu1 %4424 }
0x1d4f   :  { %v4441_v0 = vmul.f32 0.03125, %v4425_v33 }
0x1d50   :  { %v4448_v52 = vadd.f32 1e-05, %v4442_v1 }
0x1d51   :  { %v4447_v62 = vadd.f32 1e-05, %v4441_v0 }
0x1d52   :  { %12099 = vrsqrt.f32 %v4448_v52  ;;  %v9248_v52 = vld [vmem:[%s16445_s5 + $0x25] ss:$0 sm:$0xff] }
0x1d53   :  { %12101 = vrsqrt.f32 %v4447_v62 }
0x1d55   :  { %v4434_v15 = vpop.xlane.xlu0 %4433 }
0x1d56   :  { %v4444_v19 = vmul.f32 0.03125, %v4434_v15  ;;  %v4431_v37 = vpop.xlane.xlu1 %4430 }
0x1d57   :  { %v4443_v4 = vmul.f32 0.03125, %v4431_v37 }
0x1d58   :  { %v4450_v58 = vadd.f32 1e-05, %v4444_v19 }
0x1d59   :  { %v4449_v2 = vadd.f32 1e-05, %v4443_v4 }
0x1d5a   :  { %12103 = vrsqrt.f32 %v4450_v58 }
0x1d5b   :  { %12105 = vrsqrt.f32 %v4449_v2 }
0x1d5c   :  { %v12100_v61 = vpop.eup %12099 }
0x1d5d   :  { %v12102_v32 = vpop.eup %12101  ;;  %v4460_v29 = vmul.f32 %v12100_v61, %v14748_v7  ;;  %v4440_v10 = vpop.xlane.xlu0 %4439 }
0x1d5e   :  { %v4446_v3 = vmul.f32 0.03125, %v4440_v10  ;;  %v4437_v12 = vpop.xlane.xlu1 %4436  ;;  %v4459_v1 = vmul.f32 %v12102_v32, %v14751_v24 }
0x1d5f   :  { %v4474_v33 = vmul.f32 %v9246_v34, %v4460_v29  ;;  %v4445_v0 = vmul.f32 0.03125, %v4437_v12 }
0x1d60   :  { %v4452_v62 = vadd.f32 1e-05, %v4446_v3  ;;  %v4473_v15 = vmul.f32 %v9246_v34, %v4459_v1 }
0x1d61   :  { %v4451_v19 = vadd.f32 1e-05, %v4445_v0  ;;  %v4488_v4 = vadd.f32 %v9248_v52, %v4474_v33 }
0x1d62   :  { %12107 = vrsqrt.f32 %v4452_v62  ;;  %v4487_v37 = vadd.f32 %v9248_v52, %v4473_v15 }
0x1d63   :  { %12109 = vrsqrt.f32 %v4451_v19  ;;  %v9263_v19 = vld [vmem:[%s16443_s3 + $0x118] sm:$0xff] }
0x1d64   :  { %v12104_v58 = vpop.eup %12103  ;;  %10254 = vmatprep.mubr.msk.f32.mxu1 %vm226_vm6, %v4487_v37 }
0x1d65   :  { %v12106_v7 = vpop.eup %12105  ;;  %10255 = vmatmul.mubr.msk.f32.vlgmr.msra.gmra.mrb[102].mxu1 %vm226_vm6, %v4488_v4  ;;  %v4462_v24 = vmul.f32 %v12104_v58, %v14760_v27  ;;  %v9267_v4 = vld [vmem:[%s16443_s3 + $0x138] sm:$0xff] }
0x1d66   :  { %v4461_v2 = vmul.f32 %v12106_v7, %v14763_v44  ;;  %v9262_v44 = vld [vmem:[%s16443_s3 + $0x110] sm:$0xff]  ;;  %v9268_v7 = vld [vmem:[%s16443_s3 + $0x140] sm:$0xff] }
0x1d67   :  { %v4476_v61 = vmul.f32 %v9246_v34, %v4462_v24  ;;  %v11147_v37 = vpack.c.bf16 %v9263_v19, %v9262_v44  ;;  %v9269_v24 = vld [vmem:[%s16443_s3 + $0x148] sm:$0xff] }
0x1d68   :  { %v4475_v32 = vmul.f32 %v9246_v34, %v4461_v2  ;;  %v11159_v2 = vpack.c.bf16 %v9269_v24, %v9268_v7 }
0x1d69   :  { %v4490_v10 = vadd.f32 %v9248_v52, %v4476_v61  ;;  %11148 = vmatprep.subr.bf16.mxu0 %v11147_v37  ;;  %v9270_v61 = vld [vmem:[%s16443_s3 + $0x150] sm:$0xff] }
0x1d6a   :  { %v4489_v29 = vadd.f32 %v9248_v52, %v4475_v32  ;;  %11150 = vmatpush3.bf16.msra.mxu0 %v11147_v37  ;;  %v9271_v32 = vld [vmem:[%s16443_s3 + $0x158] sm:$0xff] }
0x1d6c   :  { %v12108_v3 = vpop.eup %12107  ;;  %10257 = vmatprep.mubr.msk.f32.mxu1 %vm226_vm6, %v4489_v29  ;;  %v11163_v29 = vpack.c.bf16 %v9271_v32, %v9270_v61 }
0x1d6d   :  { %v12110_v12 = vpop.eup %12109  ;;  %10258 = vmatmul.mubr.msk.f32.gmra.mrb[104].mxu1 %vm226_vm6, %v4490_v10  ;;  %v4464_v1 = vmul.f32 %v12108_v3, %v14772_v39  ;;  %v9264_v39 = vld [vmem:[%s16443_s3 + $0x120] sm:$0xff]  ;;  %v9273_v3 = vld [vmem:[%s16443_s3 + $0x168] sm:$0xff] }
0x1d6e   :  { %v4463_v33 = vmul.f32 %v12110_v12, %v14775_v56  ;;  %v9265_v56 = vld [vmem:[%s16443_s3 + $0x128] sm:$0xff]  ;;  %v9272_v10 = vld [vmem:[%s16443_s3 + $0x160] sm:$0xff] }
0x1d6f   :  { %v4478_v0 = vmul.f32 %v9246_v34, %v4464_v1  ;;  %v11167_v12 = vpack.c.bf16 %v9273_v3, %v9272_v10  ;;  %v9274_v1 = vld [vmem:[%s16443_s3 + $0x170] sm:$0xff] }
0x1d70   :  { %v4477_v62 = vmul.f32 %v9246_v34, %v4463_v33  ;;  %v11151_v34 = vpack.c.bf16 %v9265_v56, %v9264_v39  ;;  %v9275_v33 = vld [vmem:[%s16443_s3 + $0x178] sm:$0xff] }
0x1d71   :  { %v4492_v27 = vadd.f32 %v9248_v52, %v4478_v0  ;;  %v11171_v0 = vpack.c.bf16 %v9275_v33, %v9274_v1 }
0x1d72   :  { %v4491_v15 = vadd.f32 %v9248_v52, %v4477_v62  ;;  %11152 = vmatprep.subr.bf16.mxu0 %v11151_v34  ;;  %v9266_v52 = vld [vmem:[%s16443_s3 + $0x130] sm:$0xff]  ;;  %v9253_v62 = vld [vmem:[#allocation2 + $0x7] ss:$0 sm:$0xff] }
0x1d73   :  { %11154 = vmatpush3.bf16.msra.mxu0 %v11151_v34  ;;  %v11155_v58 = vpack.c.bf16 %v9267_v4, %v9266_v52 }
0x1d74   :  { %10260 = vmatprep.mubr.msk.f32.mxu1 %vm226_vm6, %v4491_v15 }
0x1d75   :  { %10261 = vmatmul.mubr.msk.f32.gmra.mrb[106].mxu1 %vm226_vm6, %v4492_v27  ;;  %11156 = vmatprep.subr.bf16.mxu0 %v11155_v58 }
0x1d77   :  { %11158 = vmatpush3.bf16.msra.mxu0 %v11155_v58 }
0x1d78   :  { %11160 = vmatprep.subr.bf16.mxu0 %v11159_v2 }
0x1d7b   :  { %11162 = vmatpush3.bf16.msra.mxu0 %v11159_v2 }
0x1d7c   :  { %11164 = vmatprep.subr.bf16.mxu0 %v11163_v29 }
0x1d7f   :  { %11166 = vmatpush3.bf16.msra.mxu0 %v11163_v29 }
0x1d80   :  { %11168 = vmatprep.subr.bf16.mxu0 %v11167_v12 }
0x1d83   :  { %11170 = vmatpush3.bf16.msra.mxu0 %v11167_v12 }
0x1d84   :  { %11172 = vmatprep.subr.bf16.mxu0 %v11171_v0 }
0x1d87   :  { %11174 = vmatpush3.bf16.msra.mxu0 %v11171_v0 }
0x1d88   :  { %11239 = vmatprep.subr.bf16.mxu0 %v16532_v14 }
0x1e38   :  { %v10256_v15 = vpop.f32.mrb[102].mxu1 }
0x1e39   :  { %v4596_v27 = vadd.f32 %v10256_v15, %v9253_v62  ;;  %v4590_v44 = vpop.f32.mrb[103].mxu1 }
0x1e3a   :  { %v4591_v19 = vadd.f32 %v9253_v62, %v4590_v44 }
0x1e3b   :  { %v4626_v37 = vmul.f32 0.044715, %v4596_v27  ;;  %v4620_v9 = vmul.f32 0.5, %v4596_v27 }
0x1e3c   :  { %v4625_v39 = vmul.f32 0.044715, %v4591_v19 }
0x1e3d   :  { %v4632_v56 = vmul.f32 %v4626_v37, %v4596_v27 }
0x1e3e   :  { %v4631_v34 = vmul.f32 %v4625_v39, %v4591_v19 }
0x1e3f   :  { %v4638_v52 = vmul.f32 %v4632_v56, %v4596_v27 }
0x1e40   :  { %v10259_v4 = vpop.f32.mrb[104].mxu1  ;;  %v4637_v58 = vmul.f32 %v4631_v34, %v4591_v19 }
0x1e41   :  { %v4644_v7 = vadd.f32 %v4638_v52, %v4596_v27  ;;  %v4606_v24 = vadd.f32 %v10259_v4, %v9253_v62  ;;  %v4600_v2 = vpop.f32.mrb[105].mxu1 }
0x1e42   :  { %v4601_v61 = vadd.f32 %v9253_v62, %v4600_v2  ;;  %v4643_v32 = vadd.f32 %v4637_v58, %v4591_v19 }
0x1e43   :  { %v4650_v29 = vmul.f32 0.7978846, %v4644_v7  ;;  %v4628_v10 = vmul.f32 0.044715, %v4606_v24 }
0x1e44   :  { %v4627_v3 = vmul.f32 0.044715, %v4601_v61  ;;  %v4649_v12 = vmul.f32 0.7978846, %v4643_v32 }
0x1e45   :  { %12111 = vtanh.f32 %v4650_v29  ;;  %v4634_v1 = vmul.f32 %v4628_v10, %v4606_v24 }
0x1e46   :  { %v4633_v33 = vmul.f32 %v4627_v3, %v4601_v61  ;;  %12113 = vtanh.f32 %v4649_v12 }
0x1e47   :  { %v4640_v0 = vmul.f32 %v4634_v1, %v4606_v24  ;;  %v4619_v1 = vmul.f32 0.5, %v4591_v19 }
0x1e48   :  { %v10262_v15 = vpop.f32.mrb[106].mxu1  ;;  %v4639_v44 = vmul.f32 %v4633_v33, %v4601_v61 }
0x1e49   :  { %v4616_v37 = vadd.f32 %v10262_v15, %v9253_v62  ;;  %v4610_v39 = vpop.f32.mrb[107].mxu1  ;;  %v4646_v56 = vadd.f32 %v4640_v0, %v4606_v24 }
0x1e4a   :  { %v4611_v34 = vadd.f32 %v9253_v62, %v4610_v39  ;;  %v4645_v52 = vadd.f32 %v4639_v44, %v4601_v61 }
0x1e4b   :  { %v4630_v4 = vmul.f32 0.044715, %v4616_v37  ;;  %v4652_v48 = vmul.f32 0.7978846, %v4646_v56 }
0x1e4c   :  { %v4629_v2 = vmul.f32 0.044715, %v4611_v34  ;;  %v4651_v58 = vmul.f32 0.7978846, %v4645_v52 }
0x1e4d   :  { %v4636_v7 = vmul.f32 %v4630_v4, %v4616_v37  ;;  %12115 = vtanh.f32 %v4652_v48 }
0x1e4e   :  { %v4635_v20 = vmul.f32 %v4629_v2, %v4611_v34  ;;  %12117 = vtanh.f32 %v4651_v58  ;;  %v4621_v2 = vmul.f32 0.5, %v4601_v61  ;;  %v9277_v61 = vld [vmem:[%s16445_s5 + $0xc] ss:$0 sm:$0xff] }
0x1e4f   :  { %v12112_v32 = vpop.eup %12111  ;;  %v4642_v29 = vmul.f32 %v4636_v7, %v4616_v37  ;;  %v4622_v7 = vmul.f32 0.5, %v4606_v24 }
0x1e50   :  { %v12114_v10 = vpop.eup %12113  ;;  %v4662_v3 = vadd.f32 1.0, %v12112_v32  ;;  %v4641_v12 = vmul.f32 %v4635_v20, %v4611_v34 }
0x1e51   :  { %v4661_v33 = vadd.f32 1.0, %v12114_v10  ;;  %v4648_v15 = vadd.f32 %v4642_v29, %v4616_v37  ;;  %v4623_v10 = vmul.f32 0.5, %v4611_v34 }
0x1e52   :  { %v4647_v0 = vadd.f32 %v4641_v12, %v4611_v34  ;;  %v4668_v39 = vmul.f32 %v4662_v3, %v4620_v9  ;;  %v4624_v3 = vmul.f32 0.5, %v4616_v37 }
0x1e53   :  { %v4667_v62 = vmul.f32 %v4661_v33, %v4619_v1  ;;  %v4654_v44 = vmul.f32 0.7978846, %v4648_v15 }
0x1e54   :  { %v4653_v56 = vmul.f32 0.7978846, %v4647_v0 }
0x1e55   :  { %10295 = vmatprep.mubr.f32.mxu0 %v4667_v62  ;;  %12119 = vtanh.f32 %v4654_v44 }
0x1e56   :  { %10296 = vmatmul.mubr.f32.vlgmr.msra.gmra.mrb[90].mxu0 %v4668_v39  ;;  %12121 = vtanh.f32 %v4653_v56 }
0x1e57   :  { %v12116_v48 = vpop.eup %12115 }
0x1e58   :  { %v12118_v52 = vpop.eup %12117  ;;  %v4664_v4 = vadd.f32 1.0, %v12116_v48 }
0x1e59   :  { %v4663_v58 = vadd.f32 1.0, %v12118_v52 }
0x1e5a   :  { %v4670_v19 = vmul.f32 %v4664_v4, %v4622_v7 }
0x1e5b   :  { %v4669_v20 = vmul.f32 %v4663_v58, %v4621_v2 }
0x1e5d   :  { %10298 = vmatprep.mubr.f32.mxu0 %v4669_v20 }
0x1e5e   :  { %10299 = vmatmul.mubr.f32.gmra.mrb[92].mxu0 %v4670_v19 }
0x1e5f   :  { %v12120_v27 = vpop.eup %12119 }
0x1e60   :  { %v12122_v32 = vpop.eup %12121  ;;  %v4666_v29 = vadd.f32 1.0, %v12120_v27 }
0x1e61   :  { %v4665_v9 = vadd.f32 1.0, %v12122_v32 }
0x1e62   :  { %v4672_v1 = vmul.f32 %v4666_v29, %v4624_v3 }
0x1e63   :  { %v4671_v12 = vmul.f32 %v4665_v9, %v4623_v10 }
0x1e65   :  { %10301 = vmatprep.mubr.f32.mxu0 %v4671_v12 }
0x1e66   :  { %10302 = vmatmul.mubr.f32.gmra.mrb[94].mxu0 %v4672_v1 }
0x1f29   :  { %v10297_v33 = vpop.f32.mrb[90].mxu0 }
0x1f2a   :  { %v4770_v24 = vadd.f32 %v10297_v33, %v9277_v61  ;;  %v4764_v15 = vpop.f32.mrb[91].mxu0 }
0x1f2b   :  { %v4765_v0 = vadd.f32 %v9277_v61, %v4764_v15 }
0x1f2c   :  { %v14866_v62 = vadd.f32 %v4770_v24, %v14718_v6 }
0x1f2d   :  { %v14869_v44 = vadd.f32 %v4765_v0, %v14721_v54 }
0x1f2e   :  { %v4802_v37 = vsel %vm226_vm6, %v14866_v62, 0.0 }
0x1f2f   :  { %16607 = vst [vmem:[#allocation15_spill] sm:$0xff] %v14869_v44  ;;  %4803 = vadd.xlane.f32.xlu0 %v4802_v37  ;;  %v4799_v34 = vsel %vm226_vm6, %v14869_v44, 0.0 }
0x1f30   :  { %4800 = vadd.xlane.f32.xlu1 %v4799_v34 }
0x1f31   :  { %v10300_v39 = vpop.f32.mrb[92].mxu0 }
0x1f32   :  { %v4780_v56 = vadd.f32 %v10300_v39, %v9277_v61  ;;  %v4774_v48 = vpop.f32.mrb[93].mxu0 }
0x1f33   :  { %v4775_v52 = vadd.f32 %v9277_v61, %v4774_v48 }
0x1f34   :  { %v14876_v4 = vadd.f32 %v4780_v56, %v14728_v13 }
0x1f35   :  { %v14879_v6 = vadd.f32 %v4775_v52, %v14731_v55 }
0x1f36   :  { %16608 = vst [vmem:[#allocation16_spill] sm:$0xff] %v14876_v4  ;;  %v4808_v54 = vsel %vm226_vm6, %v14876_v4, 0.0 }
0x1f37   :  { %16609 = vst [vmem:[#allocation21_spill] sm:$0xff] %v14879_v6  ;;  %4809 = vadd.xlane.f32.xlu0 %v4808_v54  ;;  %v4805_v2 = vsel %vm226_vm6, %v14879_v6, 0.0 }
0x1f38   :  { %4806 = vadd.xlane.f32.xlu1 %v4805_v2 }
0x1f39   :  { %v10303_v58 = vpop.f32.mrb[94].mxu0 }
0x1f3a   :  { %v4790_v7 = vadd.f32 %v10303_v58, %v9277_v61  ;;  %v4784_v20 = vpop.f32.mrb[95].mxu0 }
0x1f3b   :  { %v4785_v19 = vadd.f32 %v9277_v61, %v4784_v20 }
0x1f3c   :  { %v14886_v27 = vadd.f32 %v4790_v7, %v14738_v43 }
0x1f3d   :  { %v14889_v13 = vadd.f32 %v4785_v19, %v14741_v28 }
0x1f3e   :  { %16610 = vst [vmem:[#allocation22_spill] sm:$0xff] %v14886_v27  ;;  %v4814_v55 = vsel %vm226_vm6, %v14886_v27, 0.0 }
0x1f3f   :  { %16611 = vst [vmem:[#allocation20_spill] sm:$0xff] %v14889_v13  ;;  %4815 = vadd.xlane.f32.xlu0 %v4814_v55  ;;  %v4811_v32 = vsel %vm226_vm6, %v14889_v13, 0.0 }
0x1f40   :  { %4812 = vadd.xlane.f32.xlu1 %v4811_v32 }
0x1fbc   :  { %v4804_v29 = vpop.xlane.xlu0 %4803 }
0x1fbd   :  { %v4818_v10 = vmul.f32 0.03125, %v4804_v29  ;;  %v4801_v9 = vpop.xlane.xlu1 %4800 }
0x1fbe   :  { %v4817_v3 = vmul.f32 0.03125, %v4801_v9 }
0x1fbf   :  { %v14896_v12 = vsub.f32 %v14866_v62, %v4818_v10 }
0x1fc0   :  { %v14899_v43 = vsub.f32 %v14869_v44, %v4817_v3  ;;  %v9282_v3 = vld [vmem:[%s16442_s2 + $0x60] sm:$0xff] }
0x1fc1   :  { %v4830_v28 = vmul.f32 %v14896_v12, %v14896_v12 }
0x1fc2   :  { %v4829_v1 = vmul.f32 %v14899_v43, %v14899_v43 }
0x1fc3   :  { %v4838_v61 = vsel %vm226_vm6, %v4830_v28, 0.0  ;;  %v9283_v28 = vld [vmem:[%s16442_s2 + $0x68] sm:$0xff] }
0x1fc4   :  { %v4810_v33 = vpop.xlane.xlu0 %4809  ;;  %4839 = vadd.xlane.f32.xlu0 %v4838_v61  ;;  %v4835_v24 = vsel %vm226_vm6, %v4829_v1, 0.0  ;;  %v11175_v1 = vpack.c.bf16 %v9283_v28, %v9282_v3  ;;  %v9284_v61 = vld [vmem:[%s16442_s2 + $0x70] sm:$0xff] }
0x1fc5   :  { %v4820_v15 = vmul.f32 0.03125, %v4810_v33  ;;  %4836 = vadd.xlane.f32.xlu1 %v4835_v24  ;;  %v4807_v0 = vpop.xlane.xlu1 %4806  ;;  %v9285_v33 = vld [vmem:[%s16442_s2 + $0x78] sm:$0xff]  ;;  %v9279_v28 = vld [vmem:[%s16445_s5 + $0x17] ss:$0 sm:$0xff] }
0x1fc6   :  { %v4819_v37 = vmul.f32 0.03125, %v4807_v0  ;;  %11176 = vmatprep.subr.bf16.mxu1 %v11175_v1  ;;  %v11179_v24 = vpack.c.bf16 %v9285_v33, %v9284_v61  ;;  %v9300_v0 = vld [vmem:[%s16441_s1 + $0x68] sm:$0xff] }
0x1fc7   :  { %v14908_v34 = vsub.f32 %v14876_v4, %v4820_v15  ;;  %11178 = vmatpush3.bf16.msra.mxu1 %v11175_v1  ;;  %v9299_v15 = vld [vmem:[%s16441_s1 + $0x60] sm:$0xff] }
0x1fc8   :  { %v14911_v39 = vsub.f32 %v14879_v6, %v4819_v37  ;;  %11180 = vmatprep.subr.bf16.mxu1 %v11179_v24  ;;  %v11183_v37 = vpack.c.bf16 %v9300_v0, %v9299_v15 }
0x1fc9   :  { %v4832_v56 = vmul.f32 %v14908_v34, %v14908_v34 }
0x1fca   :  { %v4831_v48 = vmul.f32 %v14911_v39, %v14911_v39 }
0x1fcb   :  { %v4844_v52 = vsel %vm226_vm6, %v4832_v56, 0.0  ;;  %11182 = vmatpush3.bf16.msra.mxu1 %v11179_v24 }
0x1fcc   :  { %4845 = vadd.xlane.f32.xlu0 %v4844_v52  ;;  %v4816_v54 = vpop.xlane.xlu0 %4815  ;;  %v4841_v2 = vsel %vm226_vm6, %v4831_v48, 0.0  ;;  %11184 = vmatprep.subr.bf16.mxu1 %v11183_v37 }
0x1fcd   :  { %v4822_v58 = vmul.f32 0.03125, %v4816_v54  ;;  %4842 = vadd.xlane.f32.xlu1 %v4841_v2  ;;  %v4813_v7 = vpop.xlane.xlu1 %4812 }
0x1fce   :  { %v4821_v20 = vmul.f32 0.03125, %v4813_v7 }
0x1fcf   :  { %v14920_v19 = vsub.f32 %v14886_v27, %v4822_v58 }
0x1fd0   :  { %v14923_v55 = vsub.f32 %v14889_v13, %v4821_v20 }
0x1fd1   :  { %v4834_v32 = vmul.f32 %v14920_v19, %v14920_v19 }
0x1fd2   :  { %v4833_v29 = vmul.f32 %v14923_v55, %v14923_v55 }
0x1fd3   :  { %v4850_v10 = vsel %vm226_vm6, %v4834_v32, 0.0 }
0x1fd4   :  { %4851 = vadd.xlane.f32.xlu0 %v4850_v10  ;;  %v4847_v9 = vsel %vm226_vm6, %v4833_v29, 0.0 }
0x1fd5   :  { %4848 = vadd.xlane.f32.xlu1 %v4847_v9 }
0x2051   :  { %v4840_v56 = vpop.xlane.xlu0 %4839 }
0x2052   :  { %v4854_v48 = vmul.f32 0.03125, %v4840_v56  ;;  %v4837_v52 = vpop.xlane.xlu1 %4836 }
0x2053   :  { %v4853_v54 = vmul.f32 0.03125, %v4837_v52  ;;  %v9281_v52 = vld [vmem:[%s16445_s5 + $0x26] ss:$0 sm:$0xff] }
0x2054   :  { %v4860_v2 = vadd.f32 1e-05, %v4854_v48 }
0x2055   :  { %v4859_v58 = vadd.f32 1e-05, %v4853_v54 }
0x2056   :  { %12123 = vrsqrt.f32 %v4860_v2 }
0x2057   :  { %12125 = vrsqrt.f32 %v4859_v58  ;;  %v9301_v58 = vld [vmem:[%s16441_s1 + $0x70] sm:$0xff] }
0x2059   :  { %v4846_v7 = vpop.xlane.xlu0 %4845 }
0x205a   :  { %v4856_v20 = vmul.f32 0.03125, %v4846_v7  ;;  %v4843_v32 = vpop.xlane.xlu1 %4842 }
0x205b   :  { %v4855_v29 = vmul.f32 0.03125, %v4843_v32 }
0x205c   :  { %v4862_v10 = vadd.f32 1e-05, %v4856_v20 }
0x205d   :  { %v4861_v9 = vadd.f32 1e-05, %v4855_v29 }
0x205e   :  { %12127 = vrsqrt.f32 %v4862_v10 }
0x205f   :  { %12129 = vrsqrt.f32 %v4861_v9 }
0x2060   :  { %v12124_v3 = vpop.eup %12123 }
0x2061   :  { %v12126_v1 = vpop.eup %12125  ;;  %v4872_v61 = vmul.f32 %v12124_v3, %v14896_v12  ;;  %v4852_v33 = vpop.xlane.xlu0 %4851  ;;  %v9302_v12 = vld [vmem:[%s16441_s1 + $0x78] sm:$0xff] }
0x2062   :  { %v4858_v24 = vmul.f32 0.03125, %v4852_v33  ;;  %v4849_v15 = vpop.xlane.xlu1 %4848  ;;  %v4871_v0 = vmul.f32 %v12126_v1, %v14899_v43  ;;  %v11187_v32 = vpack.c.bf16 %v9302_v12, %v9301_v58  ;;  %v9293_v58 = vld [vmem:[%s16446_s6 + $0x30] sm:$0xff] }
0x2063   :  { %v4886_v56 = vmul.f32 %v9279_v28, %v4872_v61  ;;  %v4857_v48 = vmul.f32 0.03125, %v4849_v15 }
0x2064   :  { %v4864_v54 = vadd.f32 1e-05, %v4858_v24  ;;  %v4885_v2 = vmul.f32 %v9279_v28, %v4871_v0 }
0x2065   :  { %v4863_v7 = vadd.f32 1e-05, %v4857_v48  ;;  %v4900_v43 = vadd.f32 %v9281_v52, %v4886_v56 }
0x2066   :  { %12131 = vrsqrt.f32 %v4864_v54  ;;  %v4899_v20 = vadd.f32 %v9281_v52, %v4885_v2 }
0x2067   :  { %12133 = vrsqrt.f32 %v4863_v7 }
0x2068   :  { %v12128_v29 = vpop.eup %12127  ;;  %10312 = vmatprep.mubr.msk.f32.mxu1 %vm226_vm6, %v4899_v20 }
0x2069   :  { %v12130_v10 = vpop.eup %12129  ;;  %10313 = vmatmul.mubr.msk.f32.vlgmr.msra.gmra.mrb[108].mxu1 %vm226_vm6, %v4900_v43  ;;  %v4874_v9 = vmul.f32 %v12128_v29, %v14908_v34  ;;  %v9295_v29 = vld [vmem:[%s16446_s6 + $0x40] sm:$0xff] }
0x206a   :  { %v4873_v3 = vmul.f32 %v12130_v10, %v14911_v39  ;;  %11186 = vmatpush3.bf16.msra.mxu1 %v11183_v37 }
0x206b   :  { %v4888_v1 = vmul.f32 %v9279_v28, %v4874_v9  ;;  %11188 = vmatprep.subr.bf16.mxu1 %v11187_v32 }
0x206c   :  { %v4887_v61 = vmul.f32 %v9279_v28, %v4873_v3 }
0x206d   :  { %v4902_v24 = vadd.f32 %v9281_v52, %v4888_v1  ;;  %v9296_v1 = vld [vmem:[%s16446_s6 + $0x48] sm:$0xff] }
0x206e   :  { %v4901_v33 = vadd.f32 %v9281_v52, %v4887_v61  ;;  %11190 = vmatpush3.bf16.msra.mxu1 %v11187_v32 }
0x206f   :  { %11191 = vmatprep.subr.bf16.mxu1 %v16532_v14 }
0x2070   :  { %v12132_v15 = vpop.eup %12131  ;;  %10315 = vmatprep.mubr.msk.f32.mxu1 %vm226_vm6, %v4901_v33 }
0x2071   :  { %v12134_v0 = vpop.eup %12133  ;;  %10316 = vmatmul.mubr.msk.f32.gmra.mrb[110].mxu1 %vm226_vm6, %v4902_v24  ;;  %v4876_v56 = vmul.f32 %v12132_v15, %v14920_v19  ;;  %v9286_v19 = vld [vmem:[#allocation2 + $0x3] ss:$0 sm:$0xff] }
0x2072   :  { %v4875_v34 = vmul.f32 %v12134_v0, %v14923_v55 }
0x2073   :  { %v4890_v39 = vmul.f32 %v9279_v28, %v4876_v56  ;;  %v9297_v56 = vld [vmem:[%s16446_s6 + $0x50] sm:$0xff] }
0x2074   :  { %v4889_v37 = vmul.f32 %v9279_v28, %v4875_v34  ;;  %v9294_v28 = vld [vmem:[%s16446_s6 + $0x38] sm:$0xff] }
0x2075   :  { %v4904_v54 = vadd.f32 %v9281_v52, %v4890_v39  ;;  %v9304_v39 = vld [vmem:[%s16445_s5 + $0x3] ss:$0 sm:$0xff] }
0x2076   :  { %v4903_v48 = vadd.f32 %v9281_v52, %v4889_v37 }
0x2078   :  { %10318 = vmatprep.mubr.msk.f32.mxu1 %vm226_vm6, %v4903_v48 }
0x2079   :  { %10319 = vmatmul.mubr.msk.f32.gmra.mrb[112].mxu1 %vm226_vm6, %v4904_v54 }
0x207a   :  { %10329 = vmatprep.mubr.msk.f32.mxu1 %vm226_vm6, %v4899_v20 }
0x207d   :  { %10330 = vmatmul.mubr.msk.f32.vlgmr.msra.gmra.mrb[114].mxu1 %vm226_vm6, %v4900_v43 }
0x207e   :  { %10332 = vmatprep.mubr.msk.f32.mxu1 %vm226_vm6, %v4901_v33 }
0x2081   :  { %10333 = vmatmul.mubr.msk.f32.gmra.mrb[116].mxu1 %vm226_vm6, %v4902_v24  ;;  %v9298_v24 = vld [vmem:[%s16446_s6 + $0x58] sm:$0xff] }
0x2082   :  { %10335 = vmatprep.mubr.msk.f32.mxu1 %vm226_vm6, %v4903_v48 }
0x2085   :  { %10336 = vmatmul.mubr.msk.f32.gmra.mrb[118].mxu1 %vm226_vm6, %v4904_v54 }
0x2086   :  { %5445 = vmatprep.mubr.f32.mxu1 %v16560_v5 }
0x213c   :  { %v10314_v55 = vpop.f32.mrb[108].mxu1 }
0x213d   :  { %v5008_v52 = vadd.f32 %v10314_v55, %v9286_v19  ;;  %v5002_v2 = vpop.f32.mrb[109].mxu1 }
0x213e   :  { %v5003_v12 = vadd.f32 %v9286_v19, %v5002_v2 }
0x213f   :  { %v14987_v7 = vmul.f32 %v9294_v28, %v5008_v52 }
0x2140   :  { %v14989_v20 = vmul.f32 %v9293_v58, %v5003_v12  ;;  %v12412_v58 = vld [vmem:[%s16449_s9 + $0x38] sm:$0xff] }
0x2141   :  { %5052 = vrot.lane.b32.xlu0 %v14987_v7, %s12565_s21 }
0x2142   :  { %5050 = vrot.lane.b32.xlu1 %v14989_v20, %s12565_s21 }
0x2144   :  { %v10317_v43 = vpop.f32.mrb[110].mxu1 }
0x2145   :  { %v5012_v32 = vpop.f32.mrb[111].mxu1  ;;  %v5018_v9 = vadd.f32 %v10317_v43, %v9286_v19  ;;  %v12413_v43 = vld [vmem:[%s16449_s9 + $0x68] sm:$0xff] }
0x2146   :  { %v5013_v10 = vadd.f32 %v9286_v19, %v5012_v32 }
0x2147   :  { %v15005_v61 = vmul.f32 %v9296_v1, %v5018_v9  ;;  %v12415_v9 = vld [vmem:[%s16449_s9 + $0x30] sm:$0xff] }
0x2148   :  { %v14998_v3 = vmul.f32 %v9295_v29, %v5013_v10  ;;  %v12414_v29 = vld [vmem:[%s16449_s9] sm:$0xff] }
0x214a   :  { %5054 = vrot.lane.b32.xlu1 %v14998_v3, %s12565_s21 }
0x214c   :  { %v10320_v33 = vpop.f32.mrb[112].mxu1 }
0x214d   :  { %v5028_v15 = vadd.f32 %v10320_v33, %v9286_v19  ;;  %v5022_v0 = vpop.f32.mrb[113].mxu1  ;;  %v12416_v33 = vld [vmem:[%s16449_s9 + $0x60] sm:$0xff] }
0x214e   :  { %v5023_v34 = vadd.f32 %v9286_v19, %v5022_v0  ;;  %5056 = vrot.lane.b32.xlu1 %v15005_v61, %s12565_s21  ;;  %v12411_v19 = vld [vmem:[%s16449_s9 + $0x8] sm:$0xff]  ;;  %v12417_v0 = vld [vmem:[%s16449_s9 + $0x98] sm:$0xff] }
0x214f   :  { %v15018_v37 = vmul.f32 %v9298_v24, %v5028_v15 }
0x2150   :  { %v15020_v48 = vmul.f32 %v9297_v56, %v5023_v34  ;;  %v10331_v54 = vpop.f32.mrb[114].mxu1  ;;  %v12418_v34 = vld [vmem:[%s16449_s9 + $0x90] sm:$0xff] }
0x2151   :  { %v5159_v55 = vadd.f32 %v10331_v54, %v9304_v39  ;;  %v5153_v28 = vpop.f32.mrb[115].mxu1 }
0x2152   :  { %v5154_v52 = vadd.f32 %v9304_v39, %v5153_v28  ;;  %5060 = vrot.lane.b32.xlu1 %v15018_v37, %s12565_s21  ;;  %5058 = vrot.lane.b32.xlu0 %v15020_v48, %s12565_s21 }
0x2153   :  { %v5207_v2 = vmul.f32 %v12411_v19, %v5159_v55  ;;  %v15032_v12 = vmul.f32 %v12412_v58, %v5159_v55  ;;  %v15037_v32 = vmul.f32 %v12413_v43, %v5159_v55  ;;  %v15055_v56 = vmul.f32 %v12417_v0, %v5159_v55  ;;  %v12419_v55 = vld [vmem:[%s16449_s9 + $0x18] sm:$0xff] }
0x2154   :  { %v5206_v10 = vmul.f32 %v12414_v29, %v5154_v52  ;;  %v15045_v1 = vmul.f32 %v12415_v9, %v5154_v52  ;;  %v15050_v24 = vmul.f32 %v12416_v33, %v5154_v52  ;;  %v10334_v15 = vpop.f32.mrb[116].mxu1  ;;  %v15060_v54 = vmul.f32 %v12418_v34, %v5154_v52  ;;  %v12420_v52 = vld [vmem:[%s16449_s9 + $0x48] sm:$0xff] }
0x2155   :  { %v5169_v28 = vadd.f32 %v10334_v15, %v9304_v39  ;;  %v5163_v19 = vpop.f32.mrb[117].mxu1  ;;  %v12424_v15 = vld [vmem:[%s16449_s9 + $0x70] sm:$0xff] }
0x2156   :  { %v5164_v58 = vadd.f32 %v9304_v39, %v5163_v19  ;;  %v11240_v43 = vpack.c.bf16 %v5207_v2, %v5206_v10  ;;  %v11249_v29 = vpack.c.bf16 %v15032_v12, %v15045_v1  ;;  %v11258_v9 = vpack.c.bf16 %v15037_v32, %v15050_v24  ;;  %v12421_v2 = vld [vmem:[%s16449_s9 + $0x78] sm:$0xff]  ;;  %v12422_v12 = vld [vmem:[%s16449_s9 + $0x10] sm:$0xff]  ;;  %v12423_v1 = vld [vmem:[%s16449_s9 + $0x40] sm:$0xff] }
0x2157   :  { %v5209_v33 = vmul.f32 %v12419_v55, %v5169_v28  ;;  %v5215_v0 = vmul.f32 %v12420_v52, %v5169_v28  ;;  %v5221_v10 = vmul.f32 %v12421_v2, %v5169_v28  ;;  %v12425_v55 = vld [vmem:[%s16449_s9 + $0xa8] sm:$0xff]  ;;  %v12426_v2 = vld [vmem:[%s16449_s9 + $0xa0] sm:$0xff] }
0x2158   :  { %v5208_v32 = vmul.f32 %v12422_v12, %v5164_v58  ;;  %v5214_v24 = vmul.f32 %v12423_v1, %v5164_v58  ;;  %v5220_v34 = vmul.f32 %v12424_v15, %v5164_v58  ;;  %v10337_v19 = vpop.f32.mrb[118].mxu1  ;;  %11241 = vmatpush1.bf16.msra.mxu0 %v11240_v43  ;;  %v5227_v52 = vmul.f32 %v12425_v55, %v5169_v28  ;;  %v12427_v28 = vld [vmem:[%s16449_s9 + $0x28] sm:$0xff] }
0x2159   :  { %v5226_v12 = vmul.f32 %v12426_v2, %v5164_v58  ;;  %v5179_v13 = vadd.f32 %v10337_v19, %v9304_v39  ;;  %v5173_v27 = vpop.f32.mrb[119].mxu1  ;;  %11242 = vmatprep.subr.bf16.mxu0 %v16532_v14  ;;  %v11267_v1 = vpack.c.bf16 %v15055_v56, %v15060_v54  ;;  %v12428_v58 = vld [vmem:[%s16449_s9 + $0x58] sm:$0xff]  ;;  %v12429_v2 = vld [vmem:[%s16449_s9 + $0x88] sm:$0xff]  ;;  %v12431_v56 = vld [vmem:[%s16449_s9 + $0x20] sm:$0xff] }
0x215a   :  { %v5174_v15 = vadd.f32 %v9304_v39, %v5173_v27  ;;  %v11243_v6 = vpack.c.bf16 %v5209_v33, %v5208_v32  ;;  %v11252_v43 = vpack.c.bf16 %v5215_v0, %v5214_v24  ;;  %v11261_v4 = vpack.c.bf16 %v5221_v10, %v5220_v34  ;;  %v12430_v27 = vld [vmem:[%s16449_s9 + $0xb8] sm:$0xff]  ;;  %v12432_v33 = vld [vmem:[%s16449_s9 + $0x50] sm:$0xff]  ;;  %v12433_v10 = vld [vmem:[%s16449_s9 + $0x80] sm:$0xff] }
0x215b   :  { %v5211_v55 = vmul.f32 %v12427_v28, %v5179_v13  ;;  %v5217_v19 = vmul.f32 %v12428_v58, %v5179_v13  ;;  %v5223_v44 = vmul.f32 %v12429_v2, %v5179_v13  ;;  %v5229_v39 = vmul.f32 %v12430_v27, %v5179_v13  ;;  %v12434_v24 = vld [vmem:[%s16449_s9 + $0xb0] sm:$0xff] }
0x215c   :  { %v5210_v54 = vmul.f32 %v12431_v56, %v5174_v15  ;;  %v5216_v0 = vmul.f32 %v12432_v33, %v5174_v15  ;;  %v5222_v32 = vmul.f32 %v12433_v10, %v5174_v15  ;;  %v5228_v13 = vmul.f32 %v12434_v24, %v5174_v15  ;;  %11244 = vmatpush1.bf16.msra.mxu0 %v11243_v6 }
0x215d   :  { %11245 = vmatprep.subr.bf16.mxu0 %v16532_v14  ;;  %v11270_v34 = vpack.c.bf16 %v5227_v52, %v5226_v12 }
0x215e   :  { %v11246_v28 = vpack.c.bf16 %v5211_v55, %v5210_v54  ;;  %v11255_v58 = vpack.c.bf16 %v5217_v19, %v5216_v0  ;;  %v11264_v2 = vpack.c.bf16 %v5223_v44, %v5222_v32  ;;  %v11273_v27 = vpack.c.bf16 %v5229_v39, %v5228_v13 }
0x2160   :  { %11247 = vmatpush1.bf16.msra.mxu0 %v11246_v28 }
0x2161   :  { %11248 = vmatprep.subr.bf16.mxu0 %v16532_v14 }
0x2164   :  { %11250 = vmatpush1.bf16.msra.mxu0 %v11249_v29 }
0x2165   :  { %11251 = vmatprep.subr.bf16.mxu0 %v16532_v14 }
0x2168   :  { %11253 = vmatpush1.bf16.msra.mxu0 %v11252_v43 }
0x2169   :  { %11254 = vmatprep.subr.bf16.mxu0 %v16532_v14 }
0x216c   :  { %11256 = vmatpush1.bf16.msra.mxu0 %v11255_v58 }
0x216d   :  { %11257 = vmatprep.subr.bf16.mxu0 %v16532_v14 }
0x2170   :  { %11259 = vmatpush1.bf16.msra.mxu0 %v11258_v9 }
0x2171   :  { %11260 = vmatprep.subr.bf16.mxu0 %v16532_v14 }
0x2174   :  { %11262 = vmatpush1.bf16.msra.mxu0 %v11261_v4 }
0x2175   :  { %11263 = vmatprep.subr.bf16.mxu0 %v16532_v14 }
0x2178   :  { %11265 = vmatpush1.bf16.msra.mxu0 %v11264_v2 }
0x2179   :  { %11266 = vmatprep.subr.bf16.mxu0 %v16532_v14 }
0x217c   :  { %11268 = vmatpush1.bf16.msra.mxu0 %v11267_v1 }
0x217d   :  { %11269 = vmatprep.subr.bf16.mxu0 %v16532_v14 }
0x2180   :  { %11271 = vmatpush1.bf16.msra.mxu0 %v11270_v34 }
0x2181   :  { %11272 = vmatprep.subr.bf16.mxu0 %v16532_v14 }
0x2184   :  { %11274 = vmatpush1.bf16.msra.mxu0 %v11273_v27 }
0x2185   :  { %11275 = vmatprep.subr.bf16.mxu0 %v16532_v14 }
0x21b3   :  { %v5053_v44 = vpop.permute.xlu0 %5052 }
0x21b4   :  { %v15129_v6 = vadd.f32 %v5053_v44, %v14987_v7  ;;  %v5051_v29 = vpop.permute.xlu1 %5050 }
0x21b5   :  { %v15132_v4 = vadd.f32 %v5051_v29, %v14989_v20 }
0x21b6   :  { %v5183_v9 = vmul.f32 %v15129_v6, %v13088_v40  ;;  %v5189_v54 = vmul.f32 %v15129_v6, %v16570_v23  ;;  %v5195_v28 = vmul.f32 %v15129_v6, %v16577_v60 }
0x21b7   :  { %v5182_v52 = vmul.f32 %v15132_v4, %v13080_v31  ;;  %v5188_v56 = vmul.f32 %v15132_v4, %v16569_v30  ;;  %v5194_v44 = vmul.f32 %v15132_v4, %v16579_v36 }
0x21b9   :  { %v11787_v12 = vpack.i.bf16 %v5183_v9, %v5182_v52  ;;  %v11802_v32 = vpack.i.bf16 %v5189_v54, %v5188_v56  ;;  %v5200_v9 = vmul.f32 %v15132_v4, %v16594_v50  ;;  %v5201_v52 = vmul.f32 %v15129_v6, %v16595_v18  ;;  %v16613_v54 = vld [vmem:[#allocation35_spill] sm:$0xff] }
0x21bb   :  { %11788 = vrot.lane.b32.xlu0 %v11787_v12, %s12566_s24 }
0x21bc   :  { %v5055_v1 = vpop.permute.xlu1 %5054 }
0x21bd   :  { %v15140_v15 = vadd.f32 %v5055_v1, %v14998_v3  ;;  %v11817_v1 = vpack.i.bf16 %v5195_v28, %v5194_v44 }
0x21bf   :  { %v5184_v20 = vmul.f32 %v15140_v15, %v13101_v35  ;;  %v5190_v34 = vmul.f32 %v15140_v15, %v16576_v45  ;;  %v5196_v29 = vmul.f32 %v15140_v15, %v16580_v42 }
0x21c0   :  { %v5057_v43 = vpop.permute.xlu1 %5056 }
0x21c1   :  { %v15143_v7 = vadd.f32 %v5057_v43, %v15005_v61 }
0x21c3   :  { %v5185_v55 = vmul.f32 %v15143_v7, %v16568_v59  ;;  %v5197_v27 = vmul.f32 %v15143_v7, %v16578_v38 }
0x21c4   :  { %v5059_v19 = vpop.permute.xlu0 %5058  ;;  %v5061_v39 = vpop.permute.xlu1 %5060 }
0x21c5   :  { %v15154_v3 = vadd.f32 %v5059_v19, %v15020_v48  ;;  %v15157_v61 = vadd.f32 %v5061_v39, %v15018_v37  ;;  %v11792_v33 = vpack.i.bf16 %v5185_v55, %v5184_v20  ;;  %v5191_v37 = vmul.f32 %v15143_v7, %v16575_v21  ;;  %v16612_v39 = vld [vmem:[#allocation34_spill] sm:$0xff] }
0x21c6   :  { %v11822_v12 = vpack.i.bf16 %v5197_v27, %v5196_v29  ;;  %v11832_v55 = vpack.i.bf16 %v5201_v52, %v5200_v9 }
0x21c7   :  { %11793 = vrot.lane.b32.xlu1 %v11792_v33, %s12566_s24  ;;  %v5186_v0 = vmul.f32 %v15154_v3, %v16571_v51  ;;  %v5187_v10 = vmul.f32 %v15157_v61, %v16572_v63  ;;  %v5192_v13 = vmul.f32 %v15154_v3, %v16573_v25  ;;  %v5193_v48 = vmul.f32 %v15157_v61, %v16574_v26 }
0x21c8   :  { %v11807_v2 = vpack.i.bf16 %v5191_v37, %v5190_v34  ;;  %v5198_v43 = vmul.f32 %v15154_v3, %v16596_v22  ;;  %v5199_v20 = vmul.f32 %v15157_v61, %v16597_v41  ;;  %v5204_v56 = vmul.f32 %v15154_v3, %v16612_v39 }
0x21c9   :  { %v11797_v24 = vpack.i.bf16 %v5187_v10, %v5186_v0  ;;  %v11812_v58 = vpack.i.bf16 %v5193_v48, %v5192_v13  ;;  %v5205_v33 = vmul.f32 %v15157_v61, %v16613_v54  ;;  %v16614_v0 = vld [vmem:[#allocation33_spill] sm:$0xff] }
0x21ca   :  { %v11827_v19 = vpack.i.bf16 %v5199_v20, %v5198_v43  ;;  %v5203_v10 = vmul.f32 %v15143_v7, %v16614_v0 }
0x21cb   :  { %11803 = vrot.lane.b32.xlu1 %v11802_v32, %s12566_s24  ;;  %11798 = vrot.lane.b32.xlu0 %v11797_v24, %s12566_s24  ;;  %v16615_v32 = vld [vmem:[#allocation32_spill] sm:$0xff]  ;;  %v11842_v13 = vpack.i.bf16 %v5205_v33, %v5204_v56 }
0x21cc   :  { %v5202_v24 = vmul.f32 %v15140_v15, %v16615_v32 }
0x21ce   :  { %v11837_v48 = vpack.i.bf16 %v5203_v10, %v5202_v24 }
0x21cf   :  { %11813 = vrot.lane.b32.xlu1 %v11812_v58, %s12566_s24  ;;  %11808 = vrot.lane.b32.xlu0 %v11807_v2, %s12566_s24 }
0x21d3   :  { %11823 = vrot.lane.b32.xlu1 %v11822_v12, %s12566_s24  ;;  %11818 = vrot.lane.b32.xlu0 %v11817_v1, %s12566_s24 }
0x21d7   :  { %11833 = vrot.lane.b32.xlu1 %v11832_v55, %s12566_s24  ;;  %11828 = vrot.lane.b32.xlu0 %v11827_v19, %s12566_s24 }
0x21db   :  { %11843 = vrot.lane.b32.xlu1 %v11842_v13, %s12566_s24  ;;  %11838 = vrot.lane.b32.xlu0 %v11837_v48, %s12566_s24 }
0x222d   :  { %v11789_v37 = vpop.permute.xlu0 %11788 }
0x222e   :  { %v11791_v34 = vunpack.i.h.bf16 %v11789_v37  ;;  %v11790_v28 = vunpack.i.l.bf16 %v11789_v37 }
0x2230   :  { %v11192_v58 = vpack.c.bf16 %v11791_v34, %v11790_v28 }
0x2232   :  { %11194 = vmatpush1.bf16.xpose.msk.msra.mxu1 %vm13186_vm7, %v11192_v58 }
0x2233   :  { %11195 = vmatprep.subr.bf16.mxu1 %v16532_v14 }
0x2239   :  { %v11794_v27 = vpop.permute.xlu1 %11793 }
0x223a   :  { %v11796_v44 = vunpack.i.h.bf16 %v11794_v27  ;;  %v11795_v29 = vunpack.i.l.bf16 %v11794_v27 }
0x223c   :  { %v11196_v9 = vpack.c.bf16 %v11796_v44, %v11795_v29 }
0x223d   :  { %v11799_v52 = vpop.permute.xlu0 %11798  ;;  %v11804_v20 = vpop.permute.xlu1 %11803 }
0x223e   :  { %11198 = vmatpush1.bf16.xpose.msk.msra.mxu1 %vm13186_vm7, %v11196_v9  ;;  %v11801_v12 = vunpack.i.h.bf16 %v11799_v52  ;;  %v11800_v1 = vunpack.i.l.bf16 %v11799_v52  ;;  %v11806_v55 = vunpack.i.h.bf16 %v11804_v20  ;;  %v11805_v19 = vunpack.i.l.bf16 %v11804_v20 }
0x223f   :  { %11199 = vmatprep.subr.bf16.mxu1 %v16532_v14 }
0x2240   :  { %v11200_v43 = vpack.c.bf16 %v11801_v12, %v11800_v1  ;;  %v11204_v56 = vpack.c.bf16 %v11806_v55, %v11805_v19 }
0x2241   :  { %v11809_v33 = vpop.permute.xlu0 %11808  ;;  %v11814_v48 = vpop.permute.xlu1 %11813 }
0x2242   :  { %v11811_v10 = vunpack.i.h.bf16 %v11809_v33  ;;  %v11810_v24 = vunpack.i.l.bf16 %v11809_v33  ;;  %v11816_v37 = vunpack.i.h.bf16 %v11814_v48  ;;  %v11815_v34 = vunpack.i.l.bf16 %v11814_v48 }
0x2244   :  { %v11208_v13 = vpack.c.bf16 %v11811_v10, %v11810_v24  ;;  %v11212_v28 = vpack.c.bf16 %v11816_v37, %v11815_v34 }
0x2245   :  { %v11819_v58 = vpop.permute.xlu0 %11818  ;;  %v11824_v9 = vpop.permute.xlu1 %11823 }
0x2246   :  { %11202 = vmatpush1.bf16.xpose.msk.msra.mxu1 %vm13186_vm7, %v11200_v43  ;;  %v11821_v27 = vunpack.i.h.bf16 %v11819_v58  ;;  %v11820_v44 = vunpack.i.l.bf16 %v11819_v58  ;;  %v11826_v52 = vunpack.i.h.bf16 %v11824_v9  ;;  %v11825_v12 = vunpack.i.l.bf16 %v11824_v9 }
0x2247   :  { %11203 = vmatprep.subr.bf16.mxu1 %v16532_v14 }
0x2248   :  { %v11216_v29 = vpack.c.bf16 %v11821_v27, %v11820_v44  ;;  %v11220_v1 = vpack.c.bf16 %v11826_v52, %v11825_v12 }
0x2249   :  { %v11829_v43 = vpop.permute.xlu0 %11828 }
0x224a   :  { %v11831_v20 = vunpack.i.h.bf16 %v11829_v43  ;;  %v11830_v55 = vunpack.i.l.bf16 %v11829_v43 }
0x224c   :  { %v11224_v19 = vpack.c.bf16 %v11831_v20, %v11830_v55 }
0x224e   :  { %11206 = vmatpush1.bf16.xpose.msk.msra.mxu1 %vm13186_vm7, %v11204_v56  ;;  %v11834_v56 = vpop.permute.xlu1 %11833 }
0x224f   :  { %11207 = vmatprep.subr.bf16.mxu1 %v16532_v14  ;;  %v11836_v33 = vunpack.i.h.bf16 %v11834_v56  ;;  %v11835_v10 = vunpack.i.l.bf16 %v11834_v56 }
0x2251   :  { %v11228_v24 = vpack.c.bf16 %v11836_v33, %v11835_v10  ;;  %v9315_v33 = vld [vmem:[%s16447_s7 + $0x80] sm:$0xff] }
0x2256   :  { %11210 = vmatpush1.bf16.xpose.msk.msra.mxu1 %vm13186_vm7, %v11208_v13  ;;  %v11839_v13 = vpop.permute.xlu0 %11838 }
0x2257   :  { %11211 = vmatprep.subr.bf16.mxu1 %v16532_v14  ;;  %v11841_v48 = vunpack.i.h.bf16 %v11839_v13  ;;  %v11840_v37 = vunpack.i.l.bf16 %v11839_v13 }
0x2259   :  { %v11232_v34 = vpack.c.bf16 %v11841_v48, %v11840_v37 }
0x225e   :  { %11214 = vmatpush1.bf16.xpose.msk.msra.mxu1 %vm13186_vm7, %v11212_v28  ;;  %v11844_v28 = vpop.permute.xlu1 %11843 }
0x225f   :  { %11215 = vmatprep.subr.bf16.mxu1 %v16532_v14  ;;  %v11846_v58 = vunpack.i.h.bf16 %v11844_v28  ;;  %v11845_v27 = vunpack.i.l.bf16 %v11844_v28 }
0x2261   :  { %v11236_v44 = vpack.c.bf16 %v11846_v58, %v11845_v27  ;;  %v9317_v58 = vld [vmem:[%s16447_s7 + $0x90] sm:$0xff] }
0x2266   :  { %11218 = vmatpush1.bf16.xpose.msk.msra.mxu1 %vm13186_vm7, %v11216_v29 }
0x2267   :  { %11219 = vmatprep.subr.bf16.mxu1 %v16532_v14 }
0x226e   :  { %11222 = vmatpush1.bf16.xpose.msk.msra.mxu1 %vm13186_vm7, %v11220_v1 }
0x226f   :  { %11223 = vmatprep.subr.bf16.mxu1 %v16532_v14 }
0x2276   :  { %11226 = vmatpush1.bf16.xpose.msk.msra.mxu1 %vm13186_vm7, %v11224_v19  ;;  %v9316_v19 = vld [vmem:[%s16447_s7 + $0x88] sm:$0xff] }
0x2277   :  { %11227 = vmatprep.subr.bf16.mxu1 %v16532_v14 }
0x227e   :  { %11230 = vmatpush1.bf16.xpose.msk.msra.mxu1 %vm13186_vm7, %v11228_v24 }
0x227f   :  { %11231 = vmatprep.subr.bf16.mxu1 %v16532_v14 }
0x2286   :  { %11234 = vmatpush1.bf16.xpose.msk.msra.mxu1 %vm13186_vm7, %v11232_v34  ;;  %v9318_v34 = vld [vmem:[%s16447_s7 + $0x98] sm:$0xff] }
0x2287   :  { %11235 = vmatprep.subr.bf16.mxu1 %v16532_v14 }
0x228e   :  { %11238 = vmatpush1.bf16.xpose.msk.msra.mxu1 %vm13186_vm7, %v11236_v44 }
0x2295   :  { %9347 = vmatmul.mubr.msk.f32.vlgmr.msra.gmra.mrb[120].mxu1 %vm226_vm6, %v15132_v4  ;;  %v9311_v4 = vld [vmem:[%s16447_s7 + $0x60] sm:$0xff] }
0x2296   :  { %5451 = vmatprep.mubr.f32.mxu1 %v16560_v5 }
0x2299   :  { %9348 = vmatmul.mubr.msk.f32.gmra.mrb[122].mxu1 %vm226_vm6, %v15129_v6  ;;  %v9312_v6 = vld [vmem:[%s16447_s7 + $0x68] sm:$0xff] }
0x229a   :  { %5457 = vmatprep.mubr.f32.mxu1 %v16560_v5 }
0x229d   :  { %9349 = vmatmul.mubr.msk.f32.gmra.mrb[124].mxu1 %vm226_vm6, %v15140_v15 }
0x229e   :  { %5463 = vmatprep.mubr.f32.mxu1 %v16560_v5 }
0x22a1   :  { %9350 = vmatmul.mubr.msk.f32.gmra.mrb[126].mxu1 %vm226_vm6, %v15143_v7 }
0x22a2   :  { %5469 = vmatprep.mubr.f32.mxu1 %v16560_v5 }
0x22a5   :  { %9351 = vmatmul.mubr.msk.f32.gmra.mrb[128].mxu1 %vm226_vm6, %v15154_v3  ;;  %v9314_v3 = vld [vmem:[%s16447_s7 + $0x78] sm:$0xff] }
0x22a6   :  { %5475 = vmatprep.mubr.f32.mxu1 %v16560_v5 }
0x22a9   :  { %9352 = vmatmul.mubr.msk.f32.gmra.mrb[130].mxu1 %vm226_vm6, %v15157_v61  ;;  %v9313_v61 = vld [vmem:[%s16447_s7 + $0x70] sm:$0xff] }
0x2368   :  { %v5447_v15 = vpop.f32.mrb[120].mxu1 }
0x2369   :  { %v5449_v7 = vpop.f32.mrb[121].mxu1  ;;  %v5448_v9 = vadd.f32 %v9311_v4, %v5447_v15 }
0x236a   :  { %v5450_v29 = vadd.f32 %v9312_v6, %v5449_v7  ;;  %v9320_v7 = vld [vmem:[%s16447_s7 + $0xa8] sm:$0xff] }
0x236c   :  { %v5482_v52 = vsel %vm1001_vm8, %v5450_v29, -inf  ;;  %v5453_v12 = vpop.f32.mrb[122].mxu1 }
0x236d   :  { %v5483_v1 = vmax.f32 %v5448_v9, %v5482_v52  ;;  %v5455_v43 = vpop.f32.mrb[123].mxu1  ;;  %v5454_v55 = vadd.f32 %v9313_v61, %v5453_v12  ;;  %v9319_v52 = vld [vmem:[%s16447_s7 + $0xa0] sm:$0xff] }
0x236e   :  { %v5456_v20 = vadd.f32 %v9314_v3, %v5455_v43 }
0x236f   :  { %5484 = vmax.xlane.f32.xlu0 %v5483_v1 }
0x2370   :  { %v5486_v56 = vsel %vm1001_vm8, %v5456_v20, -inf  ;;  %v5459_v10 = vpop.f32.mrb[124].mxu1 }
0x2371   :  { %v5487_v24 = vmax.f32 %v5454_v55, %v5486_v56  ;;  %v5461_v13 = vpop.f32.mrb[125].mxu1  ;;  %v5460_v37 = vadd.f32 %v9315_v33, %v5459_v10  ;;  %v9322_v56 = vld [vmem:[%s16447_s7 + $0xb8] sm:$0xff]  ;;  %v9321_v10 = vld [vmem:[%s16447_s7 + $0xb0] sm:$0xff] }
0x2372   :  { %v5462_v48 = vadd.f32 %v9316_v19, %v5461_v13 }
0x2373   :  { %5488 = vmax.xlane.f32.xlu1 %v5487_v24 }
0x2374   :  { %v5490_v28 = vsel %vm1001_vm8, %v5462_v48, -inf  ;;  %v5465_v27 = vpop.f32.mrb[126].mxu1 }
0x2375   :  { %v5491_v44 = vmax.f32 %v5460_v37, %v5490_v28  ;;  %v5467_v6 = vpop.f32.mrb[127].mxu1  ;;  %v5466_v15 = vadd.f32 %v9317_v58, %v5465_v27 }
0x2376   :  { %v5468_v4 = vadd.f32 %v9318_v34, %v5467_v6 }
0x2377   :  { %5492 = vmax.xlane.f32.xlu0 %v5491_v44 }
0x2378   :  { %v5494_v3 = vsel %vm1001_vm8, %v5468_v4, -inf  ;;  %v5471_v61 = vpop.f32.mrb[128].mxu1 }
0x2379   :  { %v5495_v12 = vmax.f32 %v5466_v15, %v5494_v3  ;;  %v5473_v1 = vpop.f32.mrb[129].mxu1  ;;  %v5472_v19 = vadd.f32 %v9319_v52, %v5471_v61 }
0x237a   :  { %v5474_v43 = vadd.f32 %v9320_v7, %v5473_v1 }
0x237b   :  { %5496 = vmax.xlane.f32.xlu0 %v5495_v12 }
0x237c   :  { %v5498_v33 = vsel %vm1001_vm8, %v5474_v43, -inf  ;;  %v5477_v24 = vpop.f32.mrb[130].mxu1 }
0x237d   :  { %v5499_v13 = vmax.f32 %v5472_v19, %v5498_v33  ;;  %v5479_v34 = vpop.f32.mrb[131].mxu1  ;;  %v5478_v58 = vadd.f32 %v9321_v10, %v5477_v24 }
0x237e   :  { %v5480_v28 = vadd.f32 %v9322_v56, %v5479_v34 }
0x237f   :  { %5500 = vmax.xlane.f32.xlu1 %v5499_v13 }
0x2380   :  { %v5502_v27 = vsel %vm1001_vm8, %v5480_v28, -inf }
0x2381   :  { %v5503_v44 = vmax.f32 %v5478_v58, %v5502_v27 }
0x2383   :  { %5504 = vmax.xlane.f32.xlu0 %v5503_v44 }
0x23fc   :  { %v5485_v6 = vpop.xlane.xlu0 %5484 }
0x23fd   :  { %v5506_v7 = vsub.f32 %v5448_v9, %v5485_v6  ;;  %v5507_v3 = vsub.f32 %v5450_v29, %v5485_v6 }
0x23ff   :  { %v5518_v52 = vmul.f32 1.442695, %v5506_v7  ;;  %v5520_v61 = vmul.f32 1.442695, %v5507_v3 }
0x2400   :  { %v5489_v12 = vpop.xlane.xlu1 %5488 }
0x2401   :  { %12135 = vpow2.f32 %v5518_v52  ;;  %v5508_v1 = vsub.f32 %v5454_v55, %v5489_v12  ;;  %v5509_v2 = vsub.f32 %v5456_v20, %v5489_v12 }
0x2402   :  { %12137 = vpow2.f32 %v5520_v61 }
0x2403   :  { %v5522_v32 = vmul.f32 1.442695, %v5508_v1  ;;  %v5524_v33 = vmul.f32 1.442695, %v5509_v2 }
0x2404   :  { %v5493_v39 = vpop.xlane.xlu0 %5492 }
0x2405   :  { %12139 = vpow2.f32 %v5522_v32  ;;  %v5510_v56 = vsub.f32 %v5460_v37, %v5493_v39  ;;  %v5511_v10 = vsub.f32 %v5462_v48, %v5493_v39 }
0x2406   :  { %12141 = vpow2.f32 %v5524_v33 }
0x2407   :  { %v5526_v24 = vmul.f32 1.442695, %v5510_v56  ;;  %v5528_v13 = vmul.f32 1.442695, %v5511_v10  ;;  %v16617_v10 = vld [vmem:[#allocation39_spill] sm:$0xff] }
0x2408   :  { %v5497_v34 = vpop.xlane.xlu0 %5496 }
0x2409   :  { %12143 = vpow2.f32 %v5526_v24  ;;  %v5512_v9 = vsub.f32 %v5466_v15, %v5497_v34  ;;  %v5513_v29 = vsub.f32 %v5468_v4, %v5497_v34  ;;  %v16618_v24 = vld [vmem:[#allocation40_spill] sm:$0xff]  ;;  %v9365_v34 = vld [vmem:[%s16441_s1 + $0x100] sm:$0xff] }
0x240a   :  { %12145 = vpow2.f32 %v5528_v13  ;;  %v16619_v13 = vld [vmem:[#allocation41_spill] sm:$0xff] }
0x240b   :  { %v15300_v27 = vpop.eup %12135  ;;  %v5530_v44 = vmul.f32 1.442695, %v5512_v9  ;;  %v5532_v55 = vmul.f32 1.442695, %v5513_v29  ;;  %v9366_v9 = vld [vmem:[%s16441_s1 + $0x108] sm:$0xff] }
0x240c   :  { %v12138_v20 = vpop.eup %12137  ;;  %v5501_v6 = vpop.xlane.xlu1 %5500  ;;  %v11311_v29 = vpack.c.bf16 %v9366_v9, %v9365_v34 }
0x240d   :  { %12147 = vpow2.f32 %v5530_v44  ;;  %v5514_v2 = vsub.f32 %v5472_v19, %v5501_v6  ;;  %v5515_v7 = vsub.f32 %v5474_v43, %v5501_v6  ;;  %9353 = vmatprep.mubr.msk.f32.mxu0 %vm1001_vm8, %v12138_v20  ;;  %v9368_v44 = vld [vmem:[%s16441_s1 + $0x118] sm:$0xff] }
0x240e   :  { %12149 = vpow2.f32 %v5532_v55  ;;  %5625 = vmatmul.mubr.f32.vlgmr.msra.gmra.mrb[96].mxu0 %v15300_v27  ;;  %11312 = vmatprep.subr.bf16.mxu1 %v11311_v29 }
0x240f   :  { %v12140_v39 = vpop.eup %12139  ;;  %v5534_v32 = vmul.f32 1.442695, %v5514_v2  ;;  %v5536_v48 = vmul.f32 1.442695, %v5515_v7  ;;  %11277 = vmatpush1.bf16.msra.mxu0 %v13323_v11  ;;  %11314 = vmatpush3.bf16.msra.mxu1 %v11311_v29 }
0x2410   :  { %v12142_v37 = vpop.eup %12141  ;;  %11278 = vmatprep.subr.bf16.mxu0 %v16532_v14  ;;  %v5505_v4 = vpop.xlane.xlu0 %5504 }
0x2411   :  { %12151 = vpow2.f32 %v5534_v32  ;;  %9354 = vmatprep.mubr.msk.f32.mxu0 %vm1001_vm8, %v12142_v37  ;;  %v5516_v15 = vsub.f32 %v5478_v58, %v5505_v4  ;;  %v5517_v19 = vsub.f32 %v5480_v28, %v5505_v4 }
0x2412   :  { %12153 = vpow2.f32 %v5536_v48  ;;  %5630 = vmatmul.mubr.f32.gmra.mrb[98].mxu0 %v12140_v39 }
0x2413   :  { %v12144_v43 = vpop.eup %12143  ;;  %v5538_v3 = vmul.f32 1.442695, %v5516_v15  ;;  %v5540_v52 = vmul.f32 1.442695, %v5517_v19  ;;  %11280 = vmatpush1.bf16.msra.mxu0 %v13332_v53 }
0x2414   :  { %v12146_v61 = vpop.eup %12145  ;;  %11281 = vmatprep.subr.bf16.mxu0 %v16532_v14 }
0x2415   :  { %12155 = vpow2.f32 %v5538_v3  ;;  %9355 = vmatprep.mubr.msk.f32.mxu0 %vm1001_vm8, %v12146_v61 }
0x2416   :  { %12157 = vpow2.f32 %v5540_v52  ;;  %5635 = vmatmul.mubr.f32.gmra.mrb[100].mxu0 %v12144_v43 }
0x2417   :  { %v12148_v12 = vpop.eup %12147  ;;  %11283 = vmatpush1.bf16.msra.mxu0 %v13340_v46 }
0x2418   :  { %v12150_v58 = vpop.eup %12149  ;;  %11284 = vmatprep.subr.bf16.mxu0 %v16532_v14 }
0x2419   :  { %9356 = vmatprep.mubr.msk.f32.mxu0 %vm1001_vm8, %v12150_v58 }
0x241a   :  { %5640 = vmatmul.mubr.f32.gmra.mrb[102].mxu0 %v12148_v12 }
0x241b   :  { %v12152_v28 = vpop.eup %12151  ;;  %11286 = vmatpush1.bf16.msra.mxu0 %v13347_v8 }
0x241c   :  { %v12154_v1 = vpop.eup %12153  ;;  %11287 = vmatprep.subr.bf16.mxu0 %v16532_v14 }
0x241d   :  { %9357 = vmatprep.mubr.msk.f32.mxu0 %vm1001_vm8, %v12154_v1 }
0x241e   :  { %5645 = vmatmul.mubr.f32.gmra.mrb[104].mxu0 %v12152_v28 }
0x241f   :  { %v12156_v33 = vpop.eup %12155  ;;  %11289 = vmatpush1.bf16.msra.mxu0 %v13354_v49 }
0x2420   :  { %v12158_v56 = vpop.eup %12157  ;;  %11290 = vmatprep.subr.bf16.mxu0 %v16532_v14 }
0x2421   :  { %9358 = vmatprep.mubr.msk.f32.mxu0 %vm1001_vm8, %v12158_v56 }
0x2422   :  { %5650 = vmatmul.mubr.f32.gmra.mrb[106].mxu0 %v12156_v33 }
0x2423   :  { %11292 = vmatpush1.bf16.msra.mxu0 %v13361_v17  ;;  %9359 = vmatprep.mubr.msk.f32.mxu0 %vm1001_vm8, %v12138_v20 }
0x2424   :  { %11293 = vmatprep.subr.bf16.mxu0 %v16532_v14 }
0x2427   :  { %11295 = vmatpush1.bf16.msra.mxu0 %v13369_v47 }
0x2428   :  { %11296 = vmatprep.subr.bf16.mxu0 %v16532_v14 }
0x242b   :  { %11298 = vmatpush1.bf16.msra.mxu0 %v13375_v57 }
0x242c   :  { %11299 = vmatprep.subr.bf16.mxu0 %v16532_v14 }
0x242f   :  { %11301 = vmatpush1.bf16.msra.mxu0 %v13381_v16 }
0x2430   :  { %11302 = vmatprep.subr.bf16.mxu0 %v16532_v14 }
0x2433   :  { %11304 = vmatpush1.bf16.msra.mxu0 %v16617_v10 }
0x2434   :  { %11305 = vmatprep.subr.bf16.mxu0 %v16532_v14 }
0x2437   :  { %11307 = vmatpush1.bf16.msra.mxu0 %v16618_v24 }
0x2438   :  { %11308 = vmatprep.subr.bf16.mxu0 %v16532_v14 }
0x243b   :  { %11310 = vmatpush1.bf16.msra.mxu0 %v16619_v13 }
0x243e   :  { %5720 = vmatmul.mubr.f32.vlgmr.msra.gmra.mrb[108].mxu0 %v15300_v27  ;;  %v9367_v27 = vld [vmem:[%s16441_s1 + $0x110] sm:$0xff] }
0x243f   :  { %9360 = vmatprep.mubr.msk.f32.mxu0 %vm1001_vm8, %v12142_v37  ;;  %v11315_v55 = vpack.c.bf16 %v9368_v44, %v9367_v27 }
0x2441   :  { %11316 = vmatprep.subr.bf16.mxu1 %v11315_v55 }
0x2442   :  { %5725 = vmatmul.mubr.f32.gmra.mrb[110].mxu0 %v12140_v39  ;;  %11318 = vmatpush3.bf16.msra.mxu1 %v11315_v55 }
0x2443   :  { %9361 = vmatprep.mubr.msk.f32.mxu0 %vm1001_vm8, %v12146_v61 }
0x2446   :  { %5730 = vmatmul.mubr.f32.gmra.mrb[112].mxu0 %v12144_v43 }
0x2447   :  { %9362 = vmatprep.mubr.msk.f32.mxu0 %vm1001_vm8, %v12150_v58 }
0x244a   :  { %5735 = vmatmul.mubr.f32.gmra.mrb[114].mxu0 %v12148_v12 }
0x244b   :  { %9363 = vmatprep.mubr.msk.f32.mxu0 %vm1001_vm8, %v12154_v1 }
0x244e   :  { %5740 = vmatmul.mubr.f32.gmra.mrb[116].mxu0 %v12152_v28 }
0x244f   :  { %9364 = vmatprep.mubr.msk.f32.mxu0 %vm1001_vm8, %v12158_v56 }
0x2452   :  { %5745 = vmatmul.mubr.f32.gmra.mrb[118].mxu0 %v12156_v33 }
0x24e1   :  { %v5626_v20 = vpop.f32.mrb[96].mxu0 }
0x24e2   :  { %v5628_v6 = vpop.f32.mrb[97].mxu0 }
0x24e5   :  { %v5631_v2 = vpop.f32.mrb[98].mxu0 }
0x24e6   :  { %v5633_v7 = vpop.f32.mrb[99].mxu0 }
0x24e9   :  { %v5636_v39 = vpop.f32.mrb[100].mxu0 }
0x24ea   :  { %v5638_v32 = vpop.f32.mrb[101].mxu0 }
0x24ed   :  { %v5641_v48 = vpop.f32.mrb[102].mxu0 }
0x24ee   :  { %v5643_v37 = vpop.f32.mrb[103].mxu0 }
0x24f1   :  { %v5646_v4 = vpop.f32.mrb[104].mxu0 }
0x24f2   :  { %v5648_v15 = vpop.f32.mrb[105].mxu0 }
0x24f5   :  { %v5651_v19 = vpop.f32.mrb[106].mxu0 }
0x24f6   :  { %v5653_v43 = vpop.f32.mrb[107].mxu0 }
0x2511   :  { %v5721_v3 = vpop.f32.mrb[108].mxu0 }
0x2512   :  { %12159 = vrcp.f32 %v5721_v3  ;;  %v5723_v52 = vpop.f32.mrb[109].mxu0 }
0x2515   :  { %v5726_v61 = vpop.f32.mrb[110].mxu0 }
0x2516   :  { %12161 = vrcp.f32 %v5726_v61  ;;  %v5728_v12 = vpop.f32.mrb[111].mxu0 }
0x2519   :  { %v5731_v58 = vpop.f32.mrb[112].mxu0 }
0x251a   :  { %12163 = vrcp.f32 %v5731_v58  ;;  %v5733_v28 = vpop.f32.mrb[113].mxu0 }
0x251b   :  { %v16620_v28 = vld [vmem:[#allocation15_spill] sm:$0xff] }
0x251c   :  { %v12160_v1 = vpop.eup %12159 }
0x251d   :  { %v5736_v33 = vpop.f32.mrb[114].mxu0  ;;  %v5756_v56 = vmul.f32 %v12160_v1, %v5626_v20 }
0x251e   :  { %12165 = vrcp.f32 %v5736_v33  ;;  %v5738_v34 = vpop.f32.mrb[115].mxu0 }
0x251f   :  { %10346 = vmatprep.mubr.msk.f32.mxu1 %vm226_vm6, %v5756_v56 }
0x2520   :  { %v12162_v9 = vpop.eup %12161 }
0x2521   :  { %v5757_v29 = vmul.f32 %v12162_v9, %v5631_v2  ;;  %v5741_v27 = vpop.f32.mrb[116].mxu0 }
0x2522   :  { %12167 = vrcp.f32 %v5741_v27  ;;  %v5743_v44 = vpop.f32.mrb[117].mxu0 }
0x2523   :  { %10347 = vmatmul.mubr.msk.f32.vlgmr.msra.gmra.mrb[132].mxu1 %vm226_vm6, %v5757_v29  ;;  %v16621_v29 = vld [vmem:[#allocation16_spill] sm:$0xff] }
0x2524   :  { %v12164_v55 = vpop.eup %12163 }
0x2525   :  { %v5746_v6 = vpop.f32.mrb[118].mxu0  ;;  %v5758_v7 = vmul.f32 %v12164_v55, %v5636_v39  ;;  %v9370_v39 = vld [vmem:[%s16445_s5 + $0x8] ss:$0 sm:$0xff] }
0x2526   :  { %12169 = vrcp.f32 %v5746_v6  ;;  %v5748_v32 = vpop.f32.mrb[119].mxu0 }
0x2527   :  { %10349 = vmatprep.mubr.msk.f32.mxu1 %vm226_vm6, %v5758_v7 }
0x2528   :  { %v12166_v37 = vpop.eup %12165 }
0x2529   :  { %v5759_v20 = vmul.f32 %v12166_v37, %v5641_v48 }
0x252b   :  { %10350 = vmatmul.mubr.msk.f32.gmra.mrb[134].mxu1 %vm226_vm6, %v5759_v20 }
0x252c   :  { %v12168_v15 = vpop.eup %12167 }
0x252d   :  { %v5760_v43 = vmul.f32 %v12168_v15, %v5646_v4  ;;  %v16623_v15 = vld [vmem:[#allocation22_spill] sm:$0xff] }
0x252f   :  { %10352 = vmatprep.mubr.msk.f32.mxu1 %vm226_vm6, %v5760_v43 }
0x2530   :  { %v12170_v2 = vpop.eup %12169 }
0x2531   :  { %v5761_v3 = vmul.f32 %v12170_v2, %v5651_v19  ;;  %v16624_v2 = vld [vmem:[#allocation20_spill] sm:$0xff] }
0x2533   :  { %10353 = vmatmul.mubr.msk.f32.gmra.mrb[136].mxu1 %vm226_vm6, %v5761_v3 }
0x25f6   :  { %v10348_v52 = vpop.f32.mrb[132].mxu1 }
0x25f7   :  { %v5865_v61 = vadd.f32 %v10348_v52, %v9370_v39  ;;  %v5859_v12 = vpop.f32.mrb[133].mxu1 }
0x25f8   :  { %v5860_v58 = vadd.f32 %v9370_v39, %v5859_v12 }
0x25f9   :  { %v15361_v48 = vadd.f32 %v5865_v61, %v14866_v62  ;;  %v16622_v62 = vld [vmem:[#allocation21_spill] sm:$0xff] }
0x25fa   :  { %v15364_v1 = vadd.f32 %v5860_v58, %v16620_v28 }
0x25fb   :  { %v5897_v4 = vsel %vm226_vm6, %v15361_v48, 0.0 }
0x25fc   :  { %5898 = vadd.xlane.f32.xlu0 %v5897_v4  ;;  %v5894_v19 = vsel %vm226_vm6, %v15364_v1, 0.0 }
0x25fd   :  { %5895 = vadd.xlane.f32.xlu1 %v5894_v19 }
0x25fe   :  { %v10351_v33 = vpop.f32.mrb[134].mxu1 }
0x25ff   :  { %v5875_v56 = vadd.f32 %v10351_v33, %v9370_v39  ;;  %v5869_v34 = vpop.f32.mrb[135].mxu1 }
0x2600   :  { %v5870_v9 = vadd.f32 %v9370_v39, %v5869_v34 }
0x2601   :  { %v15371_v27 = vadd.f32 %v5875_v56, %v16621_v29 }
0x2602   :  { %v15374_v44 = vadd.f32 %v5870_v9, %v16622_v62 }
0x2603   :  { %v5903_v55 = vsel %vm226_vm6, %v15371_v27, 0.0 }
0x2604   :  { %5904 = vadd.xlane.f32.xlu0 %v5903_v55  ;;  %v5900_v6 = vsel %vm226_vm6, %v15374_v44, 0.0 }
0x2605   :  { %5901 = vadd.xlane.f32.xlu1 %v5900_v6 }
0x2606   :  { %v10354_v7 = vpop.f32.mrb[136].mxu1 }
0x2607   :  { %v5885_v32 = vadd.f32 %v10354_v7, %v9370_v39  ;;  %v5879_v37 = vpop.f32.mrb[137].mxu1 }
0x2608   :  { %v5880_v20 = vadd.f32 %v9370_v39, %v5879_v37 }
0x2609   :  { %v15381_v43 = vadd.f32 %v5885_v32, %v16623_v15 }
0x260a   :  { %v15384_v3 = vadd.f32 %v5880_v20, %v16624_v2 }
0x260b   :  { %v5909_v52 = vsel %vm226_vm6, %v15381_v43, 0.0 }
0x260c   :  { %5910 = vadd.xlane.f32.xlu0 %v5909_v52  ;;  %v5906_v61 = vsel %vm226_vm6, %v15384_v3, 0.0 }
0x260d   :  { %5907 = vadd.xlane.f32.xlu1 %v5906_v61 }
0x2689   :  { %v5899_v12 = vpop.xlane.xlu0 %5898 }
0x268a   :  { %v5913_v58 = vmul.f32 0.03125, %v5899_v12  ;;  %v5896_v28 = vpop.xlane.xlu1 %5895 }
0x268b   :  { %v5912_v4 = vmul.f32 0.03125, %v5896_v28 }
0x268c   :  { %v15391_v39 = vsub.f32 %v15361_v48, %v5913_v58 }
0x268d   :  { %v15394_v19 = vsub.f32 %v15364_v1, %v5912_v4 }
0x268e   :  { %v5925_v33 = vmul.f32 %v15391_v39, %v15391_v39 }
0x268f   :  { %v5924_v56 = vmul.f32 %v15394_v19, %v15394_v19 }
0x2690   :  { %v5933_v34 = vsel %vm226_vm6, %v5925_v33, 0.0 }
0x2691   :  { %v5905_v9 = vpop.xlane.xlu0 %5904  ;;  %5934 = vadd.xlane.f32.xlu0 %v5933_v34  ;;  %v5930_v29 = vsel %vm226_vm6, %v5924_v56, 0.0 }
0x2692   :  { %v5915_v62 = vmul.f32 0.03125, %v5905_v9  ;;  %v5902_v55 = vpop.xlane.xlu1 %5901  ;;  %5931 = vadd.xlane.f32.xlu1 %v5930_v29  ;;  %v6000_v29 = vld [vmem:[#allocation5] sm:$0xff] }
0x2693   :  { %v5914_v6 = vmul.f32 0.03125, %v5902_v55  ;;  %10367 = vmatprep.mubr.msk.f32.mxu0 %vm6006_vm9, %v6000_v29  ;;  %v9388_v55 = vld [vmem:[%s16441_s1 + $0x148] sm:$0xff] }
0x2694   :  { %v15403_v7 = vsub.f32 %v15371_v27, %v5915_v62  ;;  %v9387_v62 = vld [vmem:[%s16441_s1 + $0x140] sm:$0xff] }
0x2695   :  { %v15406_v32 = vsub.f32 %v15374_v44, %v5914_v6  ;;  %v9389_v6 = vld [vmem:[%s16441_s1 + $0x150] sm:$0xff] }
0x2696   :  { %v5927_v37 = vmul.f32 %v15403_v7, %v15403_v7 }
0x2697   :  { %v5926_v20 = vmul.f32 %v15406_v32, %v15406_v32 }
0x2698   :  { %v5939_v15 = vsel %vm226_vm6, %v5927_v37, 0.0  ;;  %v11331_v37 = vpack.c.bf16 %v9388_v55, %v9387_v62 }
0x2699   :  { %5940 = vadd.xlane.f32.xlu0 %v5939_v15  ;;  %v5911_v2 = vpop.xlane.xlu0 %5910  ;;  %v5936_v52 = vsel %vm226_vm6, %v5926_v20, 0.0  ;;  %v9390_v20 = vld [vmem:[%s16441_s1 + $0x158] sm:$0xff] }
0x269a   :  { %v5917_v61 = vmul.f32 0.03125, %v5911_v2  ;;  %5937 = vadd.xlane.f32.xlu1 %v5936_v52  ;;  %v5908_v12 = vpop.xlane.xlu1 %5907  ;;  %v11335_v15 = vpack.c.bf16 %v9390_v20, %v9389_v6  ;;  %11332 = vmatprep.subr.bf16.mxu1 %v11331_v37 }
0x269b   :  { %v5916_v58 = vmul.f32 0.03125, %v5908_v12  ;;  %11334 = vmatpush3.bf16.msra.mxu1 %v11331_v37  ;;  %v9378_v37 = vld [vmem:[%s16445_s5 + $0x18] ss:$0 sm:$0xff] }
0x269c   :  { %v15415_v28 = vsub.f32 %v15381_v43, %v5917_v61  ;;  %11336 = vmatprep.subr.bf16.mxu1 %v11335_v15 }
0x269d   :  { %v15418_v4 = vsub.f32 %v15384_v3, %v5916_v58 }
0x269e   :  { %v5929_v33 = vmul.f32 %v15415_v28, %v15415_v28 }
0x269f   :  { %v5928_v56 = vmul.f32 %v15418_v4, %v15418_v4  ;;  %11338 = vmatpush3.bf16.msra.mxu1 %v11335_v15 }
0x26a0   :  { %v5945_v34 = vsel %vm226_vm6, %v5929_v33, 0.0 }
0x26a1   :  { %5946 = vadd.xlane.f32.xlu0 %v5945_v34  ;;  %v5942_v9 = vsel %vm226_vm6, %v5928_v56, 0.0 }
0x26a2   :  { %5943 = vadd.xlane.f32.xlu1 %v5942_v9 }
0x271e   :  { %v5935_v2 = vpop.xlane.xlu0 %5934 }
0x271f   :  { %v5949_v52 = vmul.f32 0.03125, %v5935_v2  ;;  %v5932_v61 = vpop.xlane.xlu1 %5931 }
0x2720   :  { %v5948_v12 = vmul.f32 0.03125, %v5932_v61 }
0x2721   :  { %v5955_v58 = vadd.f32 1e-05, %v5949_v52 }
0x2722   :  { %v5954_v33 = vadd.f32 1e-05, %v5948_v12 }
0x2723   :  { %12171 = vrsqrt.f32 %v5955_v58  ;;  %v9380_v58 = vld [vmem:[%s16445_s5 + $0x27] ss:$0 sm:$0xff] }
0x2724   :  { %12173 = vrsqrt.f32 %v5954_v33 }
0x2726   :  { %v5941_v56 = vpop.xlane.xlu0 %5940 }
0x2727   :  { %v5951_v34 = vmul.f32 0.03125, %v5941_v56  ;;  %v5938_v9 = vpop.xlane.xlu1 %5937 }
0x2728   :  { %v5950_v29 = vmul.f32 0.03125, %v5938_v9 }
0x2729   :  { %v5957_v62 = vadd.f32 1e-05, %v5951_v34 }
0x272a   :  { %v5956_v55 = vadd.f32 1e-05, %v5950_v29 }
0x272b   :  { %12175 = vrsqrt.f32 %v5957_v62 }
0x272c   :  { %12177 = vrsqrt.f32 %v5956_v55 }
0x272d   :  { %v12172_v6 = vpop.eup %12171 }
0x272e   :  { %v12174_v20 = vpop.eup %12173  ;;  %v5947_v15 = vpop.xlane.xlu0 %5946  ;;  %v5967_v2 = vmul.f32 %v12172_v6, %v15391_v39 }
0x272f   :  { %v5953_v52 = vmul.f32 0.03125, %v5947_v15  ;;  %v5944_v61 = vpop.xlane.xlu1 %5943  ;;  %v5966_v12 = vmul.f32 %v12174_v20, %v15394_v19 }
0x2730   :  { %v5952_v33 = vmul.f32 0.03125, %v5944_v61  ;;  %v5981_v56 = vmul.f32 %v9378_v37, %v5967_v2 }
0x2731   :  { %v5959_v34 = vadd.f32 1e-05, %v5953_v52  ;;  %v5980_v9 = vmul.f32 %v9378_v37, %v5966_v12 }
0x2732   :  { %v5958_v29 = vadd.f32 1e-05, %v5952_v33  ;;  %v5995_v62 = vadd.f32 %v9380_v58, %v5981_v56 }
0x2733   :  { %12179 = vrsqrt.f32 %v5959_v34  ;;  %v5994_v55 = vadd.f32 %v9380_v58, %v5980_v9 }
0x2734   :  { %12181 = vrsqrt.f32 %v5958_v29 }
0x2735   :  { %v12176_v13 = vpop.eup %12175  ;;  %v11319_v24 = vpack.c.bf16 %v5995_v62, %v5994_v55 }
0x2736   :  { %v12178_v39 = vpop.eup %12177  ;;  %v5969_v6 = vmul.f32 %v12176_v13, %v15403_v7 }
0x2737   :  { %11320 = vmatprep.subr.bf16.mxu0 %v11319_v24  ;;  %v5968_v19 = vmul.f32 %v12178_v39, %v15406_v32  ;;  %v6002_v32 = vld [vmem:[#allocation5 + $0x10] sm:$0xff]  ;;  %v6003_v39 = vld [vmem:[#allocation5 + $0x18] sm:$0xff] }
0x2738   :  { %11322 = vmatpush3.bf16.msra.mxu0 %v11319_v24  ;;  %v5983_v20 = vmul.f32 %v9378_v37, %v5969_v6  ;;  %v6001_v24 = vld [vmem:[#allocation5 + $0x8] sm:$0xff]  ;;  %v6004_v6 = vld [vmem:[#allocation5 + $0x20] sm:$0xff] }
0x2739   :  { %v5982_v15 = vmul.f32 %v9378_v37, %v5968_v19 }
0x273a   :  { %v5997_v61 = vadd.f32 %v9380_v58, %v5983_v20 }
0x273b   :  { %v5996_v2 = vadd.f32 %v9380_v58, %v5982_v15  ;;  %v9392_v15 = vld [vmem:[%s16445_s5 + $0xf] ss:$0 sm:$0xff] }
0x273d   :  { %v12180_v52 = vpop.eup %12179  ;;  %v11323_v12 = vpack.c.bf16 %v5997_v61, %v5996_v2 }
0x273e   :  { %v12182_v33 = vpop.eup %12181  ;;  %v5971_v56 = vmul.f32 %v12180_v52, %v15415_v28  ;;  %v6005_v28 = vld [vmem:[#allocation5 + $0x28] sm:$0xff] }
0x273f   :  { %11324 = vmatprep.subr.bf16.mxu0 %v11323_v12  ;;  %v5970_v34 = vmul.f32 %v12182_v33, %v15418_v4 }
0x2740   :  { %11326 = vmatpush3.bf16.msra.mxu0 %v11323_v12  ;;  %v5985_v9 = vmul.f32 %v9378_v37, %v5971_v56 }
0x2741   :  { %v5984_v29 = vmul.f32 %v9378_v37, %v5970_v34 }
0x2742   :  { %v5999_v13 = vadd.f32 %v9380_v58, %v5985_v9 }
0x2743   :  { %v5998_v7 = vadd.f32 %v9380_v58, %v5984_v29 }
0x2745   :  { %v11327_v10 = vpack.c.bf16 %v5999_v13, %v5998_v7 }
0x2747   :  { %11328 = vmatprep.subr.bf16.mxu0 %v11327_v10 }
0x2748   :  { %11330 = vmatpush3.bf16.msra.mxu0 %v11327_v10 }
0x274b   :  { %10368 = vmatmul.mubr.msk.f32.vlgmr.msra.gmra.mrb[120].mxu0 %vm6006_vm9, %v6001_v24 }
0x274c   :  { %10370 = vmatprep.mubr.msk.f32.mxu0 %vm6006_vm9, %v6002_v32 }
0x274f   :  { %10371 = vmatmul.mubr.msk.f32.gmra.mrb[122].mxu0 %vm6006_vm9, %v6003_v39 }
0x2750   :  { %10373 = vmatprep.mubr.msk.f32.mxu0 %vm6006_vm9, %v6004_v6 }
0x2753   :  { %10374 = vmatmul.mubr.msk.f32.gmra.mrb[124].mxu0 %vm6006_vm9, %v6005_v28 }
0x281e   :  { %v10369_v4 = vpop.f32.mrb[120].mxu0 }
0x281f   :  { %v6091_v37 = vpop.f32.mrb[121].mxu0 }
0x2820   :  { %10384 = vmatprep.mubr.msk.f32.mxu1 %vm226_vm6, %v6091_v37 }
0x2821   :  { %10385 = vmatmul.mubr.msk.f32.vlgmr.msra.gmra.mrb[138].mxu1 %vm226_vm6, %v10369_v4 }
0x2822   :  { %v10372_v10 = vpop.f32.mrb[122].mxu0 }
0x2823   :  { %v6101_v58 = vpop.f32.mrb[123].mxu0 }
0x2824   :  { %10387 = vmatprep.mubr.msk.f32.mxu1 %vm226_vm6, %v6101_v58 }
0x2825   :  { %10388 = vmatmul.mubr.msk.f32.gmra.mrb[140].mxu1 %vm226_vm6, %v10372_v10 }
0x2826   :  { %v10375_v19 = vpop.f32.mrb[124].mxu0 }
0x2827   :  { %v6111_v20 = vpop.f32.mrb[125].mxu0 }
0x2828   :  { %10390 = vmatprep.mubr.msk.f32.mxu1 %vm226_vm6, %v6111_v20 }
0x2829   :  { %10391 = vmatmul.mubr.msk.f32.gmra.mrb[142].mxu1 %vm226_vm6, %v10375_v19 }
0x28f4   :  { %v10386_v52 = vpop.f32.mrb[138].mxu1 }
0x28f5   :  { %v6223_v12 = vadd.f32 %v10386_v52, %v9392_v15  ;;  %v6217_v33 = vpop.f32.mrb[139].mxu1 }
0x28f6   :  { %v6218_v56 = vadd.f32 %v9392_v15, %v6217_v33 }
0x28f7   :  { %v6247_v34 = vadd.f32 %v6223_v12, %v5995_v62 }
0x28f8   :  { %v6246_v9 = vadd.f32 %v6218_v56, %v5994_v55  ;;  %v10389_v29 = vpop.f32.mrb[140].mxu1 }
0x28f9   :  { %v6233_v24 = vadd.f32 %v10389_v29, %v9392_v15  ;;  %v6227_v32 = vpop.f32.mrb[141].mxu1  ;;  %v6255_v39 = vsel %vm226_vm6, %v6247_v34, 0.0 }
0x28fa   :  { %v6228_v6 = vadd.f32 %v9392_v15, %v6227_v32  ;;  %6256 = vadd.xlane.f32.xlu0 %v6255_v39  ;;  %v6252_v28 = vsel %vm226_vm6, %v6246_v9, 0.0 }
0x28fb   :  { %v6249_v4 = vadd.f32 %v6233_v24, %v5997_v61  ;;  %6253 = vadd.xlane.f32.xlu1 %v6252_v28 }
0x28fc   :  { %v6248_v37 = vadd.f32 %v6228_v6, %v5996_v2  ;;  %v10392_v10 = vpop.f32.mrb[142].mxu1 }
0x28fd   :  { %v6243_v58 = vadd.f32 %v10392_v10, %v9392_v15  ;;  %v6237_v19 = vpop.f32.mrb[143].mxu1  ;;  %v6261_v20 = vsel %vm226_vm6, %v6249_v4, 0.0 }
0x28fe   :  { %v6238_v52 = vadd.f32 %v9392_v15, %v6237_v19  ;;  %6262 = vadd.xlane.f32.xlu0 %v6261_v20  ;;  %v6258_v62 = vsel %vm226_vm6, %v6248_v37, 0.0 }
0x28ff   :  { %v6251_v55 = vadd.f32 %v6243_v58, %v5999_v13  ;;  %6259 = vadd.xlane.f32.xlu1 %v6258_v62 }
0x2900   :  { %v6250_v12 = vadd.f32 %v6238_v52, %v5998_v7 }
0x2901   :  { %v6267_v33 = vsel %vm226_vm6, %v6251_v55, 0.0 }
0x2902   :  { %6268 = vadd.xlane.f32.xlu0 %v6267_v33  ;;  %v6264_v56 = vsel %vm226_vm6, %v6250_v12, 0.0 }
0x2903   :  { %6265 = vadd.xlane.f32.xlu1 %v6264_v56 }
0x2987   :  { %v6257_v61 = vpop.xlane.xlu0 %6256 }
0x2988   :  { %v6271_v2 = vmul.f32 0.03125, %v6257_v61  ;;  %v6254_v29 = vpop.xlane.xlu1 %6253 }
0x2989   :  { %v6270_v24 = vmul.f32 0.03125, %v6254_v29 }
0x298a   :  { %v6277_v32 = vsub.f32 %v6247_v34, %v6271_v2 }
0x298b   :  { %v6276_v39 = vsub.f32 %v6246_v9, %v6270_v24  ;;  %v6263_v6 = vpop.xlane.xlu0 %6262 }
0x298c   :  { %v6273_v15 = vmul.f32 0.03125, %v6263_v6  ;;  %v6260_v28 = vpop.xlane.xlu1 %6259  ;;  %v6283_v10 = vmul.f32 %v6277_v32, %v6277_v32 }
0x298d   :  { %v6272_v19 = vmul.f32 0.03125, %v6260_v28  ;;  %v6282_v13 = vmul.f32 %v6276_v39, %v6276_v39 }
0x298e   :  { %v6279_v58 = vsub.f32 %v6249_v4, %v6273_v15  ;;  %v6291_v7 = vsel %vm226_vm6, %v6283_v10, 0.0 }
0x298f   :  { %v6278_v20 = vsub.f32 %v6248_v37, %v6272_v19  ;;  %6292 = vadd.xlane.f32.xlu0 %v6291_v7  ;;  %v6269_v52 = vpop.xlane.xlu0 %6268  ;;  %v6288_v62 = vsel %vm226_vm6, %v6282_v13, 0.0 }
0x2990   :  { %v6275_v33 = vmul.f32 0.03125, %v6269_v52  ;;  %6289 = vadd.xlane.f32.xlu1 %v6288_v62  ;;  %v6266_v56 = vpop.xlane.xlu1 %6265  ;;  %v6285_v61 = vmul.f32 %v6279_v58, %v6279_v58 }
0x2991   :  { %v6274_v34 = vmul.f32 0.03125, %v6266_v56  ;;  %v6284_v9 = vmul.f32 %v6278_v20, %v6278_v20 }
0x2992   :  { %v6281_v2 = vsub.f32 %v6251_v55, %v6275_v33  ;;  %v6297_v29 = vsel %vm226_vm6, %v6285_v61, 0.0 }
0x2993   :  { %v6280_v24 = vsub.f32 %v6250_v12, %v6274_v34  ;;  %6298 = vadd.xlane.f32.xlu0 %v6297_v29  ;;  %v6294_v4 = vsel %vm226_vm6, %v6284_v9, 0.0 }
0x2994   :  { %6295 = vadd.xlane.f32.xlu1 %v6294_v4  ;;  %v6287_v6 = vmul.f32 %v6281_v2, %v6281_v2 }
0x2995   :  { %v6286_v37 = vmul.f32 %v6280_v24, %v6280_v24 }
0x2996   :  { %v6303_v15 = vsel %vm226_vm6, %v6287_v6, 0.0 }
0x2997   :  { %6304 = vadd.xlane.f32.xlu0 %v6303_v15  ;;  %v6300_v28 = vsel %vm226_vm6, %v6286_v37, 0.0 }
0x2998   :  { %6301 = vadd.xlane.f32.xlu1 %v6300_v28 }
0x2a1c   :  { %v6293_v10 = vpop.xlane.xlu0 %6292 }
0x2a1d   :  { %v6307_v19 = vmul.f32 0.03125, %v6293_v10  ;;  %v6290_v13 = vpop.xlane.xlu1 %6289  ;;  %v9400_v10 = vld [vmem:[%s16445_s5 + $0x19] ss:$0 sm:$0xff] }
0x2a1e   :  { %v6306_v7 = vmul.f32 0.03125, %v6290_v13 }
0x2a1f   :  { %v6313_v55 = vadd.f32 1e-05, %v6307_v19 }
0x2a20   :  { %v6312_v52 = vadd.f32 1e-05, %v6306_v7  ;;  %v6299_v62 = vpop.xlane.xlu0 %6298  ;;  %v9402_v7 = vld [vmem:[%s16445_s5 + $0x28] ss:$0 sm:$0xff] }
0x2a21   :  { %12183 = vrsqrt.f32 %v6313_v55  ;;  %v6309_v12 = vmul.f32 0.03125, %v6299_v62  ;;  %v6296_v33 = vpop.xlane.xlu1 %6295 }
0x2a22   :  { %12185 = vrsqrt.f32 %v6312_v52  ;;  %v6308_v56 = vmul.f32 0.03125, %v6296_v33 }
0x2a23   :  { %v6315_v61 = vadd.f32 1e-05, %v6309_v12 }
0x2a24   :  { %v6314_v34 = vadd.f32 1e-05, %v6308_v56  ;;  %v6305_v9 = vpop.xlane.xlu0 %6304 }
0x2a25   :  { %12187 = vrsqrt.f32 %v6315_v61  ;;  %v6311_v29 = vmul.f32 0.03125, %v6305_v9  ;;  %v6302_v4 = vpop.xlane.xlu1 %6301 }
0x2a26   :  { %12189 = vrsqrt.f32 %v6314_v34  ;;  %v6310_v6 = vmul.f32 0.03125, %v6302_v4 }
0x2a27   :  { %v6317_v37 = vadd.f32 1e-05, %v6311_v29 }
0x2a28   :  { %v6316_v15 = vadd.f32 1e-05, %v6310_v6 }
0x2a29   :  { %12191 = vrsqrt.f32 %v6317_v37 }
0x2a2a   :  { %12193 = vrsqrt.f32 %v6316_v15 }
0x2a2b   :  { %v12184_v28 = vpop.eup %12183 }
0x2a2c   :  { %v12186_v19 = vpop.eup %12185  ;;  %v6325_v13 = vmul.f32 %v12184_v28, %v6277_v32 }
0x2a2d   :  { %v6324_v55 = vmul.f32 %v12186_v19, %v6276_v39 }
0x2a2e   :  { %v6339_v52 = vmul.f32 %v9400_v10, %v6325_v13 }
0x2a2f   :  { %v12188_v62 = vpop.eup %12187  ;;  %v6338_v12 = vmul.f32 %v9400_v10, %v6324_v55 }
0x2a30   :  { %v12190_v33 = vpop.eup %12189  ;;  %v6353_v56 = vadd.f32 %v9402_v7, %v6339_v52  ;;  %v6327_v61 = vmul.f32 %v12188_v62, %v6279_v58 }
0x2a31   :  { %v6352_v34 = vadd.f32 %v9402_v7, %v6338_v12  ;;  %v6326_v9 = vmul.f32 %v12190_v33, %v6278_v20 }
0x2a32   :  { %v15484_v29 = vadd.f32 %v6353_v56, %v15361_v48  ;;  %v6341_v4 = vmul.f32 %v9400_v10, %v6327_v61 }
0x2a33   :  { %v12192_v6 = vpop.eup %12191  ;;  %v15487_v32 = vadd.f32 %v6352_v34, %v15364_v1  ;;  %v6340_v37 = vmul.f32 %v9400_v10, %v6326_v9 }
0x2a34   :  { %v12194_v15 = vpop.eup %12193  ;;  %v6367_v39 = vsel %vm226_vm6, %v15484_v29, 0.0  ;;  %v6355_v28 = vadd.f32 %v9402_v7, %v6341_v4  ;;  %v6329_v19 = vmul.f32 %v12192_v6, %v6281_v2 }
0x2a35   :  { %6368 = vadd.xlane.f32.xlu0 %v6367_v39  ;;  %v6364_v58 = vsel %vm226_vm6, %v15487_v32, 0.0  ;;  %v6354_v20 = vadd.f32 %v9402_v7, %v6340_v37  ;;  %v6328_v13 = vmul.f32 %v12194_v15, %v6280_v24 }
0x2a36   :  { %6365 = vadd.xlane.f32.xlu1 %v6364_v58  ;;  %v15494_v48 = vadd.f32 %v6355_v28, %v15371_v27  ;;  %v6343_v55 = vmul.f32 %v9400_v10, %v6329_v19 }
0x2a37   :  { %v15497_v1 = vadd.f32 %v6354_v20, %v15374_v44  ;;  %v6342_v52 = vmul.f32 %v9400_v10, %v6328_v13 }
0x2a38   :  { %v6373_v62 = vsel %vm226_vm6, %v15494_v48, 0.0  ;;  %v6357_v12 = vadd.f32 %v9402_v7, %v6343_v55 }
0x2a39   :  { %6374 = vadd.xlane.f32.xlu0 %v6373_v62  ;;  %v6370_v2 = vsel %vm226_vm6, %v15497_v1, 0.0  ;;  %v6356_v33 = vadd.f32 %v9402_v7, %v6342_v52 }
0x2a3a   :  { %6371 = vadd.xlane.f32.xlu1 %v6370_v2  ;;  %v15504_v24 = vadd.f32 %v6357_v12, %v15381_v43 }
0x2a3b   :  { %v15507_v27 = vadd.f32 %v6356_v33, %v15384_v3 }
0x2a3c   :  { %v6379_v44 = vsel %vm226_vm6, %v15504_v24, 0.0 }
0x2a3d   :  { %6380 = vadd.xlane.f32.xlu0 %v6379_v44  ;;  %v6376_v10 = vsel %vm226_vm6, %v15507_v27, 0.0 }
0x2a3e   :  { %6377 = vadd.xlane.f32.xlu1 %v6376_v10 }
0x2ac2   :  { %v6369_v56 = vpop.xlane.xlu0 %6368 }
0x2ac3   :  { %v6383_v61 = vmul.f32 0.03125, %v6369_v56  ;;  %v6366_v34 = vpop.xlane.xlu1 %6365 }
0x2ac4   :  { %v6382_v9 = vmul.f32 0.03125, %v6366_v34 }
0x2ac5   :  { %v15514_v7 = vsub.f32 %v15484_v29, %v6383_v61 }
0x2ac6   :  { %v15517_v43 = vsub.f32 %v15487_v32, %v6382_v9  ;;  %v6375_v3 = vpop.xlane.xlu0 %6374 }
0x2ac7   :  { %v6385_v4 = vmul.f32 0.03125, %v6375_v3  ;;  %v6372_v6 = vpop.xlane.xlu1 %6371  ;;  %v6395_v37 = vmul.f32 %v15514_v7, %v15514_v7 }
0x2ac8   :  { %v6384_v15 = vmul.f32 0.03125, %v6372_v6  ;;  %v6394_v39 = vmul.f32 %v15517_v43, %v15517_v43  ;;  %v9408_v6 = vld [vmem:[%s16442_s2 + $0x108] sm:$0xff] }
0x2ac9   :  { %v15524_v28 = vsub.f32 %v15494_v48, %v6385_v4  ;;  %v6403_v19 = vsel %vm226_vm6, %v6395_v37, 0.0  ;;  %v9407_v4 = vld [vmem:[%s16442_s2 + $0x100] sm:$0xff] }
0x2aca   :  { %v15528_v58 = vsub.f32 %v15497_v1, %v6384_v15  ;;  %6404 = vadd.xlane.f32.xlu0 %v6403_v19  ;;  %v6381_v20 = vpop.xlane.xlu0 %6380  ;;  %v6400_v13 = vsel %vm226_vm6, %v6394_v39, 0.0  ;;  %v11339_v37 = vpack.c.bf16 %v9408_v6, %v9407_v4  ;;  %v9409_v15 = vld [vmem:[%s16442_s2 + $0x110] sm:$0xff]  ;;  %v9410_v39 = vld [vmem:[%s16442_s2 + $0x118] sm:$0xff] }
0x2acb   :  { %v6387_v55 = vmul.f32 0.03125, %v6381_v20  ;;  %6401 = vadd.xlane.f32.xlu1 %v6400_v13  ;;  %v6378_v52 = vpop.xlane.xlu1 %6377  ;;  %v6397_v62 = vmul.f32 %v15524_v28, %v15524_v28  ;;  %v11343_v19 = vpack.c.bf16 %v9410_v39, %v9409_v15  ;;  %v9418_v20 = vld [vmem:[%s16443_s3 + $0x180] sm:$0xff]  ;;  %v9419_v13 = vld [vmem:[%s16443_s3 + $0x188] sm:$0xff] }
0x2acc   :  { %v6386_v12 = vmul.f32 0.03125, %v6378_v52  ;;  %v6396_v2 = vmul.f32 %v15528_v58, %v15528_v58  ;;  %11340 = vmatprep.subr.bf16.mxu0 %v11339_v37 }
0x2acd   :  { %v15536_v33 = vsub.f32 %v15504_v24, %v6387_v55  ;;  %v6409_v44 = vsel %vm226_vm6, %v6397_v62, 0.0  ;;  %11342 = vmatpush3.bf16.msra.mxu0 %v11339_v37  ;;  %v11347_v55 = vpack.c.bf16 %v9419_v13, %v9418_v20 }
0x2ace   :  { %v15540_v10 = vsub.f32 %v15507_v27, %v6386_v12  ;;  %6410 = vadd.xlane.f32.xlu0 %v6409_v44  ;;  %v6406_v56 = vsel %vm226_vm6, %v6396_v2, 0.0  ;;  %11344 = vmatprep.subr.bf16.mxu0 %v11343_v19 }
0x2acf   :  { %6407 = vadd.xlane.f32.xlu1 %v6406_v56  ;;  %v6399_v61 = vmul.f32 %v15536_v33, %v15536_v33  ;;  %11348 = vmatprep.subr.bf16.mxu1 %v11347_v55 }
0x2ad0   :  { %v6398_v34 = vmul.f32 %v15540_v10, %v15540_v10  ;;  %11350 = vmatpush3.bf16.msra.mxu1 %v11347_v55 }
0x2ad1   :  { %v6415_v9 = vsel %vm226_vm6, %v6399_v61, 0.0  ;;  %11346 = vmatpush3.bf16.msra.mxu0 %v11343_v19 }
0x2ad2   :  { %6416 = vadd.xlane.f32.xlu0 %v6415_v9  ;;  %v6412_v3 = vsel %vm226_vm6, %v6398_v34, 0.0 }
0x2ad3   :  { %6413 = vadd.xlane.f32.xlu1 %v6412_v3 }
0x2b57   :  { %v6405_v52 = vpop.xlane.xlu0 %6404 }
0x2b58   :  { %v6419_v62 = vmul.f32 0.03125, %v6405_v52  ;;  %v6402_v12 = vpop.xlane.xlu1 %6401  ;;  %v9404_v52 = vld [vmem:[%s16445_s5 + $0x1a] ss:$0 sm:$0xff] }
0x2b59   :  { %v6418_v2 = vmul.f32 0.03125, %v6402_v12 }
0x2b5a   :  { %v6425_v44 = vadd.f32 1e-05, %v6419_v62 }
0x2b5b   :  { %v6424_v56 = vadd.f32 1e-05, %v6418_v2  ;;  %v6411_v61 = vpop.xlane.xlu0 %6410 }
0x2b5c   :  { %12195 = vrsqrt.f32 %v6425_v44  ;;  %v6421_v34 = vmul.f32 0.03125, %v6411_v61  ;;  %v6408_v9 = vpop.xlane.xlu1 %6407  ;;  %v9406_v44 = vld [vmem:[%s16445_s5 + $0x29] ss:$0 sm:$0xff] }
0x2b5d   :  { %12197 = vrsqrt.f32 %v6424_v56  ;;  %v6420_v3 = vmul.f32 0.03125, %v6408_v9 }
0x2b5e   :  { %v6427_v4 = vadd.f32 1e-05, %v6421_v34 }
0x2b5f   :  { %v6426_v6 = vadd.f32 1e-05, %v6420_v3  ;;  %v6417_v37 = vpop.xlane.xlu0 %6416 }
0x2b60   :  { %12199 = vrsqrt.f32 %v6427_v4  ;;  %v6423_v15 = vmul.f32 0.03125, %v6417_v37  ;;  %v6414_v39 = vpop.xlane.xlu1 %6413 }
0x2b61   :  { %12201 = vrsqrt.f32 %v6426_v6  ;;  %v6422_v19 = vmul.f32 0.03125, %v6414_v39 }
0x2b62   :  { %v6429_v20 = vadd.f32 1e-05, %v6423_v15 }
0x2b63   :  { %v6428_v13 = vadd.f32 1e-05, %v6422_v19 }
0x2b64   :  { %12203 = vrsqrt.f32 %v6429_v20 }
0x2b65   :  { %12205 = vrsqrt.f32 %v6428_v13 }
0x2b66   :  { %v12196_v55 = vpop.eup %12195 }
0x2b67   :  { %v12198_v62 = vpop.eup %12197  ;;  %v6437_v12 = vmul.f32 %v12196_v55, %v15514_v7 }
0x2b68   :  { %v6436_v2 = vmul.f32 %v12198_v62, %v15517_v43 }
0x2b69   :  { %v6451_v56 = vmul.f32 %v9404_v52, %v6437_v12 }
0x2b6a   :  { %v12200_v61 = vpop.eup %12199  ;;  %v6450_v34 = vmul.f32 %v9404_v52, %v6436_v2 }
0x2b6b   :  { %v12202_v9 = vpop.eup %12201  ;;  %v6439_v3 = vmul.f32 %v12200_v61, %v15524_v28  ;;  %v6465_v37 = vadd.f32 %v9406_v44, %v6451_v56  ;;  %v9424_v61 = vld [vmem:[%s16443_s3 + $0x1b0] sm:$0xff] }
0x2b6c   :  { %v6464_v4 = vadd.f32 %v9406_v44, %v6450_v34  ;;  %v6438_v6 = vmul.f32 %v12202_v9, %v15528_v58  ;;  %v9425_v34 = vld [vmem:[%s16443_s3 + $0x1b8] sm:$0xff] }
0x2b6d   :  { %v6453_v15 = vmul.f32 %v9404_v52, %v6439_v3  ;;  %v11359_v9 = vpack.c.bf16 %v9425_v34, %v9424_v61  ;;  %v9426_v3 = vld [vmem:[%s16443_s3 + $0x1c0] sm:$0xff] }
0x2b6e   :  { %v12204_v39 = vpop.eup %12203  ;;  %10401 = vmatprep.mubr.msk.f32.mxu0 %vm226_vm6, %v6464_v4  ;;  %v6452_v7 = vmul.f32 %v9404_v52, %v6438_v6  ;;  %v9427_v4 = vld [vmem:[%s16443_s3 + $0x1c8] sm:$0xff] }
0x2b6f   :  { %v12206_v43 = vpop.eup %12205  ;;  %10402 = vmatmul.mubr.msk.f32.vlgmr.msra.gmra.mrb[126].mxu0 %vm226_vm6, %v6465_v37  ;;  %v6441_v19 = vmul.f32 %v12204_v39, %v15536_v33  ;;  %v6467_v55 = vadd.f32 %v9406_v44, %v6453_v15  ;;  %v9420_v33 = vld [vmem:[%s16443_s3 + $0x190] sm:$0xff]  ;;  %v11363_v6 = vpack.c.bf16 %v9427_v4, %v9426_v3  ;;  %v9429_v15 = vld [vmem:[%s16443_s3 + $0x1d8] sm:$0xff]  ;;  %v9430_v39 = vld [vmem:[%s16443_s3 + $0x1e0] sm:$0xff] }
0x2b70   :  { %v6466_v20 = vadd.f32 %v9406_v44, %v6452_v7  ;;  %v6440_v13 = vmul.f32 %v12206_v43, %v15540_v10  ;;  %v9421_v10 = vld [vmem:[%s16443_s3 + $0x198] sm:$0xff]  ;;  %v9428_v37 = vld [vmem:[%s16443_s3 + $0x1d0] sm:$0xff]  ;;  %v9431_v43 = vld [vmem:[%s16443_s3 + $0x1e8] sm:$0xff] }
0x2b71   :  { %v6455_v62 = vmul.f32 %v9404_v52, %v6441_v19  ;;  %v11351_v2 = vpack.c.bf16 %v9421_v10, %v9420_v33  ;;  %v11367_v7 = vpack.c.bf16 %v9429_v15, %v9428_v37  ;;  %v11371_v19 = vpack.c.bf16 %v9431_v43, %v9430_v39 }
0x2b72   :  { %10404 = vmatprep.mubr.msk.f32.mxu0 %vm226_vm6, %v6466_v20  ;;  %v6454_v28 = vmul.f32 %v9404_v52, %v6440_v13  ;;  %v9422_v52 = vld [vmem:[%s16443_s3 + $0x1a0] sm:$0xff]  ;;  %v9432_v20 = vld [vmem:[%s16443_s3 + $0x1f0] sm:$0xff]  ;;  %v9433_v13 = vld [vmem:[%s16443_s3 + $0x1f8] sm:$0xff] }
0x2b73   :  { %10405 = vmatmul.mubr.msk.f32.gmra.mrb[128].mxu0 %vm226_vm6, %v6467_v55  ;;  %v6469_v12 = vadd.f32 %v9406_v44, %v6455_v62  ;;  %11352 = vmatprep.subr.bf16.mxu1 %v11351_v2  ;;  %v11375_v55 = vpack.c.bf16 %v9433_v13, %v9432_v20  ;;  %v9411_v62 = vld [vmem:[#allocation2 + $0x8] ss:$0 sm:$0xff] }
0x2b74   :  { %v6468_v58 = vadd.f32 %v9406_v44, %v6454_v28  ;;  %11354 = vmatpush3.bf16.msra.mxu1 %v11351_v2  ;;  %v9423_v44 = vld [vmem:[%s16443_s3 + $0x1a8] sm:$0xff] }
0x2b75   :  { %v11355_v56 = vpack.c.bf16 %v9423_v44, %v9422_v52 }
0x2b76   :  { %10407 = vmatprep.mubr.msk.f32.mxu0 %vm226_vm6, %v6468_v58 }
0x2b77   :  { %10408 = vmatmul.mubr.msk.f32.gmra.mrb[130].mxu0 %vm226_vm6, %v6469_v12  ;;  %11356 = vmatprep.subr.bf16.mxu1 %v11355_v56 }
0x2b78   :  { %11358 = vmatpush3.bf16.msra.mxu1 %v11355_v56 }
0x2b79   :  { %11360 = vmatprep.subr.bf16.mxu1 %v11359_v9 }
0x2b7c   :  { %11362 = vmatpush3.bf16.msra.mxu1 %v11359_v9 }
0x2b7d   :  { %11364 = vmatprep.subr.bf16.mxu1 %v11363_v6 }
0x2b80   :  { %11366 = vmatpush3.bf16.msra.mxu1 %v11363_v6 }
0x2b81   :  { %11368 = vmatprep.subr.bf16.mxu1 %v11367_v7 }
0x2b84   :  { %11370 = vmatpush3.bf16.msra.mxu1 %v11367_v7 }
0x2b85   :  { %11372 = vmatprep.subr.bf16.mxu1 %v11371_v19 }
0x2b88   :  { %11374 = vmatpush3.bf16.msra.mxu1 %v11371_v19 }
0x2b89   :  { %11376 = vmatprep.subr.bf16.mxu1 %v11375_v55 }
0x2b8c   :  { %11378 = vmatpush3.bf16.msra.mxu1 %v11375_v55 }
0x2b8d   :  { %11443 = vmatprep.subr.bf16.mxu1 %v16532_v14 }
0x2c42   :  { %v10403_v28 = vpop.f32.mrb[126].mxu0 }
0x2c43   :  { %v6573_v58 = vadd.f32 %v10403_v28, %v9411_v62  ;;  %v6567_v12 = vpop.f32.mrb[127].mxu0 }
0x2c44   :  { %v6568_v33 = vadd.f32 %v9411_v62, %v6567_v12 }
0x2c45   :  { %v6603_v10 = vmul.f32 0.044715, %v6573_v58 }
0x2c46   :  { %v6602_v2 = vmul.f32 0.044715, %v6568_v33  ;;  %v10406_v52 = vpop.f32.mrb[128].mxu0 }
0x2c47   :  { %v6609_v44 = vmul.f32 %v6603_v10, %v6573_v58  ;;  %v6583_v56 = vadd.f32 %v10406_v52, %v9411_v62  ;;  %v6577_v61 = vpop.f32.mrb[129].mxu0 }
0x2c48   :  { %v6608_v34 = vmul.f32 %v6602_v2, %v6568_v33  ;;  %v6578_v9 = vadd.f32 %v9411_v62, %v6577_v61 }
0x2c49   :  { %v6615_v3 = vmul.f32 %v6609_v44, %v6573_v58  ;;  %v6605_v4 = vmul.f32 0.044715, %v6583_v56 }
0x2c4a   :  { %v6604_v6 = vmul.f32 0.044715, %v6578_v9  ;;  %v10409_v37 = vpop.f32.mrb[130].mxu0  ;;  %v6614_v15 = vmul.f32 %v6608_v34, %v6568_v33 }
0x2c4b   :  { %v6621_v39 = vadd.f32 %v6615_v3, %v6573_v58  ;;  %v6611_v7 = vmul.f32 %v6605_v4, %v6583_v56  ;;  %v6593_v43 = vadd.f32 %v10409_v37, %v9411_v62  ;;  %v6587_v19 = vpop.f32.mrb[131].mxu0 }
0x2c4c   :  { %v6610_v20 = vmul.f32 %v6604_v6, %v6578_v9  ;;  %v6588_v13 = vadd.f32 %v9411_v62, %v6587_v19  ;;  %v6620_v55 = vadd.f32 %v6614_v15, %v6568_v33 }
0x2c4d   :  { %v6627_v28 = vmul.f32 0.7978846, %v6621_v39  ;;  %v6607_v12 = vmul.f32 0.044715, %v6593_v43  ;;  %v6617_v16 = vmul.f32 %v6611_v7, %v6583_v56 }
0x2c4e   :  { %v6606_v10 = vmul.f32 0.044715, %v6588_v13  ;;  %v6626_v52 = vmul.f32 0.7978846, %v6620_v55  ;;  %v6616_v57 = vmul.f32 %v6610_v20, %v6578_v9  ;;  %v6596_v55 = vmul.f32 0.5, %v6568_v33 }
0x2c4f   :  { %12207 = vtanh.f32 %v6627_v28  ;;  %v6613_v2 = vmul.f32 %v6607_v12, %v6593_v43  ;;  %v6623_v44 = vadd.f32 %v6617_v16, %v6583_v56  ;;  %v6597_v28 = vmul.f32 0.5, %v6573_v58 }
0x2c50   :  { %v6612_v61 = vmul.f32 %v6606_v10, %v6588_v13  ;;  %12209 = vtanh.f32 %v6626_v52  ;;  %v6622_v47 = vadd.f32 %v6616_v57, %v6578_v9  ;;  %v6601_v58 = vmul.f32 0.5, %v6593_v43 }
0x2c51   :  { %v6629_v34 = vmul.f32 0.7978846, %v6623_v44  ;;  %v6619_v3 = vmul.f32 %v6613_v2, %v6593_v43  ;;  %v6598_v2 = vmul.f32 0.5, %v6578_v9  ;;  %v9435_v9 = vld [vmem:[%s16445_s5 + $0xd] ss:$0 sm:$0xff] }
0x2c52   :  { %v6628_v4 = vmul.f32 0.7978846, %v6622_v47  ;;  %v6618_v37 = vmul.f32 %v6612_v61, %v6588_v13  ;;  %v6599_v61 = vmul.f32 0.5, %v6583_v56 }
0x2c53   :  { %12211 = vtanh.f32 %v6629_v34  ;;  %v6625_v6 = vadd.f32 %v6619_v3, %v6593_v43 }
0x2c54   :  { %12213 = vtanh.f32 %v6628_v4  ;;  %v6624_v62 = vadd.f32 %v6618_v37, %v6588_v13 }
0x2c55   :  { %v6631_v15 = vmul.f32 0.7978846, %v6625_v6 }
0x2c56   :  { %v6630_v39 = vmul.f32 0.7978846, %v6624_v62  ;;  %v6600_v62 = vmul.f32 0.5, %v6588_v13 }
0x2c57   :  { %12215 = vtanh.f32 %v6631_v15 }
0x2c58   :  { %12217 = vtanh.f32 %v6630_v39 }
0x2c59   :  { %v12208_v7 = vpop.eup %12207 }
0x2c5a   :  { %v12210_v19 = vpop.eup %12209  ;;  %v6639_v20 = vadd.f32 1.0, %v12208_v7 }
0x2c5b   :  { %v6638_v16 = vadd.f32 1.0, %v12210_v19 }
0x2c5c   :  { %v6645_v52 = vmul.f32 %v6639_v20, %v6597_v28 }
0x2c5d   :  { %v12212_v12 = vpop.eup %12211  ;;  %v6644_v57 = vmul.f32 %v6638_v16, %v6596_v55 }
0x2c5e   :  { %v12214_v10 = vpop.eup %12213  ;;  %v6641_v47 = vadd.f32 1.0, %v12212_v12 }
0x2c5f   :  { %10442 = vmatprep.mubr.f32.mxu1 %v6644_v57  ;;  %v6640_v44 = vadd.f32 1.0, %v12214_v10 }
0x2c60   :  { %10443 = vmatmul.mubr.f32.vlgmr.msra.gmra.mrb[144].mxu1 %v6645_v52  ;;  %v6647_v37 = vmul.f32 %v6641_v47, %v6599_v61 }
0x2c61   :  { %v12216_v34 = vpop.eup %12215  ;;  %v6646_v3 = vmul.f32 %v6640_v44, %v6598_v2 }
0x2c62   :  { %v12218_v4 = vpop.eup %12217  ;;  %v6643_v6 = vadd.f32 1.0, %v12216_v34 }
0x2c63   :  { %10445 = vmatprep.mubr.f32.mxu1 %v6646_v3  ;;  %v6642_v33 = vadd.f32 1.0, %v12218_v4 }
0x2c64   :  { %10446 = vmatmul.mubr.f32.gmra.mrb[146].mxu1 %v6647_v37  ;;  %v6649_v39 = vmul.f32 %v6643_v6, %v6601_v58 }
0x2c65   :  { %v6648_v15 = vmul.f32 %v6642_v33, %v6600_v62 }
0x2c67   :  { %10448 = vmatprep.mubr.f32.mxu1 %v6648_v15 }
0x2c68   :  { %10449 = vmatmul.mubr.f32.gmra.mrb[148].mxu1 %v6649_v39 }
0x2d33   :  { %v10444_v7 = vpop.f32.mrb[144].mxu1 }
0x2d34   :  { %v6747_v56 = vadd.f32 %v10444_v7, %v9435_v9  ;;  %v6741_v19 = vpop.f32.mrb[145].mxu1 }
0x2d35   :  { %v6742_v20 = vadd.f32 %v9435_v9, %v6741_v19 }
0x2d36   :  { %v15632_v55 = vadd.f32 %v6747_v56, %v15484_v29 }
0x2d37   :  { %v15635_v13 = vadd.f32 %v6742_v20, %v15487_v32  ;;  %v10447_v16 = vpop.f32.mrb[146].mxu1 }
0x2d38   :  { %v6757_v43 = vadd.f32 %v10447_v16, %v9435_v9  ;;  %v6751_v28 = vpop.f32.mrb[147].mxu1  ;;  %v6779_v12 = vsel %vm226_vm6, %v15632_v55, 0.0 }
0x2d39   :  { %v6752_v57 = vadd.f32 %v9435_v9, %v6751_v28  ;;  %6780 = vadd.xlane.f32.xlu0 %v6779_v12  ;;  %v6776_v10 = vsel %vm226_vm6, %v15635_v13, 0.0 }
0x2d3a   :  { %v15642_v52 = vadd.f32 %v6757_v43, %v15494_v48  ;;  %6777 = vadd.xlane.f32.xlu1 %v6776_v10 }
0x2d3b   :  { %v15645_v29 = vadd.f32 %v6752_v57, %v15497_v1  ;;  %v10450_v32 = vpop.f32.mrb[148].mxu1 }
0x2d3c   :  { %16625 = vst [vmem:[#allocation19_spill] sm:$0xff] %v15642_v52  ;;  %v6767_v47 = vadd.f32 %v10450_v32, %v9435_v9  ;;  %v6761_v2 = vpop.f32.mrb[149].mxu1  ;;  %v6785_v44 = vsel %vm226_vm6, %v15642_v52, 0.0 }
0x2d3d   :  { %16626 = vst [vmem:[#allocation24_spill] sm:$0xff] %v15645_v29  ;;  %v6762_v61 = vadd.f32 %v9435_v9, %v6761_v2  ;;  %6786 = vadd.xlane.f32.xlu0 %v6785_v44  ;;  %v6782_v34 = vsel %vm226_vm6, %v15645_v29, 0.0 }
0x2d3e   :  { %v15652_v3 = vadd.f32 %v6767_v47, %v15504_v24  ;;  %6783 = vadd.xlane.f32.xlu1 %v6782_v34 }
0x2d3f   :  { %v15655_v48 = vadd.f32 %v6762_v61, %v15507_v27 }
0x2d40   :  { %16627 = vst [vmem:[#allocation26_spill] sm:$0xff] %v15652_v3  ;;  %v6791_v1 = vsel %vm226_vm6, %v15652_v3, 0.0 }
0x2d41   :  { %16628 = vst [vmem:[#allocation23_spill] sm:$0xff] %v15655_v48  ;;  %6792 = vadd.xlane.f32.xlu0 %v6791_v1  ;;  %v6788_v4 = vsel %vm226_vm6, %v15655_v48, 0.0 }
0x2d42   :  { %6789 = vadd.xlane.f32.xlu1 %v6788_v4 }
0x2dc6   :  { %v6781_v37 = vpop.xlane.xlu0 %6780 }
0x2dc7   :  { %v6795_v6 = vmul.f32 0.03125, %v6781_v37  ;;  %v6778_v62 = vpop.xlane.xlu1 %6777 }
0x2dc8   :  { %v6794_v33 = vmul.f32 0.03125, %v6778_v62  ;;  %v9440_v62 = vld [vmem:[%s16442_s2 + $0x80] sm:$0xff] }
0x2dc9   :  { %v15662_v58 = vsub.f32 %v15632_v55, %v6795_v6 }
0x2dca   :  { %v15665_v24 = vsub.f32 %v15635_v13, %v6794_v33  ;;  %v6787_v27 = vpop.xlane.xlu0 %6786  ;;  %v9441_v33 = vld [vmem:[%s16442_s2 + $0x88] sm:$0xff] }
0x2dcb   :  { %v6797_v15 = vmul.f32 0.03125, %v6787_v27  ;;  %v6784_v39 = vpop.xlane.xlu1 %6783  ;;  %v6807_v9 = vmul.f32 %v15662_v58, %v15662_v58  ;;  %v11379_v27 = vpack.c.bf16 %v9441_v33, %v9440_v62 }
0x2dcc   :  { %v6796_v7 = vmul.f32 0.03125, %v6784_v39  ;;  %v6806_v56 = vmul.f32 %v15665_v24, %v15665_v24  ;;  %v9443_v39 = vld [vmem:[%s16442_s2 + $0x98] sm:$0xff] }
0x2dcd   :  { %v15672_v19 = vsub.f32 %v15642_v52, %v6797_v15  ;;  %v6815_v20 = vsel %vm226_vm6, %v6807_v9, 0.0  ;;  %11380 = vmatprep.subr.bf16.mxu0 %v11379_v27  ;;  %v9442_v15 = vld [vmem:[%s16442_s2 + $0x90] sm:$0xff] }
0x2dce   :  { %v15676_v16 = vsub.f32 %v15645_v29, %v6796_v7  ;;  %6816 = vadd.xlane.f32.xlu0 %v6815_v20  ;;  %v6793_v43 = vpop.xlane.xlu0 %6792  ;;  %v6812_v28 = vsel %vm226_vm6, %v6806_v56, 0.0  ;;  %11382 = vmatpush3.bf16.msra.mxu0 %v11379_v27  ;;  %v11383_v9 = vpack.c.bf16 %v9443_v39, %v9442_v15  ;;  %v9451_v7 = vld [vmem:[%s16441_s1 + $0x80] sm:$0xff]  ;;  %v9452_v56 = vld [vmem:[%s16441_s1 + $0x88] sm:$0xff] }
0x2dcf   :  { %v6799_v12 = vmul.f32 0.03125, %v6793_v43  ;;  %6813 = vadd.xlane.f32.xlu1 %v6812_v28  ;;  %v6790_v57 = vpop.xlane.xlu1 %6789  ;;  %v6809_v10 = vmul.f32 %v15672_v19, %v15672_v19  ;;  %v11387_v20 = vpack.c.bf16 %v9452_v56, %v9451_v7  ;;  %v9437_v7 = vld [vmem:[%s16445_s5 + $0x1b] ss:$0 sm:$0xff] }
0x2dd0   :  { %v6798_v32 = vmul.f32 0.03125, %v6790_v57  ;;  %v6808_v47 = vmul.f32 %v15676_v16, %v15676_v16  ;;  %11384 = vmatprep.subr.bf16.mxu0 %v11383_v9 }
0x2dd1   :  { %v15684_v2 = vsub.f32 %v15652_v3, %v6799_v12  ;;  %v6821_v44 = vsel %vm226_vm6, %v6809_v10, 0.0 }
0x2dd2   :  { %v15688_v61 = vsub.f32 %v15655_v48, %v6798_v32  ;;  %6822 = vadd.xlane.f32.xlu0 %v6821_v44  ;;  %v6818_v34 = vsel %vm226_vm6, %v6808_v47, 0.0  ;;  %11386 = vmatpush3.bf16.msra.mxu0 %v11383_v9 }
0x2dd3   :  { %6819 = vadd.xlane.f32.xlu1 %v6818_v34  ;;  %v6811_v1 = vmul.f32 %v15684_v2, %v15684_v2  ;;  %11388 = vmatprep.subr.bf16.mxu0 %v11387_v20 }
0x2dd4   :  { %v6810_v4 = vmul.f32 %v15688_v61, %v15688_v61 }
0x2dd5   :  { %v6827_v37 = vsel %vm226_vm6, %v6811_v1, 0.0 }
0x2dd6   :  { %6828 = vadd.xlane.f32.xlu0 %v6827_v37  ;;  %v6824_v6 = vsel %vm226_vm6, %v6810_v4, 0.0 }
0x2dd7   :  { %6825 = vadd.xlane.f32.xlu1 %v6824_v6 }
0x2e5b   :  { %v6817_v43 = vpop.xlane.xlu0 %6816 }
0x2e5c   :  { %v6831_v28 = vmul.f32 0.03125, %v6817_v43  ;;  %v6814_v12 = vpop.xlane.xlu1 %6813 }
0x2e5d   :  { %v6830_v57 = vmul.f32 0.03125, %v6814_v12  ;;  %v9439_v12 = vld [vmem:[%s16445_s5 + $0x2a] ss:$0 sm:$0xff] }
0x2e5e   :  { %v6837_v10 = vadd.f32 1e-05, %v6831_v28 }
0x2e5f   :  { %v6836_v32 = vadd.f32 1e-05, %v6830_v57  ;;  %v6823_v47 = vpop.xlane.xlu0 %6822 }
0x2e60   :  { %12219 = vrsqrt.f32 %v6837_v10  ;;  %v6833_v44 = vmul.f32 0.03125, %v6823_v47  ;;  %v6820_v34 = vpop.xlane.xlu1 %6819  ;;  %v9453_v47 = vld [vmem:[%s16441_s1 + $0x90] sm:$0xff] }
0x2e61   :  { %12221 = vrsqrt.f32 %v6836_v32  ;;  %v6832_v1 = vmul.f32 0.03125, %v6820_v34 }
0x2e62   :  { %v6839_v4 = vadd.f32 1e-05, %v6833_v44  ;;  %v9454_v44 = vld [vmem:[%s16441_s1 + $0x98] sm:$0xff] }
0x2e63   :  { %v6838_v37 = vadd.f32 1e-05, %v6832_v1  ;;  %v6829_v6 = vpop.xlane.xlu0 %6828 }
0x2e64   :  { %12223 = vrsqrt.f32 %v6839_v4  ;;  %v6835_v62 = vmul.f32 0.03125, %v6829_v6  ;;  %v6826_v33 = vpop.xlane.xlu1 %6825  ;;  %v11391_v6 = vpack.c.bf16 %v9454_v44, %v9453_v47 }
0x2e65   :  { %12225 = vrsqrt.f32 %v6838_v37  ;;  %v6834_v27 = vmul.f32 0.03125, %v6826_v33 }
0x2e66   :  { %v6841_v15 = vadd.f32 1e-05, %v6835_v62 }
0x2e67   :  { %v6840_v39 = vadd.f32 1e-05, %v6834_v27 }
0x2e68   :  { %12227 = vrsqrt.f32 %v6841_v15 }
0x2e69   :  { %12229 = vrsqrt.f32 %v6840_v39 }
0x2e6a   :  { %v12220_v9 = vpop.eup %12219 }
0x2e6b   :  { %v12222_v56 = vpop.eup %12221  ;;  %v6849_v43 = vmul.f32 %v12220_v9, %v15662_v58 }
0x2e6c   :  { %v6848_v28 = vmul.f32 %v12222_v56, %v15665_v24 }
0x2e6d   :  { %v6863_v57 = vmul.f32 %v9437_v7, %v6849_v43 }
0x2e6e   :  { %v12224_v10 = vpop.eup %12223  ;;  %v6862_v32 = vmul.f32 %v9437_v7, %v6848_v28 }
0x2e6f   :  { %v12226_v34 = vpop.eup %12225  ;;  %v6851_v58 = vmul.f32 %v12224_v10, %v15672_v19  ;;  %v6877_v4 = vadd.f32 %v9439_v12, %v6863_v57  ;;  %v12435_v57 = vld [vmem:[%s16446_s6 + $0x38] sm:$0xff] }
0x2e70   :  { %v6876_v1 = vadd.f32 %v9439_v12, %v6862_v32  ;;  %v6850_v24 = vmul.f32 %v12226_v34, %v15676_v16  ;;  %v12436_v32 = vld [vmem:[%s16446_s6 + $0x30] sm:$0xff] }
0x2e71   :  { %v6865_v37 = vmul.f32 %v9437_v7, %v6851_v58 }
0x2e72   :  { %v12228_v62 = vpop.eup %12227  ;;  %10459 = vmatprep.mubr.msk.f32.mxu0 %vm226_vm6, %v6876_v1  ;;  %v6864_v33 = vmul.f32 %v9437_v7, %v6850_v24  ;;  %v12437_v24 = vld [vmem:[%s16446_s6 + $0x40] sm:$0xff] }
0x2e73   :  { %v12230_v27 = vpop.eup %12229  ;;  %10460 = vmatmul.mubr.msk.f32.vlgmr.msra.gmra.mrb[132].mxu0 %vm226_vm6, %v6877_v4  ;;  %v6853_v15 = vmul.f32 %v12228_v62, %v15684_v2  ;;  %v6879_v19 = vadd.f32 %v9439_v12, %v6865_v37  ;;  %v9444_v2 = vld [vmem:[#allocation2 + $0x4] ss:$0 sm:$0xff] }
0x2e74   :  { %v6878_v39 = vadd.f32 %v9439_v12, %v6864_v33  ;;  %11390 = vmatpush3.bf16.msra.mxu0 %v11387_v20  ;;  %v6852_v9 = vmul.f32 %v12230_v27, %v15688_v61  ;;  %v9456_v33 = vld [vmem:[%s16445_s5 + $0x4] ss:$0 sm:$0xff]  ;;  %v12438_v27 = vld [vmem:[%s16446_s6 + $0x48] sm:$0xff] }
0x2e75   :  { %v6867_v56 = vmul.f32 %v9437_v7, %v6853_v15  ;;  %11392 = vmatprep.subr.bf16.mxu0 %v11391_v6 }
0x2e76   :  { %10462 = vmatprep.mubr.msk.f32.mxu0 %vm226_vm6, %v6878_v39  ;;  %v6866_v16 = vmul.f32 %v9437_v7, %v6852_v9  ;;  %v12439_v9 = vld [vmem:[%s16446_s6 + $0x50] sm:$0xff] }
0x2e77   :  { %10463 = vmatmul.mubr.msk.f32.gmra.mrb[134].mxu0 %vm226_vm6, %v6879_v19  ;;  %v6881_v28 = vadd.f32 %v9439_v12, %v6867_v56 }
0x2e78   :  { %v6880_v43 = vadd.f32 %v9439_v12, %v6866_v16  ;;  %11394 = vmatpush3.bf16.msra.mxu0 %v11391_v6 }
0x2e79   :  { %11395 = vmatprep.subr.bf16.mxu0 %v16532_v14 }
0x2e7a   :  { %10465 = vmatprep.mubr.msk.f32.mxu0 %vm226_vm6, %v6880_v43 }
0x2e7b   :  { %10466 = vmatmul.mubr.msk.f32.gmra.mrb[136].mxu0 %vm226_vm6, %v6881_v28 }
0x2e7c   :  { %10476 = vmatprep.mubr.msk.f32.mxu0 %vm226_vm6, %v6876_v1 }
0x2e7f   :  { %10477 = vmatmul.mubr.msk.f32.vlgmr.msra.gmra.mrb[138].mxu0 %vm226_vm6, %v6877_v4 }
0x2e80   :  { %10479 = vmatprep.mubr.msk.f32.mxu0 %vm226_vm6, %v6878_v39 }
0x2e83   :  { %10480 = vmatmul.mubr.msk.f32.gmra.mrb[140].mxu0 %vm226_vm6, %v6879_v19 }
0x2e84   :  { %10482 = vmatprep.mubr.msk.f32.mxu0 %vm226_vm6, %v6880_v43 }
0x2e87   :  { %10483 = vmatmul.mubr.msk.f32.gmra.mrb[142].mxu0 %vm226_vm6, %v6881_v28 }
0x2e88   :  { %7402 = vmatprep.mubr.f32.mxu0 %v16560_v5 }
0x2f46   :  { %v10461_v61 = vpop.f32.mrb[132].mxu0 }
0x2f47   :  { %v6985_v20 = vadd.f32 %v10461_v61, %v9444_v2  ;;  %v6979_v7 = vpop.f32.mrb[133].mxu0 }
0x2f48   :  { %v6980_v12 = vadd.f32 %v9444_v2, %v6979_v7 }
0x2f49   :  { %v15750_v10 = vmul.f32 %v12435_v57, %v6985_v20  ;;  %v12441_v20 = vld [vmem:[%s16449_s9 + $0x38] sm:$0xff] }
0x2f4a   :  { %v15755_v47 = vmul.f32 %v12436_v32, %v6980_v12  ;;  %v10464_v44 = vpop.f32.mrb[134].mxu0  ;;  %v12442_v12 = vld [vmem:[%s16449_s9 + $0x68] sm:$0xff]  ;;  %v12443_v32 = vld [vmem:[%s16446_s6 + $0x58] sm:$0xff] }
0x2f4b   :  { %7022 = vrot.lane.b32.xlu0 %v15750_v10, %s12565_s21  ;;  %v6989_v34 = vpop.f32.mrb[135].mxu0  ;;  %v6995_v1 = vadd.f32 %v10464_v44, %v9444_v2 }
0x2f4c   :  { %v6990_v58 = vadd.f32 %v9444_v2, %v6989_v34  ;;  %7020 = vrot.lane.b32.xlu1 %v15755_v47, %s12565_s21  ;;  %v12444_v34 = vld [vmem:[%s16449_s9] sm:$0xff] }
0x2f4d   :  { %v15774_v15 = vmul.f32 %v12438_v27, %v6995_v1  ;;  %v12445_v1 = vld [vmem:[%s16449_s9 + $0x30] sm:$0xff]  ;;  %v12447_v27 = vld [vmem:[%s16449_s9 + $0x98] sm:$0xff] }
0x2f4e   :  { %v15764_v4 = vmul.f32 %v12437_v24, %v6990_v58  ;;  %v10467_v37 = vpop.f32.mrb[136].mxu0 }
0x2f4f   :  { %v6999_v6 = vpop.f32.mrb[137].mxu0  ;;  %v7005_v39 = vadd.f32 %v10467_v37, %v9444_v2  ;;  %v12446_v37 = vld [vmem:[%s16449_s9 + $0x60] sm:$0xff] }
0x2f50   :  { %v7000_v62 = vadd.f32 %v9444_v2, %v6999_v6  ;;  %7024 = vrot.lane.b32.xlu1 %v15764_v4, %s12565_s21  ;;  %v12440_v2 = vld [vmem:[%s16449_s9 + $0x8] sm:$0xff] }
0x2f51   :  { %v15801_v44 = vmul.f32 %v12443_v32, %v7005_v39 }
0x2f52   :  { %v15779_v19 = vmul.f32 %v12439_v9, %v7000_v62  ;;  %v10478_v56 = vpop.f32.mrb[138].mxu0  ;;  %v12448_v9 = vld [vmem:[%s16449_s9 + $0x90] sm:$0xff] }
0x2f53   :  { %v7129_v16 = vadd.f32 %v10478_v56, %v9456_v33  ;;  %v7123_v43 = vpop.f32.mrb[139].mxu0 }
0x2f54   :  { %v7124_v28 = vadd.f32 %v9456_v33, %v7123_v43  ;;  %7026 = vrot.lane.b32.xlu1 %v15774_v15, %s12565_s21  ;;  %7028 = vrot.lane.b32.xlu0 %v15779_v19, %s12565_s21 }
0x2f55   :  { %v7177_v61 = vmul.f32 %v12440_v2, %v7129_v16  ;;  %v15791_v7 = vmul.f32 %v12441_v20, %v7129_v16  ;;  %v15796_v57 = vmul.f32 %v12442_v12, %v7129_v16  ;;  %v15819_v39 = vmul.f32 %v12447_v27, %v7129_v16 }
0x2f56   :  { %v7176_v58 = vmul.f32 %v12444_v34, %v7124_v28  ;;  %v15809_v24 = vmul.f32 %v12445_v1, %v7124_v28  ;;  %v15814_v6 = vmul.f32 %v12446_v37, %v7124_v28  ;;  %v10481_v62 = vpop.f32.mrb[140].mxu0  ;;  %v15824_v56 = vmul.f32 %v12448_v9, %v7124_v28  ;;  %v12449_v34 = vld [vmem:[%s16449_s9 + $0x18] sm:$0xff]  ;;  %v12450_v28 = vld [vmem:[%s16449_s9 + $0x48] sm:$0xff] }
0x2f57   :  { %v7139_v43 = vadd.f32 %v10481_v62, %v9456_v33  ;;  %v7133_v2 = vpop.f32.mrb[141].mxu0  ;;  %v12454_v62 = vld [vmem:[%s16449_s9 + $0x70] sm:$0xff] }
0x2f58   :  { %v7134_v20 = vadd.f32 %v9456_v33, %v7133_v2  ;;  %7030 = vrot.lane.b32.xlu1 %v15801_v44, %s12565_s21  ;;  %v11444_v12 = vpack.c.bf16 %v7177_v61, %v7176_v58  ;;  %v11453_v32 = vpack.c.bf16 %v15791_v7, %v15809_v24  ;;  %v11462_v16 = vpack.c.bf16 %v15796_v57, %v15814_v6  ;;  %v12451_v61 = vld [vmem:[%s16449_s9 + $0x78] sm:$0xff]  ;;  %v12452_v7 = vld [vmem:[%s16449_s9 + $0x10] sm:$0xff]  ;;  %v12453_v24 = vld [vmem:[%s16449_s9 + $0x40] sm:$0xff] }
0x2f59   :  { %v7179_v1 = vmul.f32 %v12449_v34, %v7139_v43  ;;  %v7185_v37 = vmul.f32 %v12450_v28, %v7139_v43  ;;  %v7191_v58 = vmul.f32 %v12451_v61, %v7139_v43  ;;  %v12455_v2 = vld [vmem:[%s16449_s9 + $0xa8] sm:$0xff]  ;;  %v12456_v28 = vld [vmem:[%s16449_s9 + $0xa0] sm:$0xff] }
0x2f5a   :  { %v7178_v57 = vmul.f32 %v12452_v7, %v7134_v20  ;;  %v7184_v6 = vmul.f32 %v12453_v24, %v7134_v20  ;;  %v7190_v27 = vmul.f32 %v12454_v62, %v7134_v20  ;;  %v10484_v9 = vpop.f32.mrb[142].mxu0  ;;  %11445 = vmatpush1.bf16.msra.mxu1 %v11444_v12  ;;  %v7197_v34 = vmul.f32 %v12455_v2, %v7139_v43  ;;  %v12457_v43 = vld [vmem:[%s16449_s9 + $0x28] sm:$0xff] }
0x2f5b   :  { %v7196_v61 = vmul.f32 %v12456_v28, %v7134_v20  ;;  %v7149_v7 = vadd.f32 %v10484_v9, %v9456_v33  ;;  %v7143_v48 = vpop.f32.mrb[143].mxu0  ;;  %11446 = vmatprep.subr.bf16.mxu1 %v16532_v14  ;;  %v11471_v24 = vpack.c.bf16 %v15819_v39, %v15824_v56  ;;  %v12458_v20 = vld [vmem:[%s16449_s9 + $0x58] sm:$0xff]  ;;  %v12459_v28 = vld [vmem:[%s16449_s9 + $0x88] sm:$0xff]  ;;  %v12461_v39 = vld [vmem:[%s16449_s9 + $0x20] sm:$0xff] }
0x2f5c   :  { %v7144_v62 = vadd.f32 %v9456_v33, %v7143_v48  ;;  %v11447_v3 = vpack.c.bf16 %v7179_v1, %v7178_v57  ;;  %v11456_v12 = vpack.c.bf16 %v7185_v37, %v7184_v6  ;;  %v11465_v29 = vpack.c.bf16 %v7191_v58, %v7190_v27  ;;  %v12460_v48 = vld [vmem:[%s16449_s9 + $0xb8] sm:$0xff]  ;;  %v12462_v1 = vld [vmem:[%s16449_s9 + $0x50] sm:$0xff]  ;;  %v12463_v58 = vld [vmem:[%s16449_s9 + $0x80] sm:$0xff] }
0x2f5d   :  { %v7181_v2 = vmul.f32 %v12457_v43, %v7149_v7  ;;  %v7187_v9 = vmul.f32 %v12458_v20, %v7149_v7  ;;  %v7193_v52 = vmul.f32 %v12459_v28, %v7149_v7  ;;  %v7199_v33 = vmul.f32 %v12460_v48, %v7149_v7  ;;  %v12464_v6 = vld [vmem:[%s16449_s9 + $0xb0] sm:$0xff] }
0x2f5e   :  { %v7180_v56 = vmul.f32 %v12461_v39, %v7144_v62  ;;  %v7186_v37 = vmul.f32 %v12462_v1, %v7144_v62  ;;  %v7192_v57 = vmul.f32 %v12463_v58, %v7144_v62  ;;  %v7198_v27 = vmul.f32 %v12464_v6, %v7144_v62  ;;  %11448 = vmatpush1.bf16.msra.mxu1 %v11447_v3 }
0x2f5f   :  { %11449 = vmatprep.subr.bf16.mxu1 %v16532_v14  ;;  %v11474_v7 = vpack.c.bf16 %v7197_v34, %v7196_v61 }
0x2f60   :  { %v11450_v43 = vpack.c.bf16 %v7181_v2, %v7180_v56  ;;  %v11459_v20 = vpack.c.bf16 %v7187_v9, %v7186_v37  ;;  %v11468_v28 = vpack.c.bf16 %v7193_v52, %v7192_v57  ;;  %v11477_v48 = vpack.c.bf16 %v7199_v33, %v7198_v27 }
0x2f62   :  { %11451 = vmatpush1.bf16.msra.mxu1 %v11450_v43 }
0x2f63   :  { %11452 = vmatprep.subr.bf16.mxu1 %v16532_v14 }
0x2f66   :  { %11454 = vmatpush1.bf16.msra.mxu1 %v11453_v32 }
0x2f67   :  { %11455 = vmatprep.subr.bf16.mxu1 %v16532_v14 }
0x2f6a   :  { %11457 = vmatpush1.bf16.msra.mxu1 %v11456_v12 }
0x2f6b   :  { %11458 = vmatprep.subr.bf16.mxu1 %v16532_v14 }
0x2f6e   :  { %11460 = vmatpush1.bf16.msra.mxu1 %v11459_v20 }
0x2f6f   :  { %11461 = vmatprep.subr.bf16.mxu1 %v16532_v14 }
0x2f72   :  { %11463 = vmatpush1.bf16.msra.mxu1 %v11462_v16 }
0x2f73   :  { %11464 = vmatprep.subr.bf16.mxu1 %v16532_v14 }
0x2f76   :  { %11466 = vmatpush1.bf16.msra.mxu1 %v11465_v29 }
0x2f77   :  { %11467 = vmatprep.subr.bf16.mxu1 %v16532_v14 }
0x2f7a   :  { %11469 = vmatpush1.bf16.msra.mxu1 %v11468_v28 }
0x2f7b   :  { %11470 = vmatprep.subr.bf16.mxu1 %v16532_v14 }
0x2f7e   :  { %11472 = vmatpush1.bf16.msra.mxu1 %v11471_v24 }
0x2f7f   :  { %11473 = vmatprep.subr.bf16.mxu1 %v16532_v14 }
0x2f82   :  { %11475 = vmatpush1.bf16.msra.mxu1 %v11474_v7  ;;  %v16630_v7 = vld [vmem:[#allocation32_spill] sm:$0xff] }
0x2f83   :  { %11476 = vmatprep.subr.bf16.mxu1 %v16532_v14 }
0x2f86   :  { %11478 = vmatpush1.bf16.msra.mxu1 %v11477_v48 }
0x2f87   :  { %11479 = vmatprep.subr.bf16.mxu1 %v16532_v14 }
0x2fbd   :  { %v7023_v52 = vpop.permute.xlu0 %7022 }
0x2fbe   :  { %v15895_v3 = vadd.f32 %v7023_v52, %v15750_v10  ;;  %v7021_v32 = vpop.permute.xlu1 %7020 }
0x2fbf   :  { %v15898_v29 = vadd.f32 %v7021_v32, %v15755_v47 }
0x2fc0   :  { %v7153_v16 = vmul.f32 %v15895_v3, %v13088_v40 }
0x2fc1   :  { %v7152_v34 = vmul.f32 %v15898_v29, %v13080_v31  ;;  %v7158_v39 = vmul.f32 %v15898_v29, %v16569_v30  ;;  %v7170_v57 = vmul.f32 %v15898_v29, %v16594_v50  ;;  %v16629_v50 = vld [vmem:[#allocation34_spill] sm:$0xff] }
0x2fc2   :  { %v7025_v61 = vpop.permute.xlu1 %7024 }
0x2fc3   :  { %v11847_v24 = vpack.i.bf16 %v7153_v16, %v7152_v34  ;;  %v15905_v62 = vadd.f32 %v7025_v61, %v15764_v4 }
0x2fc5   :  { %11848 = vrot.lane.b32.xlu0 %v11847_v24, %s12566_s24  ;;  %v7154_v40 = vmul.f32 %v15905_v62, %v13101_v35  ;;  %v7172_v43 = vmul.f32 %v15905_v62, %v16630_v7 }
0x2fc6   :  { %v7029_v12 = vpop.permute.xlu0 %7028  ;;  %v7027_v10 = vpop.permute.xlu1 %7026 }
0x2fc7   :  { %v15909_v2 = vadd.f32 %v7027_v10, %v15774_v15  ;;  %v15912_v47 = vadd.f32 %v7029_v12, %v15779_v19  ;;  %v7159_v15 = vmul.f32 %v15895_v3, %v16570_v23  ;;  %v7160_v23 = vmul.f32 %v15905_v62, %v16576_v45 }
0x2fc8   :  { %v7171_v45 = vmul.f32 %v15895_v3, %v16595_v18 }
0x2fc9   :  { %v7155_v31 = vmul.f32 %v15909_v2, %v16568_v59  ;;  %v7156_v19 = vmul.f32 %v15912_v47, %v16571_v51  ;;  %v11862_v59 = vpack.i.bf16 %v7159_v15, %v7158_v39  ;;  %v7161_v1 = vmul.f32 %v15909_v2, %v16575_v21 }
0x2fca   :  { %v7031_v9 = vpop.permute.xlu1 %7030  ;;  %v7162_v30 = vmul.f32 %v15912_v47, %v16573_v25  ;;  %v7165_v51 = vmul.f32 %v15895_v3, %v16577_v60  ;;  %v7164_v21 = vmul.f32 %v15898_v29, %v16579_v36  ;;  %v7166_v25 = vmul.f32 %v15905_v62, %v16580_v42 }
0x2fcb   :  { %v15919_v4 = vadd.f32 %v7031_v9, %v15801_v44  ;;  %v11852_v33 = vpack.i.bf16 %v7155_v31, %v7154_v40  ;;  %v11867_v37 = vpack.i.bf16 %v7161_v1, %v7160_v23  ;;  %v7168_v36 = vmul.f32 %v15912_v47, %v16596_v22 }
0x2fcc   :  { %v11877_v60 = vpack.i.bf16 %v7165_v51, %v7164_v21  ;;  %v11892_v6 = vpack.i.bf16 %v7171_v45, %v7170_v57  ;;  %v7173_v27 = vmul.f32 %v15909_v2, %v16614_v0 }
0x2fcd   :  { %11853 = vrot.lane.b32.xlu1 %v11852_v33, %s12566_s24  ;;  %v7157_v35 = vmul.f32 %v15919_v4, %v16572_v63  ;;  %v7163_v44 = vmul.f32 %v15919_v4, %v16574_v26  ;;  %v7167_v26 = vmul.f32 %v15909_v2, %v16578_v38  ;;  %v7169_v38 = vmul.f32 %v15919_v4, %v16597_v41 }
0x2fce   :  { %v7175_v18 = vmul.f32 %v15919_v4, %v16613_v54  ;;  %v7174_v41 = vmul.f32 %v15912_v47, %v16629_v50  ;;  %v11897_v22 = vpack.i.bf16 %v7173_v27, %v7172_v43 }
0x2fcf   :  { %v11857_v56 = vpack.i.bf16 %v7157_v35, %v7156_v19  ;;  %v11872_v63 = vpack.i.bf16 %v7163_v44, %v7162_v30  ;;  %v11882_v58 = vpack.i.bf16 %v7167_v26, %v7166_v25  ;;  %v11887_v42 = vpack.i.bf16 %v7169_v38, %v7168_v36 }
0x2fd0   :  { %v11902_v20 = vpack.i.bf16 %v7175_v18, %v7174_v41 }
0x2fd1   :  { %11863 = vrot.lane.b32.xlu1 %v11862_v59, %s12566_s24  ;;  %11858 = vrot.lane.b32.xlu0 %v11857_v56, %s12566_s24 }
0x2fd5   :  { %11873 = vrot.lane.b32.xlu1 %v11872_v63, %s12566_s24  ;;  %11868 = vrot.lane.b32.xlu0 %v11867_v37, %s12566_s24 }
0x2fd9   :  { %11883 = vrot.lane.b32.xlu1 %v11882_v58, %s12566_s24  ;;  %11878 = vrot.lane.b32.xlu0 %v11877_v60, %s12566_s24 }
0x2fdd   :  { %11893 = vrot.lane.b32.xlu1 %v11892_v6, %s12566_s24  ;;  %11888 = vrot.lane.b32.xlu0 %v11887_v42, %s12566_s24 }
0x2fe1   :  { %11903 = vrot.lane.b32.xlu1 %v11902_v20, %s12566_s24  ;;  %11898 = vrot.lane.b32.xlu0 %v11897_v22, %s12566_s24 }
0x3037   :  { %v11849_v54 = vpop.permute.xlu0 %11848 }
0x3038   :  { %v11851_v28 = vunpack.i.h.bf16 %v11849_v54  ;;  %v11850_v48 = vunpack.i.l.bf16 %v11849_v54 }
0x303a   :  { %v11396_v0 = vpack.c.bf16 %v11851_v28, %v11850_v48 }
0x303c   :  { %11398 = vmatpush1.bf16.xpose.msk.msra.mxu0 %vm13186_vm7, %v11396_v0 }
0x303d   :  { %11399 = vmatprep.subr.bf16.mxu0 %v16532_v14 }
0x303f   :  { %v11854_v32 = vpop.permute.xlu1 %11853 }
0x3040   :  { %v11856_v16 = vunpack.i.h.bf16 %v11854_v32  ;;  %v11855_v34 = vunpack.i.l.bf16 %v11854_v32 }
0x3042   :  { %v11400_v61 = vpack.c.bf16 %v11856_v16, %v11855_v34  ;;  %v12468_v16 = vld [vmem:[%s16447_s7 + $0x70] sm:$0xff] }
0x3043   :  { %v11859_v24 = vpop.permute.xlu0 %11858  ;;  %v11864_v31 = vpop.permute.xlu1 %11863 }
0x3044   :  { %11402 = vmatpush1.bf16.xpose.msk.msra.mxu0 %vm13186_vm7, %v11400_v61  ;;  %v11861_v12 = vunpack.i.h.bf16 %v11859_v24  ;;  %v11860_v10 = vunpack.i.l.bf16 %v11859_v24  ;;  %v11866_v9 = vunpack.i.h.bf16 %v11864_v31  ;;  %v11865_v33 = vunpack.i.l.bf16 %v11864_v31 }
0x3045   :  { %11403 = vmatprep.subr.bf16.mxu0 %v16532_v14 }
0x3046   :  { %v11404_v40 = vpack.c.bf16 %v11861_v12, %v11860_v10  ;;  %v11408_v39 = vpack.c.bf16 %v11866_v9, %v11865_v33  ;;  %v12470_v9 = vld [vmem:[%s16447_s7 + $0x80] sm:$0xff] }
0x3047   :  { %v11869_v15 = vpop.permute.xlu0 %11868  ;;  %v11874_v56 = vpop.permute.xlu1 %11873 }
0x3048   :  { %v11871_v19 = vunpack.i.h.bf16 %v11869_v15  ;;  %v11870_v35 = vunpack.i.l.bf16 %v11869_v15  ;;  %v11876_v44 = vunpack.i.h.bf16 %v11874_v56  ;;  %v11875_v1 = vunpack.i.l.bf16 %v11874_v56 }
0x304a   :  { %v11412_v59 = vpack.c.bf16 %v11871_v19, %v11870_v35  ;;  %v11416_v30 = vpack.c.bf16 %v11876_v44, %v11875_v1  ;;  %v12472_v44 = vld [vmem:[%s16447_s7 + $0x90] sm:$0xff] }
0x304b   :  { %v11879_v23 = vpop.permute.xlu0 %11878  ;;  %v11884_v26 = vpop.permute.xlu1 %11883 }
0x304c   :  { %11406 = vmatpush1.bf16.xpose.msk.msra.mxu0 %vm13186_vm7, %v11404_v40  ;;  %v11881_v51 = vunpack.i.h.bf16 %v11879_v23  ;;  %v11880_v63 = vunpack.i.l.bf16 %v11879_v23  ;;  %v11886_v21 = vunpack.i.h.bf16 %v11884_v26  ;;  %v11885_v25 = vunpack.i.l.bf16 %v11884_v26  ;;  %v12469_v40 = vld [vmem:[%s16447_s7 + $0x88] sm:$0xff] }
0x304d   :  { %11407 = vmatprep.subr.bf16.mxu0 %v16532_v14 }
0x304e   :  { %v11420_v37 = vpack.c.bf16 %v11881_v51, %v11880_v63  ;;  %v11424_v45 = vpack.c.bf16 %v11886_v21, %v11885_v25  ;;  %v12474_v21 = vld [vmem:[%s16447_s7 + $0xa0] sm:$0xff] }
0x304f   :  { %v11889_v58 = vpop.permute.xlu0 %11888  ;;  %v11894_v36 = vpop.permute.xlu1 %11893 }
0x3050   :  { %v11891_v60 = vunpack.i.h.bf16 %v11889_v58  ;;  %v11890_v57 = vunpack.i.l.bf16 %v11889_v58  ;;  %v11896_v6 = vunpack.i.h.bf16 %v11894_v36  ;;  %v11895_v42 = vunpack.i.l.bf16 %v11894_v36 }
0x3052   :  { %v11428_v38 = vpack.c.bf16 %v11891_v60, %v11890_v57  ;;  %v11432_v18 = vpack.c.bf16 %v11896_v6, %v11895_v42  ;;  %v12476_v6 = vld [vmem:[%s16447_s7 + $0xb0] sm:$0xff] }
0x3053   :  { %v11899_v27 = vpop.permute.xlu0 %11898  ;;  %v11904_v43 = vpop.permute.xlu1 %11903 }
0x3054   :  { %11410 = vmatpush1.bf16.xpose.msk.msra.mxu0 %vm13186_vm7, %v11408_v39  ;;  %v11901_v50 = vunpack.i.h.bf16 %v11899_v27  ;;  %v11900_v41 = vunpack.i.l.bf16 %v11899_v27  ;;  %v11906_v20 = vunpack.i.h.bf16 %v11904_v43  ;;  %v11905_v22 = vunpack.i.l.bf16 %v11904_v43 }
0x3055   :  { %11411 = vmatprep.subr.bf16.mxu0 %v16532_v14 }
0x3056   :  { %v11436_v7 = vpack.c.bf16 %v11901_v50, %v11900_v41  ;;  %v11440_v54 = vpack.c.bf16 %v11906_v20, %v11905_v22 }
0x305c   :  { %11414 = vmatpush1.bf16.xpose.msk.msra.mxu0 %vm13186_vm7, %v11412_v59  ;;  %v12471_v59 = vld [vmem:[%s16447_s7 + $0x98] sm:$0xff] }
0x305d   :  { %11415 = vmatprep.subr.bf16.mxu0 %v16532_v14 }
0x3064   :  { %11418 = vmatpush1.bf16.xpose.msk.msra.mxu0 %vm13186_vm7, %v11416_v30 }
0x3065   :  { %11419 = vmatprep.subr.bf16.mxu0 %v16532_v14 }
0x306c   :  { %11422 = vmatpush1.bf16.xpose.msk.msra.mxu0 %vm13186_vm7, %v11420_v37  ;;  %v12473_v37 = vld [vmem:[%s16447_s7 + $0xa8] sm:$0xff] }
0x306d   :  { %11423 = vmatprep.subr.bf16.mxu0 %v16532_v14 }
0x3074   :  { %11426 = vmatpush1.bf16.xpose.msk.msra.mxu0 %vm13186_vm7, %v11424_v45 }
0x3075   :  { %11427 = vmatprep.subr.bf16.mxu0 %v16532_v14 }
0x307c   :  { %11430 = vmatpush1.bf16.xpose.msk.msra.mxu0 %vm13186_vm7, %v11428_v38  ;;  %v12475_v38 = vld [vmem:[%s16447_s7 + $0xb8] sm:$0xff] }
0x307d   :  { %11431 = vmatprep.subr.bf16.mxu0 %v16532_v14 }
0x3084   :  { %11434 = vmatpush1.bf16.xpose.msk.msra.mxu0 %vm13186_vm7, %v11432_v18 }
0x3085   :  { %11435 = vmatprep.subr.bf16.mxu0 %v16532_v14 }
0x308c   :  { %11438 = vmatpush1.bf16.xpose.msk.msra.mxu0 %vm13186_vm7, %v11436_v7 }
0x308d   :  { %11439 = vmatprep.subr.bf16.mxu0 %v16532_v14 }
0x3094   :  { %11442 = vmatpush1.bf16.xpose.msk.msra.mxu0 %vm13186_vm7, %v11440_v54 }
0x309b   :  { %9487 = vmatmul.mubr.msk.f32.vlgmr.msra.gmra.mrb[144].mxu0 %vm226_vm6, %v15898_v29 }
0x309c   :  { %7408 = vmatprep.mubr.f32.mxu0 %v16560_v5 }
0x309f   :  { %9488 = vmatmul.mubr.msk.f32.gmra.mrb[146].mxu0 %vm226_vm6, %v15895_v3 }
0x30a0   :  { %7414 = vmatprep.mubr.f32.mxu0 %v16560_v5 }
0x30a3   :  { %9489 = vmatmul.mubr.msk.f32.gmra.mrb[148].mxu0 %vm226_vm6, %v15905_v62  ;;  %v12465_v62 = vld [vmem:[%s16447_s7 + $0x68] sm:$0xff] }
0x30a4   :  { %7420 = vmatprep.mubr.f32.mxu0 %v16560_v5 }
0x30a7   :  { %9490 = vmatmul.mubr.msk.f32.gmra.mrb[150].mxu0 %vm226_vm6, %v15909_v2  ;;  %v12466_v2 = vld [vmem:[%s16447_s7 + $0x60] sm:$0xff] }
0x30a8   :  { %7426 = vmatprep.mubr.f32.mxu0 %v16560_v5 }
0x30ab   :  { %9491 = vmatmul.mubr.msk.f32.gmra.mrb[152].mxu0 %vm226_vm6, %v15912_v47 }
0x30ac   :  { %7432 = vmatprep.mubr.f32.mxu0 %v16560_v5 }
0x30af   :  { %9492 = vmatmul.mubr.msk.f32.gmra.mrb[154].mxu0 %vm226_vm6, %v15919_v4  ;;  %v12467_v4 = vld [vmem:[%s16447_s7 + $0x78] sm:$0xff] }
0x316e   :  { %v7404_v3 = vpop.f32.mrb[144].mxu0 }
0x316f   :  { %v7406_v29 = vpop.f32.mrb[145].mxu0  ;;  %v7405_v48 = vadd.f32 %v12466_v2, %v7404_v3 }
0x3170   :  { %v7407_v28 = vadd.f32 %v12465_v62, %v7406_v29 }
0x3172   :  { %v7439_v0 = vsel %vm1001_vm8, %v7407_v28, -inf  ;;  %v7410_v47 = vpop.f32.mrb[146].mxu0 }
0x3173   :  { %v7440_v52 = vmax.f32 %v7405_v48, %v7439_v0  ;;  %v7412_v5 = vpop.f32.mrb[147].mxu0  ;;  %v7411_v34 = vadd.f32 %v12468_v16, %v7410_v47 }
0x3174   :  { %v7413_v32 = vadd.f32 %v12467_v4, %v7412_v5 }
0x3175   :  { %7441 = vmax.xlane.f32.xlu0 %v7440_v52 }
0x3176   :  { %v7443_v61 = vsel %vm1001_vm8, %v7413_v32, -inf  ;;  %v7416_v24 = vpop.f32.mrb[148].mxu0 }
0x3177   :  { %v7444_v12 = vmax.f32 %v7411_v34, %v7443_v61  ;;  %v7418_v10 = vpop.f32.mrb[149].mxu0  ;;  %v7417_v33 = vadd.f32 %v12470_v9, %v7416_v24 }
0x3178   :  { %v7419_v31 = vadd.f32 %v12469_v40, %v7418_v10 }
0x3179   :  { %7445 = vmax.xlane.f32.xlu1 %v7444_v12 }
0x317a   :  { %v7447_v39 = vsel %vm1001_vm8, %v7419_v31, -inf  ;;  %v7422_v15 = vpop.f32.mrb[150].mxu0 }
0x317b   :  { %v7448_v19 = vmax.f32 %v7417_v33, %v7447_v39  ;;  %v7424_v35 = vpop.f32.mrb[151].mxu0  ;;  %v7423_v1 = vadd.f32 %v12472_v44, %v7422_v15 }
0x317c   :  { %v7425_v56 = vadd.f32 %v12471_v59, %v7424_v35 }
0x317d   :  { %7449 = vmax.xlane.f32.xlu0 %v7448_v19 }
0x317e   :  { %v7451_v30 = vsel %vm1001_vm8, %v7425_v56, -inf  ;;  %v7428_v23 = vpop.f32.mrb[152].mxu0 }
0x317f   :  { %v7452_v51 = vmax.f32 %v7423_v1, %v7451_v30  ;;  %v7430_v63 = vpop.f32.mrb[153].mxu0  ;;  %v7429_v25 = vadd.f32 %v12474_v21, %v7428_v23  ;;  %v9506_v21 = vld [vmem:[%s16441_s1 + $0x128] sm:$0xff] }
0x3180   :  { %v7431_v26 = vadd.f32 %v12473_v37, %v7430_v63  ;;  %v16635_v63 = vld [vmem:[#allocation39_spill] sm:$0xff]  ;;  %v16637_v37 = vld [vmem:[#allocation41_spill] sm:$0xff] }
0x3181   :  { %7453 = vmax.xlane.f32.xlu0 %v7452_v51 }
0x3182   :  { %v7455_v45 = vsel %vm1001_vm8, %v7431_v26, -inf  ;;  %v7434_v58 = vpop.f32.mrb[154].mxu0 }
0x3183   :  { %v7456_v60 = vmax.f32 %v7429_v25, %v7455_v45  ;;  %v7436_v57 = vpop.f32.mrb[155].mxu0  ;;  %v7435_v42 = vadd.f32 %v12476_v6, %v7434_v58  ;;  %v9507_v45 = vld [vmem:[%s16441_s1 + $0x130] sm:$0xff]  ;;  %v9508_v58 = vld [vmem:[%s16441_s1 + $0x138] sm:$0xff] }
0x3184   :  { %v7437_v36 = vadd.f32 %v12475_v38, %v7436_v57 }
0x3185   :  { %7457 = vmax.xlane.f32.xlu1 %v7456_v60  ;;  %v11519_v60 = vpack.c.bf16 %v9508_v58, %v9507_v45  ;;  %v16641_v45 = vld [vmem:[#allocation23_spill] sm:$0xff] }
0x3186   :  { %v7459_v18 = vsel %vm1001_vm8, %v7437_v36, -inf }
0x3187   :  { %v7460_v27 = vmax.f32 %v7435_v42, %v7459_v18 }
0x3189   :  { %7461 = vmax.xlane.f32.xlu0 %v7460_v27 }
0x3202   :  { %v7442_v50 = vpop.xlane.xlu0 %7441 }
0x3203   :  { %v7463_v41 = vsub.f32 %v7405_v48, %v7442_v50  ;;  %v7464_v7 = vsub.f32 %v7407_v28, %v7442_v50 }
0x3205   :  { %v7475_v43 = vmul.f32 1.442695, %v7463_v41  ;;  %v7477_v20 = vmul.f32 1.442695, %v7464_v7 }
0x3206   :  { %v7446_v22 = vpop.xlane.xlu1 %7445 }
0x3207   :  { %12231 = vpow2.f32 %v7475_v43  ;;  %v7465_v54 = vsub.f32 %v7411_v34, %v7446_v22  ;;  %v7466_v3 = vsub.f32 %v7413_v32, %v7446_v22 }
0x3208   :  { %12233 = vpow2.f32 %v7477_v20 }
0x3209   :  { %v7479_v29 = vmul.f32 1.442695, %v7465_v54  ;;  %v7481_v62 = vmul.f32 1.442695, %v7466_v3 }
0x320a   :  { %v7450_v2 = vpop.xlane.xlu0 %7449 }
0x320b   :  { %12235 = vpow2.f32 %v7479_v29  ;;  %v7467_v0 = vsub.f32 %v7417_v33, %v7450_v2  ;;  %v7468_v47 = vsub.f32 %v7419_v31, %v7450_v2 }
0x320c   :  { %12237 = vpow2.f32 %v7481_v62 }
0x320d   :  { %v7483_v52 = vmul.f32 1.442695, %v7467_v0  ;;  %v7485_v5 = vmul.f32 1.442695, %v7468_v47 }
0x320e   :  { %v7454_v4 = vpop.xlane.xlu0 %7453 }
0x320f   :  { %12239 = vpow2.f32 %v7483_v52  ;;  %v7469_v48 = vsub.f32 %v7423_v1, %v7454_v4  ;;  %v7470_v28 = vsub.f32 %v7425_v56, %v7454_v4 }
0x3210   :  { %12241 = vpow2.f32 %v7485_v5 }
0x3211   :  { %v16066_v16 = vpop.eup %12231  ;;  %v7487_v61 = vmul.f32 1.442695, %v7469_v48  ;;  %v7489_v34 = vmul.f32 1.442695, %v7470_v28 }
0x3212   :  { %v12234_v32 = vpop.eup %12233  ;;  %v7458_v24 = vpop.xlane.xlu1 %7457 }
0x3213   :  { %12243 = vpow2.f32 %v7487_v61  ;;  %v7471_v12 = vsub.f32 %v7429_v25, %v7458_v24  ;;  %v7472_v10 = vsub.f32 %v7431_v26, %v7458_v24  ;;  %9493 = vmatprep.mubr.msk.f32.mxu1 %vm1001_vm8, %v12234_v32  ;;  %v9505_v26 = vld [vmem:[%s16441_s1 + $0x120] sm:$0xff] }
0x3214   :  { %12245 = vpow2.f32 %v7489_v34  ;;  %7582 = vmatmul.mubr.f32.vlgmr.msra.gmra.mrb[150].mxu1 %v16066_v16  ;;  %v11515_v25 = vpack.c.bf16 %v9506_v21, %v9505_v26  ;;  %v16640_v21 = vld [vmem:[#allocation26_spill] sm:$0xff] }
0x3215   :  { %v12236_v40 = vpop.eup %12235  ;;  %v7491_v31 = vmul.f32 1.442695, %v7471_v12  ;;  %v7493_v9 = vmul.f32 1.442695, %v7472_v10  ;;  %11481 = vmatpush1.bf16.msra.mxu1 %v13323_v11 }
0x3216   :  { %v12238_v33 = vpop.eup %12237  ;;  %11482 = vmatprep.subr.bf16.mxu1 %v16532_v14  ;;  %v7462_v39 = vpop.xlane.xlu0 %7461  ;;  %11516 = vmatprep.subr.bf16.mxu0 %v11515_v25 }
0x3217   :  { %12247 = vpow2.f32 %v7491_v31  ;;  %9494 = vmatprep.mubr.msk.f32.mxu1 %vm1001_vm8, %v12238_v33  ;;  %v7473_v15 = vsub.f32 %v7435_v42, %v7462_v39  ;;  %v7474_v19 = vsub.f32 %v7437_v36, %v7462_v39  ;;  %11518 = vmatpush3.bf16.msra.mxu0 %v11515_v25  ;;  %v9510_v39 = vld [vmem:[%s16445_s5 + $0x9] ss:$0 sm:$0xff] }
0x3218   :  { %12249 = vpow2.f32 %v7493_v9  ;;  %7587 = vmatmul.mubr.f32.gmra.mrb[152].mxu1 %v12236_v40  ;;  %11520 = vmatprep.subr.bf16.mxu0 %v11519_v60 }
0x3219   :  { %v12240_v35 = vpop.eup %12239  ;;  %v7495_v59 = vmul.f32 1.442695, %v7473_v15  ;;  %v7497_v56 = vmul.f32 1.442695, %v7474_v19  ;;  %11484 = vmatpush1.bf16.msra.mxu1 %v13332_v53 }
0x321a   :  { %v12242_v44 = vpop.eup %12241  ;;  %11485 = vmatprep.subr.bf16.mxu1 %v16532_v14 }
0x321b   :  { %12251 = vpow2.f32 %v7495_v59  ;;  %9495 = vmatprep.mubr.msk.f32.mxu1 %vm1001_vm8, %v12242_v44  ;;  %11522 = vmatpush3.bf16.msra.mxu0 %v11519_v60 }
0x321c   :  { %12253 = vpow2.f32 %v7497_v56  ;;  %7592 = vmatmul.mubr.f32.gmra.mrb[154].mxu1 %v12240_v35 }
0x321d   :  { %v12244_v11 = vpop.eup %12243  ;;  %11487 = vmatpush1.bf16.msra.mxu1 %v13340_v46  ;;  %v16632_v46 = vld [vmem:[#allocation36_spill] sm:$0xff] }
0x321e   :  { %v12246_v1 = vpop.eup %12245  ;;  %11488 = vmatprep.subr.bf16.mxu1 %v16532_v14 }
0x321f   :  { %9496 = vmatprep.mubr.msk.f32.mxu1 %vm1001_vm8, %v12246_v1 }
0x3220   :  { %7597 = vmatmul.mubr.f32.gmra.mrb[156].mxu1 %v12244_v11 }
0x3221   :  { %v12248_v30 = vpop.eup %12247  ;;  %11490 = vmatpush1.bf16.msra.mxu1 %v13347_v8  ;;  %v16633_v8 = vld [vmem:[#allocation37_spill] sm:$0xff] }
0x3222   :  { %v12250_v53 = vpop.eup %12249  ;;  %11491 = vmatprep.subr.bf16.mxu1 %v16532_v14 }
0x3223   :  { %9497 = vmatprep.mubr.msk.f32.mxu1 %vm1001_vm8, %v12250_v53 }
0x3224   :  { %7602 = vmatmul.mubr.f32.gmra.mrb[158].mxu1 %v12248_v30 }
0x3225   :  { %v12252_v23 = vpop.eup %12251  ;;  %11493 = vmatpush1.bf16.msra.mxu1 %v13354_v49  ;;  %v16634_v49 = vld [vmem:[#allocation38_spill] sm:$0xff] }
0x3226   :  { %v12254_v51 = vpop.eup %12253  ;;  %11494 = vmatprep.subr.bf16.mxu1 %v16532_v14 }
0x3227   :  { %9498 = vmatprep.mubr.msk.f32.mxu1 %vm1001_vm8, %v12254_v51 }
0x3228   :  { %7607 = vmatmul.mubr.f32.gmra.mrb[160].mxu1 %v12252_v23 }
0x3229   :  { %11496 = vmatpush1.bf16.msra.mxu1 %v13361_v17  ;;  %9499 = vmatprep.mubr.msk.f32.mxu1 %vm1001_vm8, %v12234_v32  ;;  %v16636_v17 = vld [vmem:[#allocation40_spill] sm:$0xff] }
0x322a   :  { %11497 = vmatprep.subr.bf16.mxu1 %v16532_v14 }
0x322d   :  { %11499 = vmatpush1.bf16.msra.mxu1 %v16632_v46  ;;  %v16638_v46 = vld [vmem:[#allocation19_spill] sm:$0xff] }
0x322e   :  { %11500 = vmatprep.subr.bf16.mxu1 %v16532_v14 }
0x3231   :  { %11502 = vmatpush1.bf16.msra.mxu1 %v16633_v8 }
0x3232   :  { %11503 = vmatprep.subr.bf16.mxu1 %v16532_v14 }
0x3235   :  { %11505 = vmatpush1.bf16.msra.mxu1 %v16634_v49 }
0x3236   :  { %11506 = vmatprep.subr.bf16.mxu1 %v16532_v14 }
0x3239   :  { %11508 = vmatpush1.bf16.msra.mxu1 %v16635_v63 }
0x323a   :  { %11509 = vmatprep.subr.bf16.mxu1 %v16532_v14 }
0x323d   :  { %11511 = vmatpush1.bf16.msra.mxu1 %v16636_v17 }
0x323e   :  { %11512 = vmatprep.subr.bf16.mxu1 %v16532_v14  ;;  %v12477_v14 = vld [vmem:[#allocation5] sm:$0xff] }
0x3241   :  { %11514 = vmatpush1.bf16.msra.mxu1 %v16637_v37 }
0x3244   :  { %7677 = vmatmul.mubr.f32.vlgmr.msra.gmra.mrb[162].mxu1 %v16066_v16 }
0x3245   :  { %9500 = vmatprep.mubr.msk.f32.mxu1 %vm1001_vm8, %v12238_v33 }
0x3248   :  { %7682 = vmatmul.mubr.f32.gmra.mrb[164].mxu1 %v12236_v40 }
0x3249   :  { %9501 = vmatprep.mubr.msk.f32.mxu1 %vm1001_vm8, %v12242_v44 }
0x324c   :  { %7687 = vmatmul.mubr.f32.gmra.mrb[166].mxu1 %v12240_v35 }
0x324d   :  { %9502 = vmatprep.mubr.msk.f32.mxu1 %vm1001_vm8, %v12246_v1 }
0x3250   :  { %7692 = vmatmul.mubr.f32.gmra.mrb[168].mxu1 %v12244_v11 }
0x3251   :  { %9503 = vmatprep.mubr.msk.f32.mxu1 %vm1001_vm8, %v12250_v53 }
0x3254   :  { %7697 = vmatmul.mubr.f32.gmra.mrb[170].mxu1 %v12248_v30 }
0x3255   :  { %9504 = vmatprep.mubr.msk.f32.mxu1 %vm1001_vm8, %v12254_v51 }
0x3258   :  { %7702 = vmatmul.mubr.f32.gmra.mrb[172].mxu1 %v12252_v23 }
0x3259   :  { %10514 = vmatprep.mubr.msk.f32.mxu1 %vm6006_vm9, %v12477_v14 }
0x32e7   :  { %v7583_v57 = vpop.f32.mrb[150].mxu1 }
0x32e8   :  { %v7585_v38 = vpop.f32.mrb[151].mxu1 }
0x32eb   :  { %v7588_v36 = vpop.f32.mrb[152].mxu1 }
0x32ec   :  { %v7590_v6 = vpop.f32.mrb[153].mxu1 }
0x32ef   :  { %v7593_v42 = vpop.f32.mrb[154].mxu1 }
0x32f0   :  { %v7595_v18 = vpop.f32.mrb[155].mxu1 }
0x32f3   :  { %v7598_v27 = vpop.f32.mrb[156].mxu1 }
0x32f4   :  { %v7600_v50 = vpop.f32.mrb[157].mxu1 }
0x32f7   :  { %v7603_v41 = vpop.f32.mrb[158].mxu1 }
0x32f8   :  { %v7605_v7 = vpop.f32.mrb[159].mxu1 }
0x32fb   :  { %v7608_v43 = vpop.f32.mrb[160].mxu1 }
0x32fc   :  { %v7610_v20 = vpop.f32.mrb[161].mxu1 }
0x3317   :  { %v7678_v22 = vpop.f32.mrb[162].mxu1 }
0x3318   :  { %12255 = vrcp.f32 %v7678_v22  ;;  %v7680_v54 = vpop.f32.mrb[163].mxu1 }
0x331b   :  { %v7683_v3 = vpop.f32.mrb[164].mxu1 }
0x331c   :  { %12257 = vrcp.f32 %v7683_v3  ;;  %v7685_v29 = vpop.f32.mrb[165].mxu1 }
0x331f   :  { %v7688_v62 = vpop.f32.mrb[166].mxu1 }
0x3320   :  { %12259 = vrcp.f32 %v7688_v62  ;;  %v7690_v2 = vpop.f32.mrb[167].mxu1 }
0x3322   :  { %v12256_v0 = vpop.eup %12255 }
0x3323   :  { %v7693_v47 = vpop.f32.mrb[168].mxu1  ;;  %v7713_v52 = vmul.f32 %v12256_v0, %v7583_v57 }
0x3324   :  { %12261 = vrcp.f32 %v7693_v47  ;;  %v7695_v5 = vpop.f32.mrb[169].mxu1 }
0x3325   :  { %10493 = vmatprep.mubr.msk.f32.mxu0 %vm226_vm6, %v7713_v52 }
0x3326   :  { %v12258_v4 = vpop.eup %12257 }
0x3327   :  { %v7714_v48 = vmul.f32 %v12258_v4, %v7588_v36  ;;  %v7698_v28 = vpop.f32.mrb[170].mxu1 }
0x3328   :  { %12263 = vrcp.f32 %v7698_v28  ;;  %v7700_v16 = vpop.f32.mrb[171].mxu1 }
0x3329   :  { %10494 = vmatmul.mubr.msk.f32.vlgmr.msra.gmra.mrb[156].mxu0 %vm226_vm6, %v7714_v48 }
0x332a   :  { %v12260_v61 = vpop.eup %12259 }
0x332b   :  { %v7703_v34 = vpop.f32.mrb[172].mxu1  ;;  %v7715_v32 = vmul.f32 %v12260_v61, %v7593_v42 }
0x332c   :  { %12265 = vrcp.f32 %v7703_v34  ;;  %v7705_v24 = vpop.f32.mrb[173].mxu1 }
0x332d   :  { %10496 = vmatprep.mubr.msk.f32.mxu0 %vm226_vm6, %v7715_v32 }
0x332e   :  { %v12262_v12 = vpop.eup %12261 }
0x332f   :  { %v7716_v10 = vmul.f32 %v12262_v12, %v7598_v27 }
0x3331   :  { %10497 = vmatmul.mubr.msk.f32.gmra.mrb[158].mxu0 %vm226_vm6, %v7716_v10  ;;  %v9527_v10 = vld [vmem:[%s16441_s1 + $0x160] sm:$0xff] }
0x3332   :  { %v12264_v40 = vpop.eup %12263 }
0x3333   :  { %v7717_v31 = vmul.f32 %v12264_v40, %v7603_v41  ;;  %v9528_v40 = vld [vmem:[%s16441_s1 + $0x168] sm:$0xff] }
0x3335   :  { %10499 = vmatprep.mubr.msk.f32.mxu0 %vm226_vm6, %v7717_v31  ;;  %v9529_v31 = vld [vmem:[%s16441_s1 + $0x170] sm:$0xff] }
0x3336   :  { %v12266_v9 = vpop.eup %12265 }
0x3337   :  { %v7718_v33 = vmul.f32 %v12266_v9, %v7608_v43  ;;  %v11535_v9 = vpack.c.bf16 %v9528_v40, %v9527_v10 }
0x3339   :  { %10500 = vmatmul.mubr.msk.f32.gmra.mrb[160].mxu0 %vm226_vm6, %v7718_v33  ;;  %v9530_v33 = vld [vmem:[%s16441_s1 + $0x178] sm:$0xff]  ;;  %11536 = vmatprep.subr.bf16.mxu0 %v11535_v9 }
0x333a   :  { %11538 = vmatpush3.bf16.msra.mxu0 %v11535_v9 }
0x33fc   :  { %v10495_v15 = vpop.f32.mrb[156].mxu0 }
0x33fd   :  { %v7822_v19 = vadd.f32 %v10495_v15, %v9510_v39  ;;  %v7816_v35 = vpop.f32.mrb[157].mxu0 }
0x33fe   :  { %v7817_v59 = vadd.f32 %v9510_v39, %v7816_v35 }
0x33ff   :  { %v16128_v56 = vadd.f32 %v7822_v19, %v15632_v55  ;;  %v16639_v55 = vld [vmem:[#allocation24_spill] sm:$0xff] }
0x3400   :  { %v16131_v44 = vadd.f32 %v7817_v59, %v15635_v13 }
0x3401   :  { %v7854_v11 = vsel %vm226_vm6, %v16128_v56, 0.0 }
0x3402   :  { %7855 = vadd.xlane.f32.xlu0 %v7854_v11  ;;  %v7851_v1 = vsel %vm226_vm6, %v16131_v44, 0.0 }
0x3403   :  { %7852 = vadd.xlane.f32.xlu1 %v7851_v1 }
0x3404   :  { %v10498_v30 = vpop.f32.mrb[158].mxu0 }
0x3405   :  { %v7832_v53 = vadd.f32 %v10498_v30, %v9510_v39  ;;  %v7826_v23 = vpop.f32.mrb[159].mxu0 }
0x3406   :  { %v7827_v51 = vadd.f32 %v9510_v39, %v7826_v23 }
0x3407   :  { %v16138_v8 = vadd.f32 %v7832_v53, %v16638_v46 }
0x3408   :  { %v16141_v49 = vadd.f32 %v7827_v51, %v16639_v55 }
0x3409   :  { %v7860_v13 = vsel %vm226_vm6, %v16138_v8, 0.0 }
0x340a   :  { %7861 = vadd.xlane.f32.xlu0 %v7860_v13  ;;  %v7857_v63 = vsel %vm226_vm6, %v16141_v49, 0.0 }
0x340b   :  { %7858 = vadd.xlane.f32.xlu1 %v7857_v63  ;;  %v9518_v63 = vld [vmem:[%s16445_s5 + $0x1c] ss:$0 sm:$0xff] }
0x340c   :  { %v10501_v17 = vpop.f32.mrb[160].mxu0 }
0x340d   :  { %v7842_v37 = vadd.f32 %v10501_v17, %v9510_v39  ;;  %v7836_v14 = vpop.f32.mrb[161].mxu0 }
0x340e   :  { %v7837_v26 = vadd.f32 %v9510_v39, %v7836_v14  ;;  %v11539_v39 = vpack.c.bf16 %v9530_v33, %v9529_v31 }
0x340f   :  { %v16148_v25 = vadd.f32 %v7842_v37, %v16640_v21 }
0x3410   :  { %v16151_v58 = vadd.f32 %v7837_v26, %v16641_v45  ;;  %11540 = vmatprep.subr.bf16.mxu0 %v11539_v39 }
0x3411   :  { %v7866_v60 = vsel %vm226_vm6, %v16148_v25, 0.0  ;;  %11542 = vmatpush3.bf16.msra.mxu0 %v11539_v39 }
0x3412   :  { %7867 = vadd.xlane.f32.xlu0 %v7866_v60  ;;  %v7863_v57 = vsel %vm226_vm6, %v16151_v58, 0.0  ;;  %v9520_v60 = vld [vmem:[%s16445_s5 + $0x2b] ss:$0 sm:$0xff] }
0x3413   :  { %7864 = vadd.xlane.f32.xlu1 %v7863_v57 }
0x348f   :  { %v7856_v38 = vpop.xlane.xlu0 %7855 }
0x3490   :  { %v7870_v36 = vmul.f32 0.03125, %v7856_v38  ;;  %v7853_v6 = vpop.xlane.xlu1 %7852 }
0x3491   :  { %v7869_v42 = vmul.f32 0.03125, %v7853_v6 }
0x3492   :  { %v7876_v18 = vsub.f32 %v16128_v56, %v7870_v36 }
0x3493   :  { %v16159_v27 = vsub.f32 %v16131_v44, %v7869_v42 }
0x3494   :  { %v7882_v50 = vmul.f32 %v7876_v18, %v7876_v18 }
0x3495   :  { %v7881_v41 = vmul.f32 %v16159_v27, %v16159_v27 }
0x3496   :  { %v7890_v7 = vsel %vm226_vm6, %v7882_v50, 0.0 }
0x3497   :  { %v7862_v43 = vpop.xlane.xlu0 %7861  ;;  %7891 = vadd.xlane.f32.xlu0 %v7890_v7  ;;  %v7887_v20 = vsel %vm226_vm6, %v7881_v41, 0.0 }
0x3498   :  { %v7872_v22 = vmul.f32 0.03125, %v7862_v43  ;;  %v7859_v54 = vpop.xlane.xlu1 %7858  ;;  %7888 = vadd.xlane.f32.xlu1 %v7887_v20 }
0x3499   :  { %v7871_v3 = vmul.f32 0.03125, %v7859_v54 }
0x349a   :  { %v16166_v29 = vsub.f32 %v16138_v8, %v7872_v22 }
0x349b   :  { %v16169_v62 = vsub.f32 %v16141_v49, %v7871_v3 }
0x349c   :  { %v7884_v2 = vmul.f32 %v16166_v29, %v16166_v29 }
0x349d   :  { %v7883_v0 = vmul.f32 %v16169_v62, %v16169_v62 }
0x349e   :  { %v7896_v47 = vsel %vm226_vm6, %v7884_v2, 0.0 }
0x349f   :  { %7897 = vadd.xlane.f32.xlu0 %v7896_v47  ;;  %v7868_v52 = vpop.xlane.xlu0 %7867  ;;  %v7893_v5 = vsel %vm226_vm6, %v7883_v0, 0.0 }
0x34a0   :  { %v7874_v4 = vmul.f32 0.03125, %v7868_v52  ;;  %7894 = vadd.xlane.f32.xlu1 %v7893_v5  ;;  %v7865_v48 = vpop.xlane.xlu1 %7864 }
0x34a1   :  { %v7873_v28 = vmul.f32 0.03125, %v7865_v48 }
0x34a2   :  { %v16178_v16 = vsub.f32 %v16148_v25, %v7874_v4 }
0x34a3   :  { %v16181_v61 = vsub.f32 %v16151_v58, %v7873_v28 }
0x34a4   :  { %v7886_v34 = vmul.f32 %v16178_v16, %v16178_v16 }
0x34a5   :  { %v7885_v32 = vmul.f32 %v16181_v61, %v16181_v61 }
0x34a6   :  { %v7902_v24 = vsel %vm226_vm6, %v7886_v34, 0.0 }
0x34a7   :  { %7903 = vadd.xlane.f32.xlu0 %v7902_v24  ;;  %v7899_v12 = vsel %vm226_vm6, %v7885_v32, 0.0  ;;  %v12479_v24 = vld [vmem:[#allocation5 + $0x10] sm:$0xff] }
0x34a8   :  { %7900 = vadd.xlane.f32.xlu1 %v7899_v12  ;;  %v12480_v12 = vld [vmem:[#allocation5 + $0x18] sm:$0xff] }
0x3524   :  { %v7892_v15 = vpop.xlane.xlu0 %7891 }
0x3525   :  { %v7906_v19 = vmul.f32 0.03125, %v7892_v15  ;;  %v7889_v35 = vpop.xlane.xlu1 %7888  ;;  %v9532_v15 = vld [vmem:[%s16445_s5 + $0x10] ss:$0 sm:$0xff] }
0x3526   :  { %v7905_v59 = vmul.f32 0.03125, %v7889_v35 }
0x3527   :  { %v7912_v11 = vadd.f32 1e-05, %v7906_v19 }
0x3528   :  { %v7911_v1 = vadd.f32 1e-05, %v7905_v59 }
0x3529   :  { %12267 = vrsqrt.f32 %v7912_v11 }
0x352a   :  { %12269 = vrsqrt.f32 %v7911_v1 }
0x352c   :  { %v7898_v30 = vpop.xlane.xlu0 %7897 }
0x352d   :  { %v7908_v53 = vmul.f32 0.03125, %v7898_v30  ;;  %v7895_v23 = vpop.xlane.xlu1 %7894 }
0x352e   :  { %v7907_v51 = vmul.f32 0.03125, %v7895_v23 }
0x352f   :  { %v7914_v46 = vadd.f32 1e-05, %v7908_v53 }
0x3530   :  { %v7913_v55 = vadd.f32 1e-05, %v7907_v51 }
0x3531   :  { %12271 = vrsqrt.f32 %v7914_v46 }
0x3532   :  { %12273 = vrsqrt.f32 %v7913_v55 }
0x3533   :  { %v12268_v13 = vpop.eup %12267 }
0x3534   :  { %v12270_v17 = vpop.eup %12269  ;;  %v7904_v37 = vpop.xlane.xlu0 %7903  ;;  %v7924_v14 = vmul.f32 %v12268_v13, %v7876_v18 }
0x3535   :  { %v7910_v26 = vmul.f32 0.03125, %v7904_v37  ;;  %v7901_v21 = vpop.xlane.xlu1 %7900  ;;  %v7923_v45 = vmul.f32 %v12270_v17, %v16159_v27 }
0x3536   :  { %v7909_v57 = vmul.f32 0.03125, %v7901_v21  ;;  %v7938_v38 = vmul.f32 %v9518_v63, %v7924_v14 }
0x3537   :  { %v7916_v36 = vadd.f32 1e-05, %v7910_v26  ;;  %v7937_v6 = vmul.f32 %v9518_v63, %v7923_v45 }
0x3538   :  { %v7915_v42 = vadd.f32 1e-05, %v7909_v57  ;;  %v7952_v50 = vadd.f32 %v9520_v60, %v7938_v38 }
0x3539   :  { %12275 = vrsqrt.f32 %v7916_v36  ;;  %v7951_v41 = vadd.f32 %v9520_v60, %v7937_v6 }
0x353a   :  { %12277 = vrsqrt.f32 %v7915_v42 }
0x353b   :  { %v12272_v7 = vpop.eup %12271  ;;  %v11523_v43 = vpack.c.bf16 %v7952_v50, %v7951_v41 }
0x353c   :  { %v12274_v18 = vpop.eup %12273  ;;  %v7926_v20 = vmul.f32 %v12272_v7, %v16166_v29 }
0x353d   :  { %11524 = vmatprep.subr.bf16.mxu1 %v11523_v43  ;;  %v7925_v27 = vmul.f32 %v12274_v18, %v16169_v62  ;;  %v12478_v62 = vld [vmem:[#allocation5 + $0x8] sm:$0xff] }
0x353e   :  { %11526 = vmatpush3.bf16.msra.mxu1 %v11523_v43  ;;  %v7940_v22 = vmul.f32 %v9518_v63, %v7926_v20 }
0x353f   :  { %v7939_v54 = vmul.f32 %v9518_v63, %v7925_v27 }
0x3540   :  { %v7954_v3 = vadd.f32 %v9520_v60, %v7940_v22 }
0x3541   :  { %v7953_v2 = vadd.f32 %v9520_v60, %v7939_v54 }
0x3543   :  { %v12276_v0 = vpop.eup %12275  ;;  %v11527_v47 = vpack.c.bf16 %v7954_v3, %v7953_v2 }
0x3544   :  { %v12278_v52 = vpop.eup %12277  ;;  %v7928_v5 = vmul.f32 %v12276_v0, %v16178_v16  ;;  %v12481_v16 = vld [vmem:[#allocation5 + $0x20] sm:$0xff] }
0x3545   :  { %11528 = vmatprep.subr.bf16.mxu1 %v11527_v47  ;;  %v7927_v4 = vmul.f32 %v12278_v52, %v16181_v61  ;;  %v12482_v61 = vld [vmem:[#allocation5 + $0x28] sm:$0xff] }
0x3546   :  { %11530 = vmatpush3.bf16.msra.mxu1 %v11527_v47  ;;  %v7942_v48 = vmul.f32 %v9518_v63, %v7928_v5 }
0x3547   :  { %v7941_v28 = vmul.f32 %v9518_v63, %v7927_v4 }
0x3548   :  { %v7956_v29 = vadd.f32 %v9520_v60, %v7942_v48 }
0x3549   :  { %v7955_v34 = vadd.f32 %v9520_v60, %v7941_v28 }
0x354b   :  { %v11531_v32 = vpack.c.bf16 %v7956_v29, %v7955_v34 }
0x354d   :  { %11532 = vmatprep.subr.bf16.mxu1 %v11531_v32 }
0x354e   :  { %11534 = vmatpush3.bf16.msra.mxu1 %v11531_v32 }
0x3551   :  { %10515 = vmatmul.mubr.msk.f32.vlgmr.msra.gmra.mrb[174].mxu1 %vm6006_vm9, %v12478_v62 }
0x3552   :  { %10517 = vmatprep.mubr.msk.f32.mxu1 %vm6006_vm9, %v12479_v24 }
0x3555   :  { %10518 = vmatmul.mubr.msk.f32.gmra.mrb[176].mxu1 %vm6006_vm9, %v12480_v12 }
0x3556   :  { %10520 = vmatprep.mubr.msk.f32.mxu1 %vm6006_vm9, %v12481_v16 }
0x3559   :  { %10521 = vmatmul.mubr.msk.f32.gmra.mrb[178].mxu1 %vm6006_vm9, %v12482_v61 }
0x3624   :  { %v10516_v10 = vpop.f32.mrb[174].mxu1 }
0x3625   :  { %v8023_v40 = vpop.f32.mrb[175].mxu1 }
0x3626   :  { %10531 = vmatprep.mubr.msk.f32.mxu0 %vm226_vm6, %v8023_v40 }
0x3627   :  { %10532 = vmatmul.mubr.msk.f32.vlgmr.msra.gmra.mrb[162].mxu0 %vm226_vm6, %v10516_v10 }
0x3628   :  { %v10519_v31 = vpop.f32.mrb[176].mxu1 }
0x3629   :  { %v8033_v9 = vpop.f32.mrb[177].mxu1 }
0x362a   :  { %10534 = vmatprep.mubr.msk.f32.mxu0 %vm226_vm6, %v8033_v9 }
0x362b   :  { %10535 = vmatmul.mubr.msk.f32.gmra.mrb[164].mxu0 %vm226_vm6, %v10519_v31 }
0x362c   :  { %v10522_v33 = vpop.f32.mrb[178].mxu1 }
0x362d   :  { %v8043_v39 = vpop.f32.mrb[179].mxu1 }
0x362e   :  { %10537 = vmatprep.mubr.msk.f32.mxu0 %vm226_vm6, %v8043_v39 }
0x362f   :  { %10538 = vmatmul.mubr.msk.f32.gmra.mrb[166].mxu0 %vm226_vm6, %v10522_v33 }
0x36fa   :  { %v10533_v19 = vpop.f32.mrb[162].mxu0 }
0x36fb   :  { %v8155_v35 = vadd.f32 %v10533_v19, %v9532_v15  ;;  %v8149_v59 = vpop.f32.mrb[163].mxu0 }
0x36fc   :  { %v8150_v11 = vadd.f32 %v9532_v15, %v8149_v59 }
0x36fd   :  { %v8179_v1 = vadd.f32 %v8155_v35, %v7952_v50 }
0x36fe   :  { %v8178_v30 = vadd.f32 %v8150_v11, %v7951_v41  ;;  %v10536_v53 = vpop.f32.mrb[164].mxu0 }
0x36ff   :  { %v8165_v23 = vadd.f32 %v10536_v53, %v9532_v15  ;;  %v8159_v51 = vpop.f32.mrb[165].mxu0  ;;  %v8187_v46 = vsel %vm226_vm6, %v8179_v1, 0.0 }
0x3700   :  { %v8160_v55 = vadd.f32 %v9532_v15, %v8159_v51  ;;  %8188 = vadd.xlane.f32.xlu0 %v8187_v46  ;;  %v8184_v13 = vsel %vm226_vm6, %v8178_v30, 0.0 }
0x3701   :  { %v8181_v63 = vadd.f32 %v8165_v23, %v7954_v3  ;;  %8185 = vadd.xlane.f32.xlu1 %v8184_v13 }
0x3702   :  { %v8180_v17 = vadd.f32 %v8160_v55, %v7953_v2  ;;  %v10539_v37 = vpop.f32.mrb[166].mxu0 }
0x3703   :  { %v8175_v14 = vadd.f32 %v10539_v37, %v9532_v15  ;;  %v8169_v26 = vpop.f32.mrb[167].mxu0  ;;  %v8193_v21 = vsel %vm226_vm6, %v8181_v63, 0.0 }
0x3704   :  { %v8170_v45 = vadd.f32 %v9532_v15, %v8169_v26  ;;  %8194 = vadd.xlane.f32.xlu0 %v8193_v21  ;;  %v8190_v60 = vsel %vm226_vm6, %v8180_v17, 0.0 }
0x3705   :  { %v8183_v57 = vadd.f32 %v8175_v14, %v7956_v29  ;;  %8191 = vadd.xlane.f32.xlu1 %v8190_v60  ;;  %v9540_v14 = vld [vmem:[%s16445_s5 + $0x1d] ss:$0 sm:$0xff] }
0x3706   :  { %v8182_v38 = vadd.f32 %v8170_v45, %v7955_v34  ;;  %v9542_v45 = vld [vmem:[%s16445_s5 + $0x2c] ss:$0 sm:$0xff] }
0x3707   :  { %v8199_v36 = vsel %vm226_vm6, %v8183_v57, 0.0 }
0x3708   :  { %8200 = vadd.xlane.f32.xlu0 %v8199_v36  ;;  %v8196_v6 = vsel %vm226_vm6, %v8182_v38, 0.0 }
0x3709   :  { %8197 = vadd.xlane.f32.xlu1 %v8196_v6 }
0x378d   :  { %v8189_v42 = vpop.xlane.xlu0 %8188 }
0x378e   :  { %v8203_v50 = vmul.f32 0.03125, %v8189_v42  ;;  %v8186_v41 = vpop.xlane.xlu1 %8185 }
0x378f   :  { %v8202_v7 = vmul.f32 0.03125, %v8186_v41 }
0x3790   :  { %v8209_v43 = vsub.f32 %v8179_v1, %v8203_v50 }
0x3791   :  { %v8208_v18 = vsub.f32 %v8178_v30, %v8202_v7  ;;  %v8195_v20 = vpop.xlane.xlu0 %8194 }
0x3792   :  { %v8205_v27 = vmul.f32 0.03125, %v8195_v20  ;;  %v8192_v22 = vpop.xlane.xlu1 %8191  ;;  %v8215_v54 = vmul.f32 %v8209_v43, %v8209_v43 }
0x3793   :  { %v8204_v3 = vmul.f32 0.03125, %v8192_v22  ;;  %v8214_v2 = vmul.f32 %v8208_v18, %v8208_v18 }
0x3794   :  { %v8211_v0 = vsub.f32 %v8181_v63, %v8205_v27  ;;  %v8223_v47 = vsel %vm226_vm6, %v8215_v54, 0.0 }
0x3795   :  { %v8210_v52 = vsub.f32 %v8180_v17, %v8204_v3  ;;  %8224 = vadd.xlane.f32.xlu0 %v8223_v47  ;;  %v8201_v5 = vpop.xlane.xlu0 %8200  ;;  %v8220_v4 = vsel %vm226_vm6, %v8214_v2, 0.0 }
0x3796   :  { %v8207_v48 = vmul.f32 0.03125, %v8201_v5  ;;  %8221 = vadd.xlane.f32.xlu1 %v8220_v4  ;;  %v8198_v28 = vpop.xlane.xlu1 %8197  ;;  %v8217_v29 = vmul.f32 %v8211_v0, %v8211_v0 }
0x3797   :  { %v8206_v34 = vmul.f32 0.03125, %v8198_v28  ;;  %v8216_v32 = vmul.f32 %v8210_v52, %v8210_v52 }
0x3798   :  { %v8213_v62 = vsub.f32 %v8183_v57, %v8207_v48  ;;  %v8229_v24 = vsel %vm226_vm6, %v8217_v29, 0.0 }
0x3799   :  { %v8212_v12 = vsub.f32 %v8182_v38, %v8206_v34  ;;  %8230 = vadd.xlane.f32.xlu0 %v8229_v24  ;;  %v8226_v16 = vsel %vm226_vm6, %v8216_v32, 0.0 }
0x379a   :  { %8227 = vadd.xlane.f32.xlu1 %v8226_v16  ;;  %v8219_v61 = vmul.f32 %v8213_v62, %v8213_v62 }
0x379b   :  { %v8218_v10 = vmul.f32 %v8212_v12, %v8212_v12 }
0x379c   :  { %v8235_v40 = vsel %vm226_vm6, %v8219_v61, 0.0 }
0x379d   :  { %8236 = vadd.xlane.f32.xlu0 %v8235_v40  ;;  %v8232_v31 = vsel %vm226_vm6, %v8218_v10, 0.0 }
0x379e   :  { %8233 = vadd.xlane.f32.xlu1 %v8232_v31 }
0x3822   :  { %v8225_v9 = vpop.xlane.xlu0 %8224 }
0x3823   :  { %v8239_v33 = vmul.f32 0.03125, %v8225_v9  ;;  %v8222_v39 = vpop.xlane.xlu1 %8221 }
0x3824   :  { %v8238_v15 = vmul.f32 0.03125, %v8222_v39 }
0x3825   :  { %v8245_v19 = vadd.f32 1e-05, %v8239_v33 }
0x3826   :  { %v8244_v35 = vadd.f32 1e-05, %v8238_v15  ;;  %v8231_v59 = vpop.xlane.xlu0 %8230 }
0x3827   :  { %12279 = vrsqrt.f32 %v8245_v19  ;;  %v8241_v11 = vmul.f32 0.03125, %v8231_v59  ;;  %v8228_v1 = vpop.xlane.xlu1 %8227 }
0x3828   :  { %12281 = vrsqrt.f32 %v8244_v35  ;;  %v8240_v30 = vmul.f32 0.03125, %v8228_v1 }
0x3829   :  { %v8247_v53 = vadd.f32 1e-05, %v8241_v11 }
0x382a   :  { %v8246_v23 = vadd.f32 1e-05, %v8240_v30  ;;  %v8237_v51 = vpop.xlane.xlu0 %8236 }
0x382b   :  { %12283 = vrsqrt.f32 %v8247_v53  ;;  %v8243_v46 = vmul.f32 0.03125, %v8237_v51  ;;  %v8234_v55 = vpop.xlane.xlu1 %8233 }
0x382c   :  { %12285 = vrsqrt.f32 %v8246_v23  ;;  %v8242_v13 = vmul.f32 0.03125, %v8234_v55 }
0x382d   :  { %v8249_v63 = vadd.f32 1e-05, %v8243_v46 }
0x382e   :  { %v8248_v17 = vadd.f32 1e-05, %v8242_v13 }
0x382f   :  { %12287 = vrsqrt.f32 %v8249_v63 }
0x3830   :  { %12289 = vrsqrt.f32 %v8248_v17 }
0x3831   :  { %v12280_v37 = vpop.eup %12279 }
0x3832   :  { %v12282_v26 = vpop.eup %12281  ;;  %v8257_v21 = vmul.f32 %v12280_v37, %v8209_v43 }
0x3833   :  { %v8256_v60 = vmul.f32 %v12282_v26, %v8208_v18 }
0x3834   :  { %v8271_v57 = vmul.f32 %v9540_v14, %v8257_v21 }
0x3835   :  { %v12284_v38 = vpop.eup %12283  ;;  %v8270_v36 = vmul.f32 %v9540_v14, %v8256_v60  ;;  %v9548_v60 = vld [vmem:[%s16442_s2 + $0x128] sm:$0xff] }
0x3836   :  { %v12286_v6 = vpop.eup %12285  ;;  %v8285_v42 = vadd.f32 %v9542_v45, %v8271_v57  ;;  %v8259_v50 = vmul.f32 %v12284_v38, %v8211_v0  ;;  %v9549_v38 = vld [vmem:[%s16442_s2 + $0x130] sm:$0xff] }
0x3837   :  { %v8284_v41 = vadd.f32 %v9542_v45, %v8270_v36  ;;  %v8258_v7 = vmul.f32 %v12286_v6, %v8210_v52  ;;  %v9550_v36 = vld [vmem:[%s16442_s2 + $0x138] sm:$0xff] }
0x3838   :  { %v16245_v20 = vadd.f32 %v8285_v42, %v16128_v56  ;;  %v8273_v27 = vmul.f32 %v9540_v14, %v8259_v50  ;;  %v11547_v6 = vpack.c.bf16 %v9550_v36, %v9549_v38  ;;  %v16642_v42 = vld [vmem:[#allocation11_spill] sm:$0xff]  ;;  %v9558_v50 = vld [vmem:[%s16443_s3 + $0x200] sm:$0xff]  ;;  %v9565_v36 = vld [vmem:[%s16443_s3 + $0x238] sm:$0xff] }
0x3839   :  { %v12288_v22 = vpop.eup %12287  ;;  %v16248_v43 = vadd.f32 %v8284_v41, %v16131_v44  ;;  %v8272_v54 = vmul.f32 %v9540_v14, %v8258_v7  ;;  %v9559_v41 = vld [vmem:[%s16443_s3 + $0x208] sm:$0xff]  ;;  %v9564_v38 = vld [vmem:[%s16443_s3 + $0x230] sm:$0xff] }
0x383a   :  { %v12290_v3 = vpop.eup %12289  ;;  %v8299_v18 = vsel %vm226_vm6, %v16245_v20, 0.0  ;;  %v8287_v2 = vadd.f32 %v9542_v45, %v8273_v27  ;;  %v8261_v47 = vmul.f32 %v12288_v22, %v8213_v62  ;;  %v11551_v7 = vpack.c.bf16 %v9559_v41, %v9558_v50  ;;  %v9567_v50 = vld [vmem:[%s16443_s3 + $0x248] sm:$0xff] }
0x383b   :  { %8300 = vadd.xlane.f32.xlu0 %v8299_v18  ;;  %v8296_v0 = vsel %vm226_vm6, %v16248_v43, 0.0  ;;  %v8286_v52 = vadd.f32 %v9542_v45, %v8272_v54  ;;  %v8260_v5 = vmul.f32 %v12290_v3, %v8212_v12 }
0x383c   :  { %8297 = vadd.xlane.f32.xlu1 %v8296_v0  ;;  %v16255_v56 = vadd.f32 %v8287_v2, %v16138_v8  ;;  %v8275_v4 = vmul.f32 %v9540_v14, %v8261_v47  ;;  %11552 = vmatprep.subr.bf16.mxu0 %v11551_v7 }
0x383d   :  { %v16258_v44 = vadd.f32 %v8286_v52, %v16141_v49  ;;  %v8274_v48 = vmul.f32 %v9540_v14, %v8260_v5  ;;  %11554 = vmatpush3.bf16.msra.mxu0 %v11551_v7  ;;  %v9568_v7 = vld [vmem:[%s16443_s3 + $0x250] sm:$0xff] }
0x383e   :  { %v8305_v28 = vsel %vm226_vm6, %v16255_v56, 0.0  ;;  %v8289_v29 = vadd.f32 %v9542_v45, %v8275_v4 }
0x383f   :  { %8306 = vadd.xlane.f32.xlu0 %v8305_v28  ;;  %v8302_v34 = vsel %vm226_vm6, %v16258_v44, 0.0  ;;  %v8288_v32 = vadd.f32 %v9542_v45, %v8274_v48  ;;  %v9547_v45 = vld [vmem:[%s16442_s2 + $0x120] sm:$0xff] }
0x3840   :  { %8303 = vadd.xlane.f32.xlu1 %v8302_v34  ;;  %v16265_v62 = vadd.f32 %v8289_v29, %v16148_v25  ;;  %v11543_v57 = vpack.c.bf16 %v9548_v60, %v9547_v45  ;;  %v9562_v45 = vld [vmem:[%s16443_s3 + $0x220] sm:$0xff]  ;;  %v9563_v60 = vld [vmem:[%s16443_s3 + $0x228] sm:$0xff] }
0x3841   :  { %v16268_v8 = vadd.f32 %v8288_v32, %v16151_v58 }
0x3842   :  { %v8311_v49 = vsel %vm226_vm6, %v16265_v62, 0.0  ;;  %11544 = vmatprep.subr.bf16.mxu1 %v11543_v57 }
0x3843   :  { %8312 = vadd.xlane.f32.xlu0 %v8311_v49  ;;  %v8308_v24 = vsel %vm226_vm6, %v16268_v8, 0.0  ;;  %11546 = vmatpush3.bf16.msra.mxu1 %v11543_v57  ;;  %v11559_v57 = vpack.c.bf16 %v9563_v60, %v9562_v45 }
0x3844   :  { %8309 = vadd.xlane.f32.xlu1 %v8308_v24  ;;  %11548 = vmatprep.subr.bf16.mxu1 %v11547_v6 }
0x3847   :  { %11550 = vmatpush3.bf16.msra.mxu1 %v11547_v6  ;;  %v11563_v6 = vpack.c.bf16 %v9565_v36, %v9564_v38 }
0x3848   :  { %11584 = vmatprep.subr.bf16.mxu1 %v16642_v42 }
0x38c8   :  { %v8301_v12 = vpop.xlane.xlu0 %8300 }
0x38c9   :  { %v8315_v16 = vmul.f32 0.03125, %v8301_v12  ;;  %v8298_v61 = vpop.xlane.xlu1 %8297 }
0x38ca   :  { %v8314_v10 = vmul.f32 0.03125, %v8298_v61 }
0x38cb   :  { %v16275_v40 = vsub.f32 %v16245_v20, %v8315_v16  ;;  %v9544_v16 = vld [vmem:[%s16445_s5 + $0x1e] ss:$0 sm:$0xff] }
0x38cc   :  { %v16278_v25 = vsub.f32 %v16248_v43, %v8314_v10  ;;  %v8307_v58 = vpop.xlane.xlu0 %8306 }
0x38cd   :  { %v8317_v31 = vmul.f32 0.03125, %v8307_v58  ;;  %v8304_v9 = vpop.xlane.xlu1 %8303  ;;  %v8327_v33 = vmul.f32 %v16275_v40, %v16275_v40 }
0x38ce   :  { %v8316_v39 = vmul.f32 0.03125, %v8304_v9  ;;  %v8326_v15 = vmul.f32 %v16278_v25, %v16278_v25 }
0x38cf   :  { %v16285_v19 = vsub.f32 %v16255_v56, %v8317_v31  ;;  %v8335_v35 = vsel %vm226_vm6, %v8327_v33, 0.0  ;;  %v9546_v31 = vld [vmem:[%s16445_s5 + $0x2d] ss:$0 sm:$0xff] }
0x38d0   :  { %v16289_v59 = vsub.f32 %v16258_v44, %v8316_v39  ;;  %8336 = vadd.xlane.f32.xlu0 %v8335_v35  ;;  %v8313_v11 = vpop.xlane.xlu0 %8312  ;;  %v8332_v1 = vsel %vm226_vm6, %v8326_v15, 0.0 }
0x38d1   :  { %v8319_v30 = vmul.f32 0.03125, %v8313_v11  ;;  %8333 = vadd.xlane.f32.xlu1 %v8332_v1  ;;  %v8310_v53 = vpop.xlane.xlu1 %8309  ;;  %v8329_v23 = vmul.f32 %v16285_v19, %v16285_v19 }
0x38d2   :  { %v8318_v51 = vmul.f32 0.03125, %v8310_v53  ;;  %v8328_v46 = vmul.f32 %v16289_v59, %v16289_v59 }
0x38d3   :  { %v16297_v55 = vsub.f32 %v16265_v62, %v8319_v30  ;;  %v8341_v13 = vsel %vm226_vm6, %v8329_v23, 0.0 }
0x38d4   :  { %v16301_v63 = vsub.f32 %v16268_v8, %v8318_v51  ;;  %8342 = vadd.xlane.f32.xlu0 %v8341_v13  ;;  %v8338_v17 = vsel %vm226_vm6, %v8328_v46, 0.0 }
0x38d5   :  { %8339 = vadd.xlane.f32.xlu1 %v8338_v17  ;;  %v8331_v37 = vmul.f32 %v16297_v55, %v16297_v55 }
0x38d6   :  { %v8330_v14 = vmul.f32 %v16301_v63, %v16301_v63 }
0x38d7   :  { %v8347_v26 = vsel %vm226_vm6, %v8331_v37, 0.0  ;;  %v16643_v37 = vld [vmem:[#allocation12_spill] sm:$0xff] }
0x38d8   :  { %8348 = vadd.xlane.f32.xlu0 %v8347_v26  ;;  %v8344_v21 = vsel %vm226_vm6, %v8330_v14, 0.0 }
0x38d9   :  { %8345 = vadd.xlane.f32.xlu1 %v8344_v21 }
0x395d   :  { %v8337_v27 = vpop.xlane.xlu0 %8336 }
0x395e   :  { %v8351_v22 = vmul.f32 0.03125, %v8337_v27  ;;  %v8334_v54 = vpop.xlane.xlu1 %8333  ;;  %v9569_v27 = vld [vmem:[%s16443_s3 + $0x258] sm:$0xff] }
0x395f   :  { %v8350_v3 = vmul.f32 0.03125, %v8334_v54  ;;  %v11571_v54 = vpack.c.bf16 %v9569_v27, %v9568_v7 }
0x3960   :  { %v8357_v18 = vadd.f32 1e-05, %v8351_v22  ;;  %v9570_v22 = vld [vmem:[%s16443_s3 + $0x260] sm:$0xff] }
0x3961   :  { %v8356_v2 = vadd.f32 1e-05, %v8350_v3  ;;  %v8343_v47 = vpop.xlane.xlu0 %8342  ;;  %v9571_v3 = vld [vmem:[%s16443_s3 + $0x268] sm:$0xff] }
0x3962   :  { %12291 = vrsqrt.f32 %v8357_v18  ;;  %v8353_v0 = vmul.f32 0.03125, %v8343_v47  ;;  %v8340_v52 = vpop.xlane.xlu1 %8339  ;;  %v11575_v18 = vpack.c.bf16 %v9571_v3, %v9570_v22  ;;  %v9573_v47 = vld [vmem:[%s16443_s3 + $0x278] sm:$0xff] }
0x3963   :  { %12293 = vrsqrt.f32 %v8356_v2  ;;  %v8352_v5 = vmul.f32 0.03125, %v8340_v52  ;;  %v9572_v2 = vld [vmem:[%s16443_s3 + $0x270] sm:$0xff]  ;;  %v9551_v52 = vld [vmem:[#allocation2 + $0x9] ss:$0 sm:$0xff] }
0x3964   :  { %v8359_v4 = vadd.f32 1e-05, %v8353_v0  ;;  %v11579_v0 = vpack.c.bf16 %v9573_v47, %v9572_v2 }
0x3965   :  { %v8358_v48 = vadd.f32 1e-05, %v8352_v5  ;;  %v8349_v28 = vpop.xlane.xlu0 %8348 }
0x3966   :  { %12295 = vrsqrt.f32 %v8359_v4  ;;  %v8355_v29 = vmul.f32 0.03125, %v8349_v28  ;;  %v8346_v34 = vpop.xlane.xlu1 %8345 }
0x3967   :  { %12297 = vrsqrt.f32 %v8358_v48  ;;  %v8354_v32 = vmul.f32 0.03125, %v8346_v34 }
0x3968   :  { %v8361_v49 = vadd.f32 1e-05, %v8355_v29 }
0x3969   :  { %v8360_v24 = vadd.f32 1e-05, %v8354_v32 }
0x396a   :  { %12299 = vrsqrt.f32 %v8361_v49 }
0x396b   :  { %12301 = vrsqrt.f32 %v8360_v24 }
0x396c   :  { %v12292_v12 = vpop.eup %12291 }
0x396d   :  { %v12294_v61 = vpop.eup %12293  ;;  %v8369_v10 = vmul.f32 %v12292_v12, %v16275_v40 }
0x396e   :  { %v8368_v58 = vmul.f32 %v12294_v61, %v16278_v25 }
0x396f   :  { %v8383_v9 = vmul.f32 %v9544_v16, %v8369_v10 }
0x3970   :  { %v12296_v33 = vpop.eup %12295  ;;  %v8382_v39 = vmul.f32 %v9544_v16, %v8368_v58 }
0x3971   :  { %v12298_v15 = vpop.eup %12297  ;;  %v8371_v35 = vmul.f32 %v12296_v33, %v16285_v19  ;;  %v8397_v30 = vadd.f32 %v9546_v31, %v8383_v9 }
0x3972   :  { %v8396_v11 = vadd.f32 %v9546_v31, %v8382_v39  ;;  %v8370_v1 = vmul.f32 %v12298_v15, %v16289_v59 }
0x3973   :  { %v8385_v53 = vmul.f32 %v9544_v16, %v8371_v35 }
0x3974   :  { %v12300_v23 = vpop.eup %12299  ;;  %10548 = vmatprep.mubr.msk.f32.mxu1 %vm226_vm6, %v8396_v11  ;;  %v8384_v40 = vmul.f32 %v9544_v16, %v8370_v1 }
0x3975   :  { %v12302_v25 = vpop.eup %12301  ;;  %10549 = vmatmul.mubr.msk.f32.vlgmr.msra.gmra.mrb[180].mxu1 %vm226_vm6, %v8397_v30  ;;  %v8373_v51 = vmul.f32 %v12300_v23, %v16297_v55  ;;  %v8399_v19 = vadd.f32 %v9546_v31, %v8385_v53  ;;  %v9560_v55 = vld [vmem:[%s16443_s3 + $0x210] sm:$0xff] }
0x3976   :  { %v8398_v46 = vadd.f32 %v9546_v31, %v8384_v40  ;;  %v8372_v13 = vmul.f32 %v12302_v25, %v16301_v63  ;;  %11586 = vmatpush3.bf16.msra.mxu1 %v16642_v42  ;;  %v9561_v63 = vld [vmem:[%s16443_s3 + $0x218] sm:$0xff]  ;;  %v9566_v42 = vld [vmem:[%s16443_s3 + $0x240] sm:$0xff] }
0x3977   :  { %v8387_v17 = vmul.f32 %v9544_v16, %v8373_v51  ;;  %11588 = vmatprep.subr.bf16.mxu1 %v16643_v37  ;;  %v11555_v21 = vpack.c.bf16 %v9561_v63, %v9560_v55  ;;  %v11567_v41 = vpack.c.bf16 %v9567_v50, %v9566_v42 }
0x3978   :  { %10551 = vmatprep.mubr.msk.f32.mxu1 %vm226_vm6, %v8398_v46  ;;  %v8386_v59 = vmul.f32 %v9544_v16, %v8372_v13 }
0x3979   :  { %10552 = vmatmul.mubr.msk.f32.gmra.mrb[182].mxu1 %vm226_vm6, %v8399_v19  ;;  %v8401_v26 = vadd.f32 %v9546_v31, %v8387_v17  ;;  %11556 = vmatprep.subr.bf16.mxu0 %v11555_v21 }
0x397a   :  { %v8400_v14 = vadd.f32 %v9546_v31, %v8386_v59  ;;  %11590 = vmatpush3.bf16.msra.mxu1 %v16643_v37  ;;  %11558 = vmatpush3.bf16.msra.mxu0 %v11555_v21 }
0x397b   :  { %11560 = vmatprep.subr.bf16.mxu0 %v11559_v57 }
0x397c   :  { %10554 = vmatprep.mubr.msk.f32.mxu1 %vm226_vm6, %v8400_v14 }
0x397d   :  { %10555 = vmatmul.mubr.msk.f32.gmra.mrb[184].mxu1 %vm226_vm6, %v8401_v26 }
0x397e   :  { %11562 = vmatpush3.bf16.msra.mxu0 %v11559_v57 }
0x397f   :  { %11564 = vmatprep.subr.bf16.mxu0 %v11563_v6 }
0x3982   :  { %11566 = vmatpush3.bf16.msra.mxu0 %v11563_v6 }
0x3983   :  { %11568 = vmatprep.subr.bf16.mxu0 %v11567_v41 }
0x3986   :  { %11570 = vmatpush3.bf16.msra.mxu0 %v11567_v41 }
0x3987   :  { %11572 = vmatprep.subr.bf16.mxu0 %v11571_v54 }
0x398a   :  { %11574 = vmatpush3.bf16.msra.mxu0 %v11571_v54 }
0x398b   :  { %11576 = vmatprep.subr.bf16.mxu0 %v11575_v18 }
0x398e   :  { %11578 = vmatpush3.bf16.msra.mxu0 %v11575_v18 }
0x398f   :  { %11580 = vmatprep.subr.bf16.mxu0 %v11579_v0 }
0x3992   :  { %11582 = vmatpush3.bf16.msra.mxu0 %v11579_v0 }
0x3a48   :  { %v10550_v5 = vpop.f32.mrb[180].mxu1 }
0x3a49   :  { %v8505_v4 = vadd.f32 %v10550_v5, %v9551_v52  ;;  %v8499_v48 = vpop.f32.mrb[181].mxu1 }
0x3a4a   :  { %v8500_v28 = vadd.f32 %v9551_v52, %v8499_v48 }
0x3a4b   :  { %v8535_v29 = vmul.f32 0.044715, %v8505_v4  ;;  %v8529_v41 = vmul.f32 0.5, %v8505_v4 }
0x3a4c   :  { %v8534_v34 = vmul.f32 0.044715, %v8500_v28  ;;  %v10553_v32 = vpop.f32.mrb[182].mxu1  ;;  %v8528_v42 = vmul.f32 0.5, %v8500_v28 }
0x3a4d   :  { %v8541_v49 = vmul.f32 %v8535_v29, %v8505_v4  ;;  %v8515_v24 = vadd.f32 %v10553_v32, %v9551_v52  ;;  %v8509_v12 = vpop.f32.mrb[183].mxu1 }
0x3a4e   :  { %v8540_v16 = vmul.f32 %v8534_v34, %v8500_v28  ;;  %v8510_v61 = vadd.f32 %v9551_v52, %v8509_v12  ;;  %v9575_v12 = vld [vmem:[%s16445_s5 + $0xe] ss:$0 sm:$0xff] }
0x3a4f   :  { %v8547_v10 = vmul.f32 %v8541_v49, %v8505_v4  ;;  %v8537_v58 = vmul.f32 0.044715, %v8515_v24  ;;  %v8531_v47 = vmul.f32 0.5, %v8515_v24 }
0x3a50   :  { %v8536_v31 = vmul.f32 0.044715, %v8510_v61  ;;  %v10556_v9 = vpop.f32.mrb[184].mxu1  ;;  %v8546_v33 = vmul.f32 %v8540_v16, %v8500_v28  ;;  %v8530_v18 = vmul.f32 0.5, %v8510_v61 }
0x3a51   :  { %v8553_v39 = vadd.f32 %v8547_v10, %v8505_v4  ;;  %v8543_v15 = vmul.f32 %v8537_v58, %v8515_v24  ;;  %v8525_v35 = vadd.f32 %v10556_v9, %v9551_v52  ;;  %v8519_v11 = vpop.f32.mrb[185].mxu1 }
0x3a52   :  { %v8542_v1 = vmul.f32 %v8536_v31, %v8510_v61  ;;  %v8520_v30 = vadd.f32 %v9551_v52, %v8519_v11  ;;  %v8552_v53 = vadd.f32 %v8546_v33, %v8500_v28 }
0x3a53   :  { %v8559_v23 = vmul.f32 0.7978846, %v8553_v39  ;;  %v8539_v40 = vmul.f32 0.044715, %v8525_v35  ;;  %v8549_v25 = vmul.f32 %v8543_v15, %v8515_v24  ;;  %v8533_v4 = vmul.f32 0.5, %v8525_v35 }
0x3a54   :  { %v8538_v51 = vmul.f32 0.044715, %v8520_v30  ;;  %v8558_v46 = vmul.f32 0.7978846, %v8552_v53  ;;  %v8548_v13 = vmul.f32 %v8542_v1, %v8510_v61  ;;  %v8532_v34 = vmul.f32 0.5, %v8520_v30 }
0x3a55   :  { %12303 = vtanh.f32 %v8559_v23  ;;  %v8545_v19 = vmul.f32 %v8539_v40, %v8525_v35  ;;  %v8555_v17 = vadd.f32 %v8549_v25, %v8515_v24 }
0x3a56   :  { %v8544_v37 = vmul.f32 %v8538_v51, %v8520_v30  ;;  %12305 = vtanh.f32 %v8558_v46  ;;  %v8554_v59 = vadd.f32 %v8548_v13, %v8510_v61 }
0x3a57   :  { %v8561_v14 = vmul.f32 0.7978846, %v8555_v17  ;;  %v8551_v26 = vmul.f32 %v8545_v19, %v8525_v35 }
0x3a58   :  { %v8560_v55 = vmul.f32 0.7978846, %v8554_v59  ;;  %v8550_v63 = vmul.f32 %v8544_v37, %v8520_v30 }
0x3a59   :  { %12307 = vtanh.f32 %v8561_v14  ;;  %v8557_v21 = vadd.f32 %v8551_v26, %v8525_v35 }
0x3a5a   :  { %12309 = vtanh.f32 %v8560_v55  ;;  %v8556_v45 = vadd.f32 %v8550_v63, %v8520_v30 }
0x3a5b   :  { %v8563_v60 = vmul.f32 0.7978846, %v8557_v21 }
0x3a5c   :  { %v8562_v57 = vmul.f32 0.7978846, %v8556_v45 }
0x3a5d   :  { %12311 = vtanh.f32 %v8563_v60 }
0x3a5e   :  { %12313 = vtanh.f32 %v8562_v57 }
0x3a5f   :  { %v12304_v38 = vpop.eup %12303 }
0x3a60   :  { %v12306_v36 = vpop.eup %12305  ;;  %v8571_v6 = vadd.f32 1.0, %v12304_v38 }
0x3a61   :  { %v8570_v50 = vadd.f32 1.0, %v12306_v36 }
0x3a62   :  { %v8577_v54 = vmul.f32 %v8571_v6, %v8529_v41 }
0x3a63   :  { %v12308_v7 = vpop.eup %12307  ;;  %v8576_v27 = vmul.f32 %v8570_v50, %v8528_v42 }
0x3a64   :  { %v12310_v22 = vpop.eup %12309  ;;  %v8573_v3 = vadd.f32 1.0, %v12308_v7 }
0x3a65   :  { %10589 = vmatprep.mubr.f32.mxu0 %v8576_v27  ;;  %v8572_v2 = vadd.f32 1.0, %v12310_v22 }
0x3a66   :  { %10590 = vmatmul.mubr.f32.vlgmr.msra.gmra.mrb[168].mxu0 %v8577_v54  ;;  %v8579_v48 = vmul.f32 %v8573_v3, %v8531_v47 }
0x3a67   :  { %v12312_v0 = vpop.eup %12311  ;;  %v8578_v52 = vmul.f32 %v8572_v2, %v8530_v18 }
0x3a68   :  { %v12314_v5 = vpop.eup %12313  ;;  %v8575_v29 = vadd.f32 1.0, %v12312_v0 }
0x3a69   :  { %10592 = vmatprep.mubr.f32.mxu0 %v8578_v52  ;;  %v8574_v28 = vadd.f32 1.0, %v12314_v5 }
0x3a6a   :  { %10593 = vmatmul.mubr.f32.gmra.mrb[170].mxu0 %v8579_v48  ;;  %v8581_v49 = vmul.f32 %v8575_v29, %v8533_v4 }
0x3a6b   :  { %v8580_v32 = vmul.f32 %v8574_v28, %v8532_v34 }
0x3a6d   :  { %10595 = vmatprep.mubr.f32.mxu0 %v8580_v32 }
0x3a6e   :  { %10596 = vmatmul.mubr.f32.gmra.mrb[172].mxu0 %v8581_v49 }
0x3b39   :  { %v10591_v16 = vpop.f32.mrb[168].mxu0 }
0x3b3a   :  { %v8679_v24 = vadd.f32 %v10591_v16, %v9575_v12  ;;  %v8673_v61 = vpop.f32.mrb[169].mxu0 }
0x3b3b   :  { %v8674_v10 = vadd.f32 %v9575_v12, %v8673_v61 }
0x3b3c   :  { %v8703_v58 = vadd.f32 %v8679_v24, %v16245_v20 }
0x3b3d   :  { %v8702_v31 = vadd.f32 %v8674_v10, %v16248_v43  ;;  %v10594_v9 = vpop.f32.mrb[170].mxu0 }
0x3b3e   :  { %v8689_v33 = vadd.f32 %v10594_v9, %v9575_v12  ;;  %v8683_v39 = vpop.f32.mrb[171].mxu0  ;;  %v8711_v15 = vsel %vm226_vm6, %v8703_v58, 0.0 }
0x3b3f   :  { %v8684_v35 = vadd.f32 %v9575_v12, %v8683_v39  ;;  %8712 = vadd.xlane.f32.xlu0 %v8711_v15  ;;  %v8708_v11 = vsel %vm226_vm6, %v8702_v31, 0.0  ;;  %v9577_v15 = vld [vmem:[%s16445_s5 + $0x1f] ss:$0 sm:$0xff] }
0x3b40   :  { %v8705_v1 = vadd.f32 %v8689_v33, %v16255_v56  ;;  %8709 = vadd.xlane.f32.xlu1 %v8708_v11 }
0x3b41   :  { %v8704_v30 = vadd.f32 %v8684_v35, %v16258_v44  ;;  %v10597_v53 = vpop.f32.mrb[172].mxu0 }
0x3b42   :  { %v8699_v23 = vadd.f32 %v10597_v53, %v9575_v12  ;;  %v8693_v40 = vpop.f32.mrb[173].mxu0  ;;  %v8717_v20 = vsel %vm226_vm6, %v8705_v1, 0.0 }
0x3b43   :  { %v8694_v43 = vadd.f32 %v9575_v12, %v8693_v40  ;;  %8718 = vadd.xlane.f32.xlu0 %v8717_v20  ;;  %v8714_v25 = vsel %vm226_vm6, %v8704_v30, 0.0 }
0x3b44   :  { %v8707_v51 = vadd.f32 %v8699_v23, %v16265_v62  ;;  %8715 = vadd.xlane.f32.xlu1 %v8714_v25 }
0x3b45   :  { %v8706_v46 = vadd.f32 %v8694_v43, %v16268_v8 }
0x3b46   :  { %v8723_v13 = vsel %vm226_vm6, %v8707_v51, 0.0 }
0x3b47   :  { %8724 = vadd.xlane.f32.xlu0 %v8723_v13  ;;  %v8720_v56 = vsel %vm226_vm6, %v8706_v46, 0.0 }
0x3b48   :  { %8721 = vadd.xlane.f32.xlu1 %v8720_v56 }
0x3bcc   :  { %v8713_v44 = vpop.xlane.xlu0 %8712 }
0x3bcd   :  { %v8727_v19 = vmul.f32 0.03125, %v8713_v44  ;;  %v8710_v17 = vpop.xlane.xlu1 %8709 }
0x3bce   :  { %v8726_v37 = vmul.f32 0.03125, %v8710_v17 }
0x3bcf   :  { %v8733_v59 = vsub.f32 %v8703_v58, %v8727_v19 }
0x3bd0   :  { %v8732_v14 = vsub.f32 %v8702_v31, %v8726_v37  ;;  %v8719_v26 = vpop.xlane.xlu0 %8718 }
0x3bd1   :  { %v8729_v55 = vmul.f32 0.03125, %v8719_v26  ;;  %v8716_v63 = vpop.xlane.xlu1 %8715  ;;  %v8739_v21 = vmul.f32 %v8733_v59, %v8733_v59 }
0x3bd2   :  { %v8728_v62 = vmul.f32 0.03125, %v8716_v63  ;;  %v8738_v45 = vmul.f32 %v8732_v14, %v8732_v14 }
0x3bd3   :  { %v8735_v60 = vsub.f32 %v8705_v1, %v8729_v55  ;;  %v8747_v8 = vsel %vm226_vm6, %v8739_v21, 0.0 }
0x3bd4   :  { %v8734_v57 = vsub.f32 %v8704_v30, %v8728_v62  ;;  %8748 = vadd.xlane.f32.xlu0 %v8747_v8  ;;  %v8725_v38 = vpop.xlane.xlu0 %8724  ;;  %v8744_v36 = vsel %vm226_vm6, %v8738_v45, 0.0  ;;  %v9579_v30 = vld [vmem:[%s16445_s5 + $0x2e] ss:$0 sm:$0xff]  ;;  %s12568_s5 = smov [#allocation7]  }
0x3bd5   :  { %v8731_v6 = vmul.f32 0.03125, %v8725_v38  ;;  %8745 = vadd.xlane.f32.xlu1 %v8744_v36  ;;  %v8722_v42 = vpop.xlane.xlu1 %8721  ;;  %v8741_v50 = vmul.f32 %v8735_v60, %v8735_v60  ;;  %s8938_s7 = sshll.u32 %s12568_s5, 4  ;;  %s8939_s7 = int_to_ptr.vmem [resolvable:$true] %s8938_s7 }
0x3bd6   :  { %v8730_v41 = vmul.f32 0.03125, %v8722_v42  ;;  %v8740_v7 = vmul.f32 %v8734_v57, %v8734_v57  ;;  %s12527_s24 = scalar_lea.vmem %s8939_s7, 768  ;;  %p12532_p3 = scmp.lt.s32.totalorder %s8939_s7, %s8939_s7 }
0x3bd7   :  { %v8737_v27 = vsub.f32 %v8707_v51, %v8731_v6  ;;  %v8753_v22 = vsel %vm226_vm6, %v8741_v50, 0.0  ;;  %p12528_p2 = scmp.ne.s32.totalorder %s8939_s7, %s12527_s24  ;;  %p12533_p4 = scmp.lt.s32.totalorder %s12527_s24, %s12527_s24 }
0x3bd8   :  { %v8736_v54 = vsub.f32 %v8706_v46, %v8730_v41  ;;  %8754 = vadd.xlane.f32.xlu0 %v8753_v22  ;;  %v8750_v3 = vsel %vm226_vm6, %v8740_v7, 0.0 }
0x3bd9   :  { %8751 = vadd.xlane.f32.xlu1 %v8750_v3  ;;  %v8743_v18 = vmul.f32 %v8737_v27, %v8737_v27  ;;  %p12534_p5 = por %p12533_p4, %p12532_p3 }
0x3bda   :  { %v8742_v2 = vmul.f32 %v8736_v54, %v8736_v54 }
0x3bdb   :  { %v8759_v47 = vsel %vm226_vm6, %v8743_v18, 0.0  ;;  %p12535_p6 = pnand %p12534_p5, %p12528_p2 }
0x3bdc   :  { %8760 = vadd.xlane.f32.xlu0 %v8759_v47  ;;  %v8756_v0 = vsel %vm226_vm6, %v8742_v2, 0.0 }
0x3bdd   :  { %8757 = vadd.xlane.f32.xlu1 %v8756_v0 }
0x3c61   :  { %v8749_v52 = vpop.xlane.xlu0 %8748 }
0x3c62   :  { %v8763_v5 = vmul.f32 0.03125, %v8749_v52  ;;  %v8746_v48 = vpop.xlane.xlu1 %8745 }
0x3c63   :  { %v8762_v29 = vmul.f32 0.03125, %v8746_v48 }
0x3c64   :  { %v8769_v34 = vadd.f32 1e-05, %v8763_v5 }
0x3c65   :  { %v8768_v28 = vadd.f32 1e-05, %v8762_v29  ;;  %v8755_v4 = vpop.xlane.xlu0 %8754 }
0x3c66   :  { %12315 = vrsqrt.f32 %v8769_v34  ;;  %v8765_v32 = vmul.f32 0.03125, %v8755_v4  ;;  %v8752_v49 = vpop.xlane.xlu1 %8751 }
0x3c67   :  { %12317 = vrsqrt.f32 %v8768_v28  ;;  %v8764_v12 = vmul.f32 0.03125, %v8752_v49 }
0x3c68   :  { %v8771_v16 = vadd.f32 1e-05, %v8765_v32 }
0x3c69   :  { %v8770_v24 = vadd.f32 1e-05, %v8764_v12  ;;  %v8761_v61 = vpop.xlane.xlu0 %8760 }
0x3c6a   :  { %12319 = vrsqrt.f32 %v8771_v16  ;;  %v8767_v10 = vmul.f32 0.03125, %v8761_v61  ;;  %v8758_v58 = vpop.xlane.xlu1 %8757 }
0x3c6b   :  { %12321 = vrsqrt.f32 %v8770_v24  ;;  %v8766_v31 = vmul.f32 0.03125, %v8758_v58 }
0x3c6c   :  { %v8773_v9 = vadd.f32 1e-05, %v8767_v10 }
0x3c6d   :  { %v8772_v33 = vadd.f32 1e-05, %v8766_v31 }
0x3c6e   :  { %12323 = vrsqrt.f32 %v8773_v9 }
0x3c6f   :  { %12325 = vrsqrt.f32 %v8772_v33 }
0x3c70   :  { %v12316_v39 = vpop.eup %12315 }
0x3c71   :  { %v12318_v35 = vpop.eup %12317  ;;  %v8781_v11 = vmul.f32 %v12316_v39, %v8733_v59 }
0x3c72   :  { %v8780_v1 = vmul.f32 %v12318_v35, %v8732_v14 }
0x3c73   :  { %v8795_v53 = vmul.f32 %v9577_v15, %v8781_v11 }
0x3c74   :  { %v12320_v23 = vpop.eup %12319  ;;  %v8794_v40 = vmul.f32 %v9577_v15, %v8780_v1 }
0x3c75   :  { %v12322_v20 = vpop.eup %12321  ;;  %v8783_v43 = vmul.f32 %v12320_v23, %v8735_v60  ;;  %v8809_v46 = vadd.f32 %v9579_v30, %v8795_v53 }
0x3c76   :  { %v8808_v25 = vadd.f32 %v9579_v30, %v8794_v40  ;;  %v8782_v51 = vmul.f32 %v12322_v20, %v8734_v57 }
0x3c77   :  { %v8797_v13 = vmul.f32 %v9577_v15, %v8783_v43 }
0x3c78   :  { %v12324_v56 = vpop.eup %12323  ;;  %10606 = vmatprep.mubr.msk.f32.mxu1 %vm226_vm6, %v8808_v25  ;;  %v8796_v44 = vmul.f32 %v9577_v15, %v8782_v51 }
0x3c79   :  { %v12326_v19 = vpop.eup %12325  ;;  %10607 = vmatmul.mubr.msk.f32.vlgmr.msra.gmra.mrb[186].mxu1 %vm226_vm6, %v8809_v46  ;;  %v8785_v17 = vmul.f32 %v12324_v56, %v8737_v27  ;;  %v8811_v14 = vadd.f32 %v9579_v30, %v8797_v13 }
0x3c7a   :  { %v8810_v37 = vadd.f32 %v9579_v30, %v8796_v44  ;;  %v8784_v59 = vmul.f32 %v12326_v19, %v8736_v54 }
0x3c7b   :  { %v8799_v26 = vmul.f32 %v9577_v15, %v8785_v17 }
0x3c7c   :  { %10609 = vmatprep.mubr.msk.f32.mxu1 %vm226_vm6, %v8810_v37  ;;  %v8798_v55 = vmul.f32 %v9577_v15, %v8784_v59 }
0x3c7d   :  { %10610 = vmatmul.mubr.msk.f32.gmra.mrb[188].mxu1 %vm226_vm6, %v8811_v14  ;;  %v8813_v21 = vadd.f32 %v9579_v30, %v8799_v26 }
0x3c7e   :  { %v8812_v63 = vadd.f32 %v9579_v30, %v8798_v55 }
0x3c80   :  { %10612 = vmatprep.mubr.msk.f32.mxu1 %vm226_vm6, %v8812_v63 }
0x3c81   :  { %10613 = vmatmul.mubr.msk.f32.gmra.mrb[190].mxu1 %vm226_vm6, %v8813_v21 }
0x3d4c   :  { %v10608_v62 = vpop.f32.mrb[186].mxu1 }
0x3d4d   :  { %8928 = vst [vmem:[#allocation7 + $0x8] sm:$0xff] %v10608_v62  ;;  %v8898_v45 = vpop.f32.mrb[187].mxu1 }
0x3d4e   :  { %8927 = vst [vmem:[#allocation7] sm:$0xff] %v8898_v45 }
0x3d50   :  { %v10611_v60 = vpop.f32.mrb[188].mxu1 }
0x3d51   :  { %8930 = vst [vmem:[#allocation7 + $0x18] sm:$0xff] %v10611_v60  ;;  %v8908_v8 = vpop.f32.mrb[189].mxu1 }
0x3d52   :  { %8929 = vst [vmem:[#allocation7 + $0x10] sm:$0xff] %v8908_v8 }
0x3d54   :  { %v10614_v57 = vpop.f32.mrb[190].mxu1 }
0x3d55   :  { %8932 = vst [vmem:[#allocation7 + $0x28] sm:$0xff] %v10614_v57  ;;  %v8918_v38 = vpop.f32.mrb[191].mxu1 }
0x3d56   :  { %8931 = vst [vmem:[#allocation7 + $0x20] sm:$0xff] %v8918_v38 }
0x3d57   :  { %12538 = shalt.err (!%p12535_p6)
}
0x3d58   :  { %s12539_s23 = scalar_lea.hbm %s16450_s10, 768 }
0x3d59   :  { %p12540_p7 = scmp.ne.s32.totalorder %s16450_s10, %s12539_s23  ;;  %p12543_p8 = scmp.lt.u32.totalorder %s12539_s23, %s16450_s10 }
0x3d5b   :  { %p12545_p9 = pnand %p12543_p8, %p12540_p7 }
0x3d5d   :  { %12548 = shalt.err (!%p12545_p9)
}
0x3d5e   :  { %8944 = dma.vmem_to_hbm [thread:$0]  %s8939_s7, 768, %s16450_s10, [#allocation4], %s12559_s4, %s12559_s4, %s12560_s14  }
0x3d5f   :  { %12553 = dma.done.wait [#allocation4], 768  }
0x3d60   :  { %12554 = vsyncadd [#allocation4], 4294966528 }
0x3d61   :  { %8948 = vsyncpa [#allocation3], 1 }
0x3d62   :  { %8949 = vsyncpa [#allocation6], 1 }
0x3d63   :  { %8950 = vsyncpa [#allocation4], 1 }

</bundles_post_ra>
